<compile_context>
chip_gen: v5e
topology: v5e:2x2
jax: 0.10.0
libtpu: 0.0.40
codegen_flags: <defaults>
</compile_context>

<pallas_src>
import jax
import jax.numpy as jnp
from jax import lax
from jax.experimental import pallas as pl
from jax.experimental.pallas import tpu as pltpu

HIDDEN = 32       # hidden_dim (small test size; module default is 256)
LAYERS = 4        # num_layers
INPUT_DIM = 1     # input_dim
OUTPUT_DIM = 1    # output_dim


def _pick_batch_block(batch):
    """Largest batch block the grid allows (Bb=B for small batches).

    On v7x with large batches prefer Bb = B // 2 so the 'parallel' grid axis
    splits across the two TensorCores; cap at 256 so the (T*Bb, 4H) f32 gate
    scratch stays comfortably inside VMEM.
    """
    if batch <= 256:
        return batch
    for bb in range(256, 7, -8):
        if batch % bb == 0:
            return bb
    return 8


def _lstm_kernel(g0_ref, wih_ref, whh_ref, b_ref, wfc_ref, bfc_ref,
                 out_ref, seq_buf, gates_buf):
    # g0_ref:    (T, Bb, 4H) f32   layer-0 gates (x @ W_ih0 + b0), time-major
    # wih_ref:   (L-1, H, 4H) bf16 input->gates weights for layers 1..L-1
    # whh_ref:   (L, H, 4H)  bf16  hidden->gates weights (all layers)
    # b_ref:     (L-1, 1, 4H) f32  combined bias (b_ih + b_hh) for layers 1..L-1
    # wfc_ref:   (H, O)  bf16      final linear weight (pre-transposed)
    # bfc_ref:   (1, O)  f32       final linear bias
    # seq_buf:   (T*Bb, H)  bf16   layer-output sequence scratch (flat, time-major)
    # gates_buf: (T*Bb, 4H) f32    precomputed x @ W_ih + b for the current layer
    T, Bb, G = g0_ref.shape
    H = G // 4
    L = whh_ref.shape[0]

    h = None
    for l in range(L):                       # static unroll over layers
        if l == 0:
            # Layer-0 gates came precomputed from the wrapper.
            gate_at = lambda t: g0_ref[t]
        else:
            # One big MXU matmul for the whole sequence: (T*Bb, H) @ (H, 4H) + b.
            pre = (jnp.dot(seq_buf[...], wih_ref[l - 1],
                           preferred_element_type=jnp.float32)
                   + b_ref[l - 1])
            gates_buf[...] = pre
            gate_at = lambda t: gates_buf[
                pl.ds(pl.multiple_of(t * Bb, Bb), Bb), :]

        whh_view = whh_ref.at[l]             # ref view: no load, no hoisted value
        write_seq = l < L - 1                # last layer's per-step outputs unused

        def step(t, carry):
            h, c = carry
            # Only the recurrent matmul remains on the serial critical path.
            gates = gate_at(t) + jnp.dot(
                h.astype(jnp.bfloat16), whh_view[...],
                preferred_element_type=jnp.float32)
            # Full vreg-width nonlinearities, gates extracted with lane slices.
            sg = jax.nn.sigmoid(gates)
            th = jnp.tanh(gates)
            i = sg[:, 0 * H:1 * H]
            f = sg[:, 1 * H:2 * H]
            g = th[:, 2 * H:3 * H]
            o = sg[:, 3 * H:4 * H]
            c = f * c + i * g
            h = o * jnp.tanh(c)
            if write_seq:                    # static Python condition
                seq_buf[pl.ds(pl.multiple_of(t * Bb, Bb), Bb), :] = (
                    h.astype(seq_buf.dtype))
            return h, c

        h, _ = lax.fori_loop(
            0, T, step,
            (jnp.zeros((Bb, H), jnp.float32), jnp.zeros((Bb, H), jnp.float32)),
            unroll=True)                     # T is small: fully unrolled

    # fc(out[:, -1, :]) == fc(last layer's hidden state at the last timestep)
    out_ref[...] = (jnp.dot(h.astype(jnp.bfloat16), wfc_ref[...],
                            preferred_element_type=jnp.float32)
                    + bfc_ref[...])


def lstm_forward(x, params):
    """x: (B, T, INPUT_DIM) float32 -> (B, OUTPUT_DIM) float32."""
    w_ih0, b0, w_ih, w_hh, b, w_fc, b_fc = params
    B, T, _ = x.shape
    H, L, O = HIDDEN, LAYERS, OUTPUT_DIM
    Bb = _pick_batch_block(B)
    assert B % Bb == 0 and Bb % 8 == 0, "batch block must be 8-aligned"

    # Glue (plain JAX): precompute layer-0 gates and go time-major.
    # (No zero-padding of x to H; the F-dim contraction is tiny and off the
    # kernel's serial critical path.)
    g0 = jnp.einsum('btf,fg->btg', x, w_ih0) + b0          # (B, T, 4H) f32
    g0 = jnp.transpose(g0, (1, 0, 2))                      # (T, B, 4H)

    return pl.pallas_call(
        _lstm_kernel,
        out_shape=jax.ShapeDtypeStruct((B, O), jnp.float32),
        grid_spec=pltpu.PrefetchScalarGridSpec(
            num_scalar_prefetch=0,
            grid=(B // Bb,),                                     # batch blocks
            in_specs=[
                pl.BlockSpec((T, Bb, 4 * H), lambda i: (0, i, 0)),   # layer-0 gates
                pl.BlockSpec((L - 1, H, 4 * H), lambda i: (0, 0, 0)),  # W_ih (1..L-1)
                pl.BlockSpec((L, H, 4 * H), lambda i: (0, 0, 0)),      # W_hh
                pl.BlockSpec((L - 1, 1, 4 * H), lambda i: (0, 0, 0)),  # bias (1..L-1)
                pl.BlockSpec((H, O), lambda i: (0, 0)),                # W_fc
                pl.BlockSpec((1, O), lambda i: (0, 0)),                # b_fc
            ],
            out_specs=pl.BlockSpec((Bb, O), lambda i: (i, 0)),
            scratch_shapes=[
                pltpu.VMEM((T * Bb, H), jnp.bfloat16),       # layer output seq (flat)
                pltpu.VMEM((T * Bb, 4 * H), jnp.float32),    # precomputed gates (flat)
            ],
        ),
        compiler_params=pltpu.CompilerParams(
            dimension_semantics=("parallel",),   # batch blocks are independent
        ),
    )(g0, w_ih, w_hh, b, w_fc, b_fc)


def init_params(key):
    """Deterministic init matching PyTorch's U(-1/sqrt(H), 1/sqrt(H)) scheme."""
    H, L, F, O = HIDDEN, LAYERS, INPUT_DIM, OUTPUT_DIM
    k = 1.0 / (H ** 0.5)
    keys = jax.random.split(key, 4 * L + 2)
    idx = 0
    wih_l, whh_l, b_l = [], [], []
    w_ih0 = None
    b0 = None
    for l in range(L):
        in_dim = F if l == 0 else H
        wih = jax.random.uniform(keys[idx], (4 * H, in_dim), jnp.float32, -k, k); idx += 1
        whh = jax.random.uniform(keys[idx], (4 * H, H), jnp.float32, -k, k); idx += 1
        bih = jax.random.uniform(keys[idx], (4 * H,), jnp.float32, -k, k); idx += 1
        bhh = jax.random.uniform(keys[idx], (4 * H,), jnp.float32, -k, k); idx += 1
        if l == 0:
            w_ih0 = wih.T                                   # (F, 4H)  f32 (wrapper)
            b0 = bih + bhh                                  # (4H,)    f32
        else:
            wih_l.append(wih.T.astype(jnp.bfloat16))        # (H, 4H)  bf16
            b_l.append((bih + bhh)[None, :])                # (1, 4H)  f32
        whh_l.append(whh.T.astype(jnp.bfloat16))            # (H, 4H)  bf16
    wfc = jax.random.uniform(keys[idx], (O, H), jnp.float32, -k, k); idx += 1
    bfc = jax.random.uniform(keys[idx], (O,), jnp.float32, -k, k)
    return (w_ih0, b0,
            jnp.stack(wih_l), jnp.stack(whh_l), jnp.stack(b_l),
            wfc.T.astype(jnp.bfloat16), bfc[None, :])


def lstm_reference(x, params):
    """Pure-JAX reference mirroring the kernel's math (bf16 matmul inputs,
    f32 accumulation and f32 gate math) for a tight correctness check."""
    w_ih0, b0, w_ih, w_hh, b, w_fc, b_fc = params
    B, T, _ = x.shape
    H = HIDDEN
    pre = jnp.einsum('btf,fg->btg', x, w_ih0) + b0          # (B, T, 4H) f32
    seq = None
    h = jnp.zeros((B, H), jnp.float32)
    for l in range(LAYERS):
        if l > 0:
            pre = (jnp.einsum('bth,hg->btg', seq.astype(jnp.bfloat16), w_ih[l - 1],
                              preferred_element_type=jnp.float32)
                   + b[l - 1])
        h = jnp.zeros((B, H), jnp.float32)
        c = jnp.zeros((B, H), jnp.float32)
        outs = []
        for t in range(T):
            gates = pre[:, t, :] + jnp.dot(h.astype(jnp.bfloat16), w_hh[l],
                                           preferred_element_type=jnp.float32)
            sg = jax.nn.sigmoid(gates)
            th = jnp.tanh(gates)
            i = sg[:, :H]
            f = sg[:, H:2 * H]
            g = th[:, 2 * H:3 * H]
            o = sg[:, 3 * H:]
            c = f * c + i * g
            h = o * jnp.tanh(c)
            outs.append(h)
        seq = jnp.stack(outs, axis=1)
    return (jnp.dot(h.astype(jnp.bfloat16), w_fc,
                    preferred_element_type=jnp.float32) + b_fc)


if __name__ == "__main__":
    B, T = 16, 8
    key = jax.random.PRNGKey(0)
    k_param, k_x = jax.random.split(key)
    params = init_params(k_param)
    x = jax.random.normal(k_x, (B, T, INPUT_DIM), jnp.float32)

    out = jax.block_until_ready(lstm_forward(x, params))

    ref = lstm_reference(x, params)
    assert out.shape == (B, OUTPUT_DIM)
    assert jnp.allclose(out, ref, atol=1e-4, rtol=1e-4), (out, ref)
    print("KERNEL_OK")
</pallas_src>

<mosaic_0001>
module attributes {stable_mosaic.version = 11 : i64} {
  func.func @_lstm_kernel(%arg0: i32, %arg1: memref<8x16x128xf32, #tpu.memory_space<vmem>>, %arg2: memref<3x32x128xbf16, #tpu.memory_space<vmem>>, %arg3: memref<4x32x128xbf16, #tpu.memory_space<vmem>>, %arg4: memref<3x1x128xf32, #tpu.memory_space<vmem>>, %arg5: memref<32x1xbf16, #tpu.memory_space<vmem>>, %arg6: memref<1x1xf32, #tpu.memory_space<vmem>>, %arg7: memref<16x1xf32, #tpu.memory_space<vmem>>, %arg8: memref<128x32xbf16, #tpu.memory_space<vmem>>, %arg9: memref<128x128xf32, #tpu.memory_space<vmem>>) attributes {dimension_semantics = [#tpu.dimension_semantics<parallel>], iteration_bounds = array<i64: 1>, scalar_prefetch = 0 : i64, scratch_operands = 2 : i64, tpu.core_type = #tpu.core_type<tc>, window_params = [{transform_indices = @transform_0, window_bounds = array<i64: 8, 16, 128>}, {pipeline_mode = #tpu.pipeline_mode<synchronous>, transform_indices = @transform_1, window_bounds = array<i64: 3, 32, 128>}, {pipeline_mode = #tpu.pipeline_mode<synchronous>, transform_indices = @transform_2, window_bounds = array<i64: 4, 32, 128>}, {pipeline_mode = #tpu.pipeline_mode<synchronous>, transform_indices = @transform_3, window_bounds = array<i64: 3, 1, 128>}, {pipeline_mode = #tpu.pipeline_mode<synchronous>, transform_indices = @transform_4, window_bounds = array<i64: 32, 1>}, {pipeline_mode = #tpu.pipeline_mode<synchronous>, transform_indices = @transform_5, window_bounds = array<i64: 1, 1>}, {transform_indices = @transform_6, window_bounds = array<i64: 16, 1>}]} {
    %cst = arith.constant 0.000000e+00 : f32
    %0 = vector.broadcast %cst : f32 to vector<16x32xf32>
    %cst_0 = arith.constant 0.000000e+00 : f32
    %1 = vector.broadcast %cst_0 : f32 to vector<16x32xf32>
    %c0_i32 = arith.constant 0 : i32
    %c0_i32_1 = arith.constant 0 : i32
    %2 = arith.index_cast %c0_i32_1 : i32 to index
    %c0 = arith.constant 0 : index
    %c0_2 = arith.constant 0 : index
    %3 = vector.load %arg1[%2, %c0, %c0_2] : memref<8x16x128xf32, #tpu.memory_space<vmem>>, vector<1x16x128xf32>
    %4 = vector.shape_cast %3 : vector<1x16x128xf32> to vector<16x128xf32>
    %5 = arith.truncf %0 : vector<16x32xf32> to vector<16x32xbf16>
    %6 = arith.index_cast %c0_i32 : i32 to index
    %c0_3 = arith.constant 0 : index
    %c0_4 = arith.constant 0 : index
    %7 = vector.load %arg3[%6, %c0_3, %c0_4] : memref<4x32x128xbf16, #tpu.memory_space<vmem>>, vector<1x32x128xbf16>
    %8 = vector.shape_cast %7 : vector<1x32x128xbf16> to vector<32x128xbf16>
    %cst_5 = arith.constant dense<0.000000e+00> : vector<16x128xf32>
    %9 = tpu.matmul %5, %8, %cst_5 {dimension_numbers = #tpu.dot_dimension_numbers<[1], [0], [0], [1], [0, 0, 1, 1], [], []>} : vector<16x32xbf16>, vector<32x128xbf16>, vector<16x128xf32> -> vector<16x128xf32>
    %10 = arith.addf %4, %9 : vector<16x128xf32>
    %11 = arith.negf %10 : vector<16x128xf32>
    %12 = math.exp %11 : vector<16x128xf32>
    %cst_6 = arith.constant 1.000000e+00 : f32
    %13 = vector.broadcast %cst_6 : f32 to vector<16x128xf32>
    %14 = arith.addf %13, %12 : vector<16x128xf32>
    %15 = arith.divf %13, %14 : vector<16x128xf32>
    %16 = math.tanh %10 : vector<16x128xf32>
    %17 = vector.extract_strided_slice %15 {offsets = [0, 0], sizes = [16, 32], strides = [1, 1]} : vector<16x128xf32> to vector<16x32xf32>
    %18 = vector.extract_strided_slice %15 {offsets = [0, 32], sizes = [16, 32], strides = [1, 1]} : vector<16x128xf32> to vector<16x32xf32>
    %19 = vector.extract_strided_slice %16 {offsets = [0, 64], sizes = [16, 32], strides = [1, 1]} : vector<16x128xf32> to vector<16x32xf32>
    %20 = vector.extract_strided_slice %15 {offsets = [0, 96], sizes = [16, 32], strides = [1, 1]} : vector<16x128xf32> to vector<16x32xf32>
    %21 = arith.mulf %18, %1 : vector<16x32xf32>
    %22 = arith.mulf %17, %19 : vector<16x32xf32>
    %23 = arith.addf %21, %22 : vector<16x32xf32>
    %24 = math.tanh %23 : vector<16x32xf32>
    %25 = arith.mulf %20, %24 : vector<16x32xf32>
    %26 = arith.truncf %25 : vector<16x32xf32> to vector<16x32xbf16>
    %c16_i32 = arith.constant 16 : i32
    %27 = arith.muli %c0_i32_1, %c16_i32 : i32
    %28 = tpu.assume_multiple %27, 16 : i32
    %29 = arith.index_cast %28 : i32 to index
    %c0_7 = arith.constant 0 : index
    %30 = vector.load %arg8[%29, %c0_7] : memref<128x32xbf16, #tpu.memory_space<vmem>>, vector<16x32xbf16>
    tpu.vector_store %arg8[%29, %c0_7], %26 {strides = array<i32>} : memref<128x32xbf16, #tpu.memory_space<vmem>>, vector<16x32xbf16>,
    %c1_i32 = arith.constant 1 : i32
    %31 = arith.index_cast %c1_i32 : i32 to index
    %c0_8 = arith.constant 0 : index
    %c0_9 = arith.constant 0 : index
    %32 = vector.load %arg1[%31, %c0_8, %c0_9] : memref<8x16x128xf32, #tpu.memory_space<vmem>>, vector<1x16x128xf32>
    %33 = vector.shape_cast %32 : vector<1x16x128xf32> to vector<16x128xf32>
    %34 = arith.truncf %25 : vector<16x32xf32> to vector<16x32xbf16>
    %35 = arith.index_cast %c0_i32 : i32 to index
    %c0_10 = arith.constant 0 : index
    %c0_11 = arith.constant 0 : index
    %36 = vector.load %arg3[%35, %c0_10, %c0_11] : memref<4x32x128xbf16, #tpu.memory_space<vmem>>, vector<1x32x128xbf16>
    %37 = vector.shape_cast %36 : vector<1x32x128xbf16> to vector<32x128xbf16>
    %cst_12 = arith.constant dense<0.000000e+00> : vector<16x128xf32>
    %38 = tpu.matmul %34, %37, %cst_12 {dimension_numbers = #tpu.dot_dimension_numbers<[1], [0], [0], [1], [0, 0, 1, 1], [], []>} : vector<16x32xbf16>, vector<32x128xbf16>, vector<16x128xf32> -> vector<16x128xf32>
    %39 = arith.addf %33, %38 : vector<16x128xf32>
    %40 = arith.negf %39 : vector<16x128xf32>
    %41 = math.exp %40 : vector<16x128xf32>
    %cst_13 = arith.constant 1.000000e+00 : f32
    %42 = vector.broadcast %cst_13 : f32 to vector<16x128xf32>
    %43 = arith.addf %42, %41 : vector<16x128xf32>
    %44 = arith.divf %42, %43 : vector<16x128xf32>
    %45 = math.tanh %39 : vector<16x128xf32>
    %46 = vector.extract_strided_slice %44 {offsets = [0, 0], sizes = [16, 32], strides = [1, 1]} : vector<16x128xf32> to vector<16x32xf32>
    %47 = vector.extract_strided_slice %44 {offsets = [0, 32], sizes = [16, 32], strides = [1, 1]} : vector<16x128xf32> to vector<16x32xf32>
    %48 = vector.extract_strided_slice %45 {offsets = [0, 64], sizes = [16, 32], strides = [1, 1]} : vector<16x128xf32> to vector<16x32xf32>
    %49 = vector.extract_strided_slice %44 {offsets = [0, 96], sizes = [16, 32], strides = [1, 1]} : vector<16x128xf32> to vector<16x32xf32>
    %50 = arith.mulf %47, %23 : vector<16x32xf32>
    %51 = arith.mulf %46, %48 : vector<16x32xf32>
    %52 = arith.addf %50, %51 : vector<16x32xf32>
    %53 = math.tanh %52 : vector<16x32xf32>
    %54 = arith.mulf %49, %53 : vector<16x32xf32>
    %55 = arith.truncf %54 : vector<16x32xf32> to vector<16x32xbf16>
    %c16_i32_14 = arith.constant 16 : i32
    %56 = arith.muli %c1_i32, %c16_i32_14 : i32
    %57 = tpu.assume_multiple %56, 16 : i32
    %58 = arith.index_cast %57 : i32 to index
    %c0_15 = arith.constant 0 : index
    %59 = vector.load %arg8[%58, %c0_15] : memref<128x32xbf16, #tpu.memory_space<vmem>>, vector<16x32xbf16>
    tpu.vector_store %arg8[%58, %c0_15], %55 {strides = array<i32>} : memref<128x32xbf16, #tpu.memory_space<vmem>>, vector<16x32xbf16>,
    %c2_i32 = arith.constant 2 : i32
    %60 = arith.index_cast %c2_i32 : i32 to index
    %c0_16 = arith.constant 0 : index
    %c0_17 = arith.constant 0 : index
    %61 = vector.load %arg1[%60, %c0_16, %c0_17] : memref<8x16x128xf32, #tpu.memory_space<vmem>>, vector<1x16x128xf32>
    %62 = vector.shape_cast %61 : vector<1x16x128xf32> to vector<16x128xf32>
    %63 = arith.truncf %54 : vector<16x32xf32> to vector<16x32xbf16>
    %64 = arith.index_cast %c0_i32 : i32 to index
    %c0_18 = arith.constant 0 : index
    %c0_19 = arith.constant 0 : index
    %65 = vector.load %arg3[%64, %c0_18, %c0_19] : memref<4x32x128xbf16, #tpu.memory_space<vmem>>, vector<1x32x128xbf16>
    %66 = vector.shape_cast %65 : vector<1x32x128xbf16> to vector<32x128xbf16>
    %cst_20 = arith.constant dense<0.000000e+00> : vector<16x128xf32>
    %67 = tpu.matmul %63, %66, %cst_20 {dimension_numbers = #tpu.dot_dimension_numbers<[1], [0], [0], [1], [0, 0, 1, 1], [], []>} : vector<16x32xbf16>, vector<32x128xbf16>, vector<16x128xf32> -> vector<16x128xf32>
    %68 = arith.addf %62, %67 : vector<16x128xf32>
    %69 = arith.negf %68 : vector<16x128xf32>
    %70 = math.exp %69 : vector<16x128xf32>
    %cst_21 = arith.constant 1.000000e+00 : f32
    %71 = vector.broadcast %cst_21 : f32 to vector<16x128xf32>
    %72 = arith.addf %71, %70 : vector<16x128xf32>
    %73 = arith.divf %71, %72 : vector<16x128xf32>
    %74 = math.tanh %68 : vector<16x128xf32>
    %75 = vector.extract_strided_slice %73 {offsets = [0, 0], sizes = [16, 32], strides = [1, 1]} : vector<16x128xf32> to vector<16x32xf32>
    %76 = vector.extract_strided_slice %73 {offsets = [0, 32], sizes = [16, 32], strides = [1, 1]} : vector<16x128xf32> to vector<16x32xf32>
    %77 = vector.extract_strided_slice %74 {offsets = [0, 64], sizes = [16, 32], strides = [1, 1]} : vector<16x128xf32> to vector<16x32xf32>
    %78 = vector.extract_strided_slice %73 {offsets = [0, 96], sizes = [16, 32], strides = [1, 1]} : vector<16x128xf32> to vector<16x32xf32>
    %79 = arith.mulf %76, %52 : vector<16x32xf32>
    %80 = arith.mulf %75, %77 : vector<16x32xf32>
    %81 = arith.addf %79, %80 : vector<16x32xf32>
    %82 = math.tanh %81 : vector<16x32xf32>
    %83 = arith.mulf %78, %82 : vector<16x32xf32>
    %84 = arith.truncf %83 : vector<16x32xf32> to vector<16x32xbf16>
    %c16_i32_22 = arith.constant 16 : i32
    %85 = arith.muli %c2_i32, %c16_i32_22 : i32
    %86 = tpu.assume_multiple %85, 16 : i32
    %87 = arith.index_cast %86 : i32 to index
    %c0_23 = arith.constant 0 : index
    %88 = vector.load %arg8[%87, %c0_23] : memref<128x32xbf16, #tpu.memory_space<vmem>>, vector<16x32xbf16>
    tpu.vector_store %arg8[%87, %c0_23], %84 {strides = array<i32>} : memref<128x32xbf16, #tpu.memory_space<vmem>>, vector<16x32xbf16>,
    %c3_i32 = arith.constant 3 : i32
    %89 = arith.index_cast %c3_i32 : i32 to index
    %c0_24 = arith.constant 0 : index
    %c0_25 = arith.constant 0 : index
    %90 = vector.load %arg1[%89, %c0_24, %c0_25] : memref<8x16x128xf32, #tpu.memory_space<vmem>>, vector<1x16x128xf32>
    %91 = vector.shape_cast %90 : vector<1x16x128xf32> to vector<16x128xf32>
    %92 = arith.truncf %83 : vector<16x32xf32> to vector<16x32xbf16>
    %93 = arith.index_cast %c0_i32 : i32 to index
    %c0_26 = arith.constant 0 : index
    %c0_27 = arith.constant 0 : index
    %94 = vector.load %arg3[%93, %c0_26, %c0_27] : memref<4x32x128xbf16, #tpu.memory_space<vmem>>, vector<1x32x128xbf16>
    %95 = vector.shape_cast %94 : vector<1x32x128xbf16> to vector<32x128xbf16>
    %cst_28 = arith.constant dense<0.000000e+00> : vector<16x128xf32>
    %96 = tpu.matmul %92, %95, %cst_28 {dimension_numbers = #tpu.dot_dimension_numbers<[1], [0], [0], [1], [0, 0, 1, 1], [], []>} : vector<16x32xbf16>, vector<32x128xbf16>, vector<16x128xf32> -> vector<16x128xf32>
    %97 = arith.addf %91, %96 : vector<16x128xf32>
    %98 = arith.negf %97 : vector<16x128xf32>
    %99 = math.exp %98 : vector<16x128xf32>
    %cst_29 = arith.constant 1.000000e+00 : f32
    %100 = vector.broadcast %cst_29 : f32 to vector<16x128xf32>
    %101 = arith.addf %100, %99 : vector<16x128xf32>
    %102 = arith.divf %100, %101 : vector<16x128xf32>
    %103 = math.tanh %97 : vector<16x128xf32>
    %104 = vector.extract_strided_slice %102 {offsets = [0, 0], sizes = [16, 32], strides = [1, 1]} : vector<16x128xf32> to vector<16x32xf32>
    %105 = vector.extract_strided_slice %102 {offsets = [0, 32], sizes = [16, 32], strides = [1, 1]} : vector<16x128xf32> to vector<16x32xf32>
    %106 = vector.extract_strided_slice %103 {offsets = [0, 64], sizes = [16, 32], strides = [1, 1]} : vector<16x128xf32> to vector<16x32xf32>
    %107 = vector.extract_strided_slice %102 {offsets = [0, 96], sizes = [16, 32], strides = [1, 1]} : vector<16x128xf32> to vector<16x32xf32>
    %108 = arith.mulf %105, %81 : vector<16x32xf32>
    %109 = arith.mulf %104, %106 : vector<16x32xf32>
    %110 = arith.addf %108, %109 : vector<16x32xf32>
    %111 = math.tanh %110 : vector<16x32xf32>
    %112 = arith.mulf %107, %111 : vector<16x32xf32>
    %113 = arith.truncf %112 : vector<16x32xf32> to vector<16x32xbf16>
    %c16_i32_30 = arith.constant 16 : i32
    %114 = arith.muli %c3_i32, %c16_i32_30 : i32
    %115 = tpu.assume_multiple %114, 16 : i32
    %116 = arith.index_cast %115 : i32 to index
    %c0_31 = arith.constant 0 : index
    %117 = vector.load %arg8[%116, %c0_31] : memref<128x32xbf16, #tpu.memory_space<vmem>>, vector<16x32xbf16>
    tpu.vector_store %arg8[%116, %c0_31], %113 {strides = array<i32>} : memref<128x32xbf16, #tpu.memory_space<vmem>>, vector<16x32xbf16>,
    %c4_i32 = arith.constant 4 : i32
    %118 = arith.index_cast %c4_i32 : i32 to index
    %c0_32 = arith.constant 0 : index
    %c0_33 = arith.constant 0 : index
    %119 = vector.load %arg1[%118, %c0_32, %c0_33] : memref<8x16x128xf32, #tpu.memory_space<vmem>>, vector<1x16x128xf32>
    %120 = vector.shape_cast %119 : vector<1x16x128xf32> to vector<16x128xf32>
    %121 = arith.truncf %112 : vector<16x32xf32> to vector<16x32xbf16>
    %122 = arith.index_cast %c0_i32 : i32 to index
    %c0_34 = arith.constant 0 : index
    %c0_35 = arith.constant 0 : index
    %123 = vector.load %arg3[%122, %c0_34, %c0_35] : memref<4x32x128xbf16, #tpu.memory_space<vmem>>, vector<1x32x128xbf16>
    %124 = vector.shape_cast %123 : vector<1x32x128xbf16> to vector<32x128xbf16>
    %cst_36 = arith.constant dense<0.000000e+00> : vector<16x128xf32>
    %125 = tpu.matmul %121, %124, %cst_36 {dimension_numbers = #tpu.dot_dimension_numbers<[1], [0], [0], [1], [0, 0, 1, 1], [], []>} : vector<16x32xbf16>, vector<32x128xbf16>, vector<16x128xf32> -> vector<16x128xf32>
    %126 = arith.addf %120, %125 : vector<16x128xf32>
    %127 = arith.negf %126 : vector<16x128xf32>
    %128 = math.exp %127 : vector<16x128xf32>
    %cst_37 = arith.constant 1.000000e+00 : f32
    %129 = vector.broadcast %cst_37 : f32 to vector<16x128xf32>
    %130 = arith.addf %129, %128 : vector<16x128xf32>
    %131 = arith.divf %129, %130 : vector<16x128xf32>
    %132 = math.tanh %126 : vector<16x128xf32>
    %133 = vector.extract_strided_slice %131 {offsets = [0, 0], sizes = [16, 32], strides = [1, 1]} : vector<16x128xf32> to vector<16x32xf32>
    %134 = vector.extract_strided_slice %131 {offsets = [0, 32], sizes = [16, 32], strides = [1, 1]} : vector<16x128xf32> to vector<16x32xf32>
    %135 = vector.extract_strided_slice %132 {offsets = [0, 64], sizes = [16, 32], strides = [1, 1]} : vector<16x128xf32> to vector<16x32xf32>
    %136 = vector.extract_strided_slice %131 {offsets = [0, 96], sizes = [16, 32], strides = [1, 1]} : vector<16x128xf32> to vector<16x32xf32>
    %137 = arith.mulf %134, %110 : vector<16x32xf32>
    %138 = arith.mulf %133, %135 : vector<16x32xf32>
    %139 = arith.addf %137, %138 : vector<16x32xf32>
    %140 = math.tanh %139 : vector<16x32xf32>
    %141 = arith.mulf %136, %140 : vector<16x32xf32>
    %142 = arith.truncf %141 : vector<16x32xf32> to vector<16x32xbf16>
    %c16_i32_38 = arith.constant 16 : i32
    %143 = arith.muli %c4_i32, %c16_i32_38 : i32
    %144 = tpu.assume_multiple %143, 16 : i32
    %145 = arith.index_cast %144 : i32 to index
    %c0_39 = arith.constant 0 : index
    %146 = vector.load %arg8[%145, %c0_39] : memref<128x32xbf16, #tpu.memory_space<vmem>>, vector<16x32xbf16>
    tpu.vector_store %arg8[%145, %c0_39], %142 {strides = array<i32>} : memref<128x32xbf16, #tpu.memory_space<vmem>>, vector<16x32xbf16>,
    %c5_i32 = arith.constant 5 : i32
    %147 = arith.index_cast %c5_i32 : i32 to index
    %c0_40 = arith.constant 0 : index
    %c0_41 = arith.constant 0 : index
    %148 = vector.load %arg1[%147, %c0_40, %c0_41] : memref<8x16x128xf32, #tpu.memory_space<vmem>>, vector<1x16x128xf32>
    %149 = vector.shape_cast %148 : vector<1x16x128xf32> to vector<16x128xf32>
    %150 = arith.truncf %141 : vector<16x32xf32> to vector<16x32xbf16>
    %151 = arith.index_cast %c0_i32 : i32 to index
    %c0_42 = arith.constant 0 : index
    %c0_43 = arith.constant 0 : index
    %152 = vector.load %arg3[%151, %c0_42, %c0_43] : memref<4x32x128xbf16, #tpu.memory_space<vmem>>, vector<1x32x128xbf16>
    %153 = vector.shape_cast %152 : vector<1x32x128xbf16> to vector<32x128xbf16>
    %cst_44 = arith.constant dense<0.000000e+00> : vector<16x128xf32>
    %154 = tpu.matmul %150, %153, %cst_44 {dimension_numbers = #tpu.dot_dimension_numbers<[1], [0], [0], [1], [0, 0, 1, 1], [], []>} : vector<16x32xbf16>, vector<32x128xbf16>, vector<16x128xf32> -> vector<16x128xf32>
    %155 = arith.addf %149, %154 : vector<16x128xf32>
    %156 = arith.negf %155 : vector<16x128xf32>
    %157 = math.exp %156 : vector<16x128xf32>
    %cst_45 = arith.constant 1.000000e+00 : f32
    %158 = vector.broadcast %cst_45 : f32 to vector<16x128xf32>
    %159 = arith.addf %158, %157 : vector<16x128xf32>
    %160 = arith.divf %158, %159 : vector<16x128xf32>
    %161 = math.tanh %155 : vector<16x128xf32>
    %162 = vector.extract_strided_slice %160 {offsets = [0, 0], sizes = [16, 32], strides = [1, 1]} : vector<16x128xf32> to vector<16x32xf32>
    %163 = vector.extract_strided_slice %160 {offsets = [0, 32], sizes = [16, 32], strides = [1, 1]} : vector<16x128xf32> to vector<16x32xf32>
    %164 = vector.extract_strided_slice %161 {offsets = [0, 64], sizes = [16, 32], strides = [1, 1]} : vector<16x128xf32> to vector<16x32xf32>
    %165 = vector.extract_strided_slice %160 {offsets = [0, 96], sizes = [16, 32], strides = [1, 1]} : vector<16x128xf32> to vector<16x32xf32>
    %166 = arith.mulf %163, %139 : vector<16x32xf32>
    %167 = arith.mulf %162, %164 : vector<16x32xf32>
    %168 = arith.addf %166, %167 : vector<16x32xf32>
    %169 = math.tanh %168 : vector<16x32xf32>
    %170 = arith.mulf %165, %169 : vector<16x32xf32>
    %171 = arith.truncf %170 : vector<16x32xf32> to vector<16x32xbf16>
    %c16_i32_46 = arith.constant 16 : i32
    %172 = arith.muli %c5_i32, %c16_i32_46 : i32
    %173 = tpu.assume_multiple %172, 16 : i32
    %174 = arith.index_cast %173 : i32 to index
    %c0_47 = arith.constant 0 : index
    %175 = vector.load %arg8[%174, %c0_47] : memref<128x32xbf16, #tpu.memory_space<vmem>>, vector<16x32xbf16>
    tpu.vector_store %arg8[%174, %c0_47], %171 {strides = array<i32>} : memref<128x32xbf16, #tpu.memory_space<vmem>>, vector<16x32xbf16>,
    %c6_i32 = arith.constant 6 : i32
    %176 = arith.index_cast %c6_i32 : i32 to index
    %c0_48 = arith.constant 0 : index
    %c0_49 = arith.constant 0 : index
    %177 = vector.load %arg1[%176, %c0_48, %c0_49] : memref<8x16x128xf32, #tpu.memory_space<vmem>>, vector<1x16x128xf32>
    %178 = vector.shape_cast %177 : vector<1x16x128xf32> to vector<16x128xf32>
    %179 = arith.truncf %170 : vector<16x32xf32> to vector<16x32xbf16>
    %180 = arith.index_cast %c0_i32 : i32 to index
    %c0_50 = arith.constant 0 : index
    %c0_51 = arith.constant 0 : index
    %181 = vector.load %arg3[%180, %c0_50, %c0_51] : memref<4x32x128xbf16, #tpu.memory_space<vmem>>, vector<1x32x128xbf16>
    %182 = vector.shape_cast %181 : vector<1x32x128xbf16> to vector<32x128xbf16>
    %cst_52 = arith.constant dense<0.000000e+00> : vector<16x128xf32>
    %183 = tpu.matmul %179, %182, %cst_52 {dimension_numbers = #tpu.dot_dimension_numbers<[1], [0], [0], [1], [0, 0, 1, 1], [], []>} : vector<16x32xbf16>, vector<32x128xbf16>, vector<16x128xf32> -> vector<16x128xf32>
    %184 = arith.addf %178, %183 : vector<16x128xf32>
    %185 = arith.negf %184 : vector<16x128xf32>
    %186 = math.exp %185 : vector<16x128xf32>
    %cst_53 = arith.constant 1.000000e+00 : f32
    %187 = vector.broadcast %cst_53 : f32 to vector<16x128xf32>
    %188 = arith.addf %187, %186 : vector<16x128xf32>
    %189 = arith.divf %187, %188 : vector<16x128xf32>
    %190 = math.tanh %184 : vector<16x128xf32>
    %191 = vector.extract_strided_slice %189 {offsets = [0, 0], sizes = [16, 32], strides = [1, 1]} : vector<16x128xf32> to vector<16x32xf32>
    %192 = vector.extract_strided_slice %189 {offsets = [0, 32], sizes = [16, 32], strides = [1, 1]} : vector<16x128xf32> to vector<16x32xf32>
    %193 = vector.extract_strided_slice %190 {offsets = [0, 64], sizes = [16, 32], strides = [1, 1]} : vector<16x128xf32> to vector<16x32xf32>
    %194 = vector.extract_strided_slice %189 {offsets = [0, 96], sizes = [16, 32], strides = [1, 1]} : vector<16x128xf32> to vector<16x32xf32>
    %195 = arith.mulf %192, %168 : vector<16x32xf32>
    %196 = arith.mulf %191, %193 : vector<16x32xf32>
    %197 = arith.addf %195, %196 : vector<16x32xf32>
    %198 = math.tanh %197 : vector<16x32xf32>
    %199 = arith.mulf %194, %198 : vector<16x32xf32>
    %200 = arith.truncf %199 : vector<16x32xf32> to vector<16x32xbf16>
    %c16_i32_54 = arith.constant 16 : i32
    %201 = arith.muli %c6_i32, %c16_i32_54 : i32
    %202 = tpu.assume_multiple %201, 16 : i32
    %203 = arith.index_cast %202 : i32 to index
    %c0_55 = arith.constant 0 : index
    %204 = vector.load %arg8[%203, %c0_55] : memref<128x32xbf16, #tpu.memory_space<vmem>>, vector<16x32xbf16>
    tpu.vector_store %arg8[%203, %c0_55], %200 {strides = array<i32>} : memref<128x32xbf16, #tpu.memory_space<vmem>>, vector<16x32xbf16>,
    %c7_i32 = arith.constant 7 : i32
    %205 = arith.index_cast %c7_i32 : i32 to index
    %c0_56 = arith.constant 0 : index
    %c0_57 = arith.constant 0 : index
    %206 = vector.load %arg1[%205, %c0_56, %c0_57] : memref<8x16x128xf32, #tpu.memory_space<vmem>>, vector<1x16x128xf32>
    %207 = vector.shape_cast %206 : vector<1x16x128xf32> to vector<16x128xf32>
    %208 = arith.truncf %199 : vector<16x32xf32> to vector<16x32xbf16>
    %209 = arith.index_cast %c0_i32 : i32 to index
    %c0_58 = arith.constant 0 : index
    %c0_59 = arith.constant 0 : index
    %210 = vector.load %arg3[%209, %c0_58, %c0_59] : memref<4x32x128xbf16, #tpu.memory_space<vmem>>, vector<1x32x128xbf16>
    %211 = vector.shape_cast %210 : vector<1x32x128xbf16> to vector<32x128xbf16>
    %cst_60 = arith.constant dense<0.000000e+00> : vector<16x128xf32>
    %212 = tpu.matmul %208, %211, %cst_60 {dimension_numbers = #tpu.dot_dimension_numbers<[1], [0], [0], [1], [0, 0, 1, 1], [], []>} : vector<16x32xbf16>, vector<32x128xbf16>, vector<16x128xf32> -> vector<16x128xf32>
    %213 = arith.addf %207, %212 : vector<16x128xf32>
    %214 = arith.negf %213 : vector<16x128xf32>
    %215 = math.exp %214 : vector<16x128xf32>
    %cst_61 = arith.constant 1.000000e+00 : f32
    %216 = vector.broadcast %cst_61 : f32 to vector<16x128xf32>
    %217 = arith.addf %216, %215 : vector<16x128xf32>
    %218 = arith.divf %216, %217 : vector<16x128xf32>
    %219 = math.tanh %213 : vector<16x128xf32>
    %220 = vector.extract_strided_slice %218 {offsets = [0, 0], sizes = [16, 32], strides = [1, 1]} : vector<16x128xf32> to vector<16x32xf32>
    %221 = vector.extract_strided_slice %218 {offsets = [0, 32], sizes = [16, 32], strides = [1, 1]} : vector<16x128xf32> to vector<16x32xf32>
    %222 = vector.extract_strided_slice %219 {offsets = [0, 64], sizes = [16, 32], strides = [1, 1]} : vector<16x128xf32> to vector<16x32xf32>
    %223 = vector.extract_strided_slice %218 {offsets = [0, 96], sizes = [16, 32], strides = [1, 1]} : vector<16x128xf32> to vector<16x32xf32>
    %224 = arith.mulf %221, %197 : vector<16x32xf32>
    %225 = arith.mulf %220, %222 : vector<16x32xf32>
    %226 = arith.addf %224, %225 : vector<16x32xf32>
    %227 = math.tanh %226 : vector<16x32xf32>
    %228 = arith.mulf %223, %227 : vector<16x32xf32>
    %229 = arith.truncf %228 : vector<16x32xf32> to vector<16x32xbf16>
    %c16_i32_62 = arith.constant 16 : i32
    %230 = arith.muli %c7_i32, %c16_i32_62 : i32
    %231 = tpu.assume_multiple %230, 16 : i32
    %232 = arith.index_cast %231 : i32 to index
    %c0_63 = arith.constant 0 : index
    %233 = vector.load %arg8[%232, %c0_63] : memref<128x32xbf16, #tpu.memory_space<vmem>>, vector<16x32xbf16>
    tpu.vector_store %arg8[%232, %c0_63], %229 {strides = array<i32>} : memref<128x32xbf16, #tpu.memory_space<vmem>>, vector<16x32xbf16>,
    %c8_i32 = arith.constant 8 : i32
    %c0_64 = arith.constant 0 : index
    %c0_65 = arith.constant 0 : index
    %234 = vector.load %arg8[%c0_64, %c0_65] : memref<128x32xbf16, #tpu.memory_space<vmem>>, vector<128x32xbf16>
    %c0_66 = arith.constant 0 : index
    %c0_67 = arith.constant 0 : index
    %c0_68 = arith.constant 0 : index
    %235 = vector.load %arg2[%c0_66, %c0_67, %c0_68] : memref<3x32x128xbf16, #tpu.memory_space<vmem>>, vector<1x32x128xbf16>
    %236 = vector.shape_cast %235 : vector<1x32x128xbf16> to vector<32x128xbf16>
    %cst_69 = arith.constant dense<0.000000e+00> : vector<128x128xf32>
    %237 = tpu.matmul %234, %236, %cst_69 {dimension_numbers = #tpu.dot_dimension_numbers<[1], [0], [0], [1], [0, 0, 1, 1], [], []>} : vector<128x32xbf16>, vector<32x128xbf16>, vector<128x128xf32> -> vector<128x128xf32>
    %c0_70 = arith.constant 0 : index
    %c0_71 = arith.constant 0 : index
    %c0_72 = arith.constant 0 : index
    %238 = vector.load %arg4[%c0_70, %c0_71, %c0_72] : memref<3x1x128xf32, #tpu.memory_space<vmem>>, vector<1x1x128xf32>
    %239 = vector.shape_cast %238 : vector<1x1x128xf32> to vector<1x128xf32>
    %240 = vector.broadcast %239 : vector<1x128xf32> to vector<128x128xf32>
    %241 = arith.addf %237, %240 : vector<128x128xf32>
    %c0_73 = arith.constant 0 : index
    %c0_74 = arith.constant 0 : index
    %242 = vector.load %arg9[%c0_73, %c0_74] : memref<128x128xf32, #tpu.memory_space<vmem>>, vector<128x128xf32>
    tpu.vector_store %arg9[%c0_73, %c0_74], %241 {strides = array<i32>} : memref<128x128xf32, #tpu.memory_space<vmem>>, vector<128x128xf32>,
    %cst_75 = arith.constant 0.000000e+00 : f32
    %243 = vector.broadcast %cst_75 : f32 to vector<16x32xf32>
    %cst_76 = arith.constant 0.000000e+00 : f32
    %244 = vector.broadcast %cst_76 : f32 to vector<16x32xf32>
    %c1_i32_77 = arith.constant 1 : i32
    %c0_i32_78 = arith.constant 0 : i32
    %c16_i32_79 = arith.constant 16 : i32
    %245 = arith.muli %c0_i32_78, %c16_i32_79 : i32
    %246 = tpu.assume_multiple %245, 16 : i32
    %247 = arith.index_cast %246 : i32 to index
    %c0_80 = arith.constant 0 : index
    %248 = vector.load %arg9[%247, %c0_80] : memref<128x128xf32, #tpu.memory_space<vmem>>, vector<16x128xf32>
    %249 = arith.truncf %243 : vector<16x32xf32> to vector<16x32xbf16>
    %250 = arith.index_cast %c1_i32_77 : i32 to index
    %c0_81 = arith.constant 0 : index
    %c0_82 = arith.constant 0 : index
    %251 = vector.load %arg3[%250, %c0_81, %c0_82] : memref<4x32x128xbf16, #tpu.memory_space<vmem>>, vector<1x32x128xbf16>
    %252 = vector.shape_cast %251 : vector<1x32x128xbf16> to vector<32x128xbf16>
    %cst_83 = arith.constant dense<0.000000e+00> : vector<16x128xf32>
    %253 = tpu.matmul %249, %252, %cst_83 {dimension_numbers = #tpu.dot_dimension_numbers<[1], [0], [0], [1], [0, 0, 1, 1], [], []>} : vector<16x32xbf16>, vector<32x128xbf16>, vector<16x128xf32> -> vector<16x128xf32>
    %254 = arith.addf %248, %253 : vector<16x128xf32>
    %255 = arith.negf %254 : vector<16x128xf32>
    %256 = math.exp %255 : vector<16x128xf32>
    %cst_84 = arith.constant 1.000000e+00 : f32
    %257 = vector.broadcast %cst_84 : f32 to vector<16x128xf32>
    %258 = arith.addf %257, %256 : vector<16x128xf32>
    %259 = arith.divf %257, %258 : vector<16x128xf32>
    %260 = math.tanh %254 : vector<16x128xf32>
    %261 = vector.extract_strided_slice %259 {offsets = [0, 0], sizes = [16, 32], strides = [1, 1]} : vector<16x128xf32> to vector<16x32xf32>
    %262 = vector.extract_strided_slice %259 {offsets = [0, 32], sizes = [16, 32], strides = [1, 1]} : vector<16x128xf32> to vector<16x32xf32>
    %263 = vector.extract_strided_slice %260 {offsets = [0, 64], sizes = [16, 32], strides = [1, 1]} : vector<16x128xf32> to vector<16x32xf32>
    %264 = vector.extract_strided_slice %259 {offsets = [0, 96], sizes = [16, 32], strides = [1, 1]} : vector<16x128xf32> to vector<16x32xf32>
    %265 = arith.mulf %262, %244 : vector<16x32xf32>
    %266 = arith.mulf %261, %263 : vector<16x32xf32>
    %267 = arith.addf %265, %266 : vector<16x32xf32>
    %268 = math.tanh %267 : vector<16x32xf32>
    %269 = arith.mulf %264, %268 : vector<16x32xf32>
    %270 = arith.truncf %269 : vector<16x32xf32> to vector<16x32xbf16>
    %c16_i32_85 = arith.constant 16 : i32
    %271 = arith.muli %c0_i32_78, %c16_i32_85 : i32
    %272 = tpu.assume_multiple %271, 16 : i32
    %273 = arith.index_cast %272 : i32 to index
    %c0_86 = arith.constant 0 : index
    %274 = vector.load %arg8[%273, %c0_86] : memref<128x32xbf16, #tpu.memory_space<vmem>>, vector<16x32xbf16>
    tpu.vector_store %arg8[%273, %c0_86], %270 {strides = array<i32>} : memref<128x32xbf16, #tpu.memory_space<vmem>>, vector<16x32xbf16>,
    %c1_i32_87 = arith.constant 1 : i32
    %c16_i32_88 = arith.constant 16 : i32
    %275 = arith.muli %c1_i32_87, %c16_i32_88 : i32
    %276 = tpu.assume_multiple %275, 16 : i32
    %277 = arith.index_cast %276 : i32 to index
    %c0_89 = arith.constant 0 : index
    %278 = vector.load %arg9[%277, %c0_89] : memref<128x128xf32, #tpu.memory_space<vmem>>, vector<16x128xf32>
    %279 = arith.truncf %269 : vector<16x32xf32> to vector<16x32xbf16>
    %280 = arith.index_cast %c1_i32_77 : i32 to index
    %c0_90 = arith.constant 0 : index
    %c0_91 = arith.constant 0 : index
    %281 = vector.load %arg3[%280, %c0_90, %c0_91] : memref<4x32x128xbf16, #tpu.memory_space<vmem>>, vector<1x32x128xbf16>
    %282 = vector.shape_cast %281 : vector<1x32x128xbf16> to vector<32x128xbf16>
    %cst_92 = arith.constant dense<0.000000e+00> : vector<16x128xf32>
    %283 = tpu.matmul %279, %282, %cst_92 {dimension_numbers = #tpu.dot_dimension_numbers<[1], [0], [0], [1], [0, 0, 1, 1], [], []>} : vector<16x32xbf16>, vector<32x128xbf16>, vector<16x128xf32> -> vector<16x128xf32>
    %284 = arith.addf %278, %283 : vector<16x128xf32>
    %285 = arith.negf %284 : vector<16x128xf32>
    %286 = math.exp %285 : vector<16x128xf32>
    %cst_93 = arith.constant 1.000000e+00 : f32
    %287 = vector.broadcast %cst_93 : f32 to vector<16x128xf32>
    %288 = arith.addf %287, %286 : vector<16x128xf32>
    %289 = arith.divf %287, %288 : vector<16x128xf32>
    %290 = math.tanh %284 : vector<16x128xf32>
    %291 = vector.extract_strided_slice %289 {offsets = [0, 0], sizes = [16, 32], strides = [1, 1]} : vector<16x128xf32> to vector<16x32xf32>
    %292 = vector.extract_strided_slice %289 {offsets = [0, 32], sizes = [16, 32], strides = [1, 1]} : vector<16x128xf32> to vector<16x32xf32>
    %293 = vector.extract_strided_slice %290 {offsets = [0, 64], sizes = [16, 32], strides = [1, 1]} : vector<16x128xf32> to vector<16x32xf32>
    %294 = vector.extract_strided_slice %289 {offsets = [0, 96], sizes = [16, 32], strides = [1, 1]} : vector<16x128xf32> to vector<16x32xf32>
    %295 = arith.mulf %292, %267 : vector<16x32xf32>
    %296 = arith.mulf %291, %293 : vector<16x32xf32>
    %297 = arith.addf %295, %296 : vector<16x32xf32>
    %298 = math.tanh %297 : vector<16x32xf32>
    %299 = arith.mulf %294, %298 : vector<16x32xf32>
    %300 = arith.truncf %299 : vector<16x32xf32> to vector<16x32xbf16>
    %c16_i32_94 = arith.constant 16 : i32
    %301 = arith.muli %c1_i32_87, %c16_i32_94 : i32
    %302 = tpu.assume_multiple %301, 16 : i32
    %303 = arith.index_cast %302 : i32 to index
    %c0_95 = arith.constant 0 : index
    %304 = vector.load %arg8[%303, %c0_95] : memref<128x32xbf16, #tpu.memory_space<vmem>>, vector<16x32xbf16>
    tpu.vector_store %arg8[%303, %c0_95], %300 {strides = array<i32>} : memref<128x32xbf16, #tpu.memory_space<vmem>>, vector<16x32xbf16>,
    %c2_i32_96 = arith.constant 2 : i32
    %c16_i32_97 = arith.constant 16 : i32
    %305 = arith.muli %c2_i32_96, %c16_i32_97 : i32
    %306 = tpu.assume_multiple %305, 16 : i32
    %307 = arith.index_cast %306 : i32 to index
    %c0_98 = arith.constant 0 : index
    %308 = vector.load %arg9[%307, %c0_98] : memref<128x128xf32, #tpu.memory_space<vmem>>, vector<16x128xf32>
    %309 = arith.truncf %299 : vector<16x32xf32> to vector<16x32xbf16>
    %310 = arith.index_cast %c1_i32_77 : i32 to index
    %c0_99 = arith.constant 0 : index
    %c0_100 = arith.constant 0 : index
    %311 = vector.load %arg3[%310, %c0_99, %c0_100] : memref<4x32x128xbf16, #tpu.memory_space<vmem>>, vector<1x32x128xbf16>
    %312 = vector.shape_cast %311 : vector<1x32x128xbf16> to vector<32x128xbf16>
    %cst_101 = arith.constant dense<0.000000e+00> : vector<16x128xf32>
    %313 = tpu.matmul %309, %312, %cst_101 {dimension_numbers = #tpu.dot_dimension_numbers<[1], [0], [0], [1], [0, 0, 1, 1], [], []>} : vector<16x32xbf16>, vector<32x128xbf16>, vector<16x128xf32> -> vector<16x128xf32>
    %314 = arith.addf %308, %313 : vector<16x128xf32>
    %315 = arith.negf %314 : vector<16x128xf32>
    %316 = math.exp %315 : vector<16x128xf32>
    %cst_102 = arith.constant 1.000000e+00 : f32
    %317 = vector.broadcast %cst_102 : f32 to vector<16x128xf32>
    %318 = arith.addf %317, %316 : vector<16x128xf32>
    %319 = arith.divf %317, %318 : vector<16x128xf32>
    %320 = math.tanh %314 : vector<16x128xf32>
    %321 = vector.extract_strided_slice %319 {offsets = [0, 0], sizes = [16, 32], strides = [1, 1]} : vector<16x128xf32> to vector<16x32xf32>
    %322 = vector.extract_strided_slice %319 {offsets = [0, 32], sizes = [16, 32], strides = [1, 1]} : vector<16x128xf32> to vector<16x32xf32>
    %323 = vector.extract_strided_slice %320 {offsets = [0, 64], sizes = [16, 32], strides = [1, 1]} : vector<16x128xf32> to vector<16x32xf32>
    %324 = vector.extract_strided_slice %319 {offsets = [0, 96], sizes = [16, 32], strides = [1, 1]} : vector<16x128xf32> to vector<16x32xf32>
    %325 = arith.mulf %322, %297 : vector<16x32xf32>
    %326 = arith.mulf %321, %323 : vector<16x32xf32>
    %327 = arith.addf %325, %326 : vector<16x32xf32>
    %328 = math.tanh %327 : vector<16x32xf32>
    %329 = arith.mulf %324, %328 : vector<16x32xf32>
    %330 = arith.truncf %329 : vector<16x32xf32> to vector<16x32xbf16>
    %c16_i32_103 = arith.constant 16 : i32
    %331 = arith.muli %c2_i32_96, %c16_i32_103 : i32
    %332 = tpu.assume_multiple %331, 16 : i32
    %333 = arith.index_cast %332 : i32 to index
    %c0_104 = arith.constant 0 : index
    %334 = vector.load %arg8[%333, %c0_104] : memref<128x32xbf16, #tpu.memory_space<vmem>>, vector<16x32xbf16>
    tpu.vector_store %arg8[%333, %c0_104], %330 {strides = array<i32>} : memref<128x32xbf16, #tpu.memory_space<vmem>>, vector<16x32xbf16>,
    %c3_i32_105 = arith.constant 3 : i32
    %c16_i32_106 = arith.constant 16 : i32
    %335 = arith.muli %c3_i32_105, %c16_i32_106 : i32
    %336 = tpu.assume_multiple %335, 16 : i32
    %337 = arith.index_cast %336 : i32 to index
    %c0_107 = arith.constant 0 : index
    %338 = vector.load %arg9[%337, %c0_107] : memref<128x128xf32, #tpu.memory_space<vmem>>, vector<16x128xf32>
    %339 = arith.truncf %329 : vector<16x32xf32> to vector<16x32xbf16>
    %340 = arith.index_cast %c1_i32_77 : i32 to index
    %c0_108 = arith.constant 0 : index
    %c0_109 = arith.constant 0 : index
    %341 = vector.load %arg3[%340, %c0_108, %c0_109] : memref<4x32x128xbf16, #tpu.memory_space<vmem>>, vector<1x32x128xbf16>
    %342 = vector.shape_cast %341 : vector<1x32x128xbf16> to vector<32x128xbf16>
    %cst_110 = arith.constant dense<0.000000e+00> : vector<16x128xf32>
    %343 = tpu.matmul %339, %342, %cst_110 {dimension_numbers = #tpu.dot_dimension_numbers<[1], [0], [0], [1], [0, 0, 1, 1], [], []>} : vector<16x32xbf16>, vector<32x128xbf16>, vector<16x128xf32> -> vector<16x128xf32>
    %344 = arith.addf %338, %343 : vector<16x128xf32>
    %345 = arith.negf %344 : vector<16x128xf32>
    %346 = math.exp %345 : vector<16x128xf32>
    %cst_111 = arith.constant 1.000000e+00 : f32
    %347 = vector.broadcast %cst_111 : f32 to vector<16x128xf32>
    %348 = arith.addf %347, %346 : vector<16x128xf32>
    %349 = arith.divf %347, %348 : vector<16x128xf32>
    %350 = math.tanh %344 : vector<16x128xf32>
    %351 = vector.extract_strided_slice %349 {offsets = [0, 0], sizes = [16, 32], strides = [1, 1]} : vector<16x128xf32> to vector<16x32xf32>
    %352 = vector.extract_strided_slice %349 {offsets = [0, 32], sizes = [16, 32], strides = [1, 1]} : vector<16x128xf32> to vector<16x32xf32>
    %353 = vector.extract_strided_slice %350 {offsets = [0, 64], sizes = [16, 32], strides = [1, 1]} : vector<16x128xf32> to vector<16x32xf32>
    %354 = vector.extract_strided_slice %349 {offsets = [0, 96], sizes = [16, 32], strides = [1, 1]} : vector<16x128xf32> to vector<16x32xf32>
    %355 = arith.mulf %352, %327 : vector<16x32xf32>
    %356 = arith.mulf %351, %353 : vector<16x32xf32>
    %357 = arith.addf %355, %356 : vector<16x32xf32>
    %358 = math.tanh %357 : vector<16x32xf32>
    %359 = arith.mulf %354, %358 : vector<16x32xf32>
    %360 = arith.truncf %359 : vector<16x32xf32> to vector<16x32xbf16>
    %c16_i32_112 = arith.constant 16 : i32
    %361 = arith.muli %c3_i32_105, %c16_i32_112 : i32
    %362 = tpu.assume_multiple %361, 16 : i32
    %363 = arith.index_cast %362 : i32 to index
    %c0_113 = arith.constant 0 : index
    %364 = vector.load %arg8[%363, %c0_113] : memref<128x32xbf16, #tpu.memory_space<vmem>>, vector<16x32xbf16>
    tpu.vector_store %arg8[%363, %c0_113], %360 {strides = array<i32>} : memref<128x32xbf16, #tpu.memory_space<vmem>>, vector<16x32xbf16>,
    %c4_i32_114 = arith.constant 4 : i32
    %c16_i32_115 = arith.constant 16 : i32
    %365 = arith.muli %c4_i32_114, %c16_i32_115 : i32
    %366 = tpu.assume_multiple %365, 16 : i32
    %367 = arith.index_cast %366 : i32 to index
    %c0_116 = arith.constant 0 : index
    %368 = vector.load %arg9[%367, %c0_116] : memref<128x128xf32, #tpu.memory_space<vmem>>, vector<16x128xf32>
    %369 = arith.truncf %359 : vector<16x32xf32> to vector<16x32xbf16>
    %370 = arith.index_cast %c1_i32_77 : i32 to index
    %c0_117 = arith.constant 0 : index
    %c0_118 = arith.constant 0 : index
    %371 = vector.load %arg3[%370, %c0_117, %c0_118] : memref<4x32x128xbf16, #tpu.memory_space<vmem>>, vector<1x32x128xbf16>
    %372 = vector.shape_cast %371 : vector<1x32x128xbf16> to vector<32x128xbf16>
    %cst_119 = arith.constant dense<0.000000e+00> : vector<16x128xf32>
    %373 = tpu.matmul %369, %372, %cst_119 {dimension_numbers = #tpu.dot_dimension_numbers<[1], [0], [0], [1], [0, 0, 1, 1], [], []>} : vector<16x32xbf16>, vector<32x128xbf16>, vector<16x128xf32> -> vector<16x128xf32>
    %374 = arith.addf %368, %373 : vector<16x128xf32>
    %375 = arith.negf %374 : vector<16x128xf32>
    %376 = math.exp %375 : vector<16x128xf32>
    %cst_120 = arith.constant 1.000000e+00 : f32
    %377 = vector.broadcast %cst_120 : f32 to vector<16x128xf32>
    %378 = arith.addf %377, %376 : vector<16x128xf32>
    %379 = arith.divf %377, %378 : vector<16x128xf32>
    %380 = math.tanh %374 : vector<16x128xf32>
    %381 = vector.extract_strided_slice %379 {offsets = [0, 0], sizes = [16, 32], strides = [1, 1]} : vector<16x128xf32> to vector<16x32xf32>
    %382 = vector.extract_strided_slice %379 {offsets = [0, 32], sizes = [16, 32], strides = [1, 1]} : vector<16x128xf32> to vector<16x32xf32>
    %383 = vector.extract_strided_slice %380 {offsets = [0, 64], sizes = [16, 32], strides = [1, 1]} : vector<16x128xf32> to vector<16x32xf32>
    %384 = vector.extract_strided_slice %379 {offsets = [0, 96], sizes = [16, 32], strides = [1, 1]} : vector<16x128xf32> to vector<16x32xf32>
    %385 = arith.mulf %382, %357 : vector<16x32xf32>
    %386 = arith.mulf %381, %383 : vector<16x32xf32>
    %387 = arith.addf %385, %386 : vector<16x32xf32>
    %388 = math.tanh %387 : vector<16x32xf32>
    %389 = arith.mulf %384, %388 : vector<16x32xf32>
    %390 = arith.truncf %389 : vector<16x32xf32> to vector<16x32xbf16>
    %c16_i32_121 = arith.constant 16 : i32
    %391 = arith.muli %c4_i32_114, %c16_i32_121 : i32
    %392 = tpu.assume_multiple %391, 16 : i32
    %393 = arith.index_cast %392 : i32 to index
    %c0_122 = arith.constant 0 : index
    %394 = vector.load %arg8[%393, %c0_122] : memref<128x32xbf16, #tpu.memory_space<vmem>>, vector<16x32xbf16>
    tpu.vector_store %arg8[%393, %c0_122], %390 {strides = array<i32>} : memref<128x32xbf16, #tpu.memory_space<vmem>>, vector<16x32xbf16>,
    %c5_i32_123 = arith.constant 5 : i32
    %c16_i32_124 = arith.constant 16 : i32
    %395 = arith.muli %c5_i32_123, %c16_i32_124 : i32
    %396 = tpu.assume_multiple %395, 16 : i32
    %397 = arith.index_cast %396 : i32 to index
    %c0_125 = arith.constant 0 : index
    %398 = vector.load %arg9[%397, %c0_125] : memref<128x128xf32, #tpu.memory_space<vmem>>, vector<16x128xf32>
    %399 = arith.truncf %389 : vector<16x32xf32> to vector<16x32xbf16>
    %400 = arith.index_cast %c1_i32_77 : i32 to index
    %c0_126 = arith.constant 0 : index
    %c0_127 = arith.constant 0 : index
    %401 = vector.load %arg3[%400, %c0_126, %c0_127] : memref<4x32x128xbf16, #tpu.memory_space<vmem>>, vector<1x32x128xbf16>
    %402 = vector.shape_cast %401 : vector<1x32x128xbf16> to vector<32x128xbf16>
    %cst_128 = arith.constant dense<0.000000e+00> : vector<16x128xf32>
    %403 = tpu.matmul %399, %402, %cst_128 {dimension_numbers = #tpu.dot_dimension_numbers<[1], [0], [0], [1], [0, 0, 1, 1], [], []>} : vector<16x32xbf16>, vector<32x128xbf16>, vector<16x128xf32> -> vector<16x128xf32>
    %404 = arith.addf %398, %403 : vector<16x128xf32>
    %405 = arith.negf %404 : vector<16x128xf32>
    %406 = math.exp %405 : vector<16x128xf32>
    %cst_129 = arith.constant 1.000000e+00 : f32
    %407 = vector.broadcast %cst_129 : f32 to vector<16x128xf32>
    %408 = arith.addf %407, %406 : vector<16x128xf32>
    %409 = arith.divf %407, %408 : vector<16x128xf32>
    %410 = math.tanh %404 : vector<16x128xf32>
    %411 = vector.extract_strided_slice %409 {offsets = [0, 0], sizes = [16, 32], strides = [1, 1]} : vector<16x128xf32> to vector<16x32xf32>
    %412 = vector.extract_strided_slice %409 {offsets = [0, 32], sizes = [16, 32], strides = [1, 1]} : vector<16x128xf32> to vector<16x32xf32>
    %413 = vector.extract_strided_slice %410 {offsets = [0, 64], sizes = [16, 32], strides = [1, 1]} : vector<16x128xf32> to vector<16x32xf32>
    %414 = vector.extract_strided_slice %409 {offsets = [0, 96], sizes = [16, 32], strides = [1, 1]} : vector<16x128xf32> to vector<16x32xf32>
    %415 = arith.mulf %412, %387 : vector<16x32xf32>
    %416 = arith.mulf %411, %413 : vector<16x32xf32>
    %417 = arith.addf %415, %416 : vector<16x32xf32>
    %418 = math.tanh %417 : vector<16x32xf32>
    %419 = arith.mulf %414, %418 : vector<16x32xf32>
    %420 = arith.truncf %419 : vector<16x32xf32> to vector<16x32xbf16>
    %c16_i32_130 = arith.constant 16 : i32
    %421 = arith.muli %c5_i32_123, %c16_i32_130 : i32
    %422 = tpu.assume_multiple %421, 16 : i32
    %423 = arith.index_cast %422 : i32 to index
    %c0_131 = arith.constant 0 : index
    %424 = vector.load %arg8[%423, %c0_131] : memref<128x32xbf16, #tpu.memory_space<vmem>>, vector<16x32xbf16>
    tpu.vector_store %arg8[%423, %c0_131], %420 {strides = array<i32>} : memref<128x32xbf16, #tpu.memory_space<vmem>>, vector<16x32xbf16>,
    %c6_i32_132 = arith.constant 6 : i32
    %c16_i32_133 = arith.constant 16 : i32
    %425 = arith.muli %c6_i32_132, %c16_i32_133 : i32
    %426 = tpu.assume_multiple %425, 16 : i32
    %427 = arith.index_cast %426 : i32 to index
    %c0_134 = arith.constant 0 : index
    %428 = vector.load %arg9[%427, %c0_134] : memref<128x128xf32, #tpu.memory_space<vmem>>, vector<16x128xf32>
    %429 = arith.truncf %419 : vector<16x32xf32> to vector<16x32xbf16>
    %430 = arith.index_cast %c1_i32_77 : i32 to index
    %c0_135 = arith.constant 0 : index
    %c0_136 = arith.constant 0 : index
    %431 = vector.load %arg3[%430, %c0_135, %c0_136] : memref<4x32x128xbf16, #tpu.memory_space<vmem>>, vector<1x32x128xbf16>
    %432 = vector.shape_cast %431 : vector<1x32x128xbf16> to vector<32x128xbf16>
    %cst_137 = arith.constant dense<0.000000e+00> : vector<16x128xf32>
    %433 = tpu.matmul %429, %432, %cst_137 {dimension_numbers = #tpu.dot_dimension_numbers<[1], [0], [0], [1], [0, 0, 1, 1], [], []>} : vector<16x32xbf16>, vector<32x128xbf16>, vector<16x128xf32> -> vector<16x128xf32>
    %434 = arith.addf %428, %433 : vector<16x128xf32>
    %435 = arith.negf %434 : vector<16x128xf32>
    %436 = math.exp %435 : vector<16x128xf32>
    %cst_138 = arith.constant 1.000000e+00 : f32
    %437 = vector.broadcast %cst_138 : f32 to vector<16x128xf32>
    %438 = arith.addf %437, %436 : vector<16x128xf32>
    %439 = arith.divf %437, %438 : vector<16x128xf32>
    %440 = math.tanh %434 : vector<16x128xf32>
    %441 = vector.extract_strided_slice %439 {offsets = [0, 0], sizes = [16, 32], strides = [1, 1]} : vector<16x128xf32> to vector<16x32xf32>
    %442 = vector.extract_strided_slice %439 {offsets = [0, 32], sizes = [16, 32], strides = [1, 1]} : vector<16x128xf32> to vector<16x32xf32>
    %443 = vector.extract_strided_slice %440 {offsets = [0, 64], sizes = [16, 32], strides = [1, 1]} : vector<16x128xf32> to vector<16x32xf32>
    %444 = vector.extract_strided_slice %439 {offsets = [0, 96], sizes = [16, 32], strides = [1, 1]} : vector<16x128xf32> to vector<16x32xf32>
    %445 = arith.mulf %442, %417 : vector<16x32xf32>
    %446 = arith.mulf %441, %443 : vector<16x32xf32>
    %447 = arith.addf %445, %446 : vector<16x32xf32>
    %448 = math.tanh %447 : vector<16x32xf32>
    %449 = arith.mulf %444, %448 : vector<16x32xf32>
    %450 = arith.truncf %449 : vector<16x32xf32> to vector<16x32xbf16>
    %c16_i32_139 = arith.constant 16 : i32
    %451 = arith.muli %c6_i32_132, %c16_i32_139 : i32
    %452 = tpu.assume_multiple %451, 16 : i32
    %453 = arith.index_cast %452 : i32 to index
    %c0_140 = arith.constant 0 : index
    %454 = vector.load %arg8[%453, %c0_140] : memref<128x32xbf16, #tpu.memory_space<vmem>>, vector<16x32xbf16>
    tpu.vector_store %arg8[%453, %c0_140], %450 {strides = array<i32>} : memref<128x32xbf16, #tpu.memory_space<vmem>>, vector<16x32xbf16>,
    %c7_i32_141 = arith.constant 7 : i32
    %c16_i32_142 = arith.constant 16 : i32
    %455 = arith.muli %c7_i32_141, %c16_i32_142 : i32
    %456 = tpu.assume_multiple %455, 16 : i32
    %457 = arith.index_cast %456 : i32 to index
    %c0_143 = arith.constant 0 : index
    %458 = vector.load %arg9[%457, %c0_143] : memref<128x128xf32, #tpu.memory_space<vmem>>, vector<16x128xf32>
    %459 = arith.truncf %449 : vector<16x32xf32> to vector<16x32xbf16>
    %460 = arith.index_cast %c1_i32_77 : i32 to index
    %c0_144 = arith.constant 0 : index
    %c0_145 = arith.constant 0 : index
    %461 = vector.load %arg3[%460, %c0_144, %c0_145] : memref<4x32x128xbf16, #tpu.memory_space<vmem>>, vector<1x32x128xbf16>
    %462 = vector.shape_cast %461 : vector<1x32x128xbf16> to vector<32x128xbf16>
    %cst_146 = arith.constant dense<0.000000e+00> : vector<16x128xf32>
    %463 = tpu.matmul %459, %462, %cst_146 {dimension_numbers = #tpu.dot_dimension_numbers<[1], [0], [0], [1], [0, 0, 1, 1], [], []>} : vector<16x32xbf16>, vector<32x128xbf16>, vector<16x128xf32> -> vector<16x128xf32>
    %464 = arith.addf %458, %463 : vector<16x128xf32>
    %465 = arith.negf %464 : vector<16x128xf32>
    %466 = math.exp %465 : vector<16x128xf32>
    %cst_147 = arith.constant 1.000000e+00 : f32
    %467 = vector.broadcast %cst_147 : f32 to vector<16x128xf32>
    %468 = arith.addf %467, %466 : vector<16x128xf32>
    %469 = arith.divf %467, %468 : vector<16x128xf32>
    %470 = math.tanh %464 : vector<16x128xf32>
    %471 = vector.extract_strided_slice %469 {offsets = [0, 0], sizes = [16, 32], strides = [1, 1]} : vector<16x128xf32> to vector<16x32xf32>
    %472 = vector.extract_strided_slice %469 {offsets = [0, 32], sizes = [16, 32], strides = [1, 1]} : vector<16x128xf32> to vector<16x32xf32>
    %473 = vector.extract_strided_slice %470 {offsets = [0, 64], sizes = [16, 32], strides = [1, 1]} : vector<16x128xf32> to vector<16x32xf32>
    %474 = vector.extract_strided_slice %469 {offsets = [0, 96], sizes = [16, 32], strides = [1, 1]} : vector<16x128xf32> to vector<16x32xf32>
    %475 = arith.mulf %472, %447 : vector<16x32xf32>
    %476 = arith.mulf %471, %473 : vector<16x32xf32>
    %477 = arith.addf %475, %476 : vector<16x32xf32>
    %478 = math.tanh %477 : vector<16x32xf32>
    %479 = arith.mulf %474, %478 : vector<16x32xf32>
    %480 = arith.truncf %479 : vector<16x32xf32> to vector<16x32xbf16>
    %c16_i32_148 = arith.constant 16 : i32
    %481 = arith.muli %c7_i32_141, %c16_i32_148 : i32
    %482 = tpu.assume_multiple %481, 16 : i32
    %483 = arith.index_cast %482 : i32 to index
    %c0_149 = arith.constant 0 : index
    %484 = vector.load %arg8[%483, %c0_149] : memref<128x32xbf16, #tpu.memory_space<vmem>>, vector<16x32xbf16>
    tpu.vector_store %arg8[%483, %c0_149], %480 {strides = array<i32>} : memref<128x32xbf16, #tpu.memory_space<vmem>>, vector<16x32xbf16>,
    %c8_i32_150 = arith.constant 8 : i32
    %c0_151 = arith.constant 0 : index
    %c0_152 = arith.constant 0 : index
    %485 = vector.load %arg8[%c0_151, %c0_152] : memref<128x32xbf16, #tpu.memory_space<vmem>>, vector<128x32xbf16>
    %c1 = arith.constant 1 : index
    %c0_153 = arith.constant 0 : index
    %c0_154 = arith.constant 0 : index
    %486 = vector.load %arg2[%c1, %c0_153, %c0_154] : memref<3x32x128xbf16, #tpu.memory_space<vmem>>, vector<1x32x128xbf16>
    %487 = vector.shape_cast %486 : vector<1x32x128xbf16> to vector<32x128xbf16>
    %cst_155 = arith.constant dense<0.000000e+00> : vector<128x128xf32>
    %488 = tpu.matmul %485, %487, %cst_155 {dimension_numbers = #tpu.dot_dimension_numbers<[1], [0], [0], [1], [0, 0, 1, 1], [], []>} : vector<128x32xbf16>, vector<32x128xbf16>, vector<128x128xf32> -> vector<128x128xf32>
    %c1_156 = arith.constant 1 : index
    %c0_157 = arith.constant 0 : index
    %c0_158 = arith.constant 0 : index
    %489 = vector.load %arg4[%c1_156, %c0_157, %c0_158] : memref<3x1x128xf32, #tpu.memory_space<vmem>>, vector<1x1x128xf32>
    %490 = vector.shape_cast %489 : vector<1x1x128xf32> to vector<1x128xf32>
    %491 = vector.broadcast %490 : vector<1x128xf32> to vector<128x128xf32>
    %492 = arith.addf %488, %491 : vector<128x128xf32>
    %c0_159 = arith.constant 0 : index
    %c0_160 = arith.constant 0 : index
    %493 = vector.load %arg9[%c0_159, %c0_160] : memref<128x128xf32, #tpu.memory_space<vmem>>, vector<128x128xf32>
    tpu.vector_store %arg9[%c0_159, %c0_160], %492 {strides = array<i32>} : memref<128x128xf32, #tpu.memory_space<vmem>>, vector<128x128xf32>,
    %cst_161 = arith.constant 0.000000e+00 : f32
    %494 = vector.broadcast %cst_161 : f32 to vector<16x32xf32>
    %cst_162 = arith.constant 0.000000e+00 : f32
    %495 = vector.broadcast %cst_162 : f32 to vector<16x32xf32>
    %c2_i32_163 = arith.constant 2 : i32
    %c0_i32_164 = arith.constant 0 : i32
    %c16_i32_165 = arith.constant 16 : i32
    %496 = arith.muli %c0_i32_164, %c16_i32_165 : i32
    %497 = tpu.assume_multiple %496, 16 : i32
    %498 = arith.index_cast %497 : i32 to index
    %c0_166 = arith.constant 0 : index
    %499 = vector.load %arg9[%498, %c0_166] : memref<128x128xf32, #tpu.memory_space<vmem>>, vector<16x128xf32>
    %500 = arith.truncf %494 : vector<16x32xf32> to vector<16x32xbf16>
    %501 = arith.index_cast %c2_i32_163 : i32 to index
    %c0_167 = arith.constant 0 : index
    %c0_168 = arith.constant 0 : index
    %502 = vector.load %arg3[%501, %c0_167, %c0_168] : memref<4x32x128xbf16, #tpu.memory_space<vmem>>, vector<1x32x128xbf16>
    %503 = vector.shape_cast %502 : vector<1x32x128xbf16> to vector<32x128xbf16>
    %cst_169 = arith.constant dense<0.000000e+00> : vector<16x128xf32>
    %504 = tpu.matmul %500, %503, %cst_169 {dimension_numbers = #tpu.dot_dimension_numbers<[1], [0], [0], [1], [0, 0, 1, 1], [], []>} : vector<16x32xbf16>, vector<32x128xbf16>, vector<16x128xf32> -> vector<16x128xf32>
    %505 = arith.addf %499, %504 : vector<16x128xf32>
    %506 = arith.negf %505 : vector<16x128xf32>
    %507 = math.exp %506 : vector<16x128xf32>
    %cst_170 = arith.constant 1.000000e+00 : f32
    %508 = vector.broadcast %cst_170 : f32 to vector<16x128xf32>
    %509 = arith.addf %508, %507 : vector<16x128xf32>
    %510 = arith.divf %508, %509 : vector<16x128xf32>
    %511 = math.tanh %505 : vector<16x128xf32>
    %512 = vector.extract_strided_slice %510 {offsets = [0, 0], sizes = [16, 32], strides = [1, 1]} : vector<16x128xf32> to vector<16x32xf32>
    %513 = vector.extract_strided_slice %510 {offsets = [0, 32], sizes = [16, 32], strides = [1, 1]} : vector<16x128xf32> to vector<16x32xf32>
    %514 = vector.extract_strided_slice %511 {offsets = [0, 64], sizes = [16, 32], strides = [1, 1]} : vector<16x128xf32> to vector<16x32xf32>
    %515 = vector.extract_strided_slice %510 {offsets = [0, 96], sizes = [16, 32], strides = [1, 1]} : vector<16x128xf32> to vector<16x32xf32>
    %516 = arith.mulf %513, %495 : vector<16x32xf32>
    %517 = arith.mulf %512, %514 : vector<16x32xf32>
    %518 = arith.addf %516, %517 : vector<16x32xf32>
    %519 = math.tanh %518 : vector<16x32xf32>
    %520 = arith.mulf %515, %519 : vector<16x32xf32>
    %521 = arith.truncf %520 : vector<16x32xf32> to vector<16x32xbf16>
    %c16_i32_171 = arith.constant 16 : i32
    %522 = arith.muli %c0_i32_164, %c16_i32_171 : i32
    %523 = tpu.assume_multiple %522, 16 : i32
    %524 = arith.index_cast %523 : i32 to index
    %c0_172 = arith.constant 0 : index
    %525 = vector.load %arg8[%524, %c0_172] : memref<128x32xbf16, #tpu.memory_space<vmem>>, vector<16x32xbf16>
    tpu.vector_store %arg8[%524, %c0_172], %521 {strides = array<i32>} : memref<128x32xbf16, #tpu.memory_space<vmem>>, vector<16x32xbf16>,
    %c1_i32_173 = arith.constant 1 : i32
    %c16_i32_174 = arith.constant 16 : i32
    %526 = arith.muli %c1_i32_173, %c16_i32_174 : i32
    %527 = tpu.assume_multiple %526, 16 : i32
    %528 = arith.index_cast %527 : i32 to index
    %c0_175 = arith.constant 0 : index
    %529 = vector.load %arg9[%528, %c0_175] : memref<128x128xf32, #tpu.memory_space<vmem>>, vector<16x128xf32>
    %530 = arith.truncf %520 : vector<16x32xf32> to vector<16x32xbf16>
    %531 = arith.index_cast %c2_i32_163 : i32 to index
    %c0_176 = arith.constant 0 : index
    %c0_177 = arith.constant 0 : index
    %532 = vector.load %arg3[%531, %c0_176, %c0_177] : memref<4x32x128xbf16, #tpu.memory_space<vmem>>, vector<1x32x128xbf16>
    %533 = vector.shape_cast %532 : vector<1x32x128xbf16> to vector<32x128xbf16>
    %cst_178 = arith.constant dense<0.000000e+00> : vector<16x128xf32>
    %534 = tpu.matmul %530, %533, %cst_178 {dimension_numbers = #tpu.dot_dimension_numbers<[1], [0], [0], [1], [0, 0, 1, 1], [], []>} : vector<16x32xbf16>, vector<32x128xbf16>, vector<16x128xf32> -> vector<16x128xf32>
    %535 = arith.addf %529, %534 : vector<16x128xf32>
    %536 = arith.negf %535 : vector<16x128xf32>
    %537 = math.exp %536 : vector<16x128xf32>
    %cst_179 = arith.constant 1.000000e+00 : f32
    %538 = vector.broadcast %cst_179 : f32 to vector<16x128xf32>
    %539 = arith.addf %538, %537 : vector<16x128xf32>
    %540 = arith.divf %538, %539 : vector<16x128xf32>
    %541 = math.tanh %535 : vector<16x128xf32>
    %542 = vector.extract_strided_slice %540 {offsets = [0, 0], sizes = [16, 32], strides = [1, 1]} : vector<16x128xf32> to vector<16x32xf32>
    %543 = vector.extract_strided_slice %540 {offsets = [0, 32], sizes = [16, 32], strides = [1, 1]} : vector<16x128xf32> to vector<16x32xf32>
    %544 = vector.extract_strided_slice %541 {offsets = [0, 64], sizes = [16, 32], strides = [1, 1]} : vector<16x128xf32> to vector<16x32xf32>
    %545 = vector.extract_strided_slice %540 {offsets = [0, 96], sizes = [16, 32], strides = [1, 1]} : vector<16x128xf32> to vector<16x32xf32>
    %546 = arith.mulf %543, %518 : vector<16x32xf32>
    %547 = arith.mulf %542, %544 : vector<16x32xf32>
    %548 = arith.addf %546, %547 : vector<16x32xf32>
    %549 = math.tanh %548 : vector<16x32xf32>
    %550 = arith.mulf %545, %549 : vector<16x32xf32>
    %551 = arith.truncf %550 : vector<16x32xf32> to vector<16x32xbf16>
    %c16_i32_180 = arith.constant 16 : i32
    %552 = arith.muli %c1_i32_173, %c16_i32_180 : i32
    %553 = tpu.assume_multiple %552, 16 : i32
    %554 = arith.index_cast %553 : i32 to index
    %c0_181 = arith.constant 0 : index
    %555 = vector.load %arg8[%554, %c0_181] : memref<128x32xbf16, #tpu.memory_space<vmem>>, vector<16x32xbf16>
    tpu.vector_store %arg8[%554, %c0_181], %551 {strides = array<i32>} : memref<128x32xbf16, #tpu.memory_space<vmem>>, vector<16x32xbf16>,
    %c2_i32_182 = arith.constant 2 : i32
    %c16_i32_183 = arith.constant 16 : i32
    %556 = arith.muli %c2_i32_182, %c16_i32_183 : i32
    %557 = tpu.assume_multiple %556, 16 : i32
    %558 = arith.index_cast %557 : i32 to index
    %c0_184 = arith.constant 0 : index
    %559 = vector.load %arg9[%558, %c0_184] : memref<128x128xf32, #tpu.memory_space<vmem>>, vector<16x128xf32>
    %560 = arith.truncf %550 : vector<16x32xf32> to vector<16x32xbf16>
    %561 = arith.index_cast %c2_i32_163 : i32 to index
    %c0_185 = arith.constant 0 : index
    %c0_186 = arith.constant 0 : index
    %562 = vector.load %arg3[%561, %c0_185, %c0_186] : memref<4x32x128xbf16, #tpu.memory_space<vmem>>, vector<1x32x128xbf16>
    %563 = vector.shape_cast %562 : vector<1x32x128xbf16> to vector<32x128xbf16>
    %cst_187 = arith.constant dense<0.000000e+00> : vector<16x128xf32>
    %564 = tpu.matmul %560, %563, %cst_187 {dimension_numbers = #tpu.dot_dimension_numbers<[1], [0], [0], [1], [0, 0, 1, 1], [], []>} : vector<16x32xbf16>, vector<32x128xbf16>, vector<16x128xf32> -> vector<16x128xf32>
    %565 = arith.addf %559, %564 : vector<16x128xf32>
    %566 = arith.negf %565 : vector<16x128xf32>
    %567 = math.exp %566 : vector<16x128xf32>
    %cst_188 = arith.constant 1.000000e+00 : f32
    %568 = vector.broadcast %cst_188 : f32 to vector<16x128xf32>
    %569 = arith.addf %568, %567 : vector<16x128xf32>
    %570 = arith.divf %568, %569 : vector<16x128xf32>
    %571 = math.tanh %565 : vector<16x128xf32>
    %572 = vector.extract_strided_slice %570 {offsets = [0, 0], sizes = [16, 32], strides = [1, 1]} : vector<16x128xf32> to vector<16x32xf32>
    %573 = vector.extract_strided_slice %570 {offsets = [0, 32], sizes = [16, 32], strides = [1, 1]} : vector<16x128xf32> to vector<16x32xf32>
    %574 = vector.extract_strided_slice %571 {offsets = [0, 64], sizes = [16, 32], strides = [1, 1]} : vector<16x128xf32> to vector<16x32xf32>
    %575 = vector.extract_strided_slice %570 {offsets = [0, 96], sizes = [16, 32], strides = [1, 1]} : vector<16x128xf32> to vector<16x32xf32>
    %576 = arith.mulf %573, %548 : vector<16x32xf32>
    %577 = arith.mulf %572, %574 : vector<16x32xf32>
    %578 = arith.addf %576, %577 : vector<16x32xf32>
    %579 = math.tanh %578 : vector<16x32xf32>
    %580 = arith.mulf %575, %579 : vector<16x32xf32>
    %581 = arith.truncf %580 : vector<16x32xf32> to vector<16x32xbf16>
    %c16_i32_189 = arith.constant 16 : i32
    %582 = arith.muli %c2_i32_182, %c16_i32_189 : i32
    %583 = tpu.assume_multiple %582, 16 : i32
    %584 = arith.index_cast %583 : i32 to index
    %c0_190 = arith.constant 0 : index
    %585 = vector.load %arg8[%584, %c0_190] : memref<128x32xbf16, #tpu.memory_space<vmem>>, vector<16x32xbf16>
    tpu.vector_store %arg8[%584, %c0_190], %581 {strides = array<i32>} : memref<128x32xbf16, #tpu.memory_space<vmem>>, vector<16x32xbf16>,
    %c3_i32_191 = arith.constant 3 : i32
    %c16_i32_192 = arith.constant 16 : i32
    %586 = arith.muli %c3_i32_191, %c16_i32_192 : i32
    %587 = tpu.assume_multiple %586, 16 : i32
    %588 = arith.index_cast %587 : i32 to index
    %c0_193 = arith.constant 0 : index
    %589 = vector.load %arg9[%588, %c0_193] : memref<128x128xf32, #tpu.memory_space<vmem>>, vector<16x128xf32>
    %590 = arith.truncf %580 : vector<16x32xf32> to vector<16x32xbf16>
    %591 = arith.index_cast %c2_i32_163 : i32 to index
    %c0_194 = arith.constant 0 : index
    %c0_195 = arith.constant 0 : index
    %592 = vector.load %arg3[%591, %c0_194, %c0_195] : memref<4x32x128xbf16, #tpu.memory_space<vmem>>, vector<1x32x128xbf16>
    %593 = vector.shape_cast %592 : vector<1x32x128xbf16> to vector<32x128xbf16>
    %cst_196 = arith.constant dense<0.000000e+00> : vector<16x128xf32>
    %594 = tpu.matmul %590, %593, %cst_196 {dimension_numbers = #tpu.dot_dimension_numbers<[1], [0], [0], [1], [0, 0, 1, 1], [], []>} : vector<16x32xbf16>, vector<32x128xbf16>, vector<16x128xf32> -> vector<16x128xf32>
    %595 = arith.addf %589, %594 : vector<16x128xf32>
    %596 = arith.negf %595 : vector<16x128xf32>
    %597 = math.exp %596 : vector<16x128xf32>
    %cst_197 = arith.constant 1.000000e+00 : f32
    %598 = vector.broadcast %cst_197 : f32 to vector<16x128xf32>
    %599 = arith.addf %598, %597 : vector<16x128xf32>
    %600 = arith.divf %598, %599 : vector<16x128xf32>
    %601 = math.tanh %595 : vector<16x128xf32>
    %602 = vector.extract_strided_slice %600 {offsets = [0, 0], sizes = [16, 32], strides = [1, 1]} : vector<16x128xf32> to vector<16x32xf32>
    %603 = vector.extract_strided_slice %600 {offsets = [0, 32], sizes = [16, 32], strides = [1, 1]} : vector<16x128xf32> to vector<16x32xf32>
    %604 = vector.extract_strided_slice %601 {offsets = [0, 64], sizes = [16, 32], strides = [1, 1]} : vector<16x128xf32> to vector<16x32xf32>
    %605 = vector.extract_strided_slice %600 {offsets = [0, 96], sizes = [16, 32], strides = [1, 1]} : vector<16x128xf32> to vector<16x32xf32>
    %606 = arith.mulf %603, %578 : vector<16x32xf32>
    %607 = arith.mulf %602, %604 : vector<16x32xf32>
    %608 = arith.addf %606, %607 : vector<16x32xf32>
    %609 = math.tanh %608 : vector<16x32xf32>
    %610 = arith.mulf %605, %609 : vector<16x32xf32>
    %611 = arith.truncf %610 : vector<16x32xf32> to vector<16x32xbf16>
    %c16_i32_198 = arith.constant 16 : i32
    %612 = arith.muli %c3_i32_191, %c16_i32_198 : i32
    %613 = tpu.assume_multiple %612, 16 : i32
    %614 = arith.index_cast %613 : i32 to index
    %c0_199 = arith.constant 0 : index
    %615 = vector.load %arg8[%614, %c0_199] : memref<128x32xbf16, #tpu.memory_space<vmem>>, vector<16x32xbf16>
    tpu.vector_store %arg8[%614, %c0_199], %611 {strides = array<i32>} : memref<128x32xbf16, #tpu.memory_space<vmem>>, vector<16x32xbf16>,
    %c4_i32_200 = arith.constant 4 : i32
    %c16_i32_201 = arith.constant 16 : i32
    %616 = arith.muli %c4_i32_200, %c16_i32_201 : i32
    %617 = tpu.assume_multiple %616, 16 : i32
    %618 = arith.index_cast %617 : i32 to index
    %c0_202 = arith.constant 0 : index
    %619 = vector.load %arg9[%618, %c0_202] : memref<128x128xf32, #tpu.memory_space<vmem>>, vector<16x128xf32>
    %620 = arith.truncf %610 : vector<16x32xf32> to vector<16x32xbf16>
    %621 = arith.index_cast %c2_i32_163 : i32 to index
    %c0_203 = arith.constant 0 : index
    %c0_204 = arith.constant 0 : index
    %622 = vector.load %arg3[%621, %c0_203, %c0_204] : memref<4x32x128xbf16, #tpu.memory_space<vmem>>, vector<1x32x128xbf16>
    %623 = vector.shape_cast %622 : vector<1x32x128xbf16> to vector<32x128xbf16>
    %cst_205 = arith.constant dense<0.000000e+00> : vector<16x128xf32>
    %624 = tpu.matmul %620, %623, %cst_205 {dimension_numbers = #tpu.dot_dimension_numbers<[1], [0], [0], [1], [0, 0, 1, 1], [], []>} : vector<16x32xbf16>, vector<32x128xbf16>, vector<16x128xf32> -> vector<16x128xf32>
    %625 = arith.addf %619, %624 : vector<16x128xf32>
    %626 = arith.negf %625 : vector<16x128xf32>
    %627 = math.exp %626 : vector<16x128xf32>
    %cst_206 = arith.constant 1.000000e+00 : f32
    %628 = vector.broadcast %cst_206 : f32 to vector<16x128xf32>
    %629 = arith.addf %628, %627 : vector<16x128xf32>
    %630 = arith.divf %628, %629 : vector<16x128xf32>
    %631 = math.tanh %625 : vector<16x128xf32>
    %632 = vector.extract_strided_slice %630 {offsets = [0, 0], sizes = [16, 32], strides = [1, 1]} : vector<16x128xf32> to vector<16x32xf32>
    %633 = vector.extract_strided_slice %630 {offsets = [0, 32], sizes = [16, 32], strides = [1, 1]} : vector<16x128xf32> to vector<16x32xf32>
    %634 = vector.extract_strided_slice %631 {offsets = [0, 64], sizes = [16, 32], strides = [1, 1]} : vector<16x128xf32> to vector<16x32xf32>
    %635 = vector.extract_strided_slice %630 {offsets = [0, 96], sizes = [16, 32], strides = [1, 1]} : vector<16x128xf32> to vector<16x32xf32>
    %636 = arith.mulf %633, %608 : vector<16x32xf32>
    %637 = arith.mulf %632, %634 : vector<16x32xf32>
    %638 = arith.addf %636, %637 : vector<16x32xf32>
    %639 = math.tanh %638 : vector<16x32xf32>
    %640 = arith.mulf %635, %639 : vector<16x32xf32>
    %641 = arith.truncf %640 : vector<16x32xf32> to vector<16x32xbf16>
    %c16_i32_207 = arith.constant 16 : i32
    %642 = arith.muli %c4_i32_200, %c16_i32_207 : i32
    %643 = tpu.assume_multiple %642, 16 : i32
    %644 = arith.index_cast %643 : i32 to index
    %c0_208 = arith.constant 0 : index
    %645 = vector.load %arg8[%644, %c0_208] : memref<128x32xbf16, #tpu.memory_space<vmem>>, vector<16x32xbf16>
    tpu.vector_store %arg8[%644, %c0_208], %641 {strides = array<i32>} : memref<128x32xbf16, #tpu.memory_space<vmem>>, vector<16x32xbf16>,
    %c5_i32_209 = arith.constant 5 : i32
    %c16_i32_210 = arith.constant 16 : i32
    %646 = arith.muli %c5_i32_209, %c16_i32_210 : i32
    %647 = tpu.assume_multiple %646, 16 : i32
    %648 = arith.index_cast %647 : i32 to index
    %c0_211 = arith.constant 0 : index
    %649 = vector.load %arg9[%648, %c0_211] : memref<128x128xf32, #tpu.memory_space<vmem>>, vector<16x128xf32>
    %650 = arith.truncf %640 : vector<16x32xf32> to vector<16x32xbf16>
    %651 = arith.index_cast %c2_i32_163 : i32 to index
    %c0_212 = arith.constant 0 : index
    %c0_213 = arith.constant 0 : index
    %652 = vector.load %arg3[%651, %c0_212, %c0_213] : memref<4x32x128xbf16, #tpu.memory_space<vmem>>, vector<1x32x128xbf16>
    %653 = vector.shape_cast %652 : vector<1x32x128xbf16> to vector<32x128xbf16>
    %cst_214 = arith.constant dense<0.000000e+00> : vector<16x128xf32>
    %654 = tpu.matmul %650, %653, %cst_214 {dimension_numbers = #tpu.dot_dimension_numbers<[1], [0], [0], [1], [0, 0, 1, 1], [], []>} : vector<16x32xbf16>, vector<32x128xbf16>, vector<16x128xf32> -> vector<16x128xf32>
    %655 = arith.addf %649, %654 : vector<16x128xf32>
    %656 = arith.negf %655 : vector<16x128xf32>
    %657 = math.exp %656 : vector<16x128xf32>
    %cst_215 = arith.constant 1.000000e+00 : f32
    %658 = vector.broadcast %cst_215 : f32 to vector<16x128xf32>
    %659 = arith.addf %658, %657 : vector<16x128xf32>
    %660 = arith.divf %658, %659 : vector<16x128xf32>
    %661 = math.tanh %655 : vector<16x128xf32>
    %662 = vector.extract_strided_slice %660 {offsets = [0, 0], sizes = [16, 32], strides = [1, 1]} : vector<16x128xf32> to vector<16x32xf32>
    %663 = vector.extract_strided_slice %660 {offsets = [0, 32], sizes = [16, 32], strides = [1, 1]} : vector<16x128xf32> to vector<16x32xf32>
    %664 = vector.extract_strided_slice %661 {offsets = [0, 64], sizes = [16, 32], strides = [1, 1]} : vector<16x128xf32> to vector<16x32xf32>
    %665 = vector.extract_strided_slice %660 {offsets = [0, 96], sizes = [16, 32], strides = [1, 1]} : vector<16x128xf32> to vector<16x32xf32>
    %666 = arith.mulf %663, %638 : vector<16x32xf32>
    %667 = arith.mulf %662, %664 : vector<16x32xf32>
    %668 = arith.addf %666, %667 : vector<16x32xf32>
    %669 = math.tanh %668 : vector<16x32xf32>
    %670 = arith.mulf %665, %669 : vector<16x32xf32>
    %671 = arith.truncf %670 : vector<16x32xf32> to vector<16x32xbf16>
    %c16_i32_216 = arith.constant 16 : i32
    %672 = arith.muli %c5_i32_209, %c16_i32_216 : i32
    %673 = tpu.assume_multiple %672, 16 : i32
    %674 = arith.index_cast %673 : i32 to index
    %c0_217 = arith.constant 0 : index
    %675 = vector.load %arg8[%674, %c0_217] : memref<128x32xbf16, #tpu.memory_space<vmem>>, vector<16x32xbf16>
    tpu.vector_store %arg8[%674, %c0_217], %671 {strides = array<i32>} : memref<128x32xbf16, #tpu.memory_space<vmem>>, vector<16x32xbf16>,
    %c6_i32_218 = arith.constant 6 : i32
    %c16_i32_219 = arith.constant 16 : i32
    %676 = arith.muli %c6_i32_218, %c16_i32_219 : i32
    %677 = tpu.assume_multiple %676, 16 : i32
    %678 = arith.index_cast %677 : i32 to index
    %c0_220 = arith.constant 0 : index
    %679 = vector.load %arg9[%678, %c0_220] : memref<128x128xf32, #tpu.memory_space<vmem>>, vector<16x128xf32>
    %680 = arith.truncf %670 : vector<16x32xf32> to vector<16x32xbf16>
    %681 = arith.index_cast %c2_i32_163 : i32 to index
    %c0_221 = arith.constant 0 : index
    %c0_222 = arith.constant 0 : index
    %682 = vector.load %arg3[%681, %c0_221, %c0_222] : memref<4x32x128xbf16, #tpu.memory_space<vmem>>, vector<1x32x128xbf16>
    %683 = vector.shape_cast %682 : vector<1x32x128xbf16> to vector<32x128xbf16>
    %cst_223 = arith.constant dense<0.000000e+00> : vector<16x128xf32>
    %684 = tpu.matmul %680, %683, %cst_223 {dimension_numbers = #tpu.dot_dimension_numbers<[1], [0], [0], [1], [0, 0, 1, 1], [], []>} : vector<16x32xbf16>, vector<32x128xbf16>, vector<16x128xf32> -> vector<16x128xf32>
    %685 = arith.addf %679, %684 : vector<16x128xf32>
    %686 = arith.negf %685 : vector<16x128xf32>
    %687 = math.exp %686 : vector<16x128xf32>
    %cst_224 = arith.constant 1.000000e+00 : f32
    %688 = vector.broadcast %cst_224 : f32 to vector<16x128xf32>
    %689 = arith.addf %688, %687 : vector<16x128xf32>
    %690 = arith.divf %688, %689 : vector<16x128xf32>
    %691 = math.tanh %685 : vector<16x128xf32>
    %692 = vector.extract_strided_slice %690 {offsets = [0, 0], sizes = [16, 32], strides = [1, 1]} : vector<16x128xf32> to vector<16x32xf32>
    %693 = vector.extract_strided_slice %690 {offsets = [0, 32], sizes = [16, 32], strides = [1, 1]} : vector<16x128xf32> to vector<16x32xf32>
    %694 = vector.extract_strided_slice %691 {offsets = [0, 64], sizes = [16, 32], strides = [1, 1]} : vector<16x128xf32> to vector<16x32xf32>
    %695 = vector.extract_strided_slice %690 {offsets = [0, 96], sizes = [16, 32], strides = [1, 1]} : vector<16x128xf32> to vector<16x32xf32>
    %696 = arith.mulf %693, %668 : vector<16x32xf32>
    %697 = arith.mulf %692, %694 : vector<16x32xf32>
    %698 = arith.addf %696, %697 : vector<16x32xf32>
    %699 = math.tanh %698 : vector<16x32xf32>
    %700 = arith.mulf %695, %699 : vector<16x32xf32>
    %701 = arith.truncf %700 : vector<16x32xf32> to vector<16x32xbf16>
    %c16_i32_225 = arith.constant 16 : i32
    %702 = arith.muli %c6_i32_218, %c16_i32_225 : i32
    %703 = tpu.assume_multiple %702, 16 : i32
    %704 = arith.index_cast %703 : i32 to index
    %c0_226 = arith.constant 0 : index
    %705 = vector.load %arg8[%704, %c0_226] : memref<128x32xbf16, #tpu.memory_space<vmem>>, vector<16x32xbf16>
    tpu.vector_store %arg8[%704, %c0_226], %701 {strides = array<i32>} : memref<128x32xbf16, #tpu.memory_space<vmem>>, vector<16x32xbf16>,
    %c7_i32_227 = arith.constant 7 : i32
    %c16_i32_228 = arith.constant 16 : i32
    %706 = arith.muli %c7_i32_227, %c16_i32_228 : i32
    %707 = tpu.assume_multiple %706, 16 : i32
    %708 = arith.index_cast %707 : i32 to index
    %c0_229 = arith.constant 0 : index
    %709 = vector.load %arg9[%708, %c0_229] : memref<128x128xf32, #tpu.memory_space<vmem>>, vector<16x128xf32>
    %710 = arith.truncf %700 : vector<16x32xf32> to vector<16x32xbf16>
    %711 = arith.index_cast %c2_i32_163 : i32 to index
    %c0_230 = arith.constant 0 : index
    %c0_231 = arith.constant 0 : index
    %712 = vector.load %arg3[%711, %c0_230, %c0_231] : memref<4x32x128xbf16, #tpu.memory_space<vmem>>, vector<1x32x128xbf16>
    %713 = vector.shape_cast %712 : vector<1x32x128xbf16> to vector<32x128xbf16>
    %cst_232 = arith.constant dense<0.000000e+00> : vector<16x128xf32>
    %714 = tpu.matmul %710, %713, %cst_232 {dimension_numbers = #tpu.dot_dimension_numbers<[1], [0], [0], [1], [0, 0, 1, 1], [], []>} : vector<16x32xbf16>, vector<32x128xbf16>, vector<16x128xf32> -> vector<16x128xf32>
    %715 = arith.addf %709, %714 : vector<16x128xf32>
    %716 = arith.negf %715 : vector<16x128xf32>
    %717 = math.exp %716 : vector<16x128xf32>
    %cst_233 = arith.constant 1.000000e+00 : f32
    %718 = vector.broadcast %cst_233 : f32 to vector<16x128xf32>
    %719 = arith.addf %718, %717 : vector<16x128xf32>
    %720 = arith.divf %718, %719 : vector<16x128xf32>
    %721 = math.tanh %715 : vector<16x128xf32>
    %722 = vector.extract_strided_slice %720 {offsets = [0, 0], sizes = [16, 32], strides = [1, 1]} : vector<16x128xf32> to vector<16x32xf32>
    %723 = vector.extract_strided_slice %720 {offsets = [0, 32], sizes = [16, 32], strides = [1, 1]} : vector<16x128xf32> to vector<16x32xf32>
    %724 = vector.extract_strided_slice %721 {offsets = [0, 64], sizes = [16, 32], strides = [1, 1]} : vector<16x128xf32> to vector<16x32xf32>
    %725 = vector.extract_strided_slice %720 {offsets = [0, 96], sizes = [16, 32], strides = [1, 1]} : vector<16x128xf32> to vector<16x32xf32>
    %726 = arith.mulf %723, %698 : vector<16x32xf32>
    %727 = arith.mulf %722, %724 : vector<16x32xf32>
    %728 = arith.addf %726, %727 : vector<16x32xf32>
    %729 = math.tanh %728 : vector<16x32xf32>
    %730 = arith.mulf %725, %729 : vector<16x32xf32>
    %731 = arith.truncf %730 : vector<16x32xf32> to vector<16x32xbf16>
    %c16_i32_234 = arith.constant 16 : i32
    %732 = arith.muli %c7_i32_227, %c16_i32_234 : i32
    %733 = tpu.assume_multiple %732, 16 : i32
    %734 = arith.index_cast %733 : i32 to index
    %c0_235 = arith.constant 0 : index
    %735 = vector.load %arg8[%734, %c0_235] : memref<128x32xbf16, #tpu.memory_space<vmem>>, vector<16x32xbf16>
    tpu.vector_store %arg8[%734, %c0_235], %731 {strides = array<i32>} : memref<128x32xbf16, #tpu.memory_space<vmem>>, vector<16x32xbf16>,
    %c8_i32_236 = arith.constant 8 : i32
    %c0_237 = arith.constant 0 : index
    %c0_238 = arith.constant 0 : index
    %736 = vector.load %arg8[%c0_237, %c0_238] : memref<128x32xbf16, #tpu.memory_space<vmem>>, vector<128x32xbf16>
    %c2 = arith.constant 2 : index
    %c0_239 = arith.constant 0 : index
    %c0_240 = arith.constant 0 : index
    %737 = vector.load %arg2[%c2, %c0_239, %c0_240] : memref<3x32x128xbf16, #tpu.memory_space<vmem>>, vector<1x32x128xbf16>
    %738 = vector.shape_cast %737 : vector<1x32x128xbf16> to vector<32x128xbf16>
    %cst_241 = arith.constant dense<0.000000e+00> : vector<128x128xf32>
    %739 = tpu.matmul %736, %738, %cst_241 {dimension_numbers = #tpu.dot_dimension_numbers<[1], [0], [0], [1], [0, 0, 1, 1], [], []>} : vector<128x32xbf16>, vector<32x128xbf16>, vector<128x128xf32> -> vector<128x128xf32>
    %c2_242 = arith.constant 2 : index
    %c0_243 = arith.constant 0 : index
    %c0_244 = arith.constant 0 : index
    %740 = vector.load %arg4[%c2_242, %c0_243, %c0_244] : memref<3x1x128xf32, #tpu.memory_space<vmem>>, vector<1x1x128xf32>
    %741 = vector.shape_cast %740 : vector<1x1x128xf32> to vector<1x128xf32>
    %742 = vector.broadcast %741 : vector<1x128xf32> to vector<128x128xf32>
    %743 = arith.addf %739, %742 : vector<128x128xf32>
    %c0_245 = arith.constant 0 : index
    %c0_246 = arith.constant 0 : index
    %744 = vector.load %arg9[%c0_245, %c0_246] : memref<128x128xf32, #tpu.memory_space<vmem>>, vector<128x128xf32>
    tpu.vector_store %arg9[%c0_245, %c0_246], %743 {strides = array<i32>} : memref<128x128xf32, #tpu.memory_space<vmem>>, vector<128x128xf32>,
    %cst_247 = arith.constant 0.000000e+00 : f32
    %745 = vector.broadcast %cst_247 : f32 to vector<16x32xf32>
    %cst_248 = arith.constant 0.000000e+00 : f32
    %746 = vector.broadcast %cst_248 : f32 to vector<16x32xf32>
    %c3_i32_249 = arith.constant 3 : i32
    %c0_i32_250 = arith.constant 0 : i32
    %c16_i32_251 = arith.constant 16 : i32
    %747 = arith.muli %c0_i32_250, %c16_i32_251 : i32
    %748 = tpu.assume_multiple %747, 16 : i32
    %749 = arith.index_cast %748 : i32 to index
    %c0_252 = arith.constant 0 : index
    %750 = vector.load %arg9[%749, %c0_252] : memref<128x128xf32, #tpu.memory_space<vmem>>, vector<16x128xf32>
    %751 = arith.truncf %745 : vector<16x32xf32> to vector<16x32xbf16>
    %752 = arith.index_cast %c3_i32_249 : i32 to index
    %c0_253 = arith.constant 0 : index
    %c0_254 = arith.constant 0 : index
    %753 = vector.load %arg3[%752, %c0_253, %c0_254] : memref<4x32x128xbf16, #tpu.memory_space<vmem>>, vector<1x32x128xbf16>
    %754 = vector.shape_cast %753 : vector<1x32x128xbf16> to vector<32x128xbf16>
    %cst_255 = arith.constant dense<0.000000e+00> : vector<16x128xf32>
    %755 = tpu.matmul %751, %754, %cst_255 {dimension_numbers = #tpu.dot_dimension_numbers<[1], [0], [0], [1], [0, 0, 1, 1], [], []>} : vector<16x32xbf16>, vector<32x128xbf16>, vector<16x128xf32> -> vector<16x128xf32>
    %756 = arith.addf %750, %755 : vector<16x128xf32>
    %757 = arith.negf %756 : vector<16x128xf32>
    %758 = math.exp %757 : vector<16x128xf32>
    %cst_256 = arith.constant 1.000000e+00 : f32
    %759 = vector.broadcast %cst_256 : f32 to vector<16x128xf32>
    %760 = arith.addf %759, %758 : vector<16x128xf32>
    %761 = arith.divf %759, %760 : vector<16x128xf32>
    %762 = math.tanh %756 : vector<16x128xf32>
    %763 = vector.extract_strided_slice %761 {offsets = [0, 0], sizes = [16, 32], strides = [1, 1]} : vector<16x128xf32> to vector<16x32xf32>
    %764 = vector.extract_strided_slice %761 {offsets = [0, 32], sizes = [16, 32], strides = [1, 1]} : vector<16x128xf32> to vector<16x32xf32>
    %765 = vector.extract_strided_slice %762 {offsets = [0, 64], sizes = [16, 32], strides = [1, 1]} : vector<16x128xf32> to vector<16x32xf32>
    %766 = vector.extract_strided_slice %761 {offsets = [0, 96], sizes = [16, 32], strides = [1, 1]} : vector<16x128xf32> to vector<16x32xf32>
    %767 = arith.mulf %764, %746 : vector<16x32xf32>
    %768 = arith.mulf %763, %765 : vector<16x32xf32>
    %769 = arith.addf %767, %768 : vector<16x32xf32>
    %770 = math.tanh %769 : vector<16x32xf32>
    %771 = arith.mulf %766, %770 : vector<16x32xf32>
    %c1_i32_257 = arith.constant 1 : i32
    %c16_i32_258 = arith.constant 16 : i32
    %772 = arith.muli %c1_i32_257, %c16_i32_258 : i32
    %773 = tpu.assume_multiple %772, 16 : i32
    %774 = arith.index_cast %773 : i32 to index
    %c0_259 = arith.constant 0 : index
    %775 = vector.load %arg9[%774, %c0_259] : memref<128x128xf32, #tpu.memory_space<vmem>>, vector<16x128xf32>
    %776 = arith.truncf %771 : vector<16x32xf32> to vector<16x32xbf16>
    %777 = arith.index_cast %c3_i32_249 : i32 to index
    %c0_260 = arith.constant 0 : index
    %c0_261 = arith.constant 0 : index
    %778 = vector.load %arg3[%777, %c0_260, %c0_261] : memref<4x32x128xbf16, #tpu.memory_space<vmem>>, vector<1x32x128xbf16>
    %779 = vector.shape_cast %778 : vector<1x32x128xbf16> to vector<32x128xbf16>
    %cst_262 = arith.constant dense<0.000000e+00> : vector<16x128xf32>
    %780 = tpu.matmul %776, %779, %cst_262 {dimension_numbers = #tpu.dot_dimension_numbers<[1], [0], [0], [1], [0, 0, 1, 1], [], []>} : vector<16x32xbf16>, vector<32x128xbf16>, vector<16x128xf32> -> vector<16x128xf32>
    %781 = arith.addf %775, %780 : vector<16x128xf32>
    %782 = arith.negf %781 : vector<16x128xf32>
    %783 = math.exp %782 : vector<16x128xf32>
    %cst_263 = arith.constant 1.000000e+00 : f32
    %784 = vector.broadcast %cst_263 : f32 to vector<16x128xf32>
    %785 = arith.addf %784, %783 : vector<16x128xf32>
    %786 = arith.divf %784, %785 : vector<16x128xf32>
    %787 = math.tanh %781 : vector<16x128xf32>
    %788 = vector.extract_strided_slice %786 {offsets = [0, 0], sizes = [16, 32], strides = [1, 1]} : vector<16x128xf32> to vector<16x32xf32>
    %789 = vector.extract_strided_slice %786 {offsets = [0, 32], sizes = [16, 32], strides = [1, 1]} : vector<16x128xf32> to vector<16x32xf32>
    %790 = vector.extract_strided_slice %787 {offsets = [0, 64], sizes = [16, 32], strides = [1, 1]} : vector<16x128xf32> to vector<16x32xf32>
    %791 = vector.extract_strided_slice %786 {offsets = [0, 96], sizes = [16, 32], strides = [1, 1]} : vector<16x128xf32> to vector<16x32xf32>
    %792 = arith.mulf %789, %769 : vector<16x32xf32>
    %793 = arith.mulf %788, %790 : vector<16x32xf32>
    %794 = arith.addf %792, %793 : vector<16x32xf32>
    %795 = math.tanh %794 : vector<16x32xf32>
    %796 = arith.mulf %791, %795 : vector<16x32xf32>
    %c2_i32_264 = arith.constant 2 : i32
    %c16_i32_265 = arith.constant 16 : i32
    %797 = arith.muli %c2_i32_264, %c16_i32_265 : i32
    %798 = tpu.assume_multiple %797, 16 : i32
    %799 = arith.index_cast %798 : i32 to index
    %c0_266 = arith.constant 0 : index
    %800 = vector.load %arg9[%799, %c0_266] : memref<128x128xf32, #tpu.memory_space<vmem>>, vector<16x128xf32>
    %801 = arith.truncf %796 : vector<16x32xf32> to vector<16x32xbf16>
    %802 = arith.index_cast %c3_i32_249 : i32 to index
    %c0_267 = arith.constant 0 : index
    %c0_268 = arith.constant 0 : index
    %803 = vector.load %arg3[%802, %c0_267, %c0_268] : memref<4x32x128xbf16, #tpu.memory_space<vmem>>, vector<1x32x128xbf16>
    %804 = vector.shape_cast %803 : vector<1x32x128xbf16> to vector<32x128xbf16>
    %cst_269 = arith.constant dense<0.000000e+00> : vector<16x128xf32>
    %805 = tpu.matmul %801, %804, %cst_269 {dimension_numbers = #tpu.dot_dimension_numbers<[1], [0], [0], [1], [0, 0, 1, 1], [], []>} : vector<16x32xbf16>, vector<32x128xbf16>, vector<16x128xf32> -> vector<16x128xf32>
    %806 = arith.addf %800, %805 : vector<16x128xf32>
    %807 = arith.negf %806 : vector<16x128xf32>
    %808 = math.exp %807 : vector<16x128xf32>
    %cst_270 = arith.constant 1.000000e+00 : f32
    %809 = vector.broadcast %cst_270 : f32 to vector<16x128xf32>
    %810 = arith.addf %809, %808 : vector<16x128xf32>
    %811 = arith.divf %809, %810 : vector<16x128xf32>
    %812 = math.tanh %806 : vector<16x128xf32>
    %813 = vector.extract_strided_slice %811 {offsets = [0, 0], sizes = [16, 32], strides = [1, 1]} : vector<16x128xf32> to vector<16x32xf32>
    %814 = vector.extract_strided_slice %811 {offsets = [0, 32], sizes = [16, 32], strides = [1, 1]} : vector<16x128xf32> to vector<16x32xf32>
    %815 = vector.extract_strided_slice %812 {offsets = [0, 64], sizes = [16, 32], strides = [1, 1]} : vector<16x128xf32> to vector<16x32xf32>
    %816 = vector.extract_strided_slice %811 {offsets = [0, 96], sizes = [16, 32], strides = [1, 1]} : vector<16x128xf32> to vector<16x32xf32>
    %817 = arith.mulf %814, %794 : vector<16x32xf32>
    %818 = arith.mulf %813, %815 : vector<16x32xf32>
    %819 = arith.addf %817, %818 : vector<16x32xf32>
    %820 = math.tanh %819 : vector<16x32xf32>
    %821 = arith.mulf %816, %820 : vector<16x32xf32>
    %c3_i32_271 = arith.constant 3 : i32
    %c16_i32_272 = arith.constant 16 : i32
    %822 = arith.muli %c3_i32_271, %c16_i32_272 : i32
    %823 = tpu.assume_multiple %822, 16 : i32
    %824 = arith.index_cast %823 : i32 to index
    %c0_273 = arith.constant 0 : index
    %825 = vector.load %arg9[%824, %c0_273] : memref<128x128xf32, #tpu.memory_space<vmem>>, vector<16x128xf32>
    %826 = arith.truncf %821 : vector<16x32xf32> to vector<16x32xbf16>
    %827 = arith.index_cast %c3_i32_249 : i32 to index
    %c0_274 = arith.constant 0 : index
    %c0_275 = arith.constant 0 : index
    %828 = vector.load %arg3[%827, %c0_274, %c0_275] : memref<4x32x128xbf16, #tpu.memory_space<vmem>>, vector<1x32x128xbf16>
    %829 = vector.shape_cast %828 : vector<1x32x128xbf16> to vector<32x128xbf16>
    %cst_276 = arith.constant dense<0.000000e+00> : vector<16x128xf32>
    %830 = tpu.matmul %826, %829, %cst_276 {dimension_numbers = #tpu.dot_dimension_numbers<[1], [0], [0], [1], [0, 0, 1, 1], [], []>} : vector<16x32xbf16>, vector<32x128xbf16>, vector<16x128xf32> -> vector<16x128xf32>
    %831 = arith.addf %825, %830 : vector<16x128xf32>
    %832 = arith.negf %831 : vector<16x128xf32>
    %833 = math.exp %832 : vector<16x128xf32>
    %cst_277 = arith.constant 1.000000e+00 : f32
    %834 = vector.broadcast %cst_277 : f32 to vector<16x128xf32>
    %835 = arith.addf %834, %833 : vector<16x128xf32>
    %836 = arith.divf %834, %835 : vector<16x128xf32>
    %837 = math.tanh %831 : vector<16x128xf32>
    %838 = vector.extract_strided_slice %836 {offsets = [0, 0], sizes = [16, 32], strides = [1, 1]} : vector<16x128xf32> to vector<16x32xf32>
    %839 = vector.extract_strided_slice %836 {offsets = [0, 32], sizes = [16, 32], strides = [1, 1]} : vector<16x128xf32> to vector<16x32xf32>
    %840 = vector.extract_strided_slice %837 {offsets = [0, 64], sizes = [16, 32], strides = [1, 1]} : vector<16x128xf32> to vector<16x32xf32>
    %841 = vector.extract_strided_slice %836 {offsets = [0, 96], sizes = [16, 32], strides = [1, 1]} : vector<16x128xf32> to vector<16x32xf32>
    %842 = arith.mulf %839, %819 : vector<16x32xf32>
    %843 = arith.mulf %838, %840 : vector<16x32xf32>
    %844 = arith.addf %842, %843 : vector<16x32xf32>
    %845 = math.tanh %844 : vector<16x32xf32>
    %846 = arith.mulf %841, %845 : vector<16x32xf32>
    %c4_i32_278 = arith.constant 4 : i32
    %c16_i32_279 = arith.constant 16 : i32
    %847 = arith.muli %c4_i32_278, %c16_i32_279 : i32
    %848 = tpu.assume_multiple %847, 16 : i32
    %849 = arith.index_cast %848 : i32 to index
    %c0_280 = arith.constant 0 : index
    %850 = vector.load %arg9[%849, %c0_280] : memref<128x128xf32, #tpu.memory_space<vmem>>, vector<16x128xf32>
    %851 = arith.truncf %846 : vector<16x32xf32> to vector<16x32xbf16>
    %852 = arith.index_cast %c3_i32_249 : i32 to index
    %c0_281 = arith.constant 0 : index
    %c0_282 = arith.constant 0 : index
    %853 = vector.load %arg3[%852, %c0_281, %c0_282] : memref<4x32x128xbf16, #tpu.memory_space<vmem>>, vector<1x32x128xbf16>
    %854 = vector.shape_cast %853 : vector<1x32x128xbf16> to vector<32x128xbf16>
    %cst_283 = arith.constant dense<0.000000e+00> : vector<16x128xf32>
    %855 = tpu.matmul %851, %854, %cst_283 {dimension_numbers = #tpu.dot_dimension_numbers<[1], [0], [0], [1], [0, 0, 1, 1], [], []>} : vector<16x32xbf16>, vector<32x128xbf16>, vector<16x128xf32> -> vector<16x128xf32>
    %856 = arith.addf %850, %855 : vector<16x128xf32>
    %857 = arith.negf %856 : vector<16x128xf32>
    %858 = math.exp %857 : vector<16x128xf32>
    %cst_284 = arith.constant 1.000000e+00 : f32
    %859 = vector.broadcast %cst_284 : f32 to vector<16x128xf32>
    %860 = arith.addf %859, %858 : vector<16x128xf32>
    %861 = arith.divf %859, %860 : vector<16x128xf32>
    %862 = math.tanh %856 : vector<16x128xf32>
    %863 = vector.extract_strided_slice %861 {offsets = [0, 0], sizes = [16, 32], strides = [1, 1]} : vector<16x128xf32> to vector<16x32xf32>
    %864 = vector.extract_strided_slice %861 {offsets = [0, 32], sizes = [16, 32], strides = [1, 1]} : vector<16x128xf32> to vector<16x32xf32>
    %865 = vector.extract_strided_slice %862 {offsets = [0, 64], sizes = [16, 32], strides = [1, 1]} : vector<16x128xf32> to vector<16x32xf32>
    %866 = vector.extract_strided_slice %861 {offsets = [0, 96], sizes = [16, 32], strides = [1, 1]} : vector<16x128xf32> to vector<16x32xf32>
    %867 = arith.mulf %864, %844 : vector<16x32xf32>
    %868 = arith.mulf %863, %865 : vector<16x32xf32>
    %869 = arith.addf %867, %868 : vector<16x32xf32>
    %870 = math.tanh %869 : vector<16x32xf32>
    %871 = arith.mulf %866, %870 : vector<16x32xf32>
    %c5_i32_285 = arith.constant 5 : i32
    %c16_i32_286 = arith.constant 16 : i32
    %872 = arith.muli %c5_i32_285, %c16_i32_286 : i32
    %873 = tpu.assume_multiple %872, 16 : i32
    %874 = arith.index_cast %873 : i32 to index
    %c0_287 = arith.constant 0 : index
    %875 = vector.load %arg9[%874, %c0_287] : memref<128x128xf32, #tpu.memory_space<vmem>>, vector<16x128xf32>
    %876 = arith.truncf %871 : vector<16x32xf32> to vector<16x32xbf16>
    %877 = arith.index_cast %c3_i32_249 : i32 to index
    %c0_288 = arith.constant 0 : index
    %c0_289 = arith.constant 0 : index
    %878 = vector.load %arg3[%877, %c0_288, %c0_289] : memref<4x32x128xbf16, #tpu.memory_space<vmem>>, vector<1x32x128xbf16>
    %879 = vector.shape_cast %878 : vector<1x32x128xbf16> to vector<32x128xbf16>
    %cst_290 = arith.constant dense<0.000000e+00> : vector<16x128xf32>
    %880 = tpu.matmul %876, %879, %cst_290 {dimension_numbers = #tpu.dot_dimension_numbers<[1], [0], [0], [1], [0, 0, 1, 1], [], []>} : vector<16x32xbf16>, vector<32x128xbf16>, vector<16x128xf32> -> vector<16x128xf32>
    %881 = arith.addf %875, %880 : vector<16x128xf32>
    %882 = arith.negf %881 : vector<16x128xf32>
    %883 = math.exp %882 : vector<16x128xf32>
    %cst_291 = arith.constant 1.000000e+00 : f32
    %884 = vector.broadcast %cst_291 : f32 to vector<16x128xf32>
    %885 = arith.addf %884, %883 : vector<16x128xf32>
    %886 = arith.divf %884, %885 : vector<16x128xf32>
    %887 = math.tanh %881 : vector<16x128xf32>
    %888 = vector.extract_strided_slice %886 {offsets = [0, 0], sizes = [16, 32], strides = [1, 1]} : vector<16x128xf32> to vector<16x32xf32>
    %889 = vector.extract_strided_slice %886 {offsets = [0, 32], sizes = [16, 32], strides = [1, 1]} : vector<16x128xf32> to vector<16x32xf32>
    %890 = vector.extract_strided_slice %887 {offsets = [0, 64], sizes = [16, 32], strides = [1, 1]} : vector<16x128xf32> to vector<16x32xf32>
    %891 = vector.extract_strided_slice %886 {offsets = [0, 96], sizes = [16, 32], strides = [1, 1]} : vector<16x128xf32> to vector<16x32xf32>
    %892 = arith.mulf %889, %869 : vector<16x32xf32>
    %893 = arith.mulf %888, %890 : vector<16x32xf32>
    %894 = arith.addf %892, %893 : vector<16x32xf32>
    %895 = math.tanh %894 : vector<16x32xf32>
    %896 = arith.mulf %891, %895 : vector<16x32xf32>
    %c6_i32_292 = arith.constant 6 : i32
    %c16_i32_293 = arith.constant 16 : i32
    %897 = arith.muli %c6_i32_292, %c16_i32_293 : i32
    %898 = tpu.assume_multiple %897, 16 : i32
    %899 = arith.index_cast %898 : i32 to index
    %c0_294 = arith.constant 0 : index
    %900 = vector.load %arg9[%899, %c0_294] : memref<128x128xf32, #tpu.memory_space<vmem>>, vector<16x128xf32>
    %901 = arith.truncf %896 : vector<16x32xf32> to vector<16x32xbf16>
    %902 = arith.index_cast %c3_i32_249 : i32 to index
    %c0_295 = arith.constant 0 : index
    %c0_296 = arith.constant 0 : index
    %903 = vector.load %arg3[%902, %c0_295, %c0_296] : memref<4x32x128xbf16, #tpu.memory_space<vmem>>, vector<1x32x128xbf16>
    %904 = vector.shape_cast %903 : vector<1x32x128xbf16> to vector<32x128xbf16>
    %cst_297 = arith.constant dense<0.000000e+00> : vector<16x128xf32>
    %905 = tpu.matmul %901, %904, %cst_297 {dimension_numbers = #tpu.dot_dimension_numbers<[1], [0], [0], [1], [0, 0, 1, 1], [], []>} : vector<16x32xbf16>, vector<32x128xbf16>, vector<16x128xf32> -> vector<16x128xf32>
    %906 = arith.addf %900, %905 : vector<16x128xf32>
    %907 = arith.negf %906 : vector<16x128xf32>
    %908 = math.exp %907 : vector<16x128xf32>
    %cst_298 = arith.constant 1.000000e+00 : f32
    %909 = vector.broadcast %cst_298 : f32 to vector<16x128xf32>
    %910 = arith.addf %909, %908 : vector<16x128xf32>
    %911 = arith.divf %909, %910 : vector<16x128xf32>
    %912 = math.tanh %906 : vector<16x128xf32>
    %913 = vector.extract_strided_slice %911 {offsets = [0, 0], sizes = [16, 32], strides = [1, 1]} : vector<16x128xf32> to vector<16x32xf32>
    %914 = vector.extract_strided_slice %911 {offsets = [0, 32], sizes = [16, 32], strides = [1, 1]} : vector<16x128xf32> to vector<16x32xf32>
    %915 = vector.extract_strided_slice %912 {offsets = [0, 64], sizes = [16, 32], strides = [1, 1]} : vector<16x128xf32> to vector<16x32xf32>
    %916 = vector.extract_strided_slice %911 {offsets = [0, 96], sizes = [16, 32], strides = [1, 1]} : vector<16x128xf32> to vector<16x32xf32>
    %917 = arith.mulf %914, %894 : vector<16x32xf32>
    %918 = arith.mulf %913, %915 : vector<16x32xf32>
    %919 = arith.addf %917, %918 : vector<16x32xf32>
    %920 = math.tanh %919 : vector<16x32xf32>
    %921 = arith.mulf %916, %920 : vector<16x32xf32>
    %c7_i32_299 = arith.constant 7 : i32
    %c16_i32_300 = arith.constant 16 : i32
    %922 = arith.muli %c7_i32_299, %c16_i32_300 : i32
    %923 = tpu.assume_multiple %922, 16 : i32
    %924 = arith.index_cast %923 : i32 to index
    %c0_301 = arith.constant 0 : index
    %925 = vector.load %arg9[%924, %c0_301] : memref<128x128xf32, #tpu.memory_space<vmem>>, vector<16x128xf32>
    %926 = arith.truncf %921 : vector<16x32xf32> to vector<16x32xbf16>
    %927 = arith.index_cast %c3_i32_249 : i32 to index
    %c0_302 = arith.constant 0 : index
    %c0_303 = arith.constant 0 : index
    %928 = vector.load %arg3[%927, %c0_302, %c0_303] : memref<4x32x128xbf16, #tpu.memory_space<vmem>>, vector<1x32x128xbf16>
    %929 = vector.shape_cast %928 : vector<1x32x128xbf16> to vector<32x128xbf16>
    %cst_304 = arith.constant dense<0.000000e+00> : vector<16x128xf32>
    %930 = tpu.matmul %926, %929, %cst_304 {dimension_numbers = #tpu.dot_dimension_numbers<[1], [0], [0], [1], [0, 0, 1, 1], [], []>} : vector<16x32xbf16>, vector<32x128xbf16>, vector<16x128xf32> -> vector<16x128xf32>
    %931 = arith.addf %925, %930 : vector<16x128xf32>
    %932 = arith.negf %931 : vector<16x128xf32>
    %933 = math.exp %932 : vector<16x128xf32>
    %cst_305 = arith.constant 1.000000e+00 : f32
    %934 = vector.broadcast %cst_305 : f32 to vector<16x128xf32>
    %935 = arith.addf %934, %933 : vector<16x128xf32>
    %936 = arith.divf %934, %935 : vector<16x128xf32>
    %937 = math.tanh %931 : vector<16x128xf32>
    %938 = vector.extract_strided_slice %936 {offsets = [0, 0], sizes = [16, 32], strides = [1, 1]} : vector<16x128xf32> to vector<16x32xf32>
    %939 = vector.extract_strided_slice %936 {offsets = [0, 32], sizes = [16, 32], strides = [1, 1]} : vector<16x128xf32> to vector<16x32xf32>
    %940 = vector.extract_strided_slice %937 {offsets = [0, 64], sizes = [16, 32], strides = [1, 1]} : vector<16x128xf32> to vector<16x32xf32>
    %941 = vector.extract_strided_slice %936 {offsets = [0, 96], sizes = [16, 32], strides = [1, 1]} : vector<16x128xf32> to vector<16x32xf32>
    %942 = arith.mulf %939, %919 : vector<16x32xf32>
    %943 = arith.mulf %938, %940 : vector<16x32xf32>
    %944 = arith.addf %942, %943 : vector<16x32xf32>
    %945 = math.tanh %944 : vector<16x32xf32>
    %946 = arith.mulf %941, %945 : vector<16x32xf32>
    %c8_i32_306 = arith.constant 8 : i32
    %947 = arith.truncf %946 : vector<16x32xf32> to vector<16x32xbf16>
    %c0_307 = arith.constant 0 : index
    %c0_308 = arith.constant 0 : index
    %948 = vector.load %arg5[%c0_307, %c0_308] : memref<32x1xbf16, #tpu.memory_space<vmem>>, vector<32x1xbf16>
    %cst_309 = arith.constant dense<0.000000e+00> : vector<16x1xf32>
    %949 = tpu.matmul %947, %948, %cst_309 {dimension_numbers = #tpu.dot_dimension_numbers<[1], [0], [0], [1], [0, 0, 1, 1], [], []>} : vector<16x32xbf16>, vector<32x1xbf16>, vector<16x1xf32> -> vector<16x1xf32>
    %c0_310 = arith.constant 0 : index
    %c0_311 = arith.constant 0 : index
    %950 = vector.load %arg6[%c0_310, %c0_311] : memref<1x1xf32, #tpu.memory_space<vmem>>, vector<1x1xf32>
    %951 = vector.broadcast %950 : vector<1x1xf32> to vector<16x1xf32>
    %952 = arith.addf %949, %951 : vector<16x1xf32>
    %c0_312 = arith.constant 0 : index
    %c0_313 = arith.constant 0 : index
    %953 = vector.load %arg7[%c0_312, %c0_313] : memref<16x1xf32, #tpu.memory_space<vmem>>, vector<16x1xf32>
    tpu.vector_store %arg7[%c0_312, %c0_313], %952 {strides = array<i32>} : memref<16x1xf32, #tpu.memory_space<vmem>>, vector<16x1xf32>,
    return
  }
  func.func @transform_0(%arg0: i32) -> (i32, i32, i32) {
    %c0_i32 = arith.constant 0 : i32
    %c0_i32_0 = arith.constant 0 : i32
    %c0_i32_1 = arith.constant 0 : i32
    return %c0_i32, %arg0, %c0_i32_0 : i32, i32, i32
  }
  func.func @transform_1(%arg0: i32) -> (i32, i32, i32) {
    %c0_i32 = arith.constant 0 : i32
    %c0_i32_0 = arith.constant 0 : i32
    %c0_i32_1 = arith.constant 0 : i32
    %c0_i32_2 = arith.constant 0 : i32
    return %c0_i32, %c0_i32_0, %c0_i32_1 : i32, i32, i32
  }
  func.func @transform_2(%arg0: i32) -> (i32, i32, i32) {
    %c0_i32 = arith.constant 0 : i32
    %c0_i32_0 = arith.constant 0 : i32
    %c0_i32_1 = arith.constant 0 : i32
    %c0_i32_2 = arith.constant 0 : i32
    return %c0_i32, %c0_i32_0, %c0_i32_1 : i32, i32, i32
  }
  func.func @transform_3(%arg0: i32) -> (i32, i32, i32) {
    %c0_i32 = arith.constant 0 : i32
    %c0_i32_0 = arith.constant 0 : i32
    %c0_i32_1 = arith.constant 0 : i32
    %c0_i32_2 = arith.constant 0 : i32
    return %c0_i32, %c0_i32_0, %c0_i32_1 : i32, i32, i32
  }
  func.func @transform_4(%arg0: i32) -> (i32, i32) {
    %c0_i32 = arith.constant 0 : i32
    %c0_i32_0 = arith.constant 0 : i32
    %c0_i32_1 = arith.constant 0 : i32
    return %c0_i32, %c0_i32_0 : i32, i32
  }
  func.func @transform_5(%arg0: i32) -> (i32, i32) {
    %c0_i32 = arith.constant 0 : i32
    %c0_i32_0 = arith.constant 0 : i32
    %c0_i32_1 = arith.constant 0 : i32
    return %c0_i32, %c0_i32_0 : i32, i32
  }
  func.func @transform_6(%arg0: i32) -> (i32, i32) {
    %c0_i32 = arith.constant 0 : i32
    %c0_i32_0 = arith.constant 0 : i32
    return %arg0, %c0_i32 : i32, i32
  }
}

</mosaic_0001>

<bundles_post_ra>
// kernel: tpu_custom_call.1
= control target key start
LH: loop header
LB: loop body
LE: loop exit
PB: predicated region body
PF: predicated region fallthrough
CT: control target
= control target key end

     0   :  { %s6647_s0 = inlined_call_operand.hbm [shape: f32[8,16,128], index: 0, kind: input, shape index: {}]   ;;  %s6648_s1 = inlined_call_operand.hbm [shape: bf16[3,32,128], index: 1, kind: input, shape index: {}]   ;;  %s6649_s2 = inlined_call_operand.hbm [shape: bf16[4,32,128], index: 2, kind: input, shape index: {}]   ;;  %s6650_s3 = inlined_call_operand.vmem [shape: f32[3,1,128], index: 3, kind: input, shape index: {}]   ;;  %s6651_s4 = inlined_call_operand.vmem [shape: bf16[32,1], index: 4, kind: input, shape index: {}]   ;;  %s6652_s5 = inlined_call_operand.<no memory space> [shape: f32[1,1], index: 5, kind: input, shape index: {}]   ;;  %s6653_s6 = inlined_call_operand.vmem [shape: f32[16,1], index: 6, kind: output, shape index: {}]  }
   0x1   :  { %v11_v0 = vstv %s6652_s5 }
   0x2   :  { %12 = vst [vmem:[#allocation4] sm:$0x1] %v11_v0 }
   0x3   :  { %13 = vsyncpa [#allocation6], 0 }
   0x4   :  { %14 = vsyncpa [#allocation8], 0  ;;  %s32_s25 = sshll.u32 %s6648_s1, 4  ;;  %s5636_s26 = smov [#allocation7]   ;;  %s33_s25 = int_to_ptr.hbm [resolvable:$true] %s32_s25 }
   0x5   :  { %s34_s27 = sshll.u32 %s5636_s26, 4  ;;  %s19_s30 = sshll.u32 %s6647_s0, 4  ;;  %s35_s27 = int_to_ptr.vmem [resolvable:$true] %s34_s27  ;;  %s20_s30 = int_to_ptr.hbm [resolvable:$true] %s19_s30 }
   0x6   :  { %s5637_s7 = smov 64   ;;  %s5638_s8 = smov 4  }
   0x7   :  { %40 = dma.hbm_to_vmem [thread:$0]  %s33_s25, 768, %s35_s27, [#allocation8], %s5637_s7, %s5637_s7, %s5638_s8  }
   0x8   :  { %s5639_s5 = smov [#allocation5]   ;;  %s5640_s10 = smov 128  }
   0x9   :  { %s21_s9 = sshll.u32 %s5639_s5, 4  ;;  %s5641_s11 = smov 8   ;;  %s22_s9 = int_to_ptr.vmem [resolvable:$true] %s21_s9 }
   0xa   :  { %27 = dma.hbm_to_vmem [thread:$0]  %s20_s30, 2048, %s22_s9, [#allocation6], %s5640_s10, %s5640_s10, %s5641_s11  }
   0xb   :  { %s45_s13 = sshll.u32 %s6649_s2, 4  ;;  %s5642_s14 = smov [#allocation9]   ;;  %s46_s13 = int_to_ptr.hbm [resolvable:$true] %s45_s13 }
   0xc   :  { %s47_s15 = sshll.u32 %s5642_s14, 4  ;;  %s48_s15 = int_to_ptr.vmem [resolvable:$true] %s47_s15 }
   0xd   :  { %53 = dma.hbm_to_vmem [thread:$0]  %s46_s13, 1024, %s48_s15, [#allocation8], %s5637_s7, %s5637_s7, %s5638_s8  }
   0xe   :  { %5632 = dma.done.wait [#allocation6], 2048  }
   0xf   :  { %5633 = vsyncadd [#allocation6], 4294965248 }
  0x10   :  { %5634 = dma.done.wait [#allocation8], 1792  }
  0x11   :  { %5635 = vsyncadd [#allocation8], 4294965504  ;;  %v4948_v1 = vld [vmem:[#allocation9 + $0x8] sm:$0xff]  ;;  %v4947_v2 = vld [vmem:[#allocation9] sm:$0xff]  ;;  %v5643_v3 = vmov 0   ;;  %s5644_s0 = smov 32  }
  0x12   :  { %101 = vmatpush.bf16.msra.mxu0 %v4948_v1  ;;  %v73_v4 = vld [vmem:[#allocation5] sm:$0xff]  ;;  %v74_v7 = vld [vmem:[#allocation5 + $0x8] sm:$0xff]  ;;  %v4950_v50 = vld [vmem:[#allocation9 + $0x8] sm:$0xff]  ;;  %vm91_vm8 = vcmask 261120  }
  0x13   :  { %231 = vmatpush.bf16.msra.mxu3 %v4950_v50  ;;  %v4949_v51 = vld [vmem:[#allocation9] sm:$0xff]  ;;  %v200_v1 = vld [vmem:[#allocation5 + $0x18] sm:$0xff] }
  0x14   :  { %v199_v62 = vld [vmem:[#allocation5 + $0x10] sm:$0xff] }
  0x16   :  { %102 = vmatpush.bf16.msra.mxu0 %v4947_v2 }
  0x17   :  { %232 = vmatpush.bf16.msra.mxu3 %v4949_v51 }
  0x19   :  { %103 = vmatmul.bf16.vlgmr.msra.gmra.mxu0 %v5643_v3 }
  0x96   :  { %v104_v5 = vpop.f32.mrf.mxu0 }
  0x97   :  { %v109_v6 = vadd.f32 %v104_v5, %v73_v4 }
  0x99   :  { %5044 = vtanh.f32 %v109_v6  ;;  %v4508_v12 = vmul.f32 -1.442695, %v109_v6 }
  0x9e   :  { %v106_v8 = vpop.f32.mrf.mxu0 }
  0x9f   :  { %v5045_v9 = vpop.eup %5044  ;;  %v110_v10 = vadd.f32 %v106_v8, %v74_v7 }
  0xa0   :  { %155 = vrot.lane.b32.xlu0 %v5045_v9, %s5637_s7 }
  0xa1   :  { %5046 = vtanh.f32 %v110_v10  ;;  %v4509_v13 = vmul.f32 -1.442695, %v110_v10 }
  0xa2   :  { %5048 = vpow2.f32 %v4508_v12 }
  0xa3   :  { %5050 = vpow2.f32 %v4509_v13 }
  0xa7   :  { %v5047_v11 = vpop.eup %5046 }
  0xa8   :  { %157 = vrot.lane.b32.xlu0 %v5047_v11, %s5637_s7  ;;  %v5049_v14 = vpop.eup %5048 }
  0xa9   :  { %v117_v15 = vadd.f32 1.0, %v5049_v14  ;;  %v5051_v16 = vpop.eup %5050 }
  0xaa   :  { %v118_v17 = vadd.f32 1.0, %v5051_v16 }
  0xab   :  { %5052 = vrcp.f32 %v117_v15  ;;  %v130_v26 = vand.u32 2147483648, %v117_v15  ;;  %vm124_vm1 = vweird.f32 %v117_v15  ;;  %v128_v27 = vand.u32 2147483647, %v117_v15 }
  0xac   :  { %5054 = vrcp.f32 %v118_v17  ;;  %v145_v35 = vand.u32 2147483648, %v118_v17  ;;  %vm139_vm5 = vweird.f32 %v118_v17  ;;  %v143_v36 = vand.u32 2147483647, %v118_v17 }
  0xad   :  { %v131_v30 = vor.u32 1.1754944e-38, %v130_v26  ;;  %vm129_vm3 = vcmp.eq.f32.partialorder %v128_v27, 8.507059e+37 }
  0xae   :  { %v146_v38 = vor.u32 1.1754944e-38, %v145_v35  ;;  %vm144_vm7 = vcmp.eq.f32.partialorder %v143_v36, 8.507059e+37 }
  0xb1   :  { %v5053_v18 = vpop.eup %5052 }
  0xb2   :  { %v120_v19 = vmul.f32 %v5053_v18, %v117_v15  ;;  %v5055_v21 = vpop.eup %5054  ;;  %vm125_vm0 = vweird.f32 %v5053_v18 }
  0xb3   :  { %v135_v23 = vmul.f32 %v5055_v21, %v118_v17  ;;  %vm126_vm2 = vmor %vm124_vm1, %vm125_vm0  ;;  %vm140_vm4 = vweird.f32 %v5055_v21 }
  0xb4   :  { %v121_v20 = vsub.f32 1.0, %v120_v19  ;;  %vm141_vm6 = vmor %vm139_vm5, %vm140_vm4 }
  0xb5   :  { %v136_v25 = vsub.f32 1.0, %v135_v23 }
  0xb6   :  { %v122_v22 = vmul.f32 %v5053_v18, %v121_v20 }
  0xb7   :  { %v137_v29 = vmul.f32 %v5055_v21, %v136_v25 }
  0xb8   :  { %v123_v24 = vadd.f32 %v5053_v18, %v122_v22 }
  0xb9   :  { %v138_v34 = vadd.f32 %v5055_v21, %v137_v29 }
  0xba   :  { %v127_v28 = vsel %vm126_vm2, %v5053_v18, %v123_v24 }
  0xbb   :  { %v132_v32 = vsel %vm129_vm3, %v131_v30, %v127_v28  ;;  %v142_v37 = vsel %vm141_vm6, %v5055_v21, %v138_v34 }
  0xbc   :  { %v147_v39 = vsel %vm144_vm7, %v146_v38, %v142_v37  ;;  %v151_v42 = vmul.f32 0.0, %v132_v32 }
  0xbd   :  { %v152_v45 = vmul.f32 0.0, %v147_v39 }
 0x112   :  { %v156_v31 = vpop.permute.xlu0 %155 }
 0x113   :  { %v161_v33 = vmul.f32 %v156_v31, %v132_v32 }
 0x115   :  { %165 = vrot.lane.b32.xlu1 %v161_v33, %s5644_s0 }
 0x11a   :  { %v158_v40 = vpop.permute.xlu0 %157 }
 0x11b   :  { %v162_v41 = vmul.f32 %v158_v40, %v147_v39 }
 0x11d   :  { %167 = vrot.lane.b32.xlu1 %v162_v41, %s5644_s0 }
 0x187   :  { %v166_v43 = vpop.permute.xlu1 %165 }
 0x188   :  { %v5701_v44 = vadd.f32 %v166_v43, %v151_v42 }
 0x18a   :  { %5056 = vtanh.f32 %v5701_v44 }
 0x18f   :  { %v168_v46 = vpop.permute.xlu1 %167 }
 0x190   :  { %v5057_v47 = vpop.eup %5056  ;;  %v5704_v48 = vadd.f32 %v168_v46, %v152_v45  ;;  %v4952_v46 = vld [vmem:[#allocation9 + $0x8] sm:$0xff] }
 0x191   :  { %177 = vrot.lane.b32.xlu2 %v5057_v47, %s5637_s7  ;;  %361 = vmatpush.bf16.msra.mxu2 %v4952_v46  ;;  %v4951_v47 = vld [vmem:[#allocation9] sm:$0xff] }
 0x192   :  { %5058 = vtanh.f32 %v5704_v48 }
 0x195   :  { %362 = vmatpush.bf16.msra.mxu2 %v4951_v47 }
 0x198   :  { %v5059_v49 = vpop.eup %5058 }
 0x199   :  { %179 = vrot.lane.b32.xlu2 %v5059_v49, %s5637_s7 }
 0x1eb   :  { %v178_v52 = vpop.permute.xlu2 %177 }
 0x1ec   :  { %v183_v53 = vmul.f32 %v178_v52, %v132_v32 }
 0x1ee   :  { %v5709_v55 = vpack.c.bf16 %v183_v53, %v183_v53 }
 0x1f0   :  { %v205_v58 = vunpack.c.l.b16 %v5709_v55 }
 0x1f3   :  { %v180_v54 = vpop.permute.xlu2 %179 }
 0x1f4   :  { %v184_v56 = vmul.f32 %v180_v54, %v147_v39 }
 0x1f6   :  { %v5711_v57 = vpack.c.bf16 %v184_v56, %v184_v56 }
 0x1f8   :  { %v206_v59 = vunpack.c.l.b16 %v5711_v57 }
 0x1fa   :  { %v207_v60 = vpack.c.b16 %v206_v59, %v205_v58  ;;  %v329_v59 = vld [vmem:[#allocation5 + $0x20] sm:$0xff] }
 0x1fc   :  { %208 = vrot.lane.b32.xlu0 %v207_v60, %s5644_s0 }
 0x26e   :  { %v209_v61 = vpop.permute.xlu0 %208 }
 0x26f   :  { %4518 = vmatmul.msk.bf16.vlgmr.msra.gmra.mxu3 %vm91_vm8, %v209_v61 }
 0x2f2   :  { %v234_v63 = vpop.f32.mrf.mxu3 }
 0x2f3   :  { %v239_v0 = vadd.f32 %v234_v63, %v199_v62  ;;  %v330_v62 = vld [vmem:[#allocation5 + $0x28] sm:$0xff] }
 0x2f5   :  { %5060 = vtanh.f32 %v239_v0  ;;  %v4519_v10 = vmul.f32 -1.442695, %v239_v0 }
 0x2fa   :  { %v236_v2 = vpop.f32.mrf.mxu3 }
 0x2fb   :  { %v5061_v4 = vpop.eup %5060  ;;  %v240_v5 = vadd.f32 %v236_v2, %v200_v1 }
 0x2fc   :  { %285 = vrot.lane.b32.xlu1 %v5061_v4, %s5637_s7 }
 0x2fd   :  { %5062 = vtanh.f32 %v240_v5  ;;  %v4520_v7 = vmul.f32 -1.442695, %v240_v5 }
 0x2ff   :  { %5064 = vpow2.f32 %v4520_v7 }
 0x303   :  { %v5063_v6 = vpop.eup %5062 }
 0x304   :  { %287 = vrot.lane.b32.xlu2 %v5063_v6, %s5637_s7 }
 0x305   :  { %v5065_v8 = vpop.eup %5064 }
 0x306   :  { %v248_v9 = vadd.f32 1.0, %v5065_v8 }
 0x308   :  { %5066 = vrcp.f32 %v248_v9  ;;  %v275_v19 = vand.u32 2147483648, %v248_v9  ;;  %vm269_vm10 = vweird.f32 %v248_v9  ;;  %v273_v20 = vand.u32 2147483647, %v248_v9 }
 0x309   :  { %5068 = vpow2.f32 %v4519_v10 }
 0x30a   :  { %v276_v23 = vor.u32 1.1754944e-38, %v275_v19  ;;  %vm274_vm12 = vcmp.eq.f32.partialorder %v273_v20, 8.507059e+37 }
 0x30e   :  { %v5067_v11 = vpop.eup %5066 }
 0x30f   :  { %v5069_v12 = vpop.eup %5068  ;;  %v265_v13 = vmul.f32 %v5067_v11, %v248_v9  ;;  %vm270_vm9 = vweird.f32 %v5067_v11 }
 0x310   :  { %v247_v14 = vadd.f32 1.0, %v5069_v12  ;;  %vm271_vm11 = vmor %vm269_vm10, %vm270_vm9 }
 0x311   :  { %v266_v15 = vsub.f32 1.0, %v265_v13 }
 0x312   :  { %5070 = vrcp.f32 %v247_v14  ;;  %v260_v30 = vand.u32 2147483648, %v247_v14  ;;  %vm254_vm14 = vweird.f32 %v247_v14  ;;  %v258_v31 = vand.u32 2147483647, %v247_v14 }
 0x313   :  { %v267_v16 = vmul.f32 %v5067_v11, %v266_v15 }
 0x314   :  { %v261_v33 = vor.u32 1.1754944e-38, %v260_v30  ;;  %vm259_vm0 = vcmp.eq.f32.partialorder %v258_v31, 8.507059e+37 }
 0x315   :  { %v268_v17 = vadd.f32 %v5067_v11, %v267_v16 }
 0x317   :  { %v272_v21 = vsel %vm271_vm11, %v5067_v11, %v268_v17 }
 0x318   :  { %v5071_v18 = vpop.eup %5070  ;;  %v277_v25 = vsel %vm274_vm12, %v276_v23, %v272_v21 }
 0x319   :  { %v250_v22 = vmul.f32 %v5071_v18, %v247_v14  ;;  %vm255_vm13 = vweird.f32 %v5071_v18  ;;  %v282_v37 = vmul.f32 %v277_v25, %v5704_v48 }
 0x31a   :  { %vm256_vm15 = vmor %vm254_vm14, %vm255_vm13 }
 0x31b   :  { %v251_v27 = vsub.f32 1.0, %v250_v22 }
 0x31d   :  { %v252_v28 = vmul.f32 %v5071_v18, %v251_v27 }
 0x31f   :  { %v253_v29 = vadd.f32 %v5071_v18, %v252_v28 }
 0x321   :  { %v257_v32 = vsel %vm256_vm15, %v5071_v18, %v253_v29 }
 0x322   :  { %v262_v35 = vsel %vm259_vm0, %v261_v33, %v257_v32 }
 0x323   :  { %v281_v41 = vmul.f32 %v262_v35, %v5701_v44 }
 0x35e   :  { %v288_v24 = vpop.permute.xlu2 %287 }
 0x35f   :  { %v292_v26 = vmul.f32 %v288_v24, %v277_v25 }
 0x361   :  { %297 = vrot.lane.b32.xlu1 %v292_v26, %s5644_s0 }
 0x36e   :  { %v286_v34 = vpop.permute.xlu1 %285 }
 0x36f   :  { %v291_v36 = vmul.f32 %v286_v34, %v262_v35 }
 0x371   :  { %295 = vrot.lane.b32.xlu0 %v291_v36, %s5644_s0 }
 0x3d3   :  { %v298_v38 = vpop.permute.xlu1 %297 }
 0x3d4   :  { %v5722_v39 = vadd.f32 %v298_v38, %v282_v37 }
 0x3d6   :  { %5072 = vtanh.f32 %v5722_v39 }
 0x3dc   :  { %v5073_v40 = vpop.eup %5072 }
 0x3dd   :  { %309 = vrot.lane.b32.xlu0 %v5073_v40, %s5637_s7 }
 0x3e3   :  { %v296_v42 = vpop.permute.xlu0 %295 }
 0x3e4   :  { %v5727_v43 = vadd.f32 %v296_v42, %v281_v41 }
 0x3e6   :  { %5074 = vtanh.f32 %v5727_v43 }
 0x3ec   :  { %v5075_v45 = vpop.eup %5074 }
 0x3ed   :  { %307 = vrot.lane.b32.xlu2 %v5075_v45, %s5637_s7  ;;  %v4954_v45 = vld [vmem:[#allocation9 + $0x8] sm:$0xff] }
 0x3ee   :  { %491 = vmatpush.bf16.msrb.mxu3 %v4954_v45 }
 0x447   :  { %v308_v48 = vpop.permute.xlu2 %307 }
 0x448   :  { %v313_v49 = vmul.f32 %v308_v48, %v262_v35 }
 0x44a   :  { %v5731_v51 = vpack.c.bf16 %v313_v49, %v313_v49 }
 0x44c   :  { %v335_v44 = vunpack.c.l.b16 %v5731_v51 }
 0x44f   :  { %v310_v50 = vpop.permute.xlu0 %309 }
 0x450   :  { %v314_v52 = vmul.f32 %v310_v50, %v277_v25 }
 0x452   :  { %v5733_v53 = vpack.c.bf16 %v314_v52, %v314_v52 }
 0x454   :  { %v336_v54 = vunpack.c.l.b16 %v5733_v53 }
 0x456   :  { %v337_v56 = vpack.c.b16 %v336_v54, %v335_v44 }
 0x458   :  { %338 = vrot.lane.b32.xlu1 %v337_v56, %s5644_s0 }
 0x4ca   :  { %v339_v58 = vpop.permute.xlu1 %338 }
 0x4cb   :  { %4529 = vmatmul.msk.bf16.vlgmr.msra.gmra.mxu2 %vm91_vm8, %v339_v58  ;;  %v459_v58 = vld [vmem:[#allocation5 + $0x30] sm:$0xff] }
 0x54e   :  { %v364_v60 = vpop.f32.mrf.mxu2 }
 0x54f   :  { %v369_v61 = vadd.f32 %v364_v60, %v329_v59 }
 0x551   :  { %5076 = vtanh.f32 %v369_v61  ;;  %v4530_v4 = vmul.f32 -1.442695, %v369_v61  ;;  %v460_v61 = vld [vmem:[#allocation5 + $0x38] sm:$0xff] }
 0x556   :  { %v366_v63 = vpop.f32.mrf.mxu2 }
 0x557   :  { %v5077_v0 = vpop.eup %5076  ;;  %v370_v1 = vadd.f32 %v366_v63, %v330_v62 }
 0x558   :  { %415 = vrot.lane.b32.xlu2 %v5077_v0, %s5637_s7 }
 0x559   :  { %5078 = vtanh.f32 %v370_v1  ;;  %v4531_v10 = vmul.f32 -1.442695, %v370_v1 }
 0x55a   :  { %5080 = vpow2.f32 %v4530_v4 }
 0x55f   :  { %v5079_v2 = vpop.eup %5078 }
 0x560   :  { %417 = vrot.lane.b32.xlu0 %v5079_v2, %s5637_s7  ;;  %v5081_v5 = vpop.eup %5080 }
 0x561   :  { %v377_v6 = vadd.f32 1.0, %v5081_v5 }
 0x563   :  { %5082 = vrcp.f32 %v377_v6  ;;  %v390_v13 = vand.u32 2147483648, %v377_v6  ;;  %vm384_vm2 = vweird.f32 %v377_v6  ;;  %v388_v14 = vand.u32 2147483647, %v377_v6 }
 0x564   :  { %5084 = vpow2.f32 %v4531_v10 }
 0x565   :  { %v391_v17 = vor.u32 1.1754944e-38, %v390_v13  ;;  %vm389_vm4 = vcmp.eq.f32.partialorder %v388_v14, 8.507059e+37 }
 0x569   :  { %v5083_v7 = vpop.eup %5082 }
 0x56a   :  { %v380_v8 = vmul.f32 %v5083_v7, %v377_v6  ;;  %vm385_vm1 = vweird.f32 %v5083_v7  ;;  %v5085_v15 = vpop.eup %5084 }
 0x56b   :  { %vm386_vm3 = vmor %vm384_vm2, %vm385_vm1  ;;  %v378_v18 = vadd.f32 1.0, %v5085_v15 }
 0x56c   :  { %v381_v9 = vsub.f32 1.0, %v380_v8 }
 0x56d   :  { %5086 = vrcp.f32 %v378_v18  ;;  %v405_v27 = vand.u32 2147483648, %v378_v18  ;;  %vm399_vm6 = vweird.f32 %v378_v18  ;;  %v403_v28 = vand.u32 2147483647, %v378_v18 }
 0x56e   :  { %v382_v11 = vmul.f32 %v5083_v7, %v381_v9 }
 0x56f   :  { %v406_v30 = vor.u32 1.1754944e-38, %v405_v27  ;;  %vm404_vm9 = vcmp.eq.f32.partialorder %v403_v28, 8.507059e+37 }
 0x570   :  { %v383_v12 = vadd.f32 %v5083_v7, %v382_v11 }
 0x572   :  { %v387_v16 = vsel %vm386_vm3, %v5083_v7, %v383_v12 }
 0x573   :  { %v392_v20 = vsel %vm389_vm4, %v391_v17, %v387_v16  ;;  %v5087_v22 = vpop.eup %5086 }
 0x574   :  { %v395_v23 = vmul.f32 %v5087_v22, %v378_v18  ;;  %vm400_vm5 = vweird.f32 %v5087_v22  ;;  %v411_v34 = vmul.f32 %v392_v20, %v5727_v43  ;;  %v4953_v43 = vld [vmem:[#allocation9] sm:$0xff] }
 0x575   :  { %vm401_vm7 = vmor %vm399_vm6, %vm400_vm5  ;;  %492 = vmatpush.bf16.msrb.mxu3 %v4953_v43  ;;  %v4956_v43 = vld [vmem:[#allocation9 + $0x8] sm:$0xff] }
 0x576   :  { %v396_v24 = vsub.f32 1.0, %v395_v23  ;;  %621 = vmatpush.bf16.msrb.mxu0 %v4956_v43 }
 0x578   :  { %v397_v25 = vmul.f32 %v5087_v22, %v396_v24 }
 0x57a   :  { %v398_v26 = vadd.f32 %v5087_v22, %v397_v25 }
 0x57c   :  { %v402_v29 = vsel %vm401_vm7, %v5087_v22, %v398_v26 }
 0x57d   :  { %v407_v32 = vsel %vm404_vm9, %v406_v30, %v402_v29 }
 0x57e   :  { %v412_v37 = vmul.f32 %v407_v32, %v5722_v39 }
 0x5b2   :  { %v416_v19 = vpop.permute.xlu2 %415 }
 0x5b3   :  { %v421_v21 = vmul.f32 %v416_v19, %v392_v20 }
 0x5b5   :  { %425 = vrot.lane.b32.xlu1 %v421_v21, %s5644_s0 }
 0x5d2   :  { %v418_v31 = vpop.permute.xlu0 %417 }
 0x5d3   :  { %v422_v33 = vmul.f32 %v418_v31, %v407_v32 }
 0x5d5   :  { %427 = vrot.lane.b32.xlu2 %v422_v33, %s5644_s0 }
 0x627   :  { %v426_v35 = vpop.permute.xlu1 %425 }
 0x628   :  { %v5744_v36 = vadd.f32 %v426_v35, %v411_v34 }
 0x62a   :  { %5088 = vtanh.f32 %v5744_v36 }
 0x62f   :  { %v428_v38 = vpop.permute.xlu2 %427 }
 0x630   :  { %v5089_v40 = vpop.eup %5088  ;;  %v5748_v41 = vadd.f32 %v428_v38, %v412_v37 }
 0x631   :  { %437 = vrot.lane.b32.xlu0 %v5089_v40, %s5637_s7 }
 0x632   :  { %5090 = vtanh.f32 %v5748_v41 }
 0x638   :  { %v5091_v42 = vpop.eup %5090 }
 0x639   :  { %439 = vrot.lane.b32.xlu1 %v5091_v42, %s5637_s7 }
 0x6a3   :  { %v438_v46 = vpop.permute.xlu0 %437 }
 0x6a4   :  { %v443_v47 = vmul.f32 %v438_v46, %v392_v20 }
 0x6a6   :  { %v5753_v49 = vpack.c.bf16 %v443_v47, %v443_v47 }
 0x6a8   :  { %v465_v52 = vunpack.c.l.b16 %v5753_v49 }
 0x6ab   :  { %v440_v48 = vpop.permute.xlu1 %439 }
 0x6ac   :  { %v444_v39 = vmul.f32 %v440_v48, %v407_v32 }
 0x6ae   :  { %v5755_v50 = vpack.c.bf16 %v444_v39, %v444_v39 }
 0x6b0   :  { %v466_v44 = vunpack.c.l.b16 %v5755_v50 }
 0x6b2   :  { %v467_v54 = vpack.c.b16 %v466_v44, %v465_v52 }
 0x6b4   :  { %468 = vrot.lane.b32.xlu2 %v467_v54, %s5644_s0 }
 0x70e   :  { %v469_v56 = vpop.permute.xlu2 %468 }
 0x70f   :  { %4540 = vmatmul.msk.bf16.vlgmr.msrb.gmra.mxu3 %vm91_vm8, %v469_v56 }
 0x792   :  { %v494_v59 = vpop.f32.mrf.mxu3 }
 0x793   :  { %v499_v60 = vadd.f32 %v494_v59, %v459_v58  ;;  %v589_v59 = vld [vmem:[#allocation5 + $0x40] sm:$0xff] }
 0x795   :  { %5092 = vtanh.f32 %v499_v60  ;;  %v4541_v2 = vmul.f32 -1.442695, %v499_v60 }
 0x79a   :  { %v496_v62 = vpop.f32.mrf.mxu3 }
 0x79b   :  { %v5093_v63 = vpop.eup %5092  ;;  %v500_v0 = vadd.f32 %v496_v62, %v460_v61  ;;  %v590_v62 = vld [vmem:[#allocation5 + $0x48] sm:$0xff] }
 0x79c   :  { %545 = vrot.lane.b32.xlu0 %v5093_v63, %s5637_s7 }
 0x79d   :  { %5094 = vtanh.f32 %v500_v0  ;;  %v4542_v4 = vmul.f32 -1.442695, %v500_v0 }
 0x79e   :  { %5096 = vpow2.f32 %v4541_v2 }
 0x79f   :  { %5098 = vpow2.f32 %v4542_v4 }
 0x7a3   :  { %v5095_v1 = vpop.eup %5094 }
 0x7a4   :  { %547 = vrot.lane.b32.xlu1 %v5095_v1, %s5637_s7  ;;  %v5097_v5 = vpop.eup %5096 }
 0x7a5   :  { %v507_v6 = vadd.f32 1.0, %v5097_v5  ;;  %v5099_v7 = vpop.eup %5098 }
 0x7a6   :  { %v508_v8 = vadd.f32 1.0, %v5099_v7 }
 0x7a7   :  { %5100 = vrcp.f32 %v507_v6  ;;  %v520_v17 = vand.u32 2147483648, %v507_v6  ;;  %vm514_vm11 = vweird.f32 %v507_v6  ;;  %v518_v18 = vand.u32 2147483647, %v507_v6 }
 0x7a8   :  { %5102 = vrcp.f32 %v508_v8  ;;  %v535_v26 = vand.u32 2147483648, %v508_v8  ;;  %vm529_vm15 = vweird.f32 %v508_v8  ;;  %v533_v27 = vand.u32 2147483647, %v508_v8 }
 0x7a9   :  { %v521_v21 = vor.u32 1.1754944e-38, %v520_v17  ;;  %vm519_vm13 = vcmp.eq.f32.partialorder %v518_v18, 8.507059e+37 }
 0x7aa   :  { %v536_v29 = vor.u32 1.1754944e-38, %v535_v26  ;;  %vm534_vm1 = vcmp.eq.f32.partialorder %v533_v27, 8.507059e+37 }
 0x7ad   :  { %v5101_v9 = vpop.eup %5100 }
 0x7ae   :  { %v510_v10 = vmul.f32 %v5101_v9, %v507_v6  ;;  %v5103_v12 = vpop.eup %5102  ;;  %vm515_vm10 = vweird.f32 %v5101_v9 }
 0x7af   :  { %v525_v14 = vmul.f32 %v5103_v12, %v508_v8  ;;  %vm516_vm12 = vmor %vm514_vm11, %vm515_vm10  ;;  %vm530_vm14 = vweird.f32 %v5103_v12  ;;  %vm195_vm11 = vcmask 257024  }
 0x7b0   :  { %v511_v11 = vsub.f32 1.0, %v510_v10  ;;  %vm531_vm0 = vmor %vm529_vm15, %vm530_vm14 }
 0x7b1   :  { %v526_v16 = vsub.f32 1.0, %v525_v14 }
 0x7b2   :  { %v512_v13 = vmul.f32 %v5101_v9, %v511_v11 }
 0x7b3   :  { %v527_v20 = vmul.f32 %v5103_v12, %v526_v16 }
 0x7b4   :  { %v513_v15 = vadd.f32 %v5101_v9, %v512_v13 }
 0x7b5   :  { %v528_v25 = vadd.f32 %v5103_v12, %v527_v20 }
 0x7b6   :  { %v517_v19 = vsel %vm516_vm12, %v5101_v9, %v513_v15 }
 0x7b7   :  { %v522_v23 = vsel %vm519_vm13, %v521_v21, %v517_v19  ;;  %v532_v28 = vsel %vm531_vm0, %v5103_v12, %v528_v25 }
 0x7b8   :  { %v537_v31 = vsel %vm534_vm1, %v536_v29, %v532_v28  ;;  %v541_v33 = vmul.f32 %v522_v23, %v5744_v36  ;;  %v4955_v36 = vld [vmem:[#allocation9] sm:$0xff] }
 0x7b9   :  { %v542_v38 = vmul.f32 %v537_v31, %v5748_v41  ;;  %622 = vmatpush.bf16.msrb.mxu0 %v4955_v36 }
 0x80e   :  { %v546_v22 = vpop.permute.xlu0 %545 }
 0x80f   :  { %v551_v24 = vmul.f32 %v546_v22, %v522_v23 }
 0x811   :  { %555 = vrot.lane.b32.xlu2 %v551_v24, %s5644_s0 }
 0x816   :  { %v548_v30 = vpop.permute.xlu1 %547 }
 0x817   :  { %v552_v32 = vmul.f32 %v548_v30, %v537_v31 }
 0x819   :  { %557 = vrot.lane.b32.xlu0 %v552_v32, %s5644_s0 }
 0x86b   :  { %v556_v34 = vpop.permute.xlu2 %555 }
 0x86c   :  { %v5766_v35 = vadd.f32 %v556_v34, %v541_v33 }
 0x86e   :  { %5104 = vtanh.f32 %v5766_v35 }
 0x874   :  { %v5105_v37 = vpop.eup %5104 }
 0x875   :  { %567 = vrot.lane.b32.xlu1 %v5105_v37, %s5637_s7 }
 0x88b   :  { %v558_v40 = vpop.permute.xlu0 %557 }
 0x88c   :  { %v5771_v42 = vadd.f32 %v558_v40, %v542_v38 }
 0x88e   :  { %5106 = vtanh.f32 %v5771_v42 }
 0x894   :  { %v5107_v45 = vpop.eup %5106 }
 0x895   :  { %569 = vrot.lane.b32.xlu2 %v5107_v45, %s5637_s7 }
 0x8e7   :  { %v568_v46 = vpop.permute.xlu1 %567 }
 0x8e8   :  { %v573_v47 = vmul.f32 %v568_v46, %v522_v23 }
 0x8ea   :  { %v5775_v39 = vpack.c.bf16 %v573_v47, %v573_v47  ;;  %v4971_v47 = vld [vmem:[#allocation7] sm:$0xff] }
 0x8ec   :  { %v595_v41 = vunpack.c.l.b16 %v5775_v39 }
 0x8ef   :  { %v570_v48 = vpop.permute.xlu2 %569 }
 0x8f0   :  { %v574_v52 = vmul.f32 %v570_v48, %v537_v31  ;;  %v4958_v48 = vld [vmem:[#allocation9 + $0x8] sm:$0xff] }
 0x8f1   :  { %751 = vmatpush.bf16.msra.mxu1 %v4958_v48 }
 0x8f2   :  { %v5777_v44 = vpack.c.bf16 %v574_v52, %v574_v52 }
 0x8f4   :  { %v596_v54 = vunpack.c.l.b16 %v5777_v44 }
 0x8f6   :  { %v597_v56 = vpack.c.b16 %v596_v54, %v595_v41 }
 0x8f8   :  { %598 = vrot.lane.b32.xlu0 %v597_v56, %s5644_s0 }
 0x96a   :  { %v599_v58 = vpop.permute.xlu0 %598 }
 0x96b   :  { %4551 = vmatmul.msk.bf16.vlgmr.msrb.gmra.mxu0 %vm91_vm8, %v599_v58 }
 0x9e8   :  { %v624_v60 = vpop.f32.mrf.mxu0 }
 0x9e9   :  { %v629_v61 = vadd.f32 %v624_v60, %v589_v59 }
 0x9eb   :  { %5108 = vtanh.f32 %v629_v61  ;;  %v4552_v7 = vmul.f32 -1.442695, %v629_v61 }
 0x9f0   :  { %v626_v63 = vpop.f32.mrf.mxu0 }
 0x9f1   :  { %v5109_v0 = vpop.eup %5108  ;;  %v630_v1 = vadd.f32 %v626_v63, %v590_v62 }
 0x9f2   :  { %675 = vrot.lane.b32.xlu1 %v5109_v0, %s5637_s7  ;;  %v4974_v0 = vld [vmem:[#allocation9 + $0x18] sm:$0xff] }
 0x9f3   :  { %5110 = vtanh.f32 %v630_v1  ;;  %v4553_v4 = vmul.f32 -1.442695, %v630_v1  ;;  %v4973_v1 = vld [vmem:[#allocation9 + $0x10] sm:$0xff] }
 0x9f5   :  { %5112 = vpow2.f32 %v4553_v4  ;;  %v719_v4 = vld [vmem:[#allocation5 + $0x50] sm:$0xff] }
 0x9f9   :  { %v5111_v2 = vpop.eup %5110 }
 0x9fa   :  { %677 = vrot.lane.b32.xlu2 %v5111_v2, %s5637_s7 }
 0x9fb   :  { %v5113_v5 = vpop.eup %5112 }
 0x9fc   :  { %v638_v6 = vadd.f32 1.0, %v5113_v5 }
 0x9fe   :  { %5114 = vrcp.f32 %v638_v6  ;;  %v665_v16 = vand.u32 2147483648, %v638_v6  ;;  %vm659_vm3 = vweird.f32 %v638_v6  ;;  %v663_v17 = vand.u32 2147483647, %v638_v6 }
 0x9ff   :  { %5116 = vpow2.f32 %v4552_v7  ;;  %v720_v7 = vld [vmem:[#allocation5 + $0x58] sm:$0xff] }
 0xa00   :  { %v666_v20 = vor.u32 1.1754944e-38, %v665_v16  ;;  %vm664_vm5 = vcmp.eq.f32.partialorder %v663_v17, 8.507059e+37 }
 0xa04   :  { %v5115_v8 = vpop.eup %5114 }
 0xa05   :  { %v5117_v9 = vpop.eup %5116  ;;  %v655_v10 = vmul.f32 %v5115_v8, %v638_v6  ;;  %vm660_vm2 = vweird.f32 %v5115_v8 }
 0xa06   :  { %v637_v11 = vadd.f32 1.0, %v5117_v9  ;;  %vm661_vm4 = vmor %vm659_vm3, %vm660_vm2 }
 0xa07   :  { %v656_v12 = vsub.f32 1.0, %v655_v10 }
 0xa08   :  { %5118 = vrcp.f32 %v637_v11  ;;  %v650_v27 = vand.u32 2147483648, %v637_v11  ;;  %vm644_vm7 = vweird.f32 %v637_v11  ;;  %v648_v28 = vand.u32 2147483647, %v637_v11 }
 0xa09   :  { %v657_v13 = vmul.f32 %v5115_v8, %v656_v12  ;;  %v5817_v12 = vld [vmem:[%s6650_s3] ss:$0 sm:$0xff] }
 0xa0a   :  { %v651_v30 = vor.u32 1.1754944e-38, %v650_v27  ;;  %vm649_vm10 = vcmp.eq.f32.partialorder %v648_v28, 8.507059e+37 }
 0xa0b   :  { %v658_v14 = vadd.f32 %v5115_v8, %v657_v13 }
 0xa0d   :  { %v662_v18 = vsel %vm661_vm4, %v5115_v8, %v658_v14 }
 0xa0e   :  { %v5119_v15 = vpop.eup %5118  ;;  %v667_v22 = vsel %vm664_vm5, %v666_v20, %v662_v18 }
 0xa0f   :  { %v640_v19 = vmul.f32 %v5119_v15, %v637_v11  ;;  %vm645_vm6 = vweird.f32 %v5119_v15  ;;  %v672_v34 = vmul.f32 %v667_v22, %v5771_v42  ;;  %v4972_v42 = vld [vmem:[#allocation7 + $0x8] sm:$0xff] }
 0xa10   :  { %vm646_vm9 = vmor %vm644_vm7, %vm645_vm6  ;;  %1214 = vmatpush.bf16.msra.mxu0 %v4972_v42 }
 0xa11   :  { %v641_v24 = vsub.f32 1.0, %v640_v19 }
 0xa13   :  { %v642_v25 = vmul.f32 %v5119_v15, %v641_v24 }
 0xa14   :  { %1215 = vmatpush.bf16.msra.mxu0 %v4971_v47 }
 0xa15   :  { %v643_v26 = vadd.f32 %v5119_v15, %v642_v25 }
 0xa17   :  { %v647_v29 = vsel %vm646_vm9, %v5119_v15, %v643_v26 }
 0xa18   :  { %v652_v32 = vsel %vm649_vm10, %v651_v30, %v647_v29 }
 0xa19   :  { %v671_v45 = vmul.f32 %v652_v32, %v5766_v35  ;;  %v4957_v35 = vld [vmem:[#allocation9] sm:$0xff] }
 0xa1a   :  { %752 = vmatpush.bf16.msra.mxu1 %v4957_v35 }
 0xa1e   :  { %1298 = vmatpush.bf16.msrb.mxu1 %v4974_v0 }
 0xa22   :  { %1299 = vmatpush.bf16.msrb.mxu1 %v4973_v1 }
 0xa54   :  { %v678_v21 = vpop.permute.xlu2 %677 }
 0xa55   :  { %v682_v23 = vmul.f32 %v678_v21, %v667_v22 }
 0xa57   :  { %687 = vrot.lane.b32.xlu1 %v682_v23, %s5644_s0 }
 0xa64   :  { %v676_v31 = vpop.permute.xlu1 %675 }
 0xa65   :  { %v681_v33 = vmul.f32 %v676_v31, %v652_v32 }
 0xa67   :  { %685 = vrot.lane.b32.xlu0 %v681_v33, %s5644_s0 }
 0xac9   :  { %v688_v37 = vpop.permute.xlu1 %687 }
 0xaca   :  { %v5788_v38 = vadd.f32 %v688_v37, %v672_v34 }
 0xacc   :  { %5120 = vtanh.f32 %v5788_v38 }
 0xad2   :  { %v5121_v40 = vpop.eup %5120 }
 0xad3   :  { %699 = vrot.lane.b32.xlu0 %v5121_v40, %s5637_s7 }
 0xad9   :  { %v686_v43 = vpop.permute.xlu0 %685 }
 0xada   :  { %v5793_v36 = vadd.f32 %v686_v43, %v671_v45 }
 0xadb   :  { %191 = vrot.lane.b32.xlu0 %v5711_v57, %s5644_s0 }
 0xadc   :  { %5122 = vtanh.f32 %v5793_v36 }
 0xae2   :  { %v5123_v46 = vpop.eup %5122 }
 0xae3   :  { %697 = vrot.lane.b32.xlu2 %v5123_v46, %s5637_s7 }
 0xaeb   :  { %189 = vrot.lane.b32.xlu2 %v5709_v55, %s5644_s0 }
 0xb3d   :  { %v698_v52 = vpop.permute.xlu2 %697 }
 0xb3e   :  { %v703_v41 = vmul.f32 %v698_v52, %v652_v32 }
 0xb40   :  { %v5801_v56 = vpack.c.bf16 %v703_v41, %v703_v41 }
 0xb42   :  { %v725_v55 = vunpack.c.l.b16 %v5801_v56 }
 0xb45   :  { %v190_v57 = vpop.permute.xlu2 %189  ;;  %v700_v54 = vpop.permute.xlu0 %699 }
 0xb46   :  { %196 = vst.msk [vmem:[#allocation2] sm:$0xf] %vm195_vm11, %v190_v57  ;;  %v704_v58 = vmul.f32 %v700_v54, %v667_v22 }
 0xb48   :  { %v5804_v59 = vpack.c.bf16 %v704_v58, %v704_v58 }
 0xb4a   :  { %v726_v60 = vunpack.c.l.b16 %v5804_v59 }
 0xb4c   :  { %v727_v61 = vpack.c.b16 %v726_v60, %v725_v55 }
 0xb4d   :  { %v192_v62 = vpop.permute.xlu0 %191 }
 0xb4e   :  { %197 = vst.msk [vmem:[#allocation2 + $0x4] sm:$0xf] %vm195_vm11, %v192_v62  ;;  %728 = vrot.lane.b32.xlu1 %v727_v61, %s5644_s0 }
 0xb55   :  { %v4963_v63 = vld [vmem:[#allocation2] sm:$0xff] }
 0xb56   :  { %4627 = vmatmul.msk.bf16.vlgmr.msra.gmra.mxu0 %vm91_vm8, %v4963_v63 }
 0xbc0   :  { %v729_v2 = vpop.permute.xlu1 %728 }
 0xbc1   :  { %4562 = vmatmul.msk.bf16.vlgmr.msra.gmra.mxu1 %vm91_vm8, %v729_v2 }
 0xbd1   :  { %1300 = vmatmul.bf16.vlgmr.msrb.gmra.mxu1 %v5643_v3 }
 0xbd3   :  { %v1217_v11 = vpop.f32.mrf.mxu0 }
 0xbd4   :  { %v1218_v13 = vadd.f32 %v5817_v12, %v1217_v11 }
 0xbdb   :  { %v1219_v17 = vpop.f32.mrf.mxu0 }
 0xbdc   :  { %v1220_v18 = vadd.f32 %v5817_v12, %v1219_v17 }
 0xc3e   :  { %v754_v5 = vpop.f32.mrf.mxu1 }
 0xc3f   :  { %v759_v6 = vadd.f32 %v754_v5, %v719_v4 }
 0xc41   :  { %5124 = vtanh.f32 %v759_v6  ;;  %v4563_v26 = vmul.f32 -1.442695, %v759_v6 }
 0xc46   :  { %v756_v8 = vpop.f32.mrf.mxu1 }
 0xc47   :  { %v5125_v9 = vpop.eup %5124  ;;  %v760_v10 = vadd.f32 %v756_v8, %v720_v7 }
 0xc48   :  { %805 = vrot.lane.b32.xlu1 %v5125_v9, %s5637_s7 }
 0xc49   :  { %5126 = vtanh.f32 %v760_v10  ;;  %v4564_v23 = vmul.f32 -1.442695, %v760_v10 }
 0xc4e   :  { %v1301_v14 = vpop.f32.mrf.mxu1 }
 0xc4f   :  { %v5127_v15 = vpop.eup %5126  ;;  %v1306_v16 = vadd.f32 %v1301_v14, %v1218_v13 }
 0xc50   :  { %807 = vrot.lane.b32.xlu2 %v5127_v15, %s5637_s7 }
 0xc51   :  { %5128 = vtanh.f32 %v1306_v16  ;;  %v4643_v32 = vmul.f32 -1.442695, %v1306_v16 }
 0xc56   :  { %v1303_v19 = vpop.f32.mrf.mxu1 }
 0xc57   :  { %v5129_v20 = vpop.eup %5128  ;;  %v1307_v21 = vadd.f32 %v1303_v19, %v1220_v18 }
 0xc58   :  { %1352 = vrot.lane.b32.xlu0 %v5129_v20, %s5637_s7 }
 0xc59   :  { %5130 = vtanh.f32 %v1307_v21  ;;  %v4644_v45 = vmul.f32 -1.442695, %v1307_v21 }
 0xc5a   :  { %5132 = vpow2.f32 %v4564_v23 }
 0xc5f   :  { %v5131_v22 = vpop.eup %5130 }
 0xc60   :  { %1354 = vrot.lane.b32.xlu1 %v5131_v22, %s5637_s7  ;;  %v5133_v24 = vpop.eup %5132 }
 0xc61   :  { %v768_v25 = vadd.f32 1.0, %v5133_v24 }
 0xc63   :  { %5134 = vrcp.f32 %v768_v25  ;;  %v795_v40 = vand.u32 2147483648, %v768_v25  ;;  %vm789_vm13 = vweird.f32 %v768_v25  ;;  %v793_v43 = vand.u32 2147483647, %v768_v25 }
 0xc64   :  { %5136 = vpow2.f32 %v4563_v26 }
 0xc65   :  { %v796_v48 = vor.u32 1.1754944e-38, %v795_v40  ;;  %vm794_vm15 = vcmp.eq.f32.partialorder %v793_v43, 8.507059e+37 }
 0xc69   :  { %v5135_v27 = vpop.eup %5134 }
 0xc6a   :  { %v5137_v28 = vpop.eup %5136  ;;  %v785_v29 = vmul.f32 %v5135_v27, %v768_v25  ;;  %vm790_vm12 = vweird.f32 %v5135_v27 }
 0xc6b   :  { %v767_v30 = vadd.f32 1.0, %v5137_v28  ;;  %vm791_vm14 = vmor %vm789_vm13, %vm790_vm12 }
 0xc6c   :  { %v786_v31 = vsub.f32 1.0, %v785_v29 }
 0xc6d   :  { %5138 = vrcp.f32 %v767_v30  ;;  %v780_v63 = vand.u32 2147483648, %v767_v30  ;;  %vm774_vm1 = vweird.f32 %v767_v30  ;;  %v778_v0 = vand.u32 2147483647, %v767_v30 }
 0xc6e   :  { %v787_v33 = vmul.f32 %v5135_v27, %v786_v31  ;;  %5140 = vpow2.f32 %v4643_v32 }
 0xc6f   :  { %5142 = vpow2.f32 %v4644_v45  ;;  %v781_v4 = vor.u32 1.1754944e-38, %v780_v63  ;;  %vm779_vm3 = vcmp.eq.f32.partialorder %v778_v0, 8.507059e+37 }
 0xc70   :  { %v788_v34 = vadd.f32 %v5135_v27, %v787_v33 }
 0xc72   :  { %v792_v42 = vsel %vm791_vm14, %v5135_v27, %v788_v34 }
 0xc73   :  { %v5139_v37 = vpop.eup %5138  ;;  %v5824_v41 = vsel %vm794_vm15, %v796_v48, %v792_v42 }
 0xc74   :  { %v5141_v46 = vpop.eup %5140  ;;  %v770_v47 = vmul.f32 %v5139_v37, %v767_v30  ;;  %vm775_vm0 = vweird.f32 %v5139_v37  ;;  %v802_v34 = vmul.f32 %v5824_v41, %v5788_v38 }
 0xc75   :  { %v1314_v35 = vadd.f32 1.0, %v5141_v46  ;;  %v5143_v58 = vpop.eup %5142  ;;  %vm776_vm2 = vmor %vm774_vm1, %vm775_vm0 }
 0xc76   :  { %v771_v54 = vsub.f32 1.0, %v770_v47  ;;  %v1315_v60 = vadd.f32 1.0, %v5143_v58 }
 0xc77   :  { %5144 = vrcp.f32 %v1314_v35  ;;  %v1327_v15 = vand.u32 2147483648, %v1314_v35  ;;  %vm1321_vm5 = vweird.f32 %v1314_v35  ;;  %v1325_v16 = vand.u32 2147483647, %v1314_v35 }
 0xc78   :  { %v772_v55 = vmul.f32 %v5139_v37, %v771_v54  ;;  %5146 = vrcp.f32 %v1315_v60  ;;  %v1342_v24 = vand.u32 2147483648, %v1315_v60  ;;  %vm1336_vm10 = vweird.f32 %v1315_v60 }
 0xc79   :  { %v1328_v19 = vor.u32 1.1754944e-38, %v1327_v15  ;;  %vm1326_vm7 = vcmp.eq.f32.partialorder %v1325_v16, 8.507059e+37  ;;  %v1340_v25 = vand.u32 2147483647, %v1315_v60  ;;  %v4975_v15 = vld [vmem:[#allocation9 + $0x10] sm:$0xff] }
 0xc7a   :  { %v773_v61 = vadd.f32 %v5139_v37, %v772_v55  ;;  %v1343_v27 = vor.u32 1.1754944e-38, %v1342_v24 }
 0xc7b   :  { %vm1341_vm13 = vcmp.eq.f32.partialorder %v1340_v25, 8.507059e+37 }
 0xc7c   :  { %v777_v1 = vsel %vm776_vm2, %v5139_v37, %v773_v61  ;;  %v4960_v61 = vld [vmem:[#allocation9 + $0x8] sm:$0xff] }
 0xc7d   :  { %v5145_v62 = vpop.eup %5144  ;;  %v782_v6 = vsel %vm779_vm3, %v781_v4, %v777_v1  ;;  %881 = vmatpush.bf16.msrb.mxu2 %v4960_v61 }
 0xc7e   :  { %v1317_v2 = vmul.f32 %v5145_v62, %v1314_v35  ;;  %v5147_v9 = vpop.eup %5146  ;;  %vm1322_vm4 = vweird.f32 %v5145_v62  ;;  %v801_v31 = vmul.f32 %v782_v6, %v5793_v36 }
 0xc7f   :  { %v1332_v11 = vmul.f32 %v5147_v9, %v1315_v60  ;;  %vm1323_vm6 = vmor %vm1321_vm5, %vm1322_vm4  ;;  %vm1337_vm9 = vweird.f32 %v5147_v9 }
 0xc80   :  { %v1318_v8 = vsub.f32 1.0, %v1317_v2  ;;  %vm1338_vm12 = vmor %vm1336_vm10, %vm1337_vm9 }
 0xc81   :  { %v1333_v14 = vsub.f32 1.0, %v1332_v11 }
 0xc82   :  { %v1319_v10 = vmul.f32 %v5145_v62, %v1318_v8 }
 0xc83   :  { %v1334_v18 = vmul.f32 %v5147_v9, %v1333_v14  ;;  %v4976_v14 = vld [vmem:[#allocation9 + $0x18] sm:$0xff] }
 0xc84   :  { %v1320_v13 = vadd.f32 %v5145_v62, %v1319_v10 }
 0xc85   :  { %v1335_v23 = vadd.f32 %v5147_v9, %v1334_v18  ;;  %v849_v18 = vld [vmem:[#allocation5 + $0x60] sm:$0xff] }
 0xc86   :  { %v1324_v17 = vsel %vm1323_vm6, %v5145_v62, %v1320_v13 }
 0xc87   :  { %v1329_v21 = vsel %vm1326_vm7, %v1328_v19, %v1324_v17  ;;  %v1339_v26 = vsel %vm1338_vm12, %v5147_v9, %v1335_v23 }
 0xc88   :  { %v1344_v29 = vsel %vm1341_vm13, %v1343_v27, %v1339_v26  ;;  %v1348_v38 = vmul.f32 0.0, %v1329_v21 }
 0xc89   :  { %v1349_v36 = vmul.f32 0.0, %v1344_v29 }
 0xcaa   :  { %v808_v52 = vpop.permute.xlu2 %807 }
 0xcab   :  { %v812_v57 = vmul.f32 %v808_v52, %v5824_v41 }
 0xcad   :  { %817 = vrot.lane.b32.xlu0 %v812_v57, %s5644_s0 }
 0xcba   :  { %v806_v5 = vpop.permute.xlu1 %805 }
 0xcbb   :  { %v811_v7 = vmul.f32 %v806_v5, %v782_v6 }
 0xcbd   :  { %815 = vrot.lane.b32.xlu2 %v811_v7, %s5644_s0 }
 0xcca   :  { %v1353_v20 = vpop.permute.xlu0 %1352 }
 0xccb   :  { %v1358_v22 = vmul.f32 %v1353_v20, %v1329_v21 }
 0xccd   :  { %1362 = vrot.lane.b32.xlu1 %v1358_v22, %s5644_s0 }
 0xcd2   :  { %v1355_v28 = vpop.permute.xlu1 %1354 }
 0xcd3   :  { %v1359_v30 = vmul.f32 %v1355_v28, %v1344_v29 }
 0xcd5   :  { %1364 = vrot.lane.b32.xlu2 %v1359_v30, %s5644_s0 }
 0xd17   :  { %v816_v32 = vpop.permute.xlu2 %815 }
 0xd18   :  { %v5832_v33 = vadd.f32 %v816_v32, %v801_v31 }
 0xd1a   :  { %5148 = vtanh.f32 %v5832_v33 }
 0xd1f   :  { %v818_v37 = vpop.permute.xlu0 %817 }
 0xd20   :  { %v5149_v40 = vpop.eup %5148  ;;  %v5837_v45 = vadd.f32 %v818_v37, %v802_v34 }
 0xd21   :  { %827 = vrot.lane.b32.xlu0 %v5149_v40, %s5637_s7 }
 0xd22   :  { %5150 = vtanh.f32 %v5837_v45 }
 0xd28   :  { %v5151_v43 = vpop.eup %5150 }
 0xd29   :  { %829 = vrot.lane.b32.xlu1 %v5151_v43, %s5637_s7 }
 0xd2f   :  { %v1365_v46 = vpop.permute.xlu2 %1364 }
 0xd30   :  { %v5842_v42 = vadd.f32 %v1365_v46, %v1349_v36 }
 0xd32   :  { %5152 = vtanh.f32 %v5842_v42 }
 0xd38   :  { %v5153_v47 = vpop.eup %5152 }
 0xd39   :  { %1376 = vrot.lane.b32.xlu0 %v5153_v47, %s5637_s7 }
 0xd3f   :  { %v1363_v48 = vpop.permute.xlu1 %1362 }
 0xd40   :  { %v5846_v35 = vadd.f32 %v1363_v48, %v1348_v38 }
 0xd41   :  { %321 = vrot.lane.b32.xlu0 %v5733_v53, %s5644_s0  ;;  %v4959_v53 = vld [vmem:[#allocation9] sm:$0xff] }
 0xd42   :  { %5154 = vtanh.f32 %v5846_v35  ;;  %882 = vmatpush.bf16.msrb.mxu2 %v4959_v53 }
 0xd46   :  { %1427 = vmatpush.bf16.msra.mxu2 %v4976_v14 }
 0xd48   :  { %v5155_v52 = vpop.eup %5154 }
 0xd49   :  { %1374 = vrot.lane.b32.xlu2 %v5155_v52, %s5637_s7 }
 0xd4a   :  { %1428 = vmatpush.bf16.msra.mxu2 %v4975_v15 }
 0xd51   :  { %319 = vrot.lane.b32.xlu2 %v5731_v51, %s5644_s0 }
 0xd93   :  { %v828_v57 = vpop.permute.xlu0 %827 }
 0xd94   :  { %v833_v54 = vmul.f32 %v828_v57, %v782_v6 }
 0xd96   :  { %v5854_v55 = vpack.c.bf16 %v833_v54, %v833_v54 }
 0xd98   :  { %v855_v63 = vunpack.c.l.b16 %v5854_v55 }
 0xd9b   :  { %v830_v58 = vpop.permute.xlu1 %829 }
 0xd9c   :  { %v834_v60 = vmul.f32 %v830_v58, %v5824_v41 }
 0xd9e   :  { %v5857_v62 = vpack.c.bf16 %v834_v60, %v834_v60 }
 0xda0   :  { %v856_v0 = vunpack.c.l.b16 %v5857_v62 }
 0xda2   :  { %v857_v1 = vpack.c.b16 %v856_v0, %v855_v63 }
 0xda3   :  { %v1375_v2 = vpop.permute.xlu2 %1374 }
 0xda4   :  { %858 = vrot.lane.b32.xlu1 %v857_v1, %s5644_s0  ;;  %v1380_v51 = vmul.f32 %v1375_v2, %v1329_v21  ;;  %v850_v21 = vld [vmem:[#allocation5 + $0x68] sm:$0xff] }
 0xda6   :  { %v5862_v6 = vpack.c.bf16 %v1380_v51, %v1380_v51 }
 0xda8   :  { %v1401_v8 = vunpack.c.l.b16 %v5862_v6 }
 0xdab   :  { %v1377_v4 = vpop.permute.xlu0 %1376  ;;  %v320_v5 = vpop.permute.xlu2 %319 }
 0xdac   :  { %v1381_v41 = vmul.f32 %v1377_v4, %v1344_v29  ;;  %326 = vst.msk [vmem:[#allocation2 + $0x8] sm:$0xf] %vm195_vm11, %v320_v5 }
 0xdae   :  { %v5865_v7 = vpack.c.bf16 %v1381_v41, %v1381_v41 }
 0xdb0   :  { %v1402_v9 = vunpack.c.l.b16 %v5865_v7 }
 0xdb2   :  { %v1403_v10 = vpack.c.b16 %v1402_v9, %v1401_v8 }
 0xdb3   :  { %v322_v11 = vpop.permute.xlu0 %321 }
 0xdb4   :  { %327 = vst.msk [vmem:[#allocation2 + $0xc] sm:$0xf] %vm195_vm11, %v322_v11  ;;  %1404 = vrot.lane.b32.xlu1 %v1403_v10, %s5644_s0 }
 0xdbb   :  { %v4964_v13 = vld [vmem:[#allocation2 + $0x8] sm:$0xff] }
 0xdbc   :  { %4628 = vmatmul.msk.bf16.gmra.mxu0 %vm91_vm8, %v4964_v13 }
 0xe16   :  { %v859_v16 = vpop.permute.xlu1 %858 }
 0xe17   :  { %4573 = vmatmul.msk.bf16.vlgmr.msrb.gmra.mxu2 %vm91_vm8, %v859_v16 }
 0xe26   :  { %v1405_v17 = vpop.permute.xlu1 %1404 }
 0xe27   :  { %4653 = vmatmul.msk.bf16.vlgmr.msra.gmra.mxu2 %vm91_vm8, %v1405_v17 }
 0xe39   :  { %v1222_v25 = vpop.f32.mrf.mxu0 }
 0xe3a   :  { %v1223_v26 = vadd.f32 %v5817_v12, %v1222_v25 }
 0xe41   :  { %v1224_v30 = vpop.f32.mrf.mxu0 }
 0xe42   :  { %v1225_v31 = vadd.f32 %v5817_v12, %v1224_v30 }
 0xe9a   :  { %v884_v19 = vpop.f32.mrf.mxu2 }
 0xe9b   :  { %v889_v20 = vadd.f32 %v884_v19, %v849_v18 }
 0xe9d   :  { %5156 = vtanh.f32 %v889_v20  ;;  %v4574_v43 = vmul.f32 -1.442695, %v889_v20 }
 0xea2   :  { %v886_v22 = vpop.f32.mrf.mxu2 }
 0xea3   :  { %v5157_v23 = vpop.eup %5156  ;;  %v890_v24 = vadd.f32 %v886_v22, %v850_v21 }
 0xea4   :  { %935 = vrot.lane.b32.xlu2 %v5157_v23, %s5637_s7 }
 0xea5   :  { %5158 = vtanh.f32 %v890_v24  ;;  %v4575_v57 = vmul.f32 -1.442695, %v890_v24 }
 0xeaa   :  { %v1430_v27 = vpop.f32.mrf.mxu2 }
 0xeab   :  { %v5159_v28 = vpop.eup %5158  ;;  %v1435_v29 = vadd.f32 %v1430_v27, %v1223_v26 }
 0xeac   :  { %937 = vrot.lane.b32.xlu0 %v5159_v28, %s5637_s7 }
 0xead   :  { %5160 = vtanh.f32 %v1435_v29  ;;  %v4654_v63 = vmul.f32 -1.442695, %v1435_v29 }
 0xeb2   :  { %v1432_v32 = vpop.f32.mrf.mxu2 }
 0xeb3   :  { %v5161_v34 = vpop.eup %5160  ;;  %v1436_v37 = vadd.f32 %v1432_v32, %v1225_v31 }
 0xeb4   :  { %1481 = vrot.lane.b32.xlu1 %v5161_v34, %s5637_s7 }
 0xeb5   :  { %5162 = vtanh.f32 %v1436_v37  ;;  %v4655_v38 = vmul.f32 -1.442695, %v1436_v37 }
 0xeb6   :  { %5164 = vpow2.f32 %v4574_v43 }
 0xebb   :  { %v5163_v40 = vpop.eup %5162 }
 0xebc   :  { %1483 = vrot.lane.b32.xlu2 %v5163_v40, %s5637_s7  ;;  %v5165_v36 = vpop.eup %5164 }
 0xebd   :  { %v897_v46 = vadd.f32 1.0, %v5165_v36 }
 0xebf   :  { %5166 = vrcp.f32 %v897_v46  ;;  %v910_v53 = vand.u32 2147483648, %v897_v46  ;;  %vm904_vm15 = vweird.f32 %v897_v46  ;;  %v908_v0 = vand.u32 2147483647, %v897_v46 }
 0xec0   :  { %5168 = vpow2.f32 %v4655_v38 }
 0xec1   :  { %5170 = vpow2.f32 %v4575_v57  ;;  %v911_v51 = vor.u32 1.1754944e-38, %v910_v53  ;;  %vm909_vm1 = vcmp.eq.f32.partialorder %v908_v0, 8.507059e+37 }
 0xec5   :  { %v5167_v47 = vpop.eup %5166 }
 0xec6   :  { %v900_v48 = vmul.f32 %v5167_v47, %v897_v46  ;;  %v5169_v54 = vpop.eup %5168  ;;  %vm905_vm14 = vweird.f32 %v5167_v47 }
 0xec7   :  { %v1444_v60 = vadd.f32 1.0, %v5169_v54  ;;  %vm906_vm0 = vmor %vm904_vm15, %vm905_vm14  ;;  %v5171_v1 = vpop.eup %5170 }
 0xec8   :  { %v901_v52 = vsub.f32 1.0, %v900_v48  ;;  %v898_v4 = vadd.f32 1.0, %v5171_v1 }
 0xec9   :  { %5172 = vrcp.f32 %v1444_v60  ;;  %v1471_v21 = vand.u32 2147483648, %v1444_v60  ;;  %vm1465_vm3 = vweird.f32 %v1444_v60  ;;  %v1469_v22 = vand.u32 2147483647, %v1444_v60 }
 0xeca   :  { %v902_v58 = vmul.f32 %v5167_v47, %v901_v52  ;;  %5174 = vpow2.f32 %v4654_v63  ;;  %v925_v32 = vand.u32 2147483648, %v898_v4  ;;  %vm919_vm7 = vweird.f32 %v898_v4 }
 0xecb   :  { %5176 = vrcp.f32 %v898_v4  ;;  %v1472_v26 = vor.u32 1.1754944e-38, %v1471_v21  ;;  %vm1470_vm5 = vcmp.eq.f32.partialorder %v1469_v22, 8.507059e+37  ;;  %v923_v34 = vand.u32 2147483647, %v898_v4 }
 0xecc   :  { %v903_v61 = vadd.f32 %v5167_v47, %v902_v58  ;;  %v926_v43 = vor.u32 1.1754944e-38, %v925_v32 }
 0xecd   :  { %vm924_vm10 = vcmp.eq.f32.partialorder %v923_v34, 8.507059e+37 }
 0xece   :  { %v907_v2 = vsel %vm906_vm0, %v5167_v47, %v903_v61 }
 0xecf   :  { %v5880_v5 = vsel %vm909_vm1, %v911_v51, %v907_v2  ;;  %v5173_v9 = vpop.eup %5172 }
 0xed0   :  { %v5175_v10 = vpop.eup %5174  ;;  %v1461_v11 = vmul.f32 %v5173_v9, %v1444_v60  ;;  %vm1466_vm2 = vweird.f32 %v5173_v9  ;;  %v931_v53 = vmul.f32 %v5880_v5, %v5832_v33 }
 0xed1   :  { %v1443_v13 = vadd.f32 1.0, %v5175_v10  ;;  %v5177_v15 = vpop.eup %5176  ;;  %vm1467_vm4 = vmor %vm1465_vm3, %vm1466_vm2 }
 0xed2   :  { %v1462_v14 = vsub.f32 1.0, %v1461_v11  ;;  %v915_v17 = vmul.f32 %v5177_v15, %v898_v4  ;;  %vm920_vm6 = vweird.f32 %v5177_v15 }
 0xed3   :  { %5178 = vrcp.f32 %v1443_v13  ;;  %vm921_vm9 = vmor %vm919_vm7, %vm920_vm6  ;;  %v1456_v48 = vand.u32 2147483648, %v1443_v13  ;;  %vm1450_vm13 = vweird.f32 %v1443_v13  ;;  %v1454_v52 = vand.u32 2147483647, %v1443_v13 }
 0xed4   :  { %v1463_v16 = vmul.f32 %v5173_v9, %v1462_v14  ;;  %v916_v19 = vsub.f32 1.0, %v915_v17 }
 0xed5   :  { %v1457_v54 = vor.u32 1.1754944e-38, %v1456_v48  ;;  %vm1455_vm15 = vcmp.eq.f32.partialorder %v1454_v52, 8.507059e+37 }
 0xed6   :  { %v1464_v18 = vadd.f32 %v5173_v9, %v1463_v16  ;;  %v917_v24 = vmul.f32 %v5177_v15, %v916_v19 }
 0xed8   :  { %v1468_v23 = vsel %vm1467_vm4, %v5173_v9, %v1464_v18  ;;  %v918_v30 = vadd.f32 %v5177_v15, %v917_v24  ;;  %v4962_v18 = vld [vmem:[#allocation9 + $0x8] sm:$0xff] }
 0xed9   :  { %v5179_v20 = vpop.eup %5178  ;;  %v5884_v27 = vsel %vm1470_vm5, %v1472_v26, %v1468_v23  ;;  %1011 = vmatpush.bf16.msra.mxu3 %v4962_v18 }
 0xeda   :  { %v1446_v25 = vmul.f32 %v5179_v20, %v1443_v13  ;;  %v922_v37 = vsel %vm921_vm9, %v5177_v15, %v918_v30  ;;  %vm1451_vm12 = vweird.f32 %v5179_v20 }
 0xedb   :  { %v927_v46 = vsel %vm924_vm10, %v926_v43, %v922_v37  ;;  %vm1452_vm14 = vmor %vm1450_vm13, %vm1451_vm12  ;;  %v4978_v37 = vld [vmem:[#allocation9 + $0x18] sm:$0xff] }
 0xedc   :  { %v1447_v31 = vsub.f32 1.0, %v1446_v25  ;;  %v932_v10 = vmul.f32 %v927_v46, %v5837_v45 }
 0xede   :  { %v1448_v40 = vmul.f32 %v5179_v20, %v1447_v31 }
 0xee0   :  { %v1449_v38 = vadd.f32 %v5179_v20, %v1448_v40 }
 0xee2   :  { %v1453_v57 = vsel %vm1452_vm14, %v5179_v20, %v1449_v38 }
 0xee3   :  { %v1458_v60 = vsel %vm1455_vm15, %v1457_v54, %v1453_v57 }
 0xee4   :  { %v1477_v2 = vmul.f32 %v1458_v60, %v5846_v35 }
 0xefe   :  { %v936_v41 = vpop.permute.xlu2 %935 }
 0xeff   :  { %v941_v8 = vmul.f32 %v936_v41, %v5880_v5  ;;  %v1478_v41 = vmul.f32 %v5884_v27, %v5842_v42 }
 0xf01   :  { %945 = vrot.lane.b32.xlu0 %v941_v8, %s5644_s0 }
 0xf16   :  { %v1484_v28 = vpop.permute.xlu2 %1483 }
 0xf17   :  { %v1488_v29 = vmul.f32 %v1484_v28, %v5884_v27 }
 0xf19   :  { %1493 = vrot.lane.b32.xlu0 %v1488_v29, %s5644_s0 }
 0xf1e   :  { %v938_v36 = vpop.permute.xlu0 %937 }
 0xf1f   :  { %v942_v47 = vmul.f32 %v938_v36, %v927_v46 }
 0xf21   :  { %947 = vrot.lane.b32.xlu1 %v942_v47, %s5644_s0 }
 0xf26   :  { %v1482_v58 = vpop.permute.xlu1 %1481 }
 0xf27   :  { %v1487_v61 = vmul.f32 %v1482_v58, %v1458_v60 }
 0xf29   :  { %1491 = vrot.lane.b32.xlu2 %v1487_v61, %s5644_s0 }
 0xf73   :  { %v946_v63 = vpop.permute.xlu0 %945 }
 0xf74   :  { %v5892_v0 = vadd.f32 %v946_v63, %v931_v53 }
 0xf76   :  { %5180 = vtanh.f32 %v5892_v0 }
 0xf7c   :  { %v5181_v1 = vpop.eup %5180 }
 0xf7d   :  { %957 = vrot.lane.b32.xlu1 %v5181_v1, %s5637_s7 }
 0xf83   :  { %v1492_v51 = vpop.permute.xlu2 %1491 }
 0xf84   :  { %v5897_v4 = vadd.f32 %v1492_v51, %v1477_v2 }
 0xf86   :  { %5182 = vtanh.f32 %v5897_v4 }
 0xf8b   :  { %v1494_v8 = vpop.permute.xlu0 %1493 }
 0xf8c   :  { %v5183_v33 = vpop.eup %5182  ;;  %v5902_v9 = vadd.f32 %v1494_v8, %v1478_v41 }
 0xf8d   :  { %1503 = vrot.lane.b32.xlu0 %v5183_v33, %s5637_s7 }
 0xf8e   :  { %5184 = vtanh.f32 %v5902_v9 }
 0xf93   :  { %v948_v11 = vpop.permute.xlu1 %947 }
 0xf94   :  { %v5185_v35 = vpop.eup %5184  ;;  %v5907_v13 = vadd.f32 %v948_v11, %v932_v10 }
 0xf95   :  { %1505 = vrot.lane.b32.xlu1 %v5185_v35, %s5637_s7  ;;  %449 = vrot.lane.b32.xlu0 %v5753_v49, %s5644_s0  ;;  %v4961_v49 = vld [vmem:[#allocation9] sm:$0xff] }
 0xf96   :  { %5186 = vtanh.f32 %v5907_v13  ;;  %1012 = vmatpush.bf16.msra.mxu3 %v4961_v49 }
 0xf9a   :  { %1556 = vmatpush.bf16.msrb.mxu3 %v4978_v37 }
 0xf9c   :  { %v5187_v42 = vpop.eup %5186 }
 0xf9d   :  { %959 = vrot.lane.b32.xlu2 %v5187_v42, %s5637_s7  ;;  %451 = vrot.lane.b32.xlu1 %v5755_v50, %s5644_s0 }
 0xfef   :  { %v958_v14 = vpop.permute.xlu1 %957 }
 0xff0   :  { %v963_v45 = vmul.f32 %v958_v14, %v5880_v5 }
 0xff2   :  { %v5917_v16 = vpack.c.bf16 %v963_v45, %v963_v45 }
 0xff4   :  { %v985_v20 = vunpack.c.l.b16 %v5917_v16 }
 0xff7   :  { %v960_v15 = vpop.permute.xlu2 %959 }
 0xff8   :  { %v964_v17 = vmul.f32 %v960_v15, %v927_v46 }
 0xffa   :  { %v5919_v19 = vpack.c.bf16 %v964_v17, %v964_v17 }
 0xffc   :  { %v986_v21 = vunpack.c.l.b16 %v5919_v19 }
 0xffe   :  { %v987_v22 = vpack.c.b16 %v986_v21, %v985_v20 }
 0xfff   :  { %v1504_v23 = vpop.permute.xlu0 %1503 }
0x1000   :  { %988 = vrot.lane.b32.xlu2 %v987_v22, %s5644_s0  ;;  %v1509_v50 = vmul.f32 %v1504_v23, %v1458_v60 }
0x1002   :  { %v5924_v25 = vpack.c.bf16 %v1509_v50, %v1509_v50 }
0x1004   :  { %v1530_v29 = vunpack.c.l.b16 %v5924_v25 }
0x1007   :  { %v1506_v5 = vpop.permute.xlu1 %1505  ;;  %v450_v24 = vpop.permute.xlu0 %449 }
0x1008   :  { %v1510_v26 = vmul.f32 %v1506_v5, %v5884_v27  ;;  %456 = vst.msk [vmem:[#allocation2 + $0x10] sm:$0xf] %vm195_vm11, %v450_v24  ;;  %v4977_v27 = vld [vmem:[#allocation9 + $0x10] sm:$0xff] }
0x1009   :  { %1557 = vmatpush.bf16.msrb.mxu3 %v4977_v27 }
0x100a   :  { %v5928_v28 = vpack.c.bf16 %v1510_v26, %v1510_v26 }
0x100c   :  { %v1531_v30 = vunpack.c.l.b16 %v5928_v28 }
0x100e   :  { %v1532_v31 = vpack.c.b16 %v1531_v30, %v1530_v29 }
0x100f   :  { %v452_v32 = vpop.permute.xlu1 %451 }
0x1010   :  { %457 = vst.msk [vmem:[#allocation2 + $0x14] sm:$0xf] %vm195_vm11, %v452_v32  ;;  %1533 = vrot.lane.b32.xlu2 %v1532_v31, %s5644_s0 }
0x1017   :  { %v4965_v34 = vld [vmem:[#allocation2 + $0x10] sm:$0xff] }
0x1018   :  { %4629 = vmatmul.msk.bf16.gmra.mxu0 %vm91_vm8, %v4965_v34 }
0x105a   :  { %v989_v40 = vpop.permute.xlu2 %988 }
0x105b   :  { %4584 = vmatmul.msk.bf16.vlgmr.msra.gmra.mxu3 %vm91_vm8, %v989_v40 }
0x106a   :  { %v1534_v43 = vpop.permute.xlu2 %1533 }
0x106b   :  { %4664 = vmatmul.msk.bf16.vlgmr.msrb.gmra.mxu3 %vm91_vm8, %v1534_v43 }
0x1095   :  { %v1227_v47 = vpop.f32.mrf.mxu0 }
0x1096   :  { %v1228_v38 = vadd.f32 %v5817_v12, %v1227_v47 }
0x109d   :  { %v1229_v57 = vpop.f32.mrf.mxu0 }
0x109e   :  { %v1230_v54 = vadd.f32 %v5817_v12, %v1229_v57  ;;  %v4979_v57 = vld [vmem:[#allocation9 + $0x10] sm:$0xff] }
0x10de   :  { %v5937_v36 = vpop.f32.mrf.mxu3 }
0x10e6   :  { %v5939_v46 = vpop.f32.mrf.mxu3 }
0x10ee   :  { %v1559_v48 = vpop.f32.mrf.mxu3 }
0x10ef   :  { %v1564_v52 = vadd.f32 %v1559_v48, %v1228_v38 }
0x10f1   :  { %5188 = vtanh.f32 %v1564_v52  ;;  %v4665_v63 = vmul.f32 -1.442695, %v1564_v52  ;;  %v4980_v52 = vld [vmem:[#allocation9 + $0x18] sm:$0xff] }
0x10f2   :  { %1685 = vmatpush.bf16.msra.mxu1 %v4980_v52 }
0x10f6   :  { %v1561_v58 = vpop.f32.mrf.mxu3  ;;  %1686 = vmatpush.bf16.msra.mxu1 %v4979_v57 }
0x10f7   :  { %v5189_v60 = vpop.eup %5188  ;;  %v1565_v61 = vadd.f32 %v1561_v58, %v1230_v54 }
0x10f8   :  { %1610 = vrot.lane.b32.xlu0 %v5189_v60, %s5637_s7 }
0x10f9   :  { %5190 = vtanh.f32 %v1565_v61  ;;  %v4666_v1 = vmul.f32 -1.442695, %v1565_v61 }
0x10fa   :  { %5192 = vpow2.f32 %v4665_v63 }
0x10fb   :  { %5194 = vpow2.f32 %v4666_v1 }
0x10ff   :  { %v5191_v53 = vpop.eup %5190 }
0x1100   :  { %1612 = vrot.lane.b32.xlu1 %v5191_v53, %s5637_s7  ;;  %v5193_v2 = vpop.eup %5192 }
0x1101   :  { %v1572_v51 = vadd.f32 1.0, %v5193_v2  ;;  %v5195_v41 = vpop.eup %5194 }
0x1102   :  { %v1573_v8 = vadd.f32 1.0, %v5195_v41 }
0x1103   :  { %5196 = vrcp.f32 %v1572_v51  ;;  %v1585_v17 = vand.u32 2147483648, %v1572_v51  ;;  %vm1579_vm1 = vweird.f32 %v1572_v51  ;;  %v1583_v18 = vand.u32 2147483647, %v1572_v51 }
0x1104   :  { %5198 = vrcp.f32 %v1573_v8  ;;  %v1600_v24 = vand.u32 2147483648, %v1573_v8  ;;  %vm1594_vm5 = vweird.f32 %v1573_v8  ;;  %v1598_v26 = vand.u32 2147483647, %v1573_v8 }
0x1105   :  { %v1586_v21 = vor.u32 1.1754944e-38, %v1585_v17  ;;  %vm1584_vm3 = vcmp.eq.f32.partialorder %v1583_v18, 8.507059e+37 }
0x1106   :  { %v1601_v30 = vor.u32 1.1754944e-38, %v1600_v24  ;;  %vm1599_vm7 = vcmp.eq.f32.partialorder %v1598_v26, 8.507059e+37 }
0x1109   :  { %v5197_v33 = vpop.eup %5196 }
0x110a   :  { %v1575_v10 = vmul.f32 %v5197_v33, %v1572_v51  ;;  %v5199_v35 = vpop.eup %5198  ;;  %vm1580_vm0 = vweird.f32 %v5197_v33 }
0x110b   :  { %v1590_v14 = vmul.f32 %v5199_v35, %v1573_v8  ;;  %vm1581_vm2 = vmor %vm1579_vm1, %vm1580_vm0  ;;  %vm1595_vm4 = vweird.f32 %v5199_v35 }
0x110c   :  { %v1576_v11 = vsub.f32 1.0, %v1575_v10  ;;  %vm1596_vm6 = vmor %vm1594_vm5, %vm1595_vm4 }
0x110d   :  { %v1591_v15 = vsub.f32 1.0, %v1590_v14 }
0x110e   :  { %v1577_v42 = vmul.f32 %v5197_v33, %v1576_v11 }
0x110f   :  { %v1592_v20 = vmul.f32 %v5199_v35, %v1591_v15 }
0x1110   :  { %v1578_v45 = vadd.f32 %v5197_v33, %v1577_v42 }
0x1111   :  { %v1593_v5 = vadd.f32 %v5199_v35, %v1592_v20 }
0x1112   :  { %v1582_v49 = vsel %vm1581_vm2, %v5197_v33, %v1578_v45 }
0x1113   :  { %v1587_v23 = vsel %vm1584_vm3, %v1586_v21, %v1582_v49  ;;  %v1597_v29 = vsel %vm1596_vm6, %v5199_v35, %v1593_v5 }
0x1114   :  { %v1602_v32 = vsel %vm1599_vm7, %v1601_v30, %v1597_v29  ;;  %v1606_v37 = vmul.f32 %v1587_v23, %v5897_v4 }
0x1115   :  { %v1607_v47 = vmul.f32 %v1602_v32, %v5902_v9 }
0x116a   :  { %v1611_v22 = vpop.permute.xlu0 %1610 }
0x116b   :  { %v1616_v50 = vmul.f32 %v1611_v22, %v1587_v23 }
0x116d   :  { %1620 = vrot.lane.b32.xlu2 %v1616_v50, %s5644_s0 }
0x1172   :  { %v1613_v31 = vpop.permute.xlu1 %1612 }
0x1173   :  { %v1617_v34 = vmul.f32 %v1613_v31, %v1602_v32 }
0x1175   :  { %1622 = vrot.lane.b32.xlu0 %v1617_v34, %s5644_s0 }
0x117d   :  { %579 = vrot.lane.b32.xlu0 %v5775_v39, %s5644_s0 }
0x11c7   :  { %v1621_v27 = vpop.permute.xlu2 %1620 }
0x11c8   :  { %v5950_v40 = vadd.f32 %v1621_v27, %v1606_v37 }
0x11ca   :  { %5200 = vtanh.f32 %v5950_v40 }
0x11d0   :  { %v5201_v43 = vpop.eup %5200 }
0x11d1   :  { %1632 = vrot.lane.b32.xlu1 %v5201_v43, %s5637_s7 }
0x11d9   :  { %581 = vrot.lane.b32.xlu1 %v5777_v44, %s5644_s0 }
0x11e7   :  { %v1623_v38 = vpop.permute.xlu0 %1622 }
0x11e8   :  { %v5957_v48 = vadd.f32 %v1623_v38, %v1607_v47 }
0x11ea   :  { %5202 = vtanh.f32 %v5957_v48 }
0x11ef   :  { %v580_v39 = vpop.permute.xlu0 %579 }
0x11f0   :  { %v5203_v4 = vpop.eup %5202  ;;  %586 = vst.msk [vmem:[#allocation2 + $0x18] sm:$0xf] %vm195_vm11, %v580_v39 }
0x11f1   :  { %1634 = vrot.lane.b32.xlu2 %v5203_v4, %s5637_s7 }
0x1243   :  { %v1633_v54 = vpop.permute.xlu1 %1632 }
0x1244   :  { %v1638_v58 = vmul.f32 %v1633_v54, %v1587_v23 }
0x1246   :  { %v5962_v9 = vpack.c.bf16 %v1638_v58, %v1638_v58 }
0x1248   :  { %v1659_v63 = vunpack.c.l.b16 %v5962_v9 }
0x124b   :  { %v582_v44 = vpop.permute.xlu1 %581  ;;  %v1635_v60 = vpop.permute.xlu2 %1634 }
0x124c   :  { %587 = vst.msk [vmem:[#allocation2 + $0x1c] sm:$0xf] %vm195_vm11, %v582_v44  ;;  %v1639_v61 = vmul.f32 %v1635_v60, %v1602_v32 }
0x124e   :  { %v5965_v53 = vpack.c.bf16 %v1639_v61, %v1639_v61 }
0x1250   :  { %v1660_v1 = vunpack.c.l.b16 %v5965_v53 }
0x1252   :  { %v1661_v2 = vpack.c.b16 %v1660_v1, %v1659_v63 }
0x1253   :  { %v4966_v51 = vld [vmem:[#allocation2 + $0x18] sm:$0xff] }
0x1254   :  { %1662 = vrot.lane.b32.xlu2 %v1661_v2, %s5644_s0  ;;  %4630 = vmatmul.msk.bf16.gmra.mxu0 %vm91_vm8, %v4966_v51 }
0x12ae   :  { %v1663_v41 = vpop.permute.xlu2 %1662 }
0x12af   :  { %4675 = vmatmul.msk.bf16.vlgmr.msra.gmra.mxu1 %vm91_vm8, %v1663_v41 }
0x12d1   :  { %v1232_v8 = vpop.f32.mrf.mxu0 }
0x12d2   :  { %v1233_v33 = vadd.f32 %v5817_v12, %v1232_v8 }
0x12d9   :  { %v1234_v35 = vpop.f32.mrf.mxu0 }
0x12da   :  { %v1235_v42 = vadd.f32 %v5817_v12, %v1234_v35 }
0x132c   :  { %v1688_v10 = vpop.f32.mrf.mxu1 }
0x132d   :  { %v1693_v11 = vadd.f32 %v1688_v10, %v1233_v33  ;;  %v4982_v10 = vld [vmem:[#allocation9 + $0x18] sm:$0xff] }
0x132e   :  { %1814 = vmatpush.bf16.msrb.mxu2 %v4982_v10 }
0x132f   :  { %5204 = vtanh.f32 %v1693_v11  ;;  %v4676_v18 = vmul.f32 -1.442695, %v1693_v11  ;;  %v4981_v11 = vld [vmem:[#allocation9 + $0x10] sm:$0xff] }
0x1332   :  { %1815 = vmatpush.bf16.msrb.mxu2 %v4981_v11 }
0x1334   :  { %v1690_v14 = vpop.f32.mrf.mxu1 }
0x1335   :  { %v5205_v45 = vpop.eup %5204  ;;  %v1694_v15 = vadd.f32 %v1690_v14, %v1235_v42 }
0x1336   :  { %1739 = vrot.lane.b32.xlu0 %v5205_v45, %s5637_s7 }
0x1337   :  { %5206 = vtanh.f32 %v1694_v15  ;;  %v4677_v49 = vmul.f32 -1.442695, %v1694_v15 }
0x1338   :  { %5208 = vpow2.f32 %v4676_v18 }
0x1339   :  { %5210 = vpow2.f32 %v4677_v49 }
0x133d   :  { %v5207_v17 = vpop.eup %5206 }
0x133e   :  { %1741 = vrot.lane.b32.xlu1 %v5207_v17, %s5637_s7  ;;  %v5209_v20 = vpop.eup %5208 }
0x133f   :  { %v1701_v21 = vadd.f32 1.0, %v5209_v20  ;;  %v5211_v22 = vpop.eup %5210 }
0x1340   :  { %v1702_v23 = vadd.f32 1.0, %v5211_v22 }
0x1341   :  { %5212 = vrcp.f32 %v1701_v21  ;;  %v1714_v32 = vand.u32 2147483648, %v1701_v21  ;;  %vm1708_vm10 = vweird.f32 %v1701_v21  ;;  %v1712_v34 = vand.u32 2147483647, %v1701_v21 }
0x1342   :  { %5214 = vrcp.f32 %v1702_v23  ;;  %v1729_v52 = vand.u32 2147483648, %v1702_v23  ;;  %vm1723_vm15 = vweird.f32 %v1702_v23  ;;  %v1727_v57 = vand.u32 2147483647, %v1702_v23 }
0x1343   :  { %v1715_v43 = vor.u32 1.1754944e-38, %v1714_v32  ;;  %vm1713_vm13 = vcmp.eq.f32.partialorder %v1712_v34, 8.507059e+37 }
0x1344   :  { %v1730_v58 = vor.u32 1.1754944e-38, %v1729_v52  ;;  %vm1728_vm1 = vcmp.eq.f32.partialorder %v1727_v57, 8.507059e+37 }
0x1347   :  { %v5213_v50 = vpop.eup %5212 }
0x1348   :  { %v1704_v12 = vmul.f32 %v5213_v50, %v1701_v21  ;;  %v5215_v24 = vpop.eup %5214  ;;  %vm1709_vm9 = vweird.f32 %v5213_v50 }
0x1349   :  { %v1719_v29 = vmul.f32 %v5215_v24, %v1702_v23  ;;  %vm1710_vm12 = vmor %vm1708_vm10, %vm1709_vm9  ;;  %vm1724_vm14 = vweird.f32 %v5215_v24  ;;  %v6006_v23 = vld [vmem:[%s6650_s3] ss:$0 sm:$0xff] }
0x134a   :  { %v1705_v5 = vsub.f32 1.0, %v1704_v12  ;;  %vm1725_vm0 = vmor %vm1723_vm15, %vm1724_vm14 }
0x134b   :  { %v1720_v31 = vsub.f32 1.0, %v1719_v29 }
0x134c   :  { %v1706_v26 = vmul.f32 %v5213_v50, %v1705_v5 }
0x134d   :  { %v1721_v27 = vmul.f32 %v5215_v24, %v1720_v31 }
0x134e   :  { %v1707_v30 = vadd.f32 %v5213_v50, %v1706_v26 }
0x134f   :  { %v1722_v4 = vadd.f32 %v5215_v24, %v1721_v27 }
0x1350   :  { %v1711_v37 = vsel %vm1710_vm12, %v5213_v50, %v1707_v30 }
0x1351   :  { %v1716_v38 = vsel %vm1713_vm13, %v1715_v43, %v1711_v37  ;;  %v1726_v54 = vsel %vm1725_vm0, %v5215_v24, %v1722_v4 }
0x1352   :  { %v1731_v60 = vsel %vm1728_vm1, %v1730_v58, %v1726_v54  ;;  %v1735_v63 = vmul.f32 %v1716_v38, %v5950_v40 }
0x1353   :  { %v1736_v41 = vmul.f32 %v1731_v60, %v5957_v48 }
0x13a8   :  { %v1740_v47 = vpop.permute.xlu0 %1739 }
0x13a9   :  { %v1745_v39 = vmul.f32 %v1740_v47, %v1716_v38 }
0x13ab   :  { %1749 = vrot.lane.b32.xlu2 %v1745_v39, %s5644_s0 }
0x13b0   :  { %v1742_v44 = vpop.permute.xlu1 %1741 }
0x13b1   :  { %v1746_v61 = vmul.f32 %v1742_v44, %v1731_v60 }
0x13b3   :  { %1751 = vrot.lane.b32.xlu0 %v1746_v61, %s5644_s0 }
0x13bb   :  { %709 = vrot.lane.b32.xlu0 %v5801_v56, %s5644_s0 }
0x1405   :  { %v1750_v1 = vpop.permute.xlu2 %1749 }
0x1406   :  { %v5981_v2 = vadd.f32 %v1750_v1, %v1735_v63 }
0x1408   :  { %5216 = vtanh.f32 %v5981_v2 }
0x140e   :  { %v5217_v51 = vpop.eup %5216 }
0x140f   :  { %1761 = vrot.lane.b32.xlu1 %v5217_v51, %s5637_s7 }
0x1417   :  { %711 = vrot.lane.b32.xlu1 %v5804_v59, %s5644_s0 }
0x1425   :  { %v1752_v8 = vpop.permute.xlu0 %1751 }
0x1426   :  { %v5988_v33 = vadd.f32 %v1752_v8, %v1736_v41 }
0x1428   :  { %5218 = vtanh.f32 %v5988_v33 }
0x142d   :  { %v710_v56 = vpop.permute.xlu0 %709 }
0x142e   :  { %v5219_v40 = vpop.eup %5218  ;;  %716 = vst.msk [vmem:[#allocation2 + $0x20] sm:$0xf] %vm195_vm11, %v710_v56 }
0x142f   :  { %1763 = vrot.lane.b32.xlu2 %v5219_v40, %s5637_s7 }
0x1481   :  { %v1762_v35 = vpop.permute.xlu1 %1761 }
0x1482   :  { %v1767_v42 = vmul.f32 %v1762_v35, %v1716_v38 }
0x1484   :  { %v5993_v48 = vpack.c.bf16 %v1767_v42, %v1767_v42 }
0x1486   :  { %v1788_v17 = vunpack.c.l.b16 %v5993_v48 }
0x1489   :  { %v712_v59 = vpop.permute.xlu1 %711  ;;  %v1764_v14 = vpop.permute.xlu2 %1763 }
0x148a   :  { %717 = vst.msk [vmem:[#allocation2 + $0x24] sm:$0xf] %vm195_vm11, %v712_v59  ;;  %v1768_v45 = vmul.f32 %v1764_v14, %v1731_v60 }
0x148c   :  { %v5996_v15 = vpack.c.bf16 %v1768_v45, %v1768_v45 }
0x148e   :  { %v1789_v18 = vunpack.c.l.b16 %v5996_v15 }
0x1490   :  { %v1790_v49 = vpack.c.b16 %v1789_v18, %v1788_v17 }
0x1491   :  { %v4967_v20 = vld [vmem:[#allocation2 + $0x20] sm:$0xff] }
0x1492   :  { %1791 = vrot.lane.b32.xlu2 %v1790_v49, %s5644_s0  ;;  %4631 = vmatmul.msk.bf16.gmra.mxu0 %vm91_vm8, %v4967_v20 }
0x14ec   :  { %v1792_v21 = vpop.permute.xlu2 %1791 }
0x14ed   :  { %4686 = vmatmul.msk.bf16.vlgmr.msrb.gmra.mxu2 %vm91_vm8, %v1792_v21 }
0x150f   :  { %v1237_v22 = vpop.f32.mrf.mxu0 }
0x1510   :  { %v1238_v50 = vadd.f32 %v6006_v23, %v1237_v22 }
0x1517   :  { %v1239_v24 = vpop.f32.mrf.mxu0 }
0x1518   :  { %v1240_v26 = vadd.f32 %v6006_v23, %v1239_v24  ;;  %v4983_v24 = vld [vmem:[#allocation9 + $0x10] sm:$0xff] }
0x1570   :  { %v1817_v12 = vpop.f32.mrf.mxu2 }
0x1571   :  { %v1822_v5 = vadd.f32 %v1817_v12, %v1238_v50 }
0x1573   :  { %5220 = vtanh.f32 %v1822_v5  ;;  %v4687_v34 = vmul.f32 -1.442695, %v1822_v5  ;;  %v4984_v5 = vld [vmem:[#allocation9 + $0x18] sm:$0xff] }
0x1574   :  { %1943 = vmatpush.bf16.msra.mxu3 %v4984_v5 }
0x1578   :  { %v1819_v29 = vpop.f32.mrf.mxu2  ;;  %1944 = vmatpush.bf16.msra.mxu3 %v4983_v24 }
0x1579   :  { %v5221_v30 = vpop.eup %5220  ;;  %v1823_v31 = vadd.f32 %v1819_v29, %v1240_v26 }
0x157a   :  { %1868 = vrot.lane.b32.xlu0 %v5221_v30, %s5637_s7 }
0x157b   :  { %5222 = vtanh.f32 %v1823_v31  ;;  %v4688_v37 = vmul.f32 -1.442695, %v1823_v31 }
0x157c   :  { %5224 = vpow2.f32 %v4687_v34 }
0x157d   :  { %5226 = vpow2.f32 %v4688_v37 }
0x1581   :  { %v5223_v32 = vpop.eup %5222 }
0x1582   :  { %1870 = vrot.lane.b32.xlu1 %v5223_v32, %s5637_s7  ;;  %v5225_v27 = vpop.eup %5224 }
0x1583   :  { %v1830_v43 = vadd.f32 1.0, %v5225_v27  ;;  %v5227_v47 = vpop.eup %5226 }
0x1584   :  { %v1831_v38 = vadd.f32 1.0, %v5227_v47 }
0x1585   :  { %5228 = vrcp.f32 %v1830_v43  ;;  %v1843_v61 = vand.u32 2147483648, %v1830_v43  ;;  %vm1837_vm3 = vweird.f32 %v1830_v43  ;;  %v1841_v63 = vand.u32 2147483647, %v1830_v43 }
0x1586   :  { %5230 = vrcp.f32 %v1831_v38  ;;  %v1858_v11 = vand.u32 2147483648, %v1831_v38  ;;  %vm1852_vm7 = vweird.f32 %v1831_v38  ;;  %v1856_v35 = vand.u32 2147483647, %v1831_v38 }
0x1587   :  { %v1844_v41 = vor.u32 1.1754944e-38, %v1843_v61  ;;  %vm1842_vm5 = vcmp.eq.f32.partialorder %v1841_v63, 8.507059e+37 }
0x1588   :  { %v1859_v59 = vor.u32 1.1754944e-38, %v1858_v11  ;;  %vm1857_vm10 = vcmp.eq.f32.partialorder %v1856_v35, 8.507059e+37 }
0x158b   :  { %v5229_v39 = vpop.eup %5228 }
0x158c   :  { %v1833_v4 = vmul.f32 %v5229_v39, %v1830_v43  ;;  %v5231_v57 = vpop.eup %5230  ;;  %vm1838_vm2 = vweird.f32 %v5229_v39 }
0x158d   :  { %v1848_v58 = vmul.f32 %v5231_v57, %v1831_v38  ;;  %vm1839_vm4 = vmor %vm1837_vm3, %vm1838_vm2  ;;  %vm1853_vm6 = vweird.f32 %v5231_v57 }
0x158e   :  { %v1834_v52 = vsub.f32 1.0, %v1833_v4  ;;  %vm1854_vm9 = vmor %vm1852_vm7, %vm1853_vm6 }
0x158f   :  { %v1849_v60 = vsub.f32 1.0, %v1848_v58 }
0x1590   :  { %v1835_v54 = vmul.f32 %v5229_v39, %v1834_v52 }
0x1591   :  { %v1850_v51 = vmul.f32 %v5231_v57, %v1849_v60 }
0x1592   :  { %v1836_v44 = vadd.f32 %v5229_v39, %v1835_v54 }
0x1593   :  { %v1851_v10 = vadd.f32 %v5231_v57, %v1850_v51 }
0x1594   :  { %v1840_v1 = vsel %vm1839_vm4, %v5229_v39, %v1836_v44 }
0x1595   :  { %v1845_v56 = vsel %vm1842_vm5, %v1844_v41, %v1840_v1  ;;  %v1855_v42 = vsel %vm1854_vm9, %v5231_v57, %v1851_v10 }
0x1596   :  { %v1860_v45 = vsel %vm1857_vm10, %v1859_v59, %v1855_v42  ;;  %v1864_v18 = vmul.f32 %v1845_v56, %v5981_v2 }
0x1597   :  { %v1865_v22 = vmul.f32 %v1860_v45, %v5988_v33 }
0x15ec   :  { %v1869_v8 = vpop.permute.xlu0 %1868 }
0x15ed   :  { %v1874_v40 = vmul.f32 %v1869_v8, %v1845_v56 }
0x15ef   :  { %1878 = vrot.lane.b32.xlu2 %v1874_v40, %s5644_s0 }
0x15f4   :  { %v1871_v14 = vpop.permute.xlu1 %1870 }
0x15f5   :  { %v1875_v17 = vmul.f32 %v1871_v14, %v1860_v45 }
0x15f7   :  { %1880 = vrot.lane.b32.xlu0 %v1875_v17, %s5644_s0 }
0x15ff   :  { %839 = vrot.lane.b32.xlu0 %v5854_v55, %s5644_s0 }
0x1649   :  { %v1879_v49 = vpop.permute.xlu2 %1878 }
0x164a   :  { %v6017_v20 = vadd.f32 %v1879_v49, %v1864_v18 }
0x164c   :  { %5232 = vtanh.f32 %v6017_v20 }
0x1652   :  { %v5233_v21 = vpop.eup %5232 }
0x1653   :  { %1890 = vrot.lane.b32.xlu1 %v5233_v21, %s5637_s7 }
0x165b   :  { %841 = vrot.lane.b32.xlu1 %v5857_v62, %s5644_s0 }
0x1669   :  { %v1881_v50 = vpop.permute.xlu0 %1880 }
0x166a   :  { %v6024_v12 = vadd.f32 %v1881_v50, %v1865_v22 }
0x166c   :  { %5234 = vtanh.f32 %v6024_v12 }
0x1671   :  { %v840_v55 = vpop.permute.xlu0 %839 }
0x1672   :  { %v5235_v2 = vpop.eup %5234  ;;  %846 = vst.msk [vmem:[#allocation2 + $0x28] sm:$0xf] %vm195_vm11, %v840_v55 }
0x1673   :  { %1892 = vrot.lane.b32.xlu2 %v5235_v2, %s5637_s7 }
0x16c5   :  { %v1891_v26 = vpop.permute.xlu1 %1890 }
0x16c6   :  { %v1896_v29 = vmul.f32 %v1891_v26, %v1845_v56 }
0x16c8   :  { %v6029_v33 = vpack.c.bf16 %v1896_v29, %v1896_v29 }
0x16ca   :  { %v1917_v34 = vunpack.c.l.b16 %v6029_v33 }
0x16cd   :  { %v842_v62 = vpop.permute.xlu1 %841  ;;  %v1893_v30 = vpop.permute.xlu2 %1892 }
0x16ce   :  { %847 = vst.msk [vmem:[#allocation2 + $0x2c] sm:$0xf] %vm195_vm11, %v842_v62  ;;  %v1897_v31 = vmul.f32 %v1893_v30, %v1860_v45 }
0x16d0   :  { %v6032_v32 = vpack.c.bf16 %v1897_v31, %v1897_v31 }
0x16d2   :  { %v1918_v37 = vunpack.c.l.b16 %v6032_v32 }
0x16d4   :  { %v1919_v27 = vpack.c.b16 %v1918_v37, %v1917_v34 }
0x16d5   :  { %v4968_v43 = vld [vmem:[#allocation2 + $0x28] sm:$0xff] }
0x16d6   :  { %1920 = vrot.lane.b32.xlu2 %v1919_v27, %s5644_s0  ;;  %4632 = vmatmul.msk.bf16.gmra.mxu0 %vm91_vm8, %v4968_v43 }
0x1730   :  { %v1921_v47 = vpop.permute.xlu2 %1920 }
0x1731   :  { %4697 = vmatmul.msk.bf16.vlgmr.msra.gmra.mxu3 %vm91_vm8, %v1921_v47 }
0x1753   :  { %v1242_v38 = vpop.f32.mrf.mxu0 }
0x1754   :  { %v1243_v39 = vadd.f32 %v6006_v23, %v1242_v38 }
0x175b   :  { %v1244_v57 = vpop.f32.mrf.mxu0 }
0x175c   :  { %v1245_v54 = vadd.f32 %v6006_v23, %v1244_v57  ;;  %v4985_v57 = vld [vmem:[#allocation9 + $0x10] sm:$0xff] }
0x17b4   :  { %v1946_v4 = vpop.f32.mrf.mxu3 }
0x17b5   :  { %v1951_v52 = vadd.f32 %v1946_v4, %v1243_v39 }
0x17b7   :  { %5236 = vtanh.f32 %v1951_v52  ;;  %v4698_v63 = vmul.f32 -1.442695, %v1951_v52  ;;  %v4986_v52 = vld [vmem:[#allocation9 + $0x18] sm:$0xff] }
0x17b8   :  { %2072 = vmatpush.bf16.msrb.mxu1 %v4986_v52 }
0x17bc   :  { %v1948_v58 = vpop.f32.mrf.mxu3  ;;  %2073 = vmatpush.bf16.msrb.mxu1 %v4985_v57 }
0x17bd   :  { %v5237_v44 = vpop.eup %5236  ;;  %v1952_v60 = vadd.f32 %v1948_v58, %v1245_v54 }
0x17be   :  { %1997 = vrot.lane.b32.xlu0 %v5237_v44, %s5637_s7 }
0x17bf   :  { %5238 = vtanh.f32 %v1952_v60  ;;  %v4699_v1 = vmul.f32 -1.442695, %v1952_v60 }
0x17c0   :  { %5240 = vpow2.f32 %v4698_v63 }
0x17c1   :  { %5242 = vpow2.f32 %v4699_v1 }
0x17c5   :  { %v5239_v61 = vpop.eup %5238 }
0x17c6   :  { %1999 = vrot.lane.b32.xlu1 %v5239_v61, %s5637_s7  ;;  %v5241_v51 = vpop.eup %5240 }
0x17c7   :  { %v1959_v41 = vadd.f32 1.0, %v5241_v51  ;;  %v5243_v8 = vpop.eup %5242 }
0x17c8   :  { %v1960_v56 = vadd.f32 1.0, %v5243_v8 }
0x17c9   :  { %5244 = vrcp.f32 %v1959_v41  ;;  %v1972_v17 = vand.u32 2147483648, %v1959_v41  ;;  %vm1966_vm13 = vweird.f32 %v1959_v41  ;;  %v1970_v18 = vand.u32 2147483647, %v1959_v41 }
0x17ca   :  { %5246 = vrcp.f32 %v1960_v56  ;;  %v1987_v24 = vand.u32 2147483648, %v1960_v56  ;;  %vm1981_vm1 = vweird.f32 %v1960_v56  ;;  %v1985_v26 = vand.u32 2147483647, %v1960_v56 }
0x17cb   :  { %v1973_v22 = vor.u32 1.1754944e-38, %v1972_v17  ;;  %vm1971_vm15 = vcmp.eq.f32.partialorder %v1970_v18, 8.507059e+37 }
0x17cc   :  { %v1988_v62 = vor.u32 1.1754944e-38, %v1987_v24  ;;  %vm1986_vm3 = vcmp.eq.f32.partialorder %v1985_v26, 8.507059e+37 }
0x17cf   :  { %v5245_v40 = vpop.eup %5244 }
0x17d0   :  { %v1962_v10 = vmul.f32 %v5245_v40, %v1959_v41  ;;  %v5247_v35 = vpop.eup %5246  ;;  %vm1967_vm12 = vweird.f32 %v5245_v40 }
0x17d1   :  { %v1977_v59 = vmul.f32 %v5247_v35, %v1960_v56  ;;  %vm1968_vm14 = vmor %vm1966_vm13, %vm1967_vm12  ;;  %vm1982_vm0 = vweird.f32 %v5247_v35 }
0x17d2   :  { %v1963_v11 = vsub.f32 1.0, %v1962_v10  ;;  %vm1983_vm2 = vmor %vm1981_vm1, %vm1982_vm0  ;;  %v5000_v10 = vld [vmem:[#allocation9 + $0x28] sm:$0xff] }
0x17d3   :  { %v1978_v45 = vsub.f32 1.0, %v1977_v59  ;;  %2489 = vmatpush.bf16.msra.mxu1 %v5000_v10 }
0x17d4   :  { %v1964_v42 = vmul.f32 %v5245_v40, %v1963_v11  ;;  %v4999_v11 = vld [vmem:[#allocation9 + $0x20] sm:$0xff] }
0x17d5   :  { %v1979_v21 = vmul.f32 %v5247_v35, %v1978_v45 }
0x17d6   :  { %v1965_v14 = vadd.f32 %v5245_v40, %v1964_v42 }
0x17d7   :  { %v1980_v5 = vadd.f32 %v5247_v35, %v1979_v21  ;;  %2490 = vmatpush.bf16.msra.mxu1 %v4999_v11 }
0x17d8   :  { %v1969_v49 = vsel %vm1968_vm14, %v5245_v40, %v1965_v14 }
0x17d9   :  { %v1974_v55 = vsel %vm1971_vm15, %v1973_v22, %v1969_v49  ;;  %v1984_v29 = vsel %vm1983_vm2, %v5247_v35, %v1980_v5 }
0x17da   :  { %v1989_v31 = vsel %vm1986_vm3, %v1988_v62, %v1984_v29  ;;  %v1993_v37 = vmul.f32 %v1974_v55, %v6017_v20 }
0x17db   :  { %v1994_v38 = vmul.f32 %v1989_v31, %v6024_v12  ;;  %v4997_v12 = vld [vmem:[#allocation7 + $0x10] sm:$0xff] }
0x1830   :  { %v1998_v50 = vpop.permute.xlu0 %1997 }
0x1831   :  { %v2003_v2 = vmul.f32 %v1998_v50, %v1974_v55 }
0x1833   :  { %2007 = vrot.lane.b32.xlu2 %v2003_v2, %s5644_s0 }
0x1838   :  { %v2000_v30 = vpop.permute.xlu1 %1999 }
0x1839   :  { %v2004_v34 = vmul.f32 %v2000_v30, %v1989_v31 }
0x183b   :  { %2009 = vrot.lane.b32.xlu0 %v2004_v34, %s5644_s0 }
0x1843   :  { %969 = vrot.lane.b32.xlu0 %v5917_v16, %s5644_s0 }
0x184b   :  { %1388 = vrot.lane.b32.xlu0 %v5865_v7, %s5644_s0 }
0x188d   :  { %v2008_v27 = vpop.permute.xlu2 %2007 }
0x188e   :  { %v6050_v43 = vadd.f32 %v2008_v27, %v1993_v37 }
0x1890   :  { %5248 = vtanh.f32 %v6050_v43 }
0x1896   :  { %v5249_v47 = vpop.eup %5248 }
0x1897   :  { %2019 = vrot.lane.b32.xlu1 %v5249_v47, %s5637_s7 }
0x189f   :  { %971 = vrot.lane.b32.xlu1 %v5919_v19, %s5644_s0  ;;  %v4998_v19 = vld [vmem:[#allocation7 + $0x18] sm:$0xff] }
0x18a0   :  { %2405 = vmatpush.bf16.msrb.mxu3 %v4998_v19 }
0x18a4   :  { %2406 = vmatpush.bf16.msrb.mxu3 %v4997_v12 }
0x18ad   :  { %v2010_v39 = vpop.permute.xlu0 %2009 }
0x18ae   :  { %v6057_v16 = vadd.f32 %v2010_v39, %v1994_v38 }
0x18b0   :  { %5250 = vtanh.f32 %v6057_v16 }
0x18b5   :  { %v970_v7 = vpop.permute.xlu0 %969 }
0x18b6   :  { %v5251_v20 = vpop.eup %5250  ;;  %976 = vst.msk [vmem:[#allocation2 + $0x30] sm:$0xf] %vm195_vm11, %v970_v7 }
0x18b7   :  { %2021 = vrot.lane.b32.xlu2 %v5251_v20, %s5637_s7 }
0x18bd   :  { %v1389_v4 = vpop.permute.xlu0 %1388 }
0x18be   :  { %1393 = vst.msk [vmem:[#allocation2 + $0x4] sm:$0xf] %vm195_vm11, %v1389_v4 }
0x18bf   :  { %1386 = vrot.lane.b32.xlu2 %v5862_v6, %s5644_s0 }
0x1909   :  { %v2020_v54 = vpop.permute.xlu1 %2019 }
0x190a   :  { %v2025_v58 = vmul.f32 %v2020_v54, %v1974_v55  ;;  %v6084_v55 = vld [vmem:[%s6650_s3 + $0x1] ss:$0 sm:$0xff] }
0x190c   :  { %v6065_v61 = vpack.c.bf16 %v2025_v58, %v2025_v58 }
0x190e   :  { %v2046_v6 = vunpack.c.l.b16 %v6065_v61 }
0x1911   :  { %v972_v44 = vpop.permute.xlu1 %971  ;;  %v2022_v60 = vpop.permute.xlu2 %2021 }
0x1912   :  { %977 = vst.msk [vmem:[#allocation2 + $0x34] sm:$0xf] %vm195_vm11, %v972_v44  ;;  %v2026_v63 = vmul.f32 %v2022_v60, %v1989_v31 }
0x1914   :  { %v6068_v1 = vpack.c.bf16 %v2026_v63, %v2026_v63 }
0x1916   :  { %v2047_v51 = vunpack.c.l.b16 %v6068_v1 }
0x1918   :  { %v2048_v41 = vpack.c.b16 %v2047_v51, %v2046_v6 }
0x1919   :  { %v1387_v8 = vpop.permute.xlu2 %1386  ;;  %v4969_v56 = vld [vmem:[#allocation2 + $0x30] sm:$0xff] }
0x191a   :  { %1392 = vst.msk [vmem:[#allocation2] sm:$0xf] %vm195_vm11, %v1387_v8  ;;  %2049 = vrot.lane.b32.xlu1 %v2048_v41, %s5644_s0  ;;  %4633 = vmatmul.msk.bf16.gmra.mxu0 %vm91_vm8, %v4969_v56 }
0x1921   :  { %v4989_v40 = vld [vmem:[#allocation2] sm:$0xff] }
0x1922   :  { %4763 = vmatmul.msk.bf16.vlgmr.msrb.gmra.mxu3 %vm91_vm8, %v4989_v40 }
0x198c   :  { %v2050_v35 = vpop.permute.xlu1 %2049 }
0x198d   :  { %4708 = vmatmul.msk.bf16.vlgmr.msrb.gmra.mxu1 %vm91_vm8, %v2050_v35 }
0x1997   :  { %v1247_v42 = vpop.f32.mrf.mxu0 }
0x1998   :  { %v1248_v59 = vadd.f32 %v6006_v23, %v1247_v42 }
0x199d   :  { %2491 = vmatmul.bf16.vlgmr.msra.gmra.mxu1 %v5643_v3 }
0x199f   :  { %v1249_v17 = vpop.f32.mrf.mxu0 }
0x19a0   :  { %v1250_v18 = vadd.f32 %v6006_v23, %v1249_v17 }
0x19a5   :  { %v2408_v50 = vpop.f32.mrf.mxu3 }
0x19a6   :  { %v2409_v2 = vadd.f32 %v6084_v55, %v2408_v50 }
0x19ad   :  { %v2410_v23 = vpop.f32.mrf.mxu3 }
0x19ae   :  { %v2411_v29 = vadd.f32 %v6084_v55, %v2410_v23 }
0x1a0a   :  { %v2075_v14 = vpop.f32.mrf.mxu1 }
0x1a0b   :  { %v2080_v45 = vadd.f32 %v2075_v14, %v1248_v59 }
0x1a0d   :  { %5252 = vtanh.f32 %v2080_v45  ;;  %v4709_v37 = vmul.f32 -1.442695, %v2080_v45 }
0x1a12   :  { %v2077_v49 = vpop.f32.mrf.mxu1 }
0x1a13   :  { %v5253_v21 = vpop.eup %5252  ;;  %v2081_v22 = vadd.f32 %v2077_v49, %v1250_v18 }
0x1a14   :  { %2126 = vrot.lane.b32.xlu2 %v5253_v21, %s5637_s7 }
0x1a15   :  { %5254 = vtanh.f32 %v2081_v22  ;;  %v4710_v4 = vmul.f32 -1.442695, %v2081_v22 }
0x1a1a   :  { %v2492_v5 = vpop.f32.mrf.mxu1 }
0x1a1b   :  { %v5255_v24 = vpop.eup %5254  ;;  %v2497_v26 = vadd.f32 %v2492_v5, %v2409_v2 }
0x1a1c   :  { %2128 = vrot.lane.b32.xlu0 %v5255_v24, %s5637_s7 }
0x1a1d   :  { %5256 = vtanh.f32 %v2497_v26  ;;  %v4779_v58 = vmul.f32 -1.442695, %v2497_v26 }
0x1a22   :  { %v2494_v62 = vpop.f32.mrf.mxu1 }
0x1a23   :  { %v5257_v30 = vpop.eup %5256  ;;  %v2498_v31 = vadd.f32 %v2494_v62, %v2411_v29 }
0x1a24   :  { %2543 = vrot.lane.b32.xlu1 %v5257_v30, %s5637_s7 }
0x1a25   :  { %5258 = vtanh.f32 %v2498_v31  ;;  %v4780_v39 = vmul.f32 -1.442695, %v2498_v31 }
0x1a26   :  { %5260 = vpow2.f32 %v4709_v37 }
0x1a2b   :  { %v5259_v34 = vpop.eup %5258 }
0x1a2c   :  { %2545 = vrot.lane.b32.xlu2 %v5259_v34, %s5637_s7  ;;  %v5261_v27 = vpop.eup %5260 }
0x1a2d   :  { %v2088_v47 = vadd.f32 1.0, %v5261_v27 }
0x1a2f   :  { %5262 = vrcp.f32 %v2088_v47  ;;  %v2101_v54 = vand.u32 2147483648, %v2088_v47  ;;  %vm2095_vm5 = vweird.f32 %v2088_v47  ;;  %v2099_v44 = vand.u32 2147483647, %v2088_v47 }
0x1a30   :  { %5264 = vpow2.f32 %v4780_v39 }
0x1a31   :  { %5266 = vpow2.f32 %v4710_v4  ;;  %v2102_v6 = vor.u32 1.1754944e-38, %v2101_v54  ;;  %vm2100_vm7 = vcmp.eq.f32.partialorder %v2099_v44, 8.507059e+37 }
0x1a35   :  { %v5263_v38 = vpop.eup %5262 }
0x1a36   :  { %v2091_v7 = vmul.f32 %v5263_v38, %v2088_v47  ;;  %v5265_v19 = vpop.eup %5264  ;;  %vm2096_vm4 = vweird.f32 %v5263_v38 }
0x1a37   :  { %v2506_v52 = vadd.f32 1.0, %v5265_v19  ;;  %vm2097_vm6 = vmor %vm2095_vm5, %vm2096_vm4  ;;  %v5267_v60 = vpop.eup %5266 }
0x1a38   :  { %v2092_v20 = vsub.f32 1.0, %v2091_v7  ;;  %v2089_v51 = vadd.f32 1.0, %v5267_v60 }
0x1a39   :  { %5268 = vrcp.f32 %v2506_v52  ;;  %v2533_v21 = vand.u32 2147483648, %v2506_v52  ;;  %vm2527_vm10 = vweird.f32 %v2506_v52  ;;  %v2531_v22 = vand.u32 2147483647, %v2506_v52 }
0x1a3a   :  { %v2093_v12 = vmul.f32 %v5263_v38, %v2092_v20  ;;  %5270 = vpow2.f32 %v4779_v58  ;;  %v2116_v31 = vand.u32 2147483648, %v2089_v51  ;;  %vm2110_vm15 = vweird.f32 %v2089_v51 }
0x1a3b   :  { %5272 = vrcp.f32 %v2089_v51  ;;  %v2534_v24 = vor.u32 1.1754944e-38, %v2533_v21  ;;  %vm2532_vm13 = vcmp.eq.f32.partialorder %v2531_v22, 8.507059e+37  ;;  %v2114_v34 = vand.u32 2147483647, %v2089_v51  ;;  %v4988_v22 = vld [vmem:[#allocation9 + $0x18] sm:$0xff] }
0x1a3c   :  { %v2094_v57 = vadd.f32 %v5263_v38, %v2093_v12  ;;  %v2117_v47 = vor.u32 1.1754944e-38, %v2116_v31  ;;  %2201 = vmatpush.bf16.msra.mxu2 %v4988_v22 }
0x1a3d   :  { %vm2115_vm1 = vcmp.eq.f32.partialorder %v2114_v34, 8.507059e+37 }
0x1a3e   :  { %v2098_v63 = vsel %vm2097_vm6, %v5263_v38, %v2094_v57 }
0x1a3f   :  { %v6091_v41 = vsel %vm2100_vm7, %v2102_v6, %v2098_v63  ;;  %v5269_v40 = vpop.eup %5268 }
0x1a40   :  { %v5271_v10 = vpop.eup %5270  ;;  %v2523_v11 = vmul.f32 %v5269_v40, %v2506_v52  ;;  %vm2528_vm9 = vweird.f32 %v5269_v40  ;;  %v2122_v44 = vmul.f32 %v6091_v41, %v6050_v43 }
0x1a41   :  { %v2505_v35 = vadd.f32 1.0, %v5271_v10  ;;  %v5273_v59 = vpop.eup %5272  ;;  %vm2529_vm12 = vmor %vm2527_vm10, %vm2528_vm9 }
0x1a42   :  { %v2524_v42 = vsub.f32 1.0, %v2523_v11  ;;  %v2106_v45 = vmul.f32 %v5273_v59, %v2089_v51  ;;  %vm2111_vm14 = vweird.f32 %v5273_v59 }
0x1a43   :  { %5274 = vrcp.f32 %v2505_v35  ;;  %vm2112_vm0 = vmor %vm2110_vm15, %vm2111_vm14  ;;  %v2518_v4 = vand.u32 2147483648, %v2505_v35  ;;  %vm2512_vm3 = vweird.f32 %v2505_v35  ;;  %v2516_v19 = vand.u32 2147483647, %v2505_v35 }
0x1a44   :  { %v2525_v14 = vmul.f32 %v5269_v40, %v2524_v42  ;;  %v2107_v18 = vsub.f32 1.0, %v2106_v45 }
0x1a45   :  { %v2519_v52 = vor.u32 1.1754944e-38, %v2518_v4  ;;  %vm2517_vm5 = vcmp.eq.f32.partialorder %v2516_v19, 8.507059e+37 }
0x1a46   :  { %v2526_v17 = vadd.f32 %v5269_v40, %v2525_v14  ;;  %v2108_v2 = vmul.f32 %v5273_v59, %v2107_v18 }
0x1a48   :  { %v2530_v50 = vsel %vm2529_vm12, %v5269_v40, %v2526_v17  ;;  %v2109_v62 = vadd.f32 %v5273_v59, %v2108_v2 }
0x1a49   :  { %v5275_v49 = vpop.eup %5274  ;;  %v6095_v26 = vsel %vm2532_vm13, %v2534_v24, %v2530_v50 }
0x1a4a   :  { %v2508_v5 = vmul.f32 %v5275_v49, %v2505_v35  ;;  %v2113_v37 = vsel %vm2112_vm0, %v5273_v59, %v2109_v62  ;;  %vm2513_vm2 = vweird.f32 %v5275_v49  ;;  %v2540_v40 = vmul.f32 0.0, %v6095_v26 }
0x1a4b   :  { %v2118_v39 = vsel %vm2115_vm1, %v2117_v47, %v2113_v37  ;;  %vm2514_vm4 = vmor %vm2512_vm3, %vm2513_vm2 }
0x1a4c   :  { %v2509_v30 = vsub.f32 1.0, %v2508_v5  ;;  %v2123_v43 = vmul.f32 %v2118_v39, %v6057_v16 }
0x1a4e   :  { %v2510_v27 = vmul.f32 %v5275_v49, %v2509_v30 }
0x1a50   :  { %v2511_v20 = vadd.f32 %v5275_v49, %v2510_v27 }
0x1a52   :  { %v2515_v12 = vsel %vm2514_vm4, %v5275_v49, %v2511_v20 }
0x1a53   :  { %v2520_v54 = vsel %vm2517_vm5, %v2519_v52, %v2515_v12 }
0x1a54   :  { %v2539_v51 = vmul.f32 0.0, %v2520_v54 }
0x1a6e   :  { %v2127_v8 = vpop.permute.xlu2 %2126 }
0x1a6f   :  { %v2132_v56 = vmul.f32 %v2127_v8, %v6091_v41 }
0x1a71   :  { %2136 = vrot.lane.b32.xlu0 %v2132_v56, %s5644_s0 }
0x1a86   :  { %v2546_v23 = vpop.permute.xlu2 %2545 }
0x1a87   :  { %v2550_v29 = vmul.f32 %v2546_v23, %v6095_v26 }
0x1a89   :  { %2555 = vrot.lane.b32.xlu0 %v2550_v29, %s5644_s0 }
0x1a8e   :  { %v2129_v38 = vpop.permute.xlu0 %2128 }
0x1a8f   :  { %v2133_v7 = vmul.f32 %v2129_v38, %v2118_v39 }
0x1a91   :  { %2138 = vrot.lane.b32.xlu1 %v2133_v7, %s5644_s0 }
0x1a96   :  { %v2544_v57 = vpop.permute.xlu1 %2543 }
0x1a97   :  { %v2549_v58 = vmul.f32 %v2544_v57, %v2520_v54 }
0x1a99   :  { %2553 = vrot.lane.b32.xlu2 %v2549_v58, %s5644_s0 }
0x1ae3   :  { %v2137_v60 = vpop.permute.xlu0 %2136 }
0x1ae4   :  { %v6103_v63 = vadd.f32 %v2137_v60, %v2122_v44 }
0x1ae6   :  { %5276 = vtanh.f32 %v6103_v63 }
0x1aec   :  { %v5277_v6 = vpop.eup %5276 }
0x1aed   :  { %2148 = vrot.lane.b32.xlu1 %v5277_v6, %s5637_s7 }
0x1af3   :  { %v2554_v8 = vpop.permute.xlu2 %2553 }
0x1af4   :  { %v6107_v56 = vadd.f32 %v2554_v8, %v2539_v51 }
0x1af6   :  { %5278 = vtanh.f32 %v6107_v56 }
0x1afb   :  { %v2556_v10 = vpop.permute.xlu0 %2555 }
0x1afc   :  { %v5279_v11 = vpop.eup %5278  ;;  %v6111_v35 = vadd.f32 %v2556_v10, %v2540_v40 }
0x1afd   :  { %2565 = vrot.lane.b32.xlu0 %v5279_v11, %s5637_s7 }
0x1afe   :  { %5280 = vtanh.f32 %v6111_v35 }
0x1b03   :  { %v2139_v42 = vpop.permute.xlu1 %2138 }
0x1b04   :  { %v5281_v59 = vpop.eup %5280  ;;  %v6116_v14 = vadd.f32 %v2139_v42, %v2123_v43 }
0x1b05   :  { %2567 = vrot.lane.b32.xlu1 %v5281_v59, %s5637_s7  ;;  %1515 = vrot.lane.b32.xlu0 %v5924_v25, %s5644_s0  ;;  %v4987_v25 = vld [vmem:[#allocation9 + $0x10] sm:$0xff] }
0x1b06   :  { %5282 = vtanh.f32 %v6116_v14  ;;  %2202 = vmatpush.bf16.msra.mxu2 %v4987_v25 }
0x1b0c   :  { %v5283_v45 = vpop.eup %5282 }
0x1b0d   :  { %2150 = vrot.lane.b32.xlu2 %v5283_v45, %s5637_s7  ;;  %1517 = vrot.lane.b32.xlu1 %v5928_v28, %s5644_s0 }
0x1b5f   :  { %v2149_v17 = vpop.permute.xlu1 %2148 }
0x1b60   :  { %v2154_v16 = vmul.f32 %v2149_v17, %v6091_v41 }
0x1b62   :  { %v6126_v49 = vpack.c.bf16 %v2154_v16, %v2154_v16 }
0x1b64   :  { %v2175_v2 = vunpack.c.l.b16 %v6126_v49 }
0x1b67   :  { %v2151_v18 = vpop.permute.xlu2 %2150 }
0x1b68   :  { %v2155_v21 = vmul.f32 %v2151_v18, %v2118_v39  ;;  %v5002_v39 = vld [vmem:[#allocation9 + $0x28] sm:$0xff] }
0x1b69   :  { %2617 = vmatpush.bf16.msrb.mxu2 %v5002_v39 }
0x1b6a   :  { %v6128_v50 = vpack.c.bf16 %v2155_v21, %v2155_v21 }
0x1b6c   :  { %v2176_v5 = vunpack.c.l.b16 %v6128_v50 }
0x1b6e   :  { %v2177_v24 = vpack.c.b16 %v2176_v5, %v2175_v2 }
0x1b6f   :  { %v2566_v23 = vpop.permute.xlu0 %2565 }
0x1b70   :  { %2178 = vrot.lane.b32.xlu2 %v2177_v24, %s5644_s0  ;;  %v2571_v28 = vmul.f32 %v2566_v23, %v2520_v54 }
0x1b72   :  { %v6133_v62 = vpack.c.bf16 %v2571_v28, %v2571_v28 }
0x1b74   :  { %v2591_v34 = vunpack.c.l.b16 %v6133_v62 }
0x1b77   :  { %v2568_v41 = vpop.permute.xlu1 %2567  ;;  %v1516_v29 = vpop.permute.xlu0 %1515 }
0x1b78   :  { %v2572_v30 = vmul.f32 %v2568_v41, %v6095_v26  ;;  %1521 = vst.msk [vmem:[#allocation2 + $0x8] sm:$0xf] %vm195_vm11, %v1516_v29  ;;  %v5001_v26 = vld [vmem:[#allocation9 + $0x20] sm:$0xff] }
0x1b79   :  { %2618 = vmatpush.bf16.msrb.mxu2 %v5001_v26 }
0x1b7a   :  { %v6137_v31 = vpack.c.bf16 %v2572_v30, %v2572_v30 }
0x1b7c   :  { %v2592_v37 = vunpack.c.l.b16 %v6137_v31 }
0x1b7e   :  { %v2593_v27 = vpack.c.b16 %v2592_v37, %v2591_v34 }
0x1b7f   :  { %v1518_v47 = vpop.permute.xlu1 %1517 }
0x1b80   :  { %1522 = vst.msk [vmem:[#allocation2 + $0xc] sm:$0xf] %vm195_vm11, %v1518_v47  ;;  %2594 = vrot.lane.b32.xlu2 %v2593_v27, %s5644_s0 }
0x1b87   :  { %v4990_v38 = vld [vmem:[#allocation2 + $0x8] sm:$0xff] }
0x1b88   :  { %4764 = vmatmul.msk.bf16.gmra.mxu3 %vm91_vm8, %v4990_v38 }
0x1bca   :  { %v2179_v7 = vpop.permute.xlu2 %2178 }
0x1bcb   :  { %4719 = vmatmul.msk.bf16.vlgmr.msra.gmra.mxu2 %vm91_vm8, %v2179_v7 }
0x1bda   :  { %v2595_v20 = vpop.permute.xlu2 %2594 }
0x1bdb   :  { %4789 = vmatmul.msk.bf16.vlgmr.msrb.gmra.mxu2 %vm91_vm8, %v2595_v20 }
0x1c0b   :  { %v2413_v12 = vpop.f32.mrf.mxu3 }
0x1c0c   :  { %v2414_v52 = vadd.f32 %v6084_v55, %v2413_v12 }
0x1c13   :  { %v2415_v58 = vpop.f32.mrf.mxu3 }
0x1c14   :  { %v2416_v44 = vadd.f32 %v6084_v55, %v2415_v58 }
0x1c4e   :  { %v6146_v4 = vpop.f32.mrf.mxu2 }
0x1c56   :  { %v6148_v19 = vpop.f32.mrf.mxu2 }
0x1c5e   :  { %v2620_v57 = vpop.f32.mrf.mxu2 }
0x1c5f   :  { %v2625_v54 = vadd.f32 %v2620_v57, %v2414_v52 }
0x1c61   :  { %5284 = vtanh.f32 %v2625_v54  ;;  %v4790_v40 = vmul.f32 -1.442695, %v2625_v54 }
0x1c66   :  { %v2622_v60 = vpop.f32.mrf.mxu2 }
0x1c67   :  { %v5285_v6 = vpop.eup %5284  ;;  %v2626_v51 = vadd.f32 %v2622_v60, %v2416_v44 }
0x1c68   :  { %2671 = vrot.lane.b32.xlu0 %v5285_v6, %s5637_s7  ;;  %v5004_v6 = vld [vmem:[#allocation9 + $0x28] sm:$0xff] }
0x1c69   :  { %5286 = vtanh.f32 %v2626_v51  ;;  %v4791_v10 = vmul.f32 -1.442695, %v2626_v51  ;;  %2745 = vmatpush.bf16.msrb.mxu1 %v5004_v6  ;;  %v5003_v51 = vld [vmem:[#allocation9 + $0x20] sm:$0xff] }
0x1c6a   :  { %5288 = vpow2.f32 %v4790_v40 }
0x1c6b   :  { %5290 = vpow2.f32 %v4791_v10 }
0x1c6d   :  { %2746 = vmatpush.bf16.msrb.mxu1 %v5003_v51 }
0x1c6f   :  { %v5287_v8 = vpop.eup %5286 }
0x1c70   :  { %2673 = vrot.lane.b32.xlu1 %v5287_v8, %s5637_s7  ;;  %v5289_v11 = vpop.eup %5288 }
0x1c71   :  { %v2633_v43 = vadd.f32 1.0, %v5289_v11  ;;  %v5291_v42 = vpop.eup %5290 }
0x1c72   :  { %v2634_v59 = vadd.f32 1.0, %v5291_v42 }
0x1c73   :  { %5292 = vrcp.f32 %v2633_v43  ;;  %v2646_v5 = vand.u32 2147483648, %v2633_v43  ;;  %vm2640_vm7 = vweird.f32 %v2633_v43  ;;  %v2644_v24 = vand.u32 2147483647, %v2633_v43 }
0x1c74   :  { %5294 = vrcp.f32 %v2634_v59  ;;  %v2661_v27 = vand.u32 2147483648, %v2634_v59  ;;  %vm2655_vm13 = vweird.f32 %v2634_v59  ;;  %v2659_v47 = vand.u32 2147483647, %v2634_v59 }
0x1c75   :  { %v2647_v41 = vor.u32 1.1754944e-38, %v2646_v5  ;;  %vm2645_vm10 = vcmp.eq.f32.partialorder %v2644_v24, 8.507059e+37 }
0x1c76   :  { %v2662_v39 = vor.u32 1.1754944e-38, %v2661_v27  ;;  %vm2660_vm15 = vcmp.eq.f32.partialorder %v2659_v47, 8.507059e+37 }
0x1c79   :  { %v5293_v45 = vpop.eup %5292 }
0x1c7a   :  { %v2636_v17 = vmul.f32 %v5293_v45, %v2633_v43  ;;  %v5295_v18 = vpop.eup %5294  ;;  %vm2641_vm6 = vweird.f32 %v5293_v45 }
0x1c7b   :  { %v2651_v22 = vmul.f32 %v5295_v18, %v2634_v59  ;;  %vm2642_vm9 = vmor %vm2640_vm7, %vm2641_vm6  ;;  %vm2656_vm12 = vweird.f32 %v5295_v18 }
0x1c7c   :  { %v2637_v16 = vsub.f32 1.0, %v2636_v17  ;;  %vm2657_vm14 = vmor %vm2655_vm13, %vm2656_vm12 }
0x1c7d   :  { %v2652_v2 = vsub.f32 1.0, %v2651_v22 }
0x1c7e   :  { %v2638_v21 = vmul.f32 %v5293_v45, %v2637_v16 }
0x1c7f   :  { %v2653_v28 = vmul.f32 %v5295_v18, %v2652_v2 }
0x1c80   :  { %v2639_v25 = vadd.f32 %v5293_v45, %v2638_v21 }
0x1c81   :  { %v2654_v37 = vadd.f32 %v5295_v18, %v2653_v28 }
0x1c82   :  { %v2643_v23 = vsel %vm2642_vm9, %v5293_v45, %v2639_v25 }
0x1c83   :  { %v2648_v30 = vsel %vm2645_vm10, %v2647_v41, %v2643_v23  ;;  %v2658_v38 = vsel %vm2657_vm14, %v5295_v18, %v2654_v37 }
0x1c84   :  { %v2663_v7 = vsel %vm2660_vm15, %v2662_v39, %v2658_v38  ;;  %v2667_v12 = vmul.f32 %v2648_v30, %v6107_v56 }
0x1c85   :  { %v2668_v58 = vmul.f32 %v2663_v7, %v6111_v35 }
0x1cda   :  { %v2672_v29 = vpop.permute.xlu0 %2671 }
0x1cdb   :  { %v2677_v34 = vmul.f32 %v2672_v29, %v2648_v30 }
0x1cdd   :  { %2681 = vrot.lane.b32.xlu2 %v2677_v34, %s5644_s0 }
0x1ce2   :  { %v2674_v26 = vpop.permute.xlu1 %2673 }
0x1ce3   :  { %v2678_v20 = vmul.f32 %v2674_v26, %v2663_v7 }
0x1ce5   :  { %2683 = vrot.lane.b32.xlu0 %v2678_v20, %s5644_s0 }
0x1ced   :  { %1644 = vrot.lane.b32.xlu0 %v5962_v9, %s5644_s0 }
0x1d37   :  { %v2682_v52 = vpop.permute.xlu2 %2681 }
0x1d38   :  { %v6159_v57 = vadd.f32 %v2682_v52, %v2667_v12 }
0x1d3a   :  { %5296 = vtanh.f32 %v6159_v57 }
0x1d40   :  { %v5297_v54 = vpop.eup %5296 }
0x1d41   :  { %2693 = vrot.lane.b32.xlu1 %v5297_v54, %s5637_s7 }
0x1d49   :  { %1646 = vrot.lane.b32.xlu1 %v5965_v53, %s5644_s0 }
0x1d57   :  { %v2684_v44 = vpop.permute.xlu0 %2683 }
0x1d58   :  { %v6166_v60 = vadd.f32 %v2684_v44, %v2668_v58 }
0x1d5a   :  { %5298 = vtanh.f32 %v6166_v60 }
0x1d5f   :  { %v1645_v9 = vpop.permute.xlu0 %1644 }
0x1d60   :  { %v5299_v56 = vpop.eup %5298  ;;  %1650 = vst.msk [vmem:[#allocation2 + $0x10] sm:$0xf] %vm195_vm11, %v1645_v9 }
0x1d61   :  { %2695 = vrot.lane.b32.xlu2 %v5299_v56, %s5637_s7 }
0x1db3   :  { %v2694_v8 = vpop.permute.xlu1 %2693 }
0x1db4   :  { %v2699_v40 = vmul.f32 %v2694_v8, %v2648_v30 }
0x1db6   :  { %v6171_v35 = vpack.c.bf16 %v2699_v40, %v2699_v40 }
0x1db8   :  { %v2719_v42 = vunpack.c.l.b16 %v6171_v35 }
0x1dbb   :  { %v1647_v53 = vpop.permute.xlu1 %1646  ;;  %v2696_v10 = vpop.permute.xlu2 %2695 }
0x1dbc   :  { %1651 = vst.msk [vmem:[#allocation2 + $0x14] sm:$0xf] %vm195_vm11, %v1647_v53  ;;  %v2700_v11 = vmul.f32 %v2696_v10, %v2663_v7 }
0x1dbe   :  { %v6174_v43 = vpack.c.bf16 %v2700_v11, %v2700_v11 }
0x1dc0   :  { %v2720_v59 = vunpack.c.l.b16 %v6174_v43 }
0x1dc2   :  { %v2721_v45 = vpack.c.b16 %v2720_v59, %v2719_v42 }
0x1dc3   :  { %v4991_v17 = vld [vmem:[#allocation2 + $0x10] sm:$0xff] }
0x1dc4   :  { %2722 = vrot.lane.b32.xlu2 %v2721_v45, %s5644_s0  ;;  %4765 = vmatmul.msk.bf16.gmra.mxu3 %vm91_vm8, %v4991_v17 }
0x1e1e   :  { %v2723_v16 = vpop.permute.xlu2 %2722 }
0x1e1f   :  { %4800 = vmatmul.msk.bf16.vlgmr.msrb.gmra.mxu1 %vm91_vm8, %v2723_v16 }
0x1e47   :  { %v2418_v18 = vpop.f32.mrf.mxu3 }
0x1e48   :  { %v2419_v21 = vadd.f32 %v6084_v55, %v2418_v18 }
0x1e4f   :  { %v2420_v2 = vpop.f32.mrf.mxu3 }
0x1e50   :  { %v2421_v5 = vadd.f32 %v6084_v55, %v2420_v2 }
0x1e9c   :  { %v2748_v22 = vpop.f32.mrf.mxu1 }
0x1e9d   :  { %v2753_v25 = vadd.f32 %v2748_v22, %v2419_v21 }
0x1e9f   :  { %5300 = vtanh.f32 %v2753_v25  ;;  %v4801_v29 = vmul.f32 -1.442695, %v2753_v25 }
0x1ea4   :  { %v2750_v24 = vpop.f32.mrf.mxu1 }
0x1ea5   :  { %v5301_v23 = vpop.eup %5300  ;;  %v2754_v28 = vadd.f32 %v2750_v24, %v2421_v5 }
0x1ea6   :  { %2799 = vrot.lane.b32.xlu0 %v5301_v23, %s5637_s7  ;;  %v5006_v23 = vld [vmem:[#allocation9 + $0x28] sm:$0xff] }
0x1ea7   :  { %5302 = vtanh.f32 %v2754_v28  ;;  %v4802_v30 = vmul.f32 -1.442695, %v2754_v28  ;;  %2873 = vmatpush.bf16.msra.mxu2 %v5006_v23  ;;  %v5005_v28 = vld [vmem:[#allocation9 + $0x20] sm:$0xff] }
0x1ea8   :  { %5304 = vpow2.f32 %v4801_v29 }
0x1ea9   :  { %5306 = vpow2.f32 %v4802_v30 }
0x1eab   :  { %2874 = vmatpush.bf16.msra.mxu2 %v5005_v28 }
0x1ead   :  { %v5303_v41 = vpop.eup %5302 }
0x1eae   :  { %2801 = vrot.lane.b32.xlu1 %v5303_v41, %s5637_s7  ;;  %v5305_v34 = vpop.eup %5304 }
0x1eaf   :  { %v2761_v37 = vadd.f32 1.0, %v5305_v34  ;;  %v5307_v27 = vpop.eup %5306 }
0x1eb0   :  { %v2762_v47 = vadd.f32 1.0, %v5307_v27 }
0x1eb1   :  { %5308 = vrcp.f32 %v2761_v37  ;;  %v2774_v58 = vand.u32 2147483648, %v2761_v37  ;;  %vm2768_vm1 = vweird.f32 %v2761_v37  ;;  %v2772_v44 = vand.u32 2147483647, %v2761_v37 }
0x1eb2   :  { %5310 = vrcp.f32 %v2762_v47  ;;  %v2789_v10 = vand.u32 2147483648, %v2762_v47  ;;  %vm2783_vm5 = vweird.f32 %v2762_v47  ;;  %v2787_v11 = vand.u32 2147483647, %v2762_v47 }
0x1eb3   :  { %v2775_v6 = vor.u32 1.1754944e-38, %v2774_v58  ;;  %vm2773_vm3 = vcmp.eq.f32.partialorder %v2772_v44, 8.507059e+37 }
0x1eb4   :  { %v2790_v59 = vor.u32 1.1754944e-38, %v2789_v10  ;;  %vm2788_vm7 = vcmp.eq.f32.partialorder %v2787_v11, 8.507059e+37 }
0x1eb7   :  { %v5309_v38 = vpop.eup %5308 }
0x1eb8   :  { %v2764_v39 = vmul.f32 %v5309_v38, %v2761_v37  ;;  %v5311_v7 = vpop.eup %5310  ;;  %vm2769_vm0 = vweird.f32 %v5309_v38 }
0x1eb9   :  { %v2779_v12 = vmul.f32 %v5311_v7, %v2762_v47  ;;  %vm2770_vm2 = vmor %vm2768_vm1, %vm2769_vm0  ;;  %vm2784_vm4 = vweird.f32 %v5311_v7 }
0x1eba   :  { %v2765_v26 = vsub.f32 1.0, %v2764_v39  ;;  %vm2785_vm6 = vmor %vm2783_vm5, %vm2784_vm4 }
0x1ebb   :  { %v2780_v54 = vsub.f32 1.0, %v2779_v12 }
0x1ebc   :  { %v2766_v20 = vmul.f32 %v5309_v38, %v2765_v26 }
0x1ebd   :  { %v2781_v56 = vmul.f32 %v5311_v7, %v2780_v54 }
0x1ebe   :  { %v2767_v52 = vadd.f32 %v5309_v38, %v2766_v20 }
0x1ebf   :  { %v2782_v53 = vadd.f32 %v5311_v7, %v2781_v56 }
0x1ec0   :  { %v2771_v9 = vsel %vm2770_vm2, %v5309_v38, %v2767_v52 }
0x1ec1   :  { %v2776_v8 = vsel %vm2773_vm3, %v2775_v6, %v2771_v9  ;;  %v2786_v42 = vsel %vm2785_vm6, %v5311_v7, %v2782_v53 }
0x1ec2   :  { %v2791_v17 = vsel %vm2788_vm7, %v2790_v59, %v2786_v42  ;;  %v2795_v18 = vmul.f32 %v2776_v8, %v6159_v57 }
0x1ec3   :  { %v2796_v2 = vmul.f32 %v2791_v17, %v6166_v60 }
0x1f18   :  { %v2800_v51 = vpop.permute.xlu0 %2799 }
0x1f19   :  { %v2805_v40 = vmul.f32 %v2800_v51, %v2776_v8 }
0x1f1b   :  { %2809 = vrot.lane.b32.xlu2 %v2805_v40, %s5644_s0 }
0x1f20   :  { %v2802_v45 = vpop.permute.xlu1 %2801 }
0x1f21   :  { %v2806_v16 = vmul.f32 %v2802_v45, %v2791_v17 }
0x1f23   :  { %2811 = vrot.lane.b32.xlu0 %v2806_v16, %s5644_s0 }
0x1f2b   :  { %1773 = vrot.lane.b32.xlu0 %v5993_v48, %s5644_s0 }
0x1f75   :  { %v2810_v21 = vpop.permute.xlu2 %2809 }
0x1f76   :  { %v6190_v22 = vadd.f32 %v2810_v21, %v2795_v18 }
0x1f78   :  { %5312 = vtanh.f32 %v6190_v22 }
0x1f7e   :  { %v5313_v25 = vpop.eup %5312 }
0x1f7f   :  { %2821 = vrot.lane.b32.xlu1 %v5313_v25, %s5637_s7 }
0x1f87   :  { %1775 = vrot.lane.b32.xlu1 %v5996_v15, %s5644_s0 }
0x1f95   :  { %v2812_v5 = vpop.permute.xlu0 %2811 }
0x1f96   :  { %v6197_v24 = vadd.f32 %v2812_v5, %v2796_v2 }
0x1f98   :  { %5314 = vtanh.f32 %v6197_v24 }
0x1f9d   :  { %v1774_v48 = vpop.permute.xlu0 %1773 }
0x1f9e   :  { %v5315_v57 = vpop.eup %5314  ;;  %1779 = vst.msk [vmem:[#allocation2 + $0x18] sm:$0xf] %vm195_vm11, %v1774_v48 }
0x1f9f   :  { %2823 = vrot.lane.b32.xlu2 %v5315_v57, %s5637_s7 }
0x1ff1   :  { %v2822_v41 = vpop.permute.xlu1 %2821 }
0x1ff2   :  { %v2827_v29 = vmul.f32 %v2822_v41, %v2776_v8 }
0x1ff4   :  { %v6202_v60 = vpack.c.bf16 %v2827_v29, %v2827_v29 }
0x1ff6   :  { %v2847_v27 = vunpack.c.l.b16 %v6202_v60 }
0x1ff9   :  { %v1776_v15 = vpop.permute.xlu1 %1775  ;;  %v2824_v30 = vpop.permute.xlu2 %2823 }
0x1ffa   :  { %1780 = vst.msk [vmem:[#allocation2 + $0x1c] sm:$0xf] %vm195_vm11, %v1776_v15  ;;  %v2828_v34 = vmul.f32 %v2824_v30, %v2791_v17 }
0x1ffc   :  { %v6205_v37 = vpack.c.bf16 %v2828_v34, %v2828_v34 }
0x1ffe   :  { %v2848_v47 = vunpack.c.l.b16 %v6205_v37 }
0x2000   :  { %v2849_v38 = vpack.c.b16 %v2848_v47, %v2847_v27 }
0x2001   :  { %v4992_v39 = vld [vmem:[#allocation2 + $0x18] sm:$0xff] }
0x2002   :  { %2850 = vrot.lane.b32.xlu2 %v2849_v38, %s5644_s0  ;;  %4766 = vmatmul.msk.bf16.gmra.mxu3 %vm91_vm8, %v4992_v39 }
0x205c   :  { %v2851_v26 = vpop.permute.xlu2 %2850 }
0x205d   :  { %4811 = vmatmul.msk.bf16.vlgmr.msra.gmra.mxu2 %vm91_vm8, %v2851_v26 }
0x2085   :  { %v2423_v7 = vpop.f32.mrf.mxu3 }
0x2086   :  { %v2424_v20 = vadd.f32 %v6084_v55, %v2423_v7 }
0x208d   :  { %v2425_v54 = vpop.f32.mrf.mxu3 }
0x208e   :  { %v2426_v58 = vadd.f32 %v6084_v55, %v2425_v54 }
0x20e0   :  { %v2876_v12 = vpop.f32.mrf.mxu2 }
0x20e1   :  { %v2881_v52 = vadd.f32 %v2876_v12, %v2424_v20 }
0x20e3   :  { %5316 = vtanh.f32 %v2881_v52  ;;  %v4812_v51 = vmul.f32 -1.442695, %v2881_v52 }
0x20e8   :  { %v2878_v44 = vpop.f32.mrf.mxu2 }
0x20e9   :  { %v5317_v9 = vpop.eup %5316  ;;  %v2882_v56 = vadd.f32 %v2878_v44, %v2426_v58 }
0x20ea   :  { %2927 = vrot.lane.b32.xlu0 %v5317_v9, %s5637_s7  ;;  %v5008_v9 = vld [vmem:[#allocation9 + $0x28] sm:$0xff] }
0x20eb   :  { %5318 = vtanh.f32 %v2882_v56  ;;  %v4813_v8 = vmul.f32 -1.442695, %v2882_v56  ;;  %3001 = vmatpush.bf16.msra.mxu1 %v5008_v9  ;;  %v5007_v56 = vld [vmem:[#allocation9 + $0x20] sm:$0xff] }
0x20ec   :  { %5320 = vpow2.f32 %v4812_v51 }
0x20ed   :  { %5322 = vpow2.f32 %v4813_v8 }
0x20ef   :  { %3002 = vmatpush.bf16.msra.mxu1 %v5007_v56 }
0x20f1   :  { %v5319_v6 = vpop.eup %5318 }
0x20f2   :  { %2929 = vrot.lane.b32.xlu1 %v5319_v6, %s5637_s7  ;;  %v5321_v40 = vpop.eup %5320 }
0x20f3   :  { %v2889_v53 = vadd.f32 1.0, %v5321_v40  ;;  %v5323_v10 = vpop.eup %5322 }
0x20f4   :  { %v2890_v11 = vadd.f32 1.0, %v5323_v10 }
0x20f5   :  { %5324 = vrcp.f32 %v2889_v53  ;;  %v2902_v2 = vand.u32 2147483648, %v2889_v53  ;;  %vm2896_vm10 = vweird.f32 %v2889_v53  ;;  %v2900_v5 = vand.u32 2147483647, %v2889_v53 }
0x20f6   :  { %5326 = vrcp.f32 %v2890_v11  ;;  %v2917_v30 = vand.u32 2147483648, %v2890_v11  ;;  %vm2911_vm15 = vweird.f32 %v2890_v11  ;;  %v2915_v34 = vand.u32 2147483647, %v2890_v11 }
0x20f7   :  { %v2903_v23 = vor.u32 1.1754944e-38, %v2902_v2  ;;  %vm2901_vm13 = vcmp.eq.f32.partialorder %v2900_v5, 8.507059e+37 }
0x20f8   :  { %v2918_v47 = vor.u32 1.1754944e-38, %v2917_v30  ;;  %vm2916_vm1 = vcmp.eq.f32.partialorder %v2915_v34, 8.507059e+37 }
0x20fb   :  { %v5325_v42 = vpop.eup %5324 }
0x20fc   :  { %v2892_v59 = vmul.f32 %v5325_v42, %v2889_v53  ;;  %v5327_v17 = vpop.eup %5326  ;;  %vm2897_vm9 = vweird.f32 %v5325_v42 }
0x20fd   :  { %v2907_v18 = vmul.f32 %v5327_v17, %v2890_v11  ;;  %vm2898_vm12 = vmor %vm2896_vm10, %vm2897_vm9  ;;  %vm2912_vm14 = vweird.f32 %v5327_v17 }
0x20fe   :  { %v2893_v45 = vsub.f32 1.0, %v2892_v59  ;;  %vm2913_vm0 = vmor %vm2911_vm15, %vm2912_vm14 }
0x20ff   :  { %v2908_v25 = vsub.f32 1.0, %v2907_v18 }
0x2100   :  { %v2894_v16 = vmul.f32 %v5325_v42, %v2893_v45 }
0x2101   :  { %v2909_v57 = vmul.f32 %v5327_v17, %v2908_v25 }
0x2102   :  { %v2895_v21 = vadd.f32 %v5325_v42, %v2894_v16 }
0x2103   :  { %v2910_v15 = vadd.f32 %v5327_v17, %v2909_v57 }
0x2104   :  { %v2899_v48 = vsel %vm2898_vm12, %v5325_v42, %v2895_v21 }
0x2105   :  { %v2904_v41 = vsel %vm2901_vm13, %v2903_v23, %v2899_v48  ;;  %v2914_v27 = vsel %vm2913_vm0, %v5327_v17, %v2910_v15 }
0x2106   :  { %v2919_v39 = vsel %vm2916_vm1, %v2918_v47, %v2914_v27  ;;  %v2923_v7 = vmul.f32 %v2904_v41, %v6190_v22 }
0x2107   :  { %v2924_v54 = vmul.f32 %v2919_v39, %v6197_v24 }
0x215c   :  { %v2928_v28 = vpop.permute.xlu0 %2927 }
0x215d   :  { %v2933_v29 = vmul.f32 %v2928_v28, %v2904_v41 }
0x215f   :  { %2937 = vrot.lane.b32.xlu2 %v2933_v29, %s5644_s0 }
0x2164   :  { %v2930_v38 = vpop.permute.xlu1 %2929 }
0x2165   :  { %v2934_v26 = vmul.f32 %v2930_v38, %v2919_v39 }
0x2167   :  { %2939 = vrot.lane.b32.xlu0 %v2934_v26, %s5644_s0 }
0x216f   :  { %1902 = vrot.lane.b32.xlu0 %v6029_v33, %s5644_s0 }
0x21b9   :  { %v2938_v20 = vpop.permute.xlu2 %2937 }
0x21ba   :  { %v6221_v12 = vadd.f32 %v2938_v20, %v2923_v7 }
0x21bc   :  { %5328 = vtanh.f32 %v6221_v12 }
0x21c2   :  { %v5329_v52 = vpop.eup %5328 }
0x21c3   :  { %2949 = vrot.lane.b32.xlu1 %v5329_v52, %s5637_s7 }
0x21cb   :  { %1904 = vrot.lane.b32.xlu1 %v6032_v32, %s5644_s0 }
0x21d9   :  { %v2940_v58 = vpop.permute.xlu0 %2939 }
0x21da   :  { %v6228_v44 = vadd.f32 %v2940_v58, %v2924_v54 }
0x21dc   :  { %5330 = vtanh.f32 %v6228_v44 }
0x21e1   :  { %v1903_v33 = vpop.permute.xlu0 %1902 }
0x21e2   :  { %v5331_v22 = vpop.eup %5330  ;;  %1908 = vst.msk [vmem:[#allocation2 + $0x20] sm:$0xf] %vm195_vm11, %v1903_v33 }
0x21e3   :  { %2951 = vrot.lane.b32.xlu2 %v5331_v22, %s5637_s7 }
0x2235   :  { %v2950_v6 = vpop.permute.xlu1 %2949 }
0x2236   :  { %v2955_v51 = vmul.f32 %v2950_v6, %v2904_v41 }
0x2238   :  { %v6233_v24 = vpack.c.bf16 %v2955_v51, %v2955_v51 }
0x223a   :  { %v2975_v10 = vunpack.c.l.b16 %v6233_v24 }
0x223d   :  { %v1905_v32 = vpop.permute.xlu1 %1904  ;;  %v2952_v8 = vpop.permute.xlu2 %2951 }
0x223e   :  { %1909 = vst.msk [vmem:[#allocation2 + $0x24] sm:$0xf] %vm195_vm11, %v1905_v32  ;;  %v2956_v40 = vmul.f32 %v2952_v8, %v2919_v39 }
0x2240   :  { %v6236_v53 = vpack.c.bf16 %v2956_v40, %v2956_v40 }
0x2242   :  { %v2976_v11 = vunpack.c.l.b16 %v6236_v53 }
0x2244   :  { %v2977_v42 = vpack.c.b16 %v2976_v11, %v2975_v10 }
0x2245   :  { %v4993_v59 = vld [vmem:[#allocation2 + $0x20] sm:$0xff] }
0x2246   :  { %2978 = vrot.lane.b32.xlu2 %v2977_v42, %s5644_s0  ;;  %4767 = vmatmul.msk.bf16.gmra.mxu3 %vm91_vm8, %v4993_v59 }
0x22a0   :  { %v2979_v45 = vpop.permute.xlu2 %2978 }
0x22a1   :  { %4822 = vmatmul.msk.bf16.vlgmr.msra.gmra.mxu1 %vm91_vm8, %v2979_v45  ;;  %v979_v45 = vld [vmem:[#allocation5 + $0x70] sm:$0xff] }
0x22c9   :  { %v2428_v17 = vpop.f32.mrf.mxu3 }
0x22ca   :  { %v2429_v16 = vadd.f32 %v6084_v55, %v2428_v17  ;;  %v1019_v17 = vadd.f32 %v5937_v36, %v979_v45  ;;  %v980_v36 = vld [vmem:[#allocation5 + $0x78] sm:$0xff] }
0x22d1   :  { %v2430_v25 = vpop.f32.mrf.mxu3 }
0x22d2   :  { %v2431_v2 = vadd.f32 %v6084_v55, %v2430_v25 }
0x231e   :  { %v3004_v18 = vpop.f32.mrf.mxu1 }
0x231f   :  { %v3009_v21 = vadd.f32 %v3004_v18, %v2429_v16 }
0x2321   :  { %5332 = vtanh.f32 %v3009_v21  ;;  %v4823_v28 = vmul.f32 -1.442695, %v3009_v21 }
0x2326   :  { %v3006_v5 = vpop.f32.mrf.mxu1 }
0x2327   :  { %v5333_v48 = vpop.eup %5332  ;;  %v3010_v57 = vadd.f32 %v3006_v5, %v2431_v2  ;;  %v4585_v2 = vmul.f32 -1.442695, %v1019_v17 }
0x2328   :  { %3055 = vrot.lane.b32.xlu0 %v5333_v48, %s5637_s7 }
0x2329   :  { %5334 = vtanh.f32 %v3010_v57  ;;  %v4824_v41 = vmul.f32 -1.442695, %v3010_v57 }
0x232a   :  { %5336 = vpow2.f32 %v4823_v28 }
0x232b   :  { %5338 = vpow2.f32 %v4824_v41 }
0x232f   :  { %v5335_v23 = vpop.eup %5334 }
0x2330   :  { %3057 = vrot.lane.b32.xlu1 %v5335_v23, %s5637_s7  ;;  %v5337_v29 = vpop.eup %5336 }
0x2331   :  { %v3017_v15 = vadd.f32 1.0, %v5337_v29  ;;  %v5339_v30 = vpop.eup %5338 }
0x2332   :  { %v3018_v34 = vadd.f32 1.0, %v5339_v30 }
0x2333   :  { %5340 = vrcp.f32 %v3017_v15  ;;  %v3030_v52 = vand.u32 2147483648, %v3017_v15  ;;  %vm3024_vm3 = vweird.f32 %v3017_v15  ;;  %v3028_v54 = vand.u32 2147483647, %v3017_v15 }
0x2334   :  { %5342 = vrcp.f32 %v3018_v34  ;;  %v3045_v32 = vand.u32 2147483648, %v3018_v34  ;;  %vm3039_vm7 = vweird.f32 %v3018_v34  ;;  %v3043_v8 = vand.u32 2147483647, %v3018_v34 }
0x2335   :  { %v3031_v22 = vor.u32 1.1754944e-38, %v3030_v52  ;;  %vm3029_vm5 = vcmp.eq.f32.partialorder %v3028_v54, 8.507059e+37  ;;  %5344 = vtanh.f32 %v1019_v17 }
0x2336   :  { %v3046_v10 = vor.u32 1.1754944e-38, %v3045_v32  ;;  %vm3044_vm10 = vcmp.eq.f32.partialorder %v3043_v8, 8.507059e+37  ;;  %v5009_v8 = vld [vmem:[#allocation9 + $0x20] sm:$0xff] }
0x2339   :  { %v5341_v27 = vpop.eup %5340 }
0x233a   :  { %v3020_v55 = vmul.f32 %v5341_v27, %v3017_v15  ;;  %v5343_v38 = vpop.eup %5342  ;;  %vm3025_vm2 = vweird.f32 %v5341_v27 }
0x233b   :  { %v3035_v26 = vmul.f32 %v5343_v38, %v3018_v34  ;;  %vm3026_vm4 = vmor %vm3024_vm3, %vm3025_vm2  ;;  %vm3040_vm6 = vweird.f32 %v5343_v38  ;;  %v5345_v16 = vpop.eup %5344 }
0x233c   :  { %v3021_v47 = vsub.f32 1.0, %v3020_v55  ;;  %vm3041_vm9 = vmor %vm3039_vm7, %vm3040_vm6 }
0x233d   :  { %v3036_v20 = vsub.f32 1.0, %v3035_v26 }
0x233e   :  { %v3022_v39 = vmul.f32 %v5341_v27, %v3021_v47 }
0x233f   :  { %v3037_v33 = vmul.f32 %v5343_v38, %v3036_v20 }
0x2340   :  { %v3023_v7 = vadd.f32 %v5341_v27, %v3022_v39 }
0x2341   :  { %v3038_v51 = vadd.f32 %v5343_v38, %v3037_v33 }
0x2342   :  { %v3027_v58 = vsel %vm3026_vm4, %v5341_v27, %v3023_v7 }
0x2343   :  { %v6247_v56 = vsel %vm3029_vm5, %v3031_v22, %v3027_v58  ;;  %v3042_v40 = vsel %vm3041_vm9, %v5343_v38, %v3038_v51 }
0x2344   :  { %v3047_v42 = vsel %vm3044_vm10, %v3046_v10, %v3042_v40  ;;  %v3051_v18 = vmul.f32 %v6247_v56, %v6221_v12 }
0x2345   :  { %v3052_v41 = vmul.f32 %v3047_v42, %v6228_v44 }
0x239a   :  { %v3056_v9 = vpop.permute.xlu0 %3055 }
0x239b   :  { %v3061_v6 = vmul.f32 %v3056_v9, %v6247_v56 }
0x239d   :  { %3065 = vrot.lane.b32.xlu2 %v3061_v6, %s5644_s0  ;;  %v5010_v6 = vld [vmem:[#allocation9 + $0x28] sm:$0xff] }
0x239e   :  { %3129 = vmatpush.bf16.msrb.mxu2 %v5010_v6 }
0x23a2   :  { %v3058_v11 = vpop.permute.xlu1 %3057  ;;  %3130 = vmatpush.bf16.msrb.mxu2 %v5009_v8 }
0x23a3   :  { %v3062_v59 = vmul.f32 %v3058_v11, %v3047_v42 }
0x23a5   :  { %3067 = vrot.lane.b32.xlu0 %v3062_v59, %s5644_s0 }
0x23ad   :  { %2031 = vrot.lane.b32.xlu0 %v6065_v61, %s5644_s0  ;;  %v1020_v61 = vadd.f32 %v5939_v46, %v980_v36 }
0x23af   :  { %v4586_v11 = vmul.f32 -1.442695, %v1020_v61 }
0x23b5   :  { %1065 = vrot.lane.b32.xlu0 %v5345_v16, %s5637_s7 }
0x23f7   :  { %v3066_v21 = vpop.permute.xlu2 %3065 }
0x23f8   :  { %v6258_v25 = vadd.f32 %v3066_v21, %v3051_v18  ;;  %v6290_v18 = vld [vmem:[%s6650_s3 + $0x1] ss:$0 sm:$0xff] }
0x23fa   :  { %5346 = vtanh.f32 %v6258_v25 }
0x23fb   :  { %5348 = vpow2.f32 %v4585_v2 }
0x23fc   :  { %5350 = vtanh.f32 %v1020_v61 }
0x2400   :  { %v5347_v5 = vpop.eup %5346 }
0x2401   :  { %3077 = vrot.lane.b32.xlu1 %v5347_v5, %s5637_s7  ;;  %v5349_v48 = vpop.eup %5348 }
0x2402   :  { %v1027_v57 = vadd.f32 1.0, %v5349_v48  ;;  %v5351_v12 = vpop.eup %5350 }
0x2404   :  { %5352 = vrcp.f32 %v1027_v57  ;;  %v1040_v55 = vand.u32 2147483648, %v1027_v57  ;;  %vm1034_vm13 = vweird.f32 %v1027_v57  ;;  %v1038_v47 = vand.u32 2147483647, %v1027_v57 }
0x2406   :  { %v1041_v38 = vor.u32 1.1754944e-38, %v1040_v55  ;;  %vm1039_vm15 = vcmp.eq.f32.partialorder %v1038_v47, 8.507059e+37 }
0x2409   :  { %2033 = vrot.lane.b32.xlu1 %v6068_v1, %s5644_s0 }
0x240a   :  { %v5353_v23 = vpop.eup %5352 }
0x240b   :  { %v1030_v28 = vmul.f32 %v5353_v23, %v1027_v57  ;;  %vm1035_vm12 = vweird.f32 %v5353_v23 }
0x240c   :  { %vm1036_vm14 = vmor %vm1034_vm13, %vm1035_vm12 }
0x240d   :  { %v1031_v30 = vsub.f32 1.0, %v1030_v28 }
0x240f   :  { %v1032_v46 = vmul.f32 %v5353_v23, %v1031_v30 }
0x2411   :  { %1067 = vrot.lane.b32.xlu1 %v5351_v12, %s5637_s7  ;;  %v1033_v1 = vadd.f32 %v5353_v23, %v1032_v46 }
0x2413   :  { %v1037_v44 = vsel %vm1036_vm14, %v5353_v23, %v1033_v1 }
0x2414   :  { %v6272_v39 = vsel %vm1039_vm15, %v1041_v38, %v1037_v44 }
0x2415   :  { %v1061_v55 = vmul.f32 %v6272_v39, %v5892_v0 }
0x2417   :  { %v3068_v29 = vpop.permute.xlu0 %3067 }
0x2418   :  { %v6267_v15 = vadd.f32 %v3068_v29, %v3052_v41 }
0x241a   :  { %5354 = vtanh.f32 %v6267_v15 }
0x241b   :  { %5356 = vpow2.f32 %v4586_v11 }
0x241f   :  { %v2032_v34 = vpop.permute.xlu0 %2031 }
0x2420   :  { %v5355_v27 = vpop.eup %5354  ;;  %2037 = vst.msk [vmem:[#allocation2 + $0x28] sm:$0xf] %vm195_vm11, %v2032_v34 }
0x2421   :  { %3079 = vrot.lane.b32.xlu2 %v5355_v27, %s5637_s7 }
0x2427   :  { %v1066_v26 = vpop.permute.xlu0 %1065 }
0x2428   :  { %v1071_v7 = vmul.f32 %v1066_v26, %v6272_v39 }
0x242a   :  { %1075 = vrot.lane.b32.xlu1 %v1071_v7, %s5644_s0 }
0x2473   :  { %v3078_v20 = vpop.permute.xlu1 %3077 }
0x2474   :  { %v3083_v52 = vmul.f32 %v3078_v20, %v6247_v56 }
0x2476   :  { %v6277_v33 = vpack.c.bf16 %v3083_v52, %v3083_v52 }
0x2478   :  { %v3103_v51 = vunpack.c.l.b16 %v6277_v33 }
0x247b   :  { %v2034_v54 = vpop.permute.xlu1 %2033  ;;  %v3080_v58 = vpop.permute.xlu2 %3079 }
0x247c   :  { %2038 = vst.msk [vmem:[#allocation2 + $0x2c] sm:$0xf] %vm195_vm11, %v2034_v54  ;;  %v3084_v22 = vmul.f32 %v3080_v58, %v3047_v42  ;;  %v5357_v42 = vpop.eup %5356 }
0x247d   :  { %v1028_v59 = vadd.f32 1.0, %v5357_v42 }
0x247e   :  { %v6280_v9 = vpack.c.bf16 %v3084_v22, %v3084_v22 }
0x247f   :  { %5358 = vrcp.f32 %v1028_v59  ;;  %v1055_v29 = vand.u32 2147483648, %v1028_v59  ;;  %vm1049_vm1 = vweird.f32 %v1028_v59  ;;  %v1053_v46 = vand.u32 2147483647, %v1028_v59 }
0x2480   :  { %v3104_v32 = vunpack.c.l.b16 %v6280_v9 }
0x2481   :  { %v1056_v1 = vor.u32 1.1754944e-38, %v1055_v29  ;;  %vm1054_vm3 = vcmp.eq.f32.partialorder %v1053_v46, 8.507059e+37 }
0x2482   :  { %v3105_v40 = vpack.c.b16 %v3104_v32, %v3103_v51 }
0x2483   :  { %v4994_v10 = vld [vmem:[#allocation2 + $0x28] sm:$0xff]  ;;  %v1068_v61 = vpop.permute.xlu1 %1067 }
0x2484   :  { %3106 = vrot.lane.b32.xlu2 %v3105_v40, %s5644_s0  ;;  %4768 = vmatmul.msk.bf16.gmra.mxu3 %vm91_vm8, %v4994_v10 }
0x2485   :  { %v5359_v45 = vpop.eup %5358 }
0x2486   :  { %v1045_v16 = vmul.f32 %v5359_v45, %v1028_v59  ;;  %vm1050_vm0 = vweird.f32 %v5359_v45 }
0x2487   :  { %vm1051_vm2 = vmor %vm1049_vm1, %vm1050_vm0 }
0x2488   :  { %v1046_v2 = vsub.f32 1.0, %v1045_v16 }
0x248a   :  { %v1047_v48 = vmul.f32 %v5359_v45, %v1046_v2 }
0x248c   :  { %v1048_v23 = vadd.f32 %v5359_v45, %v1047_v48 }
0x248e   :  { %v1052_v34 = vsel %vm1051_vm2, %v5359_v45, %v1048_v23 }
0x248f   :  { %v6297_v47 = vsel %vm1054_vm3, %v1056_v1, %v1052_v34 }
0x2490   :  { %v1072_v38 = vmul.f32 %v1068_v61, %v6297_v47  ;;  %v1062_v16 = vmul.f32 %v6297_v47, %v5907_v13 }
0x249c   :  { %v1076_v27 = vpop.permute.xlu1 %1075 }
0x249d   :  { %v1081_v44 = vadd.f32 %v1076_v27, %v1061_v55 }
0x24de   :  { %v3107_v56 = vpop.permute.xlu2 %3106 }
0x24df   :  { %4833 = vmatmul.msk.bf16.vlgmr.msrb.gmra.mxu2 %vm91_vm8, %v3107_v56 }
0x2507   :  { %v2433_v17 = vpop.f32.mrf.mxu3 }
0x2508   :  { %v2434_v21 = vadd.f32 %v6290_v18, %v2433_v17 }
0x250f   :  { %v2435_v57 = vpop.f32.mrf.mxu3 }
0x2510   :  { %v2436_v12 = vadd.f32 %v6290_v18, %v2435_v57 }
0x2562   :  { %v3132_v5 = vpop.f32.mrf.mxu2 }
0x2563   :  { %v3137_v36 = vadd.f32 %v3132_v5, %v2434_v21 }
0x2565   :  { %5360 = vtanh.f32 %v3137_v36  ;;  %v4834_v20 = vmul.f32 -1.442695, %v3137_v36 }
0x256a   :  { %v3134_v28 = vpop.f32.mrf.mxu2 }
0x256b   :  { %v5361_v41 = vpop.eup %5360  ;;  %v3138_v30 = vadd.f32 %v3134_v28, %v2436_v12 }
0x256c   :  { %3183 = vrot.lane.b32.xlu2 %v5361_v41, %s5637_s7 }
0x256d   :  { %5362 = vtanh.f32 %v3138_v30  ;;  %v4835_v6 = vmul.f32 -1.442695, %v3138_v30 }
0x256e   :  { %5364 = vtanh.f32 %v1081_v44 }
0x256f   :  { %5366 = vpow2.f32 %v4834_v20 }
0x2573   :  { %v5363_v26 = vpop.eup %5362 }
0x2574   :  { %1077 = vrot.lane.b32.xlu2 %v1072_v38, %s5644_s0  ;;  %3185 = vrot.lane.b32.xlu0 %v5363_v26, %s5637_s7  ;;  %v5365_v7 = vpop.eup %5364 }
0x2575   :  { %v5367_v52 = vpop.eup %5366 }
0x2576   :  { %v3145_v54 = vadd.f32 1.0, %v5367_v52 }
0x2578   :  { %5368 = vrcp.f32 %v3145_v54  ;;  %v3158_v8 = vand.u32 2147483648, %v3145_v54  ;;  %vm3152_vm5 = vweird.f32 %v3145_v54  ;;  %v3156_v40 = vand.u32 2147483647, %v3145_v54 }
0x2579   :  { %5370 = vpow2.f32 %v4835_v6 }
0x257a   :  { %v3159_v11 = vor.u32 1.1754944e-38, %v3158_v8  ;;  %vm3157_vm7 = vcmp.eq.f32.partialorder %v3156_v40, 8.507059e+37 }
0x257c   :  { %1087 = vrot.lane.b32.xlu2 %v5365_v7, %s5637_s7 }
0x257e   :  { %v5369_v0 = vpop.eup %5368 }
0x257f   :  { %v3148_v58 = vmul.f32 %v5369_v0, %v3145_v54  ;;  %vm3153_vm4 = vweird.f32 %v5369_v0  ;;  %v5371_v10 = vpop.eup %5370 }
0x2580   :  { %vm3154_vm6 = vmor %vm3152_vm5, %vm3153_vm4  ;;  %v3146_v42 = vadd.f32 1.0, %v5371_v10 }
0x2581   :  { %v3149_v22 = vsub.f32 1.0, %v3148_v58 }
0x2582   :  { %5372 = vrcp.f32 %v3146_v42  ;;  %v3173_v29 = vand.u32 2147483648, %v3146_v42  ;;  %vm3167_vm10 = vweird.f32 %v3146_v42  ;;  %v3171_v13 = vand.u32 2147483647, %v3146_v42 }
0x2583   :  { %v3150_v51 = vmul.f32 %v5369_v0, %v3149_v22  ;;  %v5011_v22 = vld [vmem:[#allocation9 + $0x20] sm:$0xff] }
0x2584   :  { %v3174_v46 = vor.u32 1.1754944e-38, %v3173_v29  ;;  %vm3172_vm13 = vcmp.eq.f32.partialorder %v3171_v13, 8.507059e+37 }
0x2585   :  { %v3151_v32 = vadd.f32 %v5369_v0, %v3150_v51 }
0x2587   :  { %v3155_v56 = vsel %vm3154_vm6, %v5369_v0, %v3151_v32 }
0x2588   :  { %v3160_v45 = vsel %vm3157_vm7, %v3159_v11, %v3155_v56  ;;  %v5373_v5 = vpop.eup %5372 }
0x2589   :  { %v3163_v36 = vmul.f32 %v5373_v5, %v3146_v42  ;;  %vm3168_vm9 = vweird.f32 %v5373_v5 }
0x258a   :  { %vm3169_vm12 = vmor %vm3167_vm10, %vm3168_vm9 }
0x258b   :  { %v3164_v57 = vsub.f32 1.0, %v3163_v36 }
0x258d   :  { %v3165_v23 = vmul.f32 %v5373_v5, %v3164_v57 }
0x258f   :  { %v3166_v41 = vadd.f32 %v5373_v5, %v3165_v23 }
0x2591   :  { %v3170_v30 = vsel %vm3169_vm12, %v5373_v5, %v3166_v41 }
0x2592   :  { %v3175_v27 = vsel %vm3172_vm13, %v3174_v46, %v3170_v30 }
0x25c6   :  { %v3184_v59 = vpop.permute.xlu2 %3183 }
0x25c7   :  { %v3189_v17 = vmul.f32 %v3184_v59, %v3160_v45 }
0x25c9   :  { %3193 = vrot.lane.b32.xlu0 %v3189_v17, %s5644_s0 }
0x25ce   :  { %v1078_v21 = vpop.permute.xlu2 %1077 }
0x25cf   :  { %v1082_v2 = vadd.f32 %v1078_v21, %v1062_v16  ;;  %v5558_v21 = vld [vmem:[%s6650_s3] ss:$0 sm:$0xff] }
0x25d1   :  { %5374 = vtanh.f32 %v1082_v2 }
0x25d6   :  { %v1088_v61 = vpop.permute.xlu2 %1087 }
0x25d7   :  { %v5375_v48 = vpop.eup %5374  ;;  %v1093_v12 = vmul.f32 %v1088_v61, %v6272_v39  ;;  %v3179_v39 = vmul.f32 %v3160_v45, %v6258_v25  ;;  %v3180_v25 = vmul.f32 %v3175_v27, %v6267_v15 }
0x25d8   :  { %1089 = vrot.lane.b32.xlu0 %v5375_v48, %s5637_s7 }
0x25d9   :  { %v1095_v28 = vpack.c.bf16 %v1093_v12, %v1093_v12 }
0x25e0   :  { %1099 = vrot.lane.b32.xlu0 %v1095_v28, %s5644_s0 }
0x25e6   :  { %v3186_v34 = vpop.permute.xlu0 %3185 }
0x25e7   :  { %v3190_v1 = vmul.f32 %v3186_v34, %v3175_v27 }
0x25e8   :  { %2162 = vrot.lane.b32.xlu0 %v6128_v50, %s5644_s0 }
0x25e9   :  { %3195 = vrot.lane.b32.xlu1 %v3190_v1, %s5644_s0 }
0x263b   :  { %v3194_v55 = vpop.permute.xlu0 %3193 }
0x263c   :  { %v6313_v44 = vadd.f32 %v3194_v55, %v3179_v39 }
0x263e   :  { %5376 = vtanh.f32 %v6313_v44 }
0x2644   :  { %v5377_v38 = vpop.eup %5376 }
0x2645   :  { %3205 = vrot.lane.b32.xlu1 %v5377_v38, %s5637_s7 }
0x264a   :  { %v1090_v26 = vpop.permute.xlu0 %1089 }
0x264b   :  { %v1094_v7 = vmul.f32 %v1090_v26, %v6297_v47  ;;  %v5012_v47 = vld [vmem:[#allocation9 + $0x28] sm:$0xff] }
0x264c   :  { %3257 = vmatpush.bf16.msrb.mxu1 %v5012_v47 }
0x264d   :  { %v1096_v20 = vpack.c.bf16 %v1094_v7, %v1094_v7 }
0x264f   :  { %1101 = vrot.lane.b32.xlu1 %v1096_v20, %s5644_s0 }
0x2650   :  { %3258 = vmatpush.bf16.msrb.mxu1 %v5011_v22 }
0x2652   :  { %v1100_v52 = vpop.permute.xlu0 %1099 }
0x2653   :  { %1106 = vst.msk [vmem:[#allocation2 + $0x38] sm:$0xf] %vm195_vm11, %v1100_v52 }
0x265a   :  { %v2163_v50 = vpop.permute.xlu0 %2162 }
0x265b   :  { %2167 = vst.msk [vmem:[#allocation2 + $0x34] sm:$0xf] %vm195_vm11, %v2163_v50  ;;  %v3196_v54 = vpop.permute.xlu1 %3195 }
0x265c   :  { %v6322_v0 = vadd.f32 %v3196_v54, %v3180_v25 }
0x265e   :  { %5378 = vtanh.f32 %v6322_v0 }
0x2664   :  { %v5379_v58 = vpop.eup %5378 }
0x2665   :  { %3207 = vrot.lane.b32.xlu2 %v5379_v58, %s5637_s7 }
0x266d   :  { %2160 = vrot.lane.b32.xlu2 %v6126_v49, %s5644_s0 }
0x26b7   :  { %v3206_v6 = vpop.permute.xlu1 %3205 }
0x26b8   :  { %v3211_v51 = vmul.f32 %v3206_v6, %v3160_v45 }
0x26ba   :  { %v6328_v32 = vpack.c.bf16 %v3211_v51, %v3211_v51 }
0x26bc   :  { %v3231_v56 = vunpack.c.l.b16 %v6328_v32 }
0x26bf   :  { %v3208_v15 = vpop.permute.xlu2 %3207 }
0x26c0   :  { %v3212_v8 = vmul.f32 %v3208_v15, %v3175_v27 }
0x26c1   :  { %v1102_v40 = vpop.permute.xlu1 %1101 }
0x26c2   :  { %v6330_v10 = vpack.c.bf16 %v3212_v8, %v3212_v8  ;;  %1107 = vst.msk [vmem:[#allocation2 + $0x3c] sm:$0xf] %vm195_vm11, %v1102_v40 }
0x26c4   :  { %v3232_v11 = vunpack.c.l.b16 %v6330_v10 }
0x26c6   :  { %v3233_v49 = vpack.c.b16 %v3232_v11, %v3231_v56 }
0x26c7   :  { %v2161_v42 = vpop.permute.xlu2 %2160 }
0x26c8   :  { %2166 = vst.msk [vmem:[#allocation2 + $0x30] sm:$0xf] %vm195_vm11, %v2161_v42  ;;  %3234 = vrot.lane.b32.xlu1 %v3233_v49, %s5644_s0 }
0x26c9   :  { %v4970_v59 = vld [vmem:[#allocation2 + $0x38] sm:$0xff] }
0x26ca   :  { %4634 = vmatmul.msk.bf16.gmra.mxu0 %vm91_vm8, %v4970_v59 }
0x26cf   :  { %v4995_v45 = vld [vmem:[#allocation2 + $0x30] sm:$0xff] }
0x26d0   :  { %4769 = vmatmul.msk.bf16.gmra.mxu3 %vm91_vm8, %v4995_v45 }
0x273a   :  { %v3235_v17 = vpop.permute.xlu1 %3234 }
0x273b   :  { %4844 = vmatmul.msk.bf16.vlgmr.msrb.gmra.mxu1 %vm91_vm8, %v3235_v17 }
0x2747   :  { %v1252_v16 = vpop.f32.mrf.mxu0 }
0x2748   :  { %v1253_v2 = vadd.f32 %v5558_v21, %v1252_v16 }
0x274a   :  { %v2209_v5 = vadd.f32 %v6146_v4, %v1253_v2 }
0x274c   :  { %5380 = vtanh.f32 %v2209_v5  ;;  %v4720_v23 = vmul.f32 -1.442695, %v2209_v5 }
0x274f   :  { %v1254_v36 = vpop.f32.mrf.mxu0 }
0x2750   :  { %v1255_v48 = vadd.f32 %v5558_v21, %v1254_v36 }
0x2752   :  { %v5381_v61 = vpop.eup %5380  ;;  %v2210_v57 = vadd.f32 %v6148_v19, %v1255_v48 }
0x2753   :  { %2255 = vrot.lane.b32.xlu2 %v5381_v61, %s5637_s7  ;;  %v2438_v52 = vpop.f32.mrf.mxu3 }
0x2754   :  { %5382 = vtanh.f32 %v2210_v57  ;;  %v4721_v30 = vmul.f32 -1.442695, %v2210_v57  ;;  %v2439_v50 = vadd.f32 %v6290_v18, %v2438_v52 }
0x2755   :  { %5384 = vpow2.f32 %v4720_v23 }
0x275a   :  { %v5383_v12 = vpop.eup %5382 }
0x275b   :  { %2257 = vrot.lane.b32.xlu0 %v5383_v12, %s5637_s7  ;;  %v5385_v28 = vpop.eup %5384  ;;  %v2440_v22 = vpop.f32.mrf.mxu3 }
0x275c   :  { %v2217_v41 = vadd.f32 1.0, %v5385_v28  ;;  %v2441_v6 = vadd.f32 %v6290_v18, %v2440_v22 }
0x275e   :  { %5386 = vrcp.f32 %v2217_v41  ;;  %v2230_v19 = vand.u32 2147483648, %v2217_v41  ;;  %vm2224_vm15 = vweird.f32 %v2217_v41  ;;  %v2228_v27 = vand.u32 2147483647, %v2217_v41 }
0x275f   :  { %5388 = vpow2.f32 %v4721_v30 }
0x2760   :  { %v2231_v55 = vor.u32 1.1754944e-38, %v2230_v19  ;;  %vm2229_vm1 = vcmp.eq.f32.partialorder %v2228_v27, 8.507059e+37 }
0x2764   :  { %v5387_v29 = vpop.eup %5386 }
0x2765   :  { %v2220_v13 = vmul.f32 %v5387_v29, %v2217_v41  ;;  %vm2225_vm14 = vweird.f32 %v5387_v29  ;;  %v5389_v1 = vpop.eup %5388 }
0x2766   :  { %vm2226_vm0 = vmor %vm2224_vm15, %vm2225_vm14  ;;  %v2218_v38 = vadd.f32 1.0, %v5389_v1 }
0x2767   :  { %v2221_v4 = vsub.f32 1.0, %v2220_v13 }
0x2768   :  { %5390 = vrcp.f32 %v2218_v38  ;;  %v2245_v49 = vand.u32 2147483648, %v2218_v38  ;;  %vm2239_vm3 = vweird.f32 %v2218_v38  ;;  %v2243_v59 = vand.u32 2147483647, %v2218_v38 }
0x2769   :  { %v2222_v46 = vmul.f32 %v5387_v29, %v2221_v4 }
0x276a   :  { %v2246_v17 = vor.u32 1.1754944e-38, %v2245_v49  ;;  %vm2244_vm5 = vcmp.eq.f32.partialorder %v2243_v59, 8.507059e+37 }
0x276b   :  { %v2223_v34 = vadd.f32 %v5387_v29, %v2222_v46 }
0x276d   :  { %v2227_v39 = vsel %vm2226_vm0, %v5387_v29, %v2223_v34 }
0x276e   :  { %v6347_v26 = vsel %vm2229_vm1, %v2231_v55, %v2227_v39  ;;  %v5391_v25 = vpop.eup %5390 }
0x276f   :  { %v2235_v47 = vmul.f32 %v5391_v25, %v2218_v38  ;;  %vm2240_vm2 = vweird.f32 %v5391_v25  ;;  %v2251_v27 = vmul.f32 %v6347_v26, %v6103_v63 }
0x2770   :  { %vm2241_vm4 = vmor %vm2239_vm3, %vm2240_vm2 }
0x2771   :  { %v2236_v51 = vsub.f32 1.0, %v2235_v47 }
0x2773   :  { %v2237_v56 = vmul.f32 %v5391_v25, %v2236_v51 }
0x2775   :  { %v2238_v11 = vadd.f32 %v5391_v25, %v2237_v56 }
0x2777   :  { %v2242_v45 = vsel %vm2241_vm4, %v5391_v25, %v2238_v11 }
0x2778   :  { %v6355_v21 = vsel %vm2244_vm5, %v2246_v17, %v2242_v45 }
0x27ad   :  { %v2256_v7 = vpop.permute.xlu2 %2255 }
0x27ae   :  { %v2261_v20 = vmul.f32 %v2256_v7, %v6347_v26 }
0x27b0   :  { %2265 = vrot.lane.b32.xlu0 %v2261_v20, %s5644_s0 }
0x27b8   :  { %v3260_v54 = vpop.f32.mrf.mxu1 }
0x27b9   :  { %v3265_v58 = vadd.f32 %v3260_v54, %v2439_v50 }
0x27bb   :  { %5392 = vtanh.f32 %v3265_v58  ;;  %v4845_v61 = vmul.f32 -1.442695, %v3265_v58 }
0x27c0   :  { %v3262_v15 = vpop.f32.mrf.mxu1 }
0x27c1   :  { %v5393_v8 = vpop.eup %5392  ;;  %v3266_v40 = vadd.f32 %v3262_v15, %v2441_v6 }
0x27c2   :  { %3311 = vrot.lane.b32.xlu1 %v5393_v8, %s5637_s7  ;;  %v2252_v8 = vmul.f32 %v6355_v21, %v6116_v14 }
0x27c3   :  { %5394 = vtanh.f32 %v3266_v40  ;;  %v4846_v5 = vmul.f32 -1.442695, %v3266_v40 }
0x27c5   :  { %5396 = vpow2.f32 %v4846_v5 }
0x27c9   :  { %v5395_v42 = vpop.eup %5394 }
0x27ca   :  { %3313 = vrot.lane.b32.xlu2 %v5395_v42, %s5637_s7 }
0x27cb   :  { %v5397_v36 = vpop.eup %5396 }
0x27cc   :  { %v3274_v48 = vadd.f32 1.0, %v5397_v36 }
0x27cd   :  { %v2258_v16 = vpop.permute.xlu0 %2257 }
0x27ce   :  { %v2262_v2 = vmul.f32 %v2258_v16, %v6355_v21  ;;  %5398 = vrcp.f32 %v3274_v48  ;;  %v3301_v30 = vand.u32 2147483648, %v3274_v48  ;;  %vm3295_vm7 = vweird.f32 %v3274_v48 }
0x27cf   :  { %5400 = vpow2.f32 %v4845_v61  ;;  %v3299_v46 = vand.u32 2147483647, %v3274_v48 }
0x27d0   :  { %2267 = vrot.lane.b32.xlu1 %v2262_v2, %s5644_s0  ;;  %v3302_v1 = vor.u32 1.1754944e-38, %v3301_v30 }
0x27d1   :  { %vm3300_vm10 = vcmp.eq.f32.partialorder %v3299_v46, 8.507059e+37 }
0x27d4   :  { %v5399_v57 = vpop.eup %5398 }
0x27d5   :  { %v5401_v12 = vpop.eup %5400  ;;  %v3291_v23 = vmul.f32 %v5399_v57, %v3274_v48  ;;  %vm3296_vm6 = vweird.f32 %v5399_v57 }
0x27d6   :  { %v3273_v28 = vadd.f32 1.0, %v5401_v12  ;;  %vm3297_vm9 = vmor %vm3295_vm7, %vm3296_vm6  ;;  %v5014_v12 = vld [vmem:[#allocation9 + $0x28] sm:$0xff] }
0x27d7   :  { %v3292_v41 = vsub.f32 1.0, %v3291_v23  ;;  %3385 = vmatpush.bf16.msra.mxu2 %v5014_v12  ;;  %v5013_v23 = vld [vmem:[#allocation9 + $0x20] sm:$0xff] }
0x27d8   :  { %5402 = vrcp.f32 %v3273_v28  ;;  %v3286_v58 = vand.u32 2147483648, %v3273_v28  ;;  %vm3280_vm13 = vweird.f32 %v3273_v28  ;;  %v3284_v63 = vand.u32 2147483647, %v3273_v28 }
0x27d9   :  { %v3293_v29 = vmul.f32 %v5399_v57, %v3292_v41 }
0x27da   :  { %v3287_v22 = vor.u32 1.1754944e-38, %v3286_v58  ;;  %vm3285_vm15 = vcmp.eq.f32.partialorder %v3284_v63, 8.507059e+37 }
0x27db   :  { %v3294_v13 = vadd.f32 %v5399_v57, %v3293_v29  ;;  %3386 = vmatpush.bf16.msra.mxu2 %v5013_v23 }
0x27dd   :  { %v3298_v34 = vsel %vm3297_vm9, %v5399_v57, %v3294_v13 }
0x27de   :  { %v5403_v4 = vpop.eup %5402  ;;  %v3303_v38 = vsel %vm3300_vm10, %v3302_v1, %v3298_v34 }
0x27df   :  { %v3276_v19 = vmul.f32 %v5403_v4, %v3273_v28  ;;  %vm3281_vm12 = vweird.f32 %v5403_v4  ;;  %v3308_v45 = vmul.f32 %v3303_v38, %v6322_v0 }
0x27e0   :  { %vm3282_vm14 = vmor %vm3280_vm13, %vm3281_vm12 }
0x27e1   :  { %v3277_v52 = vsub.f32 1.0, %v3276_v19 }
0x27e3   :  { %v3278_v50 = vmul.f32 %v5403_v4, %v3277_v52 }
0x27e5   :  { %v3279_v54 = vadd.f32 %v5403_v4, %v3278_v50 }
0x27e7   :  { %v3283_v47 = vsel %vm3282_vm14, %v5403_v4, %v3279_v54 }
0x27e8   :  { %v3288_v51 = vsel %vm3285_vm15, %v3287_v22, %v3283_v47 }
0x27e9   :  { %v3307_v49 = vmul.f32 %v3288_v51, %v6313_v44 }
0x2822   :  { %v2266_v39 = vpop.permute.xlu0 %2265 }
0x2823   :  { %v2271_v55 = vadd.f32 %v2266_v39, %v2251_v27 }
0x2824   :  { %v3314_v7 = vpop.permute.xlu2 %3313 }
0x2825   :  { %v3318_v20 = vmul.f32 %v3314_v7, %v3303_v38  ;;  %5404 = vtanh.f32 %v2271_v55 }
0x2827   :  { %3323 = vrot.lane.b32.xlu0 %v3318_v20, %s5644_s0 }
0x282b   :  { %v5405_v25 = vpop.eup %5404 }
0x282c   :  { %2277 = vrot.lane.b32.xlu1 %v5405_v25, %s5637_s7 }
0x2834   :  { %v3312_v6 = vpop.permute.xlu1 %3311 }
0x2835   :  { %v3317_v15 = vmul.f32 %v3312_v6, %v3288_v51 }
0x2837   :  { %3321 = vrot.lane.b32.xlu2 %v3317_v15, %s5644_s0 }
0x2842   :  { %v2268_v40 = vpop.permute.xlu1 %2267 }
0x2843   :  { %v2272_v56 = vadd.f32 %v2268_v40, %v2252_v8 }
0x2845   :  { %5406 = vtanh.f32 %v2272_v56 }
0x284b   :  { %v5407_v11 = vpop.eup %5406 }
0x284c   :  { %2279 = vrot.lane.b32.xlu2 %v5407_v11, %s5637_s7 }
0x2891   :  { %v3322_v42 = vpop.permute.xlu2 %3321 }
0x2892   :  { %v6368_v59 = vadd.f32 %v3322_v42, %v3307_v49 }
0x2894   :  { %5408 = vtanh.f32 %v6368_v59 }
0x2899   :  { %v3324_v17 = vpop.permute.xlu0 %3323 }
0x289a   :  { %v5409_v16 = vpop.eup %5408  ;;  %v6372_v2 = vadd.f32 %v3324_v17, %v3308_v45 }
0x289b   :  { %3333 = vrot.lane.b32.xlu0 %v5409_v16, %s5637_s7 }
0x289c   :  { %5410 = vtanh.f32 %v6372_v2 }
0x289e   :  { %v2278_v14 = vpop.permute.xlu1 %2277 }
0x289f   :  { %v2283_v5 = vmul.f32 %v2278_v14, %v6347_v26 }
0x28a1   :  { %v2285_v44 = vpack.c.bf16 %v2283_v5, %v2283_v5 }
0x28a2   :  { %v5411_v36 = vpop.eup %5410 }
0x28a3   :  { %3335 = vrot.lane.b32.xlu1 %v5411_v36, %s5637_s7  ;;  %2289 = vrot.lane.b32.xlu2 %v2285_v44, %s5644_s0 }
0x28a6   :  { %v2280_v48 = vpop.permute.xlu2 %2279 }
0x28a7   :  { %v2284_v0 = vmul.f32 %v2280_v48, %v6355_v21 }
0x28a9   :  { %v2286_v61 = vpack.c.bf16 %v2284_v0, %v2284_v0 }
0x28ab   :  { %2291 = vrot.lane.b32.xlu0 %v2286_v61, %s5644_s0 }
0x28fd   :  { %v2290_v57 = vpop.permute.xlu2 %2289 }
0x28fe   :  { %2295 = vst.msk [vmem:[#allocation2 + $0x38] sm:$0xf] %vm195_vm11, %v2290_v57 }
0x290d   :  { %v3334_v26 = vpop.permute.xlu0 %3333 }
0x290e   :  { %v3339_v28 = vmul.f32 %v3334_v26, %v3288_v51 }
0x2910   :  { %v6382_v29 = vpack.c.bf16 %v3339_v28, %v3339_v28 }
0x2912   :  { %v3359_v21 = vunpack.c.l.b16 %v6382_v29 }
0x2915   :  { %v3336_v41 = vpop.permute.xlu1 %3335 }
0x2916   :  { %v3340_v13 = vmul.f32 %v3336_v41, %v3303_v38 }
0x2918   :  { %v6384_v4 = vpack.c.bf16 %v3340_v13, %v3340_v13 }
0x291a   :  { %v3360_v30 = vunpack.c.l.b16 %v6384_v4 }
0x291c   :  { %v3361_v46 = vpack.c.b16 %v3360_v30, %v3359_v21 }
0x291d   :  { %v2292_v34 = vpop.permute.xlu0 %2291 }
0x291e   :  { %3362 = vrot.lane.b32.xlu1 %v3361_v46, %s5644_s0  ;;  %2296 = vst.msk [vmem:[#allocation2 + $0x3c] sm:$0xf] %vm195_vm11, %v2292_v34 }
0x2925   :  { %v4996_v19 = vld [vmem:[#allocation2 + $0x38] sm:$0xff] }
0x2926   :  { %4770 = vmatmul.msk.bf16.gmra.mxu3 %vm91_vm8, %v4996_v19 }
0x2990   :  { %v3363_v27 = vpop.permute.xlu1 %3362 }
0x2991   :  { %4855 = vmatmul.msk.bf16.vlgmr.msra.gmra.mxu2 %vm91_vm8, %v3363_v27 }
0x29a9   :  { %v2443_v1 = vpop.f32.mrf.mxu3 }
0x29aa   :  { %v2444_v39 = vadd.f32 %v6290_v18, %v2443_v1 }
0x29b1   :  { %v2445_v7 = vpop.f32.mrf.mxu3 }
0x29b2   :  { %v2446_v20 = vadd.f32 %v6290_v18, %v2445_v7 }
0x2a14   :  { %v3388_v55 = vpop.f32.mrf.mxu2 }
0x2a15   :  { %v3393_v38 = vadd.f32 %v3388_v55, %v2444_v39 }
0x2a17   :  { %5412 = vtanh.f32 %v3393_v38  ;;  %v4856_v58 = vmul.f32 -1.442695, %v3393_v38 }
0x2a1c   :  { %v3390_v52 = vpop.f32.mrf.mxu2 }
0x2a1d   :  { %v5413_v50 = vpop.eup %5412  ;;  %v3394_v25 = vadd.f32 %v3390_v52, %v2446_v20 }
0x2a1e   :  { %3439 = vrot.lane.b32.xlu2 %v5413_v50, %s5637_s7 }
0x2a1f   :  { %5414 = vtanh.f32 %v3394_v25  ;;  %v4857_v15 = vmul.f32 -1.442695, %v3394_v25  ;;  %v6416_v25 = vld [vmem:[#allocation9 + $0x38] sm:$0xff] }
0x2a20   :  { %5416 = vpow2.f32 %v4856_v58  ;;  %3772 = vmatpush.bf16.msrb.mxu0 %v6416_v25  ;;  %4366 = vmatpush.bf16.msra.mxu3 %v6416_v25 }
0x2a25   :  { %v5415_v54 = vpop.eup %5414 }
0x2a26   :  { %3441 = vrot.lane.b32.xlu0 %v5415_v54, %s5637_s7  ;;  %v5417_v63 = vpop.eup %5416  ;;  %v6421_v54 = vld [vmem:[#allocation9 + $0x30] sm:$0xff] }
0x2a27   :  { %v3401_v47 = vadd.f32 1.0, %v5417_v63  ;;  %3773 = vmatpush.bf16.msrb.mxu0 %v6421_v54  ;;  %4367 = vmatpush.bf16.msra.mxu3 %v6421_v54 }
0x2a29   :  { %5418 = vrcp.f32 %v3401_v47  ;;  %v3414_v40 = vand.u32 2147483648, %v3401_v47  ;;  %vm3408_vm1 = vweird.f32 %v3401_v47  ;;  %v3412_v56 = vand.u32 2147483647, %v3401_v47 }
0x2a2a   :  { %5420 = vpow2.f32 %v4857_v15 }
0x2a2b   :  { %v3415_v42 = vor.u32 1.1754944e-38, %v3414_v40  ;;  %vm3413_vm3 = vcmp.eq.f32.partialorder %v3412_v56, 8.507059e+37  ;;  %3970 = vmatpush.bf16.msra.mxu0 %v6416_v25  ;;  %v6449_v40 = vld [vmem:[%s6650_s3 + $0x2] ss:$0 sm:$0xff] }
0x2a2f   :  { %v5419_v22 = vpop.eup %5418  ;;  %3971 = vmatpush.bf16.msra.mxu0 %v6421_v54 }
0x2a30   :  { %v3404_v6 = vmul.f32 %v5419_v22, %v3401_v47  ;;  %vm3409_vm0 = vweird.f32 %v5419_v22  ;;  %v5421_v11 = vpop.eup %5420 }
0x2a31   :  { %vm3410_vm2 = vmor %vm3408_vm1, %vm3409_vm0  ;;  %v3402_v45 = vadd.f32 1.0, %v5421_v11 }
0x2a32   :  { %v3405_v51 = vsub.f32 1.0, %v3404_v6 }
0x2a33   :  { %5422 = vrcp.f32 %v3402_v45  ;;  %v3429_v61 = vand.u32 2147483648, %v3402_v45  ;;  %vm3423_vm5 = vweird.f32 %v3402_v45  ;;  %v3427_v57 = vand.u32 2147483647, %v3402_v45 }
0x2a34   :  { %v3406_v8 = vmul.f32 %v5419_v22, %v3405_v51 }
0x2a35   :  { %v3430_v23 = vor.u32 1.1754944e-38, %v3429_v61  ;;  %vm3428_vm7 = vcmp.eq.f32.partialorder %v3427_v57, 8.507059e+37 }
0x2a36   :  { %v3407_v18 = vadd.f32 %v5419_v22, %v3406_v8 }
0x2a38   :  { %v3411_v49 = vsel %vm3410_vm2, %v5419_v22, %v3407_v18 }
0x2a39   :  { %v3416_v16 = vsel %vm3413_vm3, %v3415_v42, %v3411_v49  ;;  %v5423_v5 = vpop.eup %5422 }
0x2a3a   :  { %v3419_v36 = vmul.f32 %v5423_v5, %v3402_v45  ;;  %vm3424_vm4 = vweird.f32 %v5423_v5  ;;  %v3435_v13 = vmul.f32 %v3416_v16, %v6368_v59  ;;  %v5024_v59 = vld [vmem:[#allocation7 + $0x28] sm:$0xff] }
0x2a3b   :  { %vm3425_vm6 = vmor %vm3423_vm5, %vm3424_vm4  ;;  %5029 = vmatpush.bf16.msrb.mxu2 %v5024_v59  ;;  %3589 = vmatpush.bf16.msra.mxu1 %v5024_v59 }
0x2a3c   :  { %v3420_v44 = vsub.f32 1.0, %v3419_v36 }
0x2a3e   :  { %v3421_v48 = vmul.f32 %v5423_v5, %v3420_v44 }
0x2a40   :  { %v3422_v0 = vadd.f32 %v5423_v5, %v3421_v48 }
0x2a42   :  { %v3426_v12 = vsel %vm3425_vm6, %v5423_v5, %v3422_v0 }
0x2a43   :  { %v3431_v28 = vsel %vm3428_vm7, %v3430_v23, %v3426_v12 }
0x2a44   :  { %v3436_v46 = vmul.f32 %v3431_v28, %v6372_v2  ;;  %v5023_v2 = vld [vmem:[#allocation7 + $0x20] sm:$0xff] }
0x2a45   :  { %5030 = vmatpush.bf16.msrb.mxu2 %v5023_v2  ;;  %3590 = vmatpush.bf16.msra.mxu1 %v5023_v2 }
0x2a49   :  { %3673 = vmatpush.bf16.msra.mxu2 %v6416_v25 }
0x2a4d   :  { %3674 = vmatpush.bf16.msra.mxu2 %v6421_v54 }
0x2a78   :  { %v3440_v17 = vpop.permute.xlu2 %3439 }
0x2a79   :  { %v3445_v14 = vmul.f32 %v3440_v17, %v3416_v16 }
0x2a7b   :  { %3449 = vrot.lane.b32.xlu1 %v3445_v14, %s5644_s0 }
0x2a98   :  { %v3442_v26 = vpop.permute.xlu0 %3441 }
0x2a99   :  { %v3446_v41 = vmul.f32 %v3442_v26, %v3431_v28 }
0x2a9b   :  { %3451 = vrot.lane.b32.xlu2 %v3446_v41, %s5644_s0 }
0x2aa3   :  { %3345 = vrot.lane.b32.xlu2 %v6382_v29, %s5644_s0 }
0x2aed   :  { %v3450_v21 = vpop.permute.xlu1 %3449 }
0x2aee   :  { %v3455_v30 = vadd.f32 %v3450_v21, %v3435_v13 }
0x2af0   :  { %5424 = vtanh.f32 %v3455_v30 }
0x2af5   :  { %v3452_v34 = vpop.permute.xlu2 %3451 }
0x2af6   :  { %v5425_v19 = vpop.eup %5424  ;;  %v3456_v27 = vadd.f32 %v3452_v34, %v3436_v46 }
0x2af7   :  { %3461 = vrot.lane.b32.xlu0 %v5425_v19, %s5637_s7 }
0x2af8   :  { %5426 = vtanh.f32 %v3456_v27 }
0x2afd   :  { %v3346_v1 = vpop.permute.xlu2 %3345 }
0x2afe   :  { %v5427_v39 = vpop.eup %5426  ;;  %3351 = vst.msk [vmem:[#allocation2 + $0x30] sm:$0xf] %vm195_vm11, %v3346_v1 }
0x2aff   :  { %3463 = vrot.lane.b32.xlu1 %v5427_v39, %s5637_s7  ;;  %3347 = vrot.lane.b32.xlu0 %v6384_v4, %s5644_s0 }
0x2b07   :  { %2577 = vrot.lane.b32.xlu0 %v6133_v62, %s5644_s0 }
0x2b69   :  { %v3462_v29 = vpop.permute.xlu0 %3461 }
0x2b6a   :  { %v3467_v55 = vmul.f32 %v3462_v29, %v3416_v16 }
0x2b6c   :  { %v3469_v38 = vpack.c.bf16 %v3467_v55, %v3467_v55 }
0x2b6e   :  { %3473 = vrot.lane.b32.xlu1 %v3469_v38, %s5644_s0 }
0x2b71   :  { %v3464_v7 = vpop.permute.xlu1 %3463  ;;  %v3348_v20 = vpop.permute.xlu0 %3347 }
0x2b72   :  { %v3468_v52 = vmul.f32 %v3464_v7, %v3431_v28  ;;  %3352 = vst.msk [vmem:[#allocation2 + $0x34] sm:$0xf] %vm195_vm11, %v3348_v20 }
0x2b74   :  { %v3470_v4 = vpack.c.bf16 %v3468_v52, %v3468_v52 }
0x2b76   :  { %3475 = vrot.lane.b32.xlu2 %v3470_v4, %s5644_s0  ;;  %2579 = vrot.lane.b32.xlu1 %v6137_v31, %s5644_s0 }
0x2b79   :  { %v2578_v62 = vpop.permute.xlu0 %2577  ;;  %v5021_v50 = vld [vmem:[#allocation2 + $0x30] sm:$0xff] }
0x2b7a   :  { %2583 = vst.msk [vmem:[#allocation2] sm:$0xf] %vm195_vm11, %v2578_v62  ;;  %4905 = vmatmul.msk.bf16.vlgmr.msrb.gmra.mxu2 %vm91_vm8, %v5021_v50 }
0x2b7b   :  { %3871 = vmatpush.bf16.msrb.mxu2 %v6416_v25 }
0x2b7f   :  { %3872 = vmatpush.bf16.msrb.mxu2 %v6421_v54 }
0x2bd0   :  { %v3476_v31 = vpop.permute.xlu2 %3475 }
0x2bd1   :  { %3480 = vst.msk [vmem:[#allocation2 + $0x3c] sm:$0xf] %vm195_vm11, %v3476_v31 }
0x2be0   :  { %v3474_v58 = vpop.permute.xlu1 %3473 }
0x2be1   :  { %3479 = vst.msk [vmem:[#allocation2 + $0x38] sm:$0xf] %vm195_vm11, %v3474_v58 }
0x2be8   :  { %v2580_v63 = vpop.permute.xlu1 %2579  ;;  %v5022_v47 = vld [vmem:[#allocation2 + $0x38] sm:$0xff] }
0x2be9   :  { %2584 = vst.msk [vmem:[#allocation2 + $0x4] sm:$0xf] %vm195_vm11, %v2580_v63  ;;  %4906 = vmatmul.msk.bf16.gmra.mxu2 %vm91_vm8, %v5022_v47 }
0x2bf0   :  { %v5015_v22 = vld [vmem:[#allocation2] sm:$0xff] }
0x2bf1   :  { %4899 = vmatmul.msk.bf16.vlgmr.msra.gmra.mxu1 %vm91_vm8, %v5015_v22 }
0x2bf9   :  { %3675 = vmatmul.bf16.vlgmr.msra.gmra.mxu2 %v5643_v3 }
0x2bfa   :  { %4069 = vmatpush.bf16.msra.mxu2 %v6416_v25 }
0x2bfd   :  { %v6438_v6 = vpop.f32.mrf.mxu2 }
0x2bfe   :  { %4070 = vmatpush.bf16.msra.mxu2 %v6421_v54 }
0x2c05   :  { %v6440_v51 = vpop.f32.mrf.mxu2 }
0x2c6c   :  { %v6442_v15 = vpop.f32.mrf.mxu2 }
0x2c6e   :  { %v3592_v18 = vpop.f32.mrf.mxu1 }
0x2c6f   :  { %v3593_v3 = vadd.f32 %v6449_v40, %v3592_v18 }
0x2c74   :  { %v6444_v8 = vpop.f32.mrf.mxu2 }
0x2c76   :  { %v3594_v49 = vpop.f32.mrf.mxu1 }
0x2c77   :  { %v3595_v42 = vadd.f32 %v6449_v40, %v3594_v49 }
0x2c7c   :  { %v3676_v56 = vpop.f32.mrf.mxu2 }
0x2c7d   :  { %v3681_v11 = vadd.f32 %v3676_v56, %v3593_v3 }
0x2c7f   :  { %5428 = vtanh.f32 %v3681_v11  ;;  %v4915_v5 = vmul.f32 -1.442695, %v3681_v11 }
0x2c84   :  { %v3678_v45 = vpop.f32.mrf.mxu2 }
0x2c85   :  { %v5429_v17 = vpop.eup %5428  ;;  %v3682_v16 = vadd.f32 %v3678_v45, %v3595_v42 }
0x2c86   :  { %3727 = vrot.lane.b32.xlu2 %v5429_v17, %s5637_s7 }
0x2c87   :  { %5430 = vtanh.f32 %v3682_v16  ;;  %v4916_v57 = vmul.f32 -1.442695, %v3682_v16 }
0x2c88   :  { %5432 = vpow2.f32 %v4915_v5 }
0x2c8d   :  { %v5431_v14 = vpop.eup %5430 }
0x2c8e   :  { %3729 = vrot.lane.b32.xlu0 %v5431_v14, %s5637_s7  ;;  %v5433_v36 = vpop.eup %5432 }
0x2c8f   :  { %v3689_v44 = vadd.f32 1.0, %v5433_v36 }
0x2c91   :  { %5434 = vrcp.f32 %v3689_v44  ;;  %v3702_v26 = vand.u32 2147483648, %v3689_v44  ;;  %vm3696_vm10 = vweird.f32 %v3689_v44  ;;  %v3700_v28 = vand.u32 2147483647, %v3689_v44 }
0x2c92   :  { %5436 = vpow2.f32 %v4916_v57 }
0x2c93   :  { %v3703_v21 = vor.u32 1.1754944e-38, %v3702_v26  ;;  %vm3701_vm13 = vcmp.eq.f32.partialorder %v3700_v28, 8.507059e+37 }
0x2c97   :  { %v5435_v48 = vpop.eup %5434 }
0x2c98   :  { %v3692_v0 = vmul.f32 %v5435_v48, %v3689_v44  ;;  %vm3697_vm9 = vweird.f32 %v5435_v48  ;;  %v5437_v41 = vpop.eup %5436 }
0x2c99   :  { %vm3698_vm12 = vmor %vm3696_vm10, %vm3697_vm9  ;;  %v3690_v30 = vadd.f32 1.0, %v5437_v41 }
0x2c9a   :  { %v3693_v61 = vsub.f32 1.0, %v3692_v0 }
0x2c9b   :  { %5438 = vrcp.f32 %v3690_v30  ;;  %v3717_v29 = vand.u32 2147483648, %v3690_v30  ;;  %vm3711_vm15 = vweird.f32 %v3690_v30  ;;  %v3715_v55 = vand.u32 2147483647, %v3690_v30 }
0x2c9c   :  { %v3694_v12 = vmul.f32 %v5435_v48, %v3693_v61 }
0x2c9d   :  { %v3718_v7 = vor.u32 1.1754944e-38, %v3717_v29  ;;  %vm3716_vm1 = vcmp.eq.f32.partialorder %v3715_v55, 8.507059e+37 }
0x2c9e   :  { %v3695_v23 = vadd.f32 %v5435_v48, %v3694_v12 }
0x2ca0   :  { %v3699_v13 = vsel %vm3698_vm12, %v5435_v48, %v3695_v23 }
0x2ca1   :  { %v3704_v34 = vsel %vm3701_vm13, %v3703_v21, %v3699_v13  ;;  %v5439_v27 = vpop.eup %5438 }
0x2ca2   :  { %v3707_v1 = vmul.f32 %v5439_v27, %v3690_v30  ;;  %vm3712_vm14 = vweird.f32 %v5439_v27  ;;  %v3723_v62 = vmul.f32 0.0, %v3704_v34 }
0x2ca3   :  { %vm3713_vm0 = vmor %vm3711_vm15, %vm3712_vm14 }
0x2ca4   :  { %v3708_v39 = vsub.f32 1.0, %v3707_v1 }
0x2ca6   :  { %v3709_v59 = vmul.f32 %v5439_v27, %v3708_v39 }
0x2ca8   :  { %v3710_v2 = vadd.f32 %v5439_v27, %v3709_v59 }
0x2caa   :  { %v3714_v38 = vsel %vm3713_vm0, %v5439_v27, %v3710_v2 }
0x2cab   :  { %v3719_v52 = vsel %vm3716_vm1, %v3718_v7, %v3714_v38 }
0x2cac   :  { %v3724_v58 = vmul.f32 0.0, %v3719_v52 }
0x2ce0   :  { %v3728_v46 = vpop.permute.xlu2 %3727 }
0x2ce1   :  { %v3733_v19 = vmul.f32 %v3728_v46, %v3704_v34 }
0x2ce3   :  { %3737 = vrot.lane.b32.xlu1 %v3733_v19, %s5644_s0 }
0x2d00   :  { %v3730_v20 = vpop.permute.xlu0 %3729 }
0x2d01   :  { %v3734_v4 = vmul.f32 %v3730_v20, %v3719_v52 }
0x2d03   :  { %3739 = vrot.lane.b32.xlu2 %v3734_v4, %s5644_s0 }
0x2d0b   :  { %2705 = vrot.lane.b32.xlu2 %v6171_v35, %s5644_s0 }
0x2d55   :  { %v3738_v50 = vpop.permute.xlu1 %3737 }
0x2d56   :  { %v6459_v31 = vadd.f32 %v3738_v50, %v3723_v62 }
0x2d58   :  { %5440 = vtanh.f32 %v6459_v31 }
0x2d5d   :  { %v3740_v63 = vpop.permute.xlu2 %3739 }
0x2d5e   :  { %v5441_v47 = vpop.eup %5440  ;;  %v6462_v22 = vadd.f32 %v3740_v63, %v3724_v58 }
0x2d5f   :  { %3749 = vrot.lane.b32.xlu0 %v5441_v47, %s5637_s7 }
0x2d60   :  { %5442 = vtanh.f32 %v6462_v22 }
0x2d65   :  { %v2706_v18 = vpop.permute.xlu2 %2705 }
0x2d66   :  { %v5443_v3 = vpop.eup %5442  ;;  %2711 = vst.msk [vmem:[#allocation2 + $0x8] sm:$0xf] %vm195_vm11, %v2706_v18 }
0x2d67   :  { %3751 = vrot.lane.b32.xlu1 %v5443_v3, %s5637_s7  ;;  %2707 = vrot.lane.b32.xlu0 %v6174_v43, %s5644_s0 }
0x2dd1   :  { %v3750_v35 = vpop.permute.xlu0 %3749 }
0x2dd2   :  { %v3755_v49 = vmul.f32 %v3750_v35, %v3704_v34 }
0x2dd9   :  { %v3752_v56 = vpop.permute.xlu1 %3751  ;;  %v2708_v11 = vpop.permute.xlu0 %2707 }
0x2dda   :  { %v3756_v42 = vmul.f32 %v3752_v56, %v3719_v52  ;;  %2712 = vst.msk [vmem:[#allocation2 + $0xc] sm:$0xf] %vm195_vm11, %v2708_v11 }
0x2ddc   :  { %v3759_v45 = vpack.c.bf16 %v3756_v42, %v3755_v49 }
0x2dde   :  { %3761 = vrot.lane.b32.xlu1 %v3759_v45, %s5644_s0 }
0x2de1   :  { %v5016_v17 = vld [vmem:[#allocation2 + $0x8] sm:$0xff] }
0x2de2   :  { %4900 = vmatmul.msk.bf16.gmra.mxu1 %vm91_vm8, %v5016_v17 }
0x2e50   :  { %v3762_v16 = vpop.permute.xlu1 %3761 }
0x2e51   :  { %4917 = vmatmul.msk.bf16.vlgmr.msrb.gmra.mxu0 %vm91_vm8, %v3762_v16 }
0x2e52   :  { %4168 = vmatpush.bf16.msrb.mxu0 %v6416_v25 }
0x2e56   :  { %4169 = vmatpush.bf16.msrb.mxu0 %v6421_v54 }
0x2e5f   :  { %v3597_v43 = vpop.f32.mrf.mxu1 }
0x2e60   :  { %v3598_v14 = vadd.f32 %v6449_v40, %v3597_v43 }
0x2e67   :  { %v3599_v44 = vpop.f32.mrf.mxu1 }
0x2e68   :  { %v3600_v48 = vadd.f32 %v6449_v40, %v3599_v44 }
0x2ece   :  { %v3775_v5 = vpop.f32.mrf.mxu0 }
0x2ecf   :  { %v3780_v36 = vadd.f32 %v3775_v5, %v3598_v14 }
0x2ed1   :  { %5444 = vtanh.f32 %v3780_v36  ;;  %v4918_v23 = vmul.f32 -1.442695, %v3780_v36 }
0x2ed6   :  { %v3777_v0 = vpop.f32.mrf.mxu0 }
0x2ed7   :  { %v5445_v61 = vpop.eup %5444  ;;  %v3781_v57 = vadd.f32 %v3777_v0, %v3600_v48 }
0x2ed8   :  { %3826 = vrot.lane.b32.xlu2 %v5445_v61, %s5637_s7 }
0x2ed9   :  { %5446 = vtanh.f32 %v3781_v57  ;;  %v4919_v30 = vmul.f32 -1.442695, %v3781_v57 }
0x2eda   :  { %5448 = vpow2.f32 %v4918_v23 }
0x2edf   :  { %v5447_v12 = vpop.eup %5446 }
0x2ee0   :  { %3828 = vrot.lane.b32.xlu0 %v5447_v12, %s5637_s7  ;;  %v5449_v26 = vpop.eup %5448 }
0x2ee1   :  { %v3788_v28 = vadd.f32 1.0, %v5449_v26 }
0x2ee3   :  { %5450 = vrcp.f32 %v3788_v28  ;;  %v3801_v19 = vand.u32 2147483648, %v3788_v28  ;;  %vm3795_vm3 = vweird.f32 %v3788_v28  ;;  %v3799_v27 = vand.u32 2147483647, %v3788_v28 }
0x2ee4   :  { %5452 = vpow2.f32 %v4919_v30 }
0x2ee5   :  { %v3802_v59 = vor.u32 1.1754944e-38, %v3801_v19  ;;  %vm3800_vm5 = vcmp.eq.f32.partialorder %v3799_v27, 8.507059e+37 }
0x2ee9   :  { %v5451_v41 = vpop.eup %5450 }
0x2eea   :  { %v3791_v13 = vmul.f32 %v5451_v41, %v3788_v28  ;;  %vm3796_vm2 = vweird.f32 %v5451_v41  ;;  %v5453_v1 = vpop.eup %5452 }
0x2eeb   :  { %vm3797_vm4 = vmor %vm3795_vm3, %vm3796_vm2  ;;  %v3789_v2 = vadd.f32 1.0, %v5453_v1 }
0x2eec   :  { %v3792_v21 = vsub.f32 1.0, %v3791_v13 }
0x2eed   :  { %5454 = vrcp.f32 %v3789_v2  ;;  %v3816_v50 = vand.u32 2147483648, %v3789_v2  ;;  %vm3810_vm7 = vweird.f32 %v3789_v2  ;;  %v3814_v58 = vand.u32 2147483647, %v3789_v2 }
0x2eee   :  { %v3793_v46 = vmul.f32 %v5451_v41, %v3792_v21 }
0x2eef   :  { %v3817_v47 = vor.u32 1.1754944e-38, %v3816_v50  ;;  %vm3815_vm10 = vcmp.eq.f32.partialorder %v3814_v58, 8.507059e+37 }
0x2ef0   :  { %v3794_v34 = vadd.f32 %v5451_v41, %v3793_v46 }
0x2ef2   :  { %v3798_v39 = vsel %vm3797_vm4, %v5451_v41, %v3794_v34 }
0x2ef3   :  { %v3803_v55 = vsel %vm3800_vm5, %v3802_v59, %v3798_v39  ;;  %v5455_v7 = vpop.eup %5454 }
0x2ef4   :  { %v3806_v20 = vmul.f32 %v5455_v7, %v3789_v2  ;;  %vm3811_vm6 = vweird.f32 %v5455_v7  ;;  %v3822_v56 = vmul.f32 %v3803_v55, %v6459_v31 }
0x2ef5   :  { %vm3812_vm9 = vmor %vm3810_vm7, %vm3811_vm6 }
0x2ef6   :  { %v3807_v52 = vsub.f32 1.0, %v3806_v20 }
0x2ef8   :  { %v3808_v4 = vmul.f32 %v5455_v7, %v3807_v52 }
0x2efa   :  { %v3809_v62 = vadd.f32 %v5455_v7, %v3808_v4 }
0x2efc   :  { %v3813_v63 = vsel %vm3812_vm9, %v5455_v7, %v3809_v62 }
0x2efd   :  { %v3818_v3 = vsel %vm3815_vm10, %v3817_v47, %v3813_v63 }
0x2efe   :  { %v3823_v42 = vmul.f32 %v3818_v3, %v6462_v22 }
0x2f32   :  { %v3827_v29 = vpop.permute.xlu2 %3826 }
0x2f33   :  { %v3832_v38 = vmul.f32 %v3827_v29, %v3803_v55 }
0x2f35   :  { %3836 = vrot.lane.b32.xlu1 %v3832_v38, %s5644_s0 }
0x2f52   :  { %v3829_v18 = vpop.permute.xlu0 %3828 }
0x2f53   :  { %v3833_v35 = vmul.f32 %v3829_v18, %v3818_v3 }
0x2f55   :  { %3838 = vrot.lane.b32.xlu2 %v3833_v35, %s5644_s0 }
0x2f5d   :  { %2833 = vrot.lane.b32.xlu2 %v6202_v60, %s5644_s0 }
0x2fa7   :  { %v3837_v11 = vpop.permute.xlu1 %3836 }
0x2fa8   :  { %v6485_v49 = vadd.f32 %v3837_v11, %v3822_v56 }
0x2faa   :  { %5456 = vtanh.f32 %v6485_v49 }
0x2faf   :  { %v3839_v45 = vpop.permute.xlu2 %3838 }
0x2fb0   :  { %v5457_v17 = vpop.eup %5456  ;;  %v6489_v16 = vadd.f32 %v3839_v45, %v3823_v42 }
0x2fb1   :  { %3848 = vrot.lane.b32.xlu0 %v5457_v17, %s5637_s7 }
0x2fb2   :  { %5458 = vtanh.f32 %v6489_v16 }
0x2fb7   :  { %v2834_v43 = vpop.permute.xlu2 %2833 }
0x2fb8   :  { %v5459_v14 = vpop.eup %5458  ;;  %2839 = vst.msk [vmem:[#allocation2 + $0x10] sm:$0xf] %vm195_vm11, %v2834_v43 }
0x2fb9   :  { %3850 = vrot.lane.b32.xlu1 %v5459_v14, %s5637_s7  ;;  %2835 = vrot.lane.b32.xlu0 %v6205_v37, %s5644_s0 }
0x3023   :  { %v3849_v60 = vpop.permute.xlu0 %3848 }
0x3024   :  { %v3854_v5 = vmul.f32 %v3849_v60, %v3803_v55 }
0x302b   :  { %v3851_v31 = vpop.permute.xlu1 %3850  ;;  %v2836_v22 = vpop.permute.xlu0 %2835 }
0x302c   :  { %v3855_v36 = vmul.f32 %v3851_v31, %v3818_v3  ;;  %2840 = vst.msk [vmem:[#allocation2 + $0x14] sm:$0xf] %vm195_vm11, %v2836_v22 }
0x302e   :  { %v3858_v44 = vpack.c.bf16 %v3855_v36, %v3854_v5 }
0x3030   :  { %3860 = vrot.lane.b32.xlu1 %v3858_v44, %s5644_s0 }
0x3033   :  { %v5017_v48 = vld [vmem:[#allocation2 + $0x10] sm:$0xff] }
0x3034   :  { %4901 = vmatmul.msk.bf16.gmra.mxu1 %vm91_vm8, %v5017_v48 }
0x30a2   :  { %v3861_v0 = vpop.permute.xlu1 %3860 }
0x30a3   :  { %4920 = vmatmul.msk.bf16.vlgmr.msrb.gmra.mxu2 %vm91_vm8, %v3861_v0 }
0x30a4   :  { %4267 = vmatpush.bf16.msrb.mxu2 %v6416_v25 }
0x30a8   :  { %4268 = vmatpush.bf16.msrb.mxu2 %v6421_v54 }
0x30b1   :  { %v3602_v37 = vpop.f32.mrf.mxu1 }
0x30b2   :  { %v3603_v61 = vadd.f32 %v6449_v40, %v3602_v37 }
0x30b9   :  { %v3604_v23 = vpop.f32.mrf.mxu1 }
0x30ba   :  { %v3605_v26 = vadd.f32 %v6449_v40, %v3604_v23 }
0x3126   :  { %v3874_v57 = vpop.f32.mrf.mxu2 }
0x3127   :  { %v3879_v12 = vadd.f32 %v3874_v57, %v3603_v61 }
0x3129   :  { %5460 = vtanh.f32 %v3879_v12  ;;  %v4921_v25 = vmul.f32 -1.442695, %v3879_v12 }
0x312e   :  { %v3876_v28 = vpop.f32.mrf.mxu2 }
0x312f   :  { %v5461_v41 = vpop.eup %5460  ;;  %v3880_v13 = vadd.f32 %v3876_v28, %v3605_v26 }
0x3130   :  { %3925 = vrot.lane.b32.xlu2 %v5461_v41, %s5637_s7 }
0x3131   :  { %5462 = vtanh.f32 %v3880_v13  ;;  %v4922_v27 = vmul.f32 -1.442695, %v3880_v13 }
0x3132   :  { %5464 = vpow2.f32 %v4921_v25 }
0x3137   :  { %v5463_v21 = vpop.eup %5462 }
0x3138   :  { %3927 = vrot.lane.b32.xlu0 %v5463_v21, %s5637_s7  ;;  %v5465_v54 = vpop.eup %5464 }
0x3139   :  { %v3887_v30 = vadd.f32 1.0, %v5465_v54 }
0x313b   :  { %5466 = vrcp.f32 %v3887_v30  ;;  %v3900_v59 = vand.u32 2147483648, %v3887_v30  ;;  %vm3894_vm13 = vweird.f32 %v3887_v30  ;;  %v3898_v2 = vand.u32 2147483647, %v3887_v30 }
0x313c   :  { %5468 = vpow2.f32 %v4922_v27 }
0x313d   :  { %v3901_v38 = vor.u32 1.1754944e-38, %v3900_v59  ;;  %vm3899_vm15 = vcmp.eq.f32.partialorder %v3898_v2, 8.507059e+37 }
0x3141   :  { %v5467_v46 = vpop.eup %5466 }
0x3142   :  { %v3890_v34 = vmul.f32 %v5467_v46, %v3887_v30  ;;  %vm3895_vm12 = vweird.f32 %v5467_v46  ;;  %v5469_v29 = vpop.eup %5468 }
0x3143   :  { %vm3896_vm14 = vmor %vm3894_vm13, %vm3895_vm12  ;;  %v3888_v7 = vadd.f32 1.0, %v5469_v29 }
0x3144   :  { %v3891_v19 = vsub.f32 1.0, %v3890_v34 }
0x3145   :  { %5470 = vrcp.f32 %v3888_v7  ;;  %v3915_v18 = vand.u32 2147483648, %v3888_v7  ;;  %vm3909_vm1 = vweird.f32 %v3888_v7  ;;  %v3913_v3 = vand.u32 2147483647, %v3888_v7 }
0x3146   :  { %v3892_v1 = vmul.f32 %v5467_v46, %v3891_v19 }
0x3147   :  { %v3916_v56 = vor.u32 1.1754944e-38, %v3915_v18  ;;  %vm3914_vm3 = vcmp.eq.f32.partialorder %v3913_v3, 8.507059e+37 }
0x3148   :  { %v3893_v39 = vadd.f32 %v5467_v46, %v3892_v1 }
0x314a   :  { %v3897_v55 = vsel %vm3896_vm14, %v5467_v46, %v3893_v39 }
0x314b   :  { %v3902_v52 = vsel %vm3899_vm15, %v3901_v38, %v3897_v55  ;;  %v5471_v62 = vpop.eup %5470 }
0x314c   :  { %v3905_v50 = vmul.f32 %v5471_v62, %v3888_v7  ;;  %vm3910_vm0 = vweird.f32 %v5471_v62  ;;  %v3921_v17 = vmul.f32 %v3902_v52, %v6485_v49 }
0x314d   :  { %vm3911_vm2 = vmor %vm3909_vm1, %vm3910_vm0 }
0x314e   :  { %v3906_v58 = vsub.f32 1.0, %v3905_v50 }
0x3150   :  { %v3907_v63 = vmul.f32 %v5471_v62, %v3906_v58 }
0x3152   :  { %v3908_v47 = vadd.f32 %v5471_v62, %v3907_v63 }
0x3154   :  { %v3912_v35 = vsel %vm3911_vm2, %v5471_v62, %v3908_v47 }
0x3155   :  { %v3917_v42 = vsel %vm3914_vm3, %v3916_v56, %v3912_v35 }
0x3156   :  { %v3922_v60 = vmul.f32 %v3917_v42, %v6489_v16 }
0x318a   :  { %v3926_v20 = vpop.permute.xlu2 %3925 }
0x318b   :  { %v3931_v4 = vmul.f32 %v3926_v20, %v3902_v52 }
0x318d   :  { %3935 = vrot.lane.b32.xlu1 %v3931_v4, %s5644_s0 }
0x31aa   :  { %v3928_v11 = vpop.permute.xlu0 %3927 }
0x31ab   :  { %v3932_v45 = vmul.f32 %v3928_v11, %v3917_v42 }
0x31ad   :  { %3937 = vrot.lane.b32.xlu2 %v3932_v45, %s5644_s0 }
0x31b5   :  { %2961 = vrot.lane.b32.xlu2 %v6233_v24, %s5644_s0 }
0x31ff   :  { %v3936_v43 = vpop.permute.xlu1 %3935 }
0x3200   :  { %v6512_v14 = vadd.f32 %v3936_v43, %v3921_v17 }
0x3202   :  { %5472 = vtanh.f32 %v6512_v14 }
0x3207   :  { %v3938_v31 = vpop.permute.xlu2 %3937 }
0x3208   :  { %v5473_v22 = vpop.eup %5472  ;;  %v6516_v5 = vadd.f32 %v3938_v31, %v3922_v60 }
0x3209   :  { %3947 = vrot.lane.b32.xlu0 %v5473_v22, %s5637_s7 }
0x320a   :  { %5474 = vtanh.f32 %v6516_v5 }
0x320f   :  { %v2962_v36 = vpop.permute.xlu2 %2961 }
0x3210   :  { %v5475_v44 = vpop.eup %5474  ;;  %2967 = vst.msk [vmem:[#allocation2 + $0x18] sm:$0xf] %vm195_vm11, %v2962_v36 }
0x3211   :  { %3949 = vrot.lane.b32.xlu1 %v5475_v44, %s5637_s7  ;;  %2963 = vrot.lane.b32.xlu0 %v6236_v53, %s5644_s0 }
0x327b   :  { %v3948_v24 = vpop.permute.xlu0 %3947 }
0x327c   :  { %v3953_v48 = vmul.f32 %v3948_v24, %v3902_v52 }
0x3283   :  { %v3950_v49 = vpop.permute.xlu1 %3949  ;;  %v2964_v16 = vpop.permute.xlu0 %2963 }
0x3284   :  { %v3954_v0 = vmul.f32 %v3950_v49, %v3917_v42  ;;  %2968 = vst.msk [vmem:[#allocation2 + $0x1c] sm:$0xf] %vm195_vm11, %v2964_v16 }
0x3286   :  { %v3957_v37 = vpack.c.bf16 %v3954_v0, %v3953_v48 }
0x3288   :  { %3959 = vrot.lane.b32.xlu1 %v3957_v37, %s5644_s0 }
0x328b   :  { %v5018_v61 = vld [vmem:[#allocation2 + $0x18] sm:$0xff] }
0x328c   :  { %4902 = vmatmul.msk.bf16.gmra.mxu1 %vm91_vm8, %v5018_v61 }
0x32fa   :  { %v3960_v57 = vpop.permute.xlu1 %3959 }
0x32fb   :  { %4923 = vmatmul.msk.bf16.vlgmr.msra.gmra.mxu0 %vm91_vm8, %v3960_v57 }
0x3309   :  { %v3607_v12 = vpop.f32.mrf.mxu1 }
0x330a   :  { %v3608_v23 = vadd.f32 %v6449_v40, %v3607_v12 }
0x3311   :  { %v3609_v28 = vpop.f32.mrf.mxu1 }
0x3312   :  { %v3610_v41 = vadd.f32 %v6449_v40, %v3609_v28 }
0x3378   :  { %v3973_v53 = vpop.f32.mrf.mxu0 }
0x3379   :  { %v3978_v26 = vadd.f32 %v3973_v53, %v3608_v23 }
0x337b   :  { %5476 = vtanh.f32 %v3978_v26  ;;  %v4924_v30 = vmul.f32 -1.442695, %v3978_v26 }
0x3380   :  { %v3975_v13 = vpop.f32.mrf.mxu0 }
0x3381   :  { %v5477_v21 = vpop.eup %5476  ;;  %v3979_v25 = vadd.f32 %v3975_v13, %v3610_v41 }
0x3382   :  { %4024 = vrot.lane.b32.xlu2 %v5477_v21, %s5637_s7 }
0x3383   :  { %5478 = vtanh.f32 %v3979_v25  ;;  %v4925_v39 = vmul.f32 -1.442695, %v3979_v25 }
0x3384   :  { %5480 = vpow2.f32 %v4924_v30 }
0x3389   :  { %v5479_v54 = vpop.eup %5478 }
0x338a   :  { %4026 = vrot.lane.b32.xlu0 %v5479_v54, %s5637_s7  ;;  %v5481_v46 = vpop.eup %5480 }
0x338b   :  { %v3986_v34 = vadd.f32 1.0, %v5481_v46 }
0x338d   :  { %5482 = vrcp.f32 %v3986_v34  ;;  %v3999_v29 = vand.u32 2147483648, %v3986_v34  ;;  %vm3993_vm5 = vweird.f32 %v3986_v34  ;;  %v3997_v55 = vand.u32 2147483647, %v3986_v34 }
0x338e   :  { %5484 = vpow2.f32 %v4925_v39 }
0x338f   :  { %v4000_v20 = vor.u32 1.1754944e-38, %v3999_v29  ;;  %vm3998_vm7 = vcmp.eq.f32.partialorder %v3997_v55, 8.507059e+37 }
0x3393   :  { %v5483_v19 = vpop.eup %5482 }
0x3394   :  { %v3989_v27 = vmul.f32 %v5483_v19, %v3986_v34  ;;  %vm3994_vm4 = vweird.f32 %v5483_v19  ;;  %v5485_v38 = vpop.eup %5484 }
0x3395   :  { %vm3995_vm6 = vmor %vm3993_vm5, %vm3994_vm4  ;;  %v3987_v52 = vadd.f32 1.0, %v5485_v38 }
0x3396   :  { %v3990_v1 = vsub.f32 1.0, %v3989_v27 }
0x3397   :  { %5486 = vrcp.f32 %v3987_v52  ;;  %v4014_v35 = vand.u32 2147483648, %v3987_v52  ;;  %vm4008_vm10 = vweird.f32 %v3987_v52  ;;  %v4012_v56 = vand.u32 2147483647, %v3987_v52 }
0x3398   :  { %v3991_v59 = vmul.f32 %v5483_v19, %v3990_v1 }
0x3399   :  { %v4015_v42 = vor.u32 1.1754944e-38, %v4014_v35  ;;  %vm4013_vm13 = vcmp.eq.f32.partialorder %v4012_v56, 8.507059e+37 }
0x339a   :  { %v3992_v2 = vadd.f32 %v5483_v19, %v3991_v59 }
0x339c   :  { %v3996_v7 = vsel %vm3995_vm6, %v5483_v19, %v3992_v2 }
0x339d   :  { %v4001_v62 = vsel %vm3998_vm7, %v4000_v20, %v3996_v7  ;;  %v5487_v58 = vpop.eup %5486 }
0x339e   :  { %v4004_v63 = vmul.f32 %v5487_v58, %v3987_v52  ;;  %vm4009_vm9 = vweird.f32 %v5487_v58  ;;  %v4020_v60 = vmul.f32 %v4001_v62, %v6512_v14 }
0x339f   :  { %vm4010_vm12 = vmor %vm4008_vm10, %vm4009_vm9 }
0x33a0   :  { %v4005_v47 = vsub.f32 1.0, %v4004_v63 }
0x33a2   :  { %v4006_v18 = vmul.f32 %v5487_v58, %v4005_v47 }
0x33a4   :  { %v4007_v3 = vadd.f32 %v5487_v58, %v4006_v18 }
0x33a6   :  { %v4011_v11 = vsel %vm4010_vm12, %v5487_v58, %v4007_v3 }
0x33a7   :  { %v4016_v17 = vsel %vm4013_vm13, %v4015_v42, %v4011_v11 }
0x33a8   :  { %v4021_v36 = vmul.f32 %v4016_v17, %v6516_v5 }
0x33dc   :  { %v4025_v4 = vpop.permute.xlu2 %4024 }
0x33dd   :  { %v4030_v50 = vmul.f32 %v4025_v4, %v4001_v62 }
0x33df   :  { %4034 = vrot.lane.b32.xlu1 %v4030_v50, %s5644_s0 }
0x33fc   :  { %v4027_v45 = vpop.permute.xlu0 %4026 }
0x33fd   :  { %v4031_v43 = vmul.f32 %v4027_v45, %v4016_v17 }
0x33ff   :  { %4036 = vrot.lane.b32.xlu2 %v4031_v43, %s5644_s0 }
0x3407   :  { %3089 = vrot.lane.b32.xlu2 %v6277_v33, %s5644_s0 }
0x3451   :  { %v4035_v31 = vpop.permute.xlu1 %4034 }
0x3452   :  { %v6537_v22 = vadd.f32 %v4035_v31, %v4020_v60 }
0x3454   :  { %5488 = vtanh.f32 %v6537_v22 }
0x3459   :  { %v4037_v44 = vpop.permute.xlu2 %4036 }
0x345a   :  { %v5489_v24 = vpop.eup %5488  ;;  %v6541_v49 = vadd.f32 %v4037_v44, %v4021_v36 }
0x345b   :  { %4046 = vrot.lane.b32.xlu0 %v5489_v24, %s5637_s7 }
0x345c   :  { %5490 = vtanh.f32 %v6541_v49 }
0x3461   :  { %v3090_v16 = vpop.permute.xlu2 %3089 }
0x3462   :  { %v5491_v48 = vpop.eup %5490  ;;  %3095 = vst.msk [vmem:[#allocation2 + $0x20] sm:$0xf] %vm195_vm11, %v3090_v16 }
0x3463   :  { %4048 = vrot.lane.b32.xlu1 %v5491_v48, %s5637_s7  ;;  %3091 = vrot.lane.b32.xlu0 %v6280_v9, %s5644_s0 }
0x34cd   :  { %v4047_v33 = vpop.permute.xlu0 %4046 }
0x34ce   :  { %v4052_v0 = vmul.f32 %v4047_v33, %v4001_v62 }
0x34d5   :  { %v4049_v14 = vpop.permute.xlu1 %4048  ;;  %v3092_v5 = vpop.permute.xlu0 %3091 }
0x34d6   :  { %v4053_v37 = vmul.f32 %v4049_v14, %v4016_v17  ;;  %3096 = vst.msk [vmem:[#allocation2 + $0x24] sm:$0xf] %vm195_vm11, %v3092_v5 }
0x34d8   :  { %v4056_v61 = vpack.c.bf16 %v4053_v37, %v4052_v0 }
0x34da   :  { %4058 = vrot.lane.b32.xlu1 %v4056_v61, %s5644_s0 }
0x34dd   :  { %v5019_v57 = vld [vmem:[#allocation2 + $0x20] sm:$0xff] }
0x34de   :  { %4903 = vmatmul.msk.bf16.gmra.mxu1 %vm91_vm8, %v5019_v57 }
0x354c   :  { %v4059_v12 = vpop.permute.xlu1 %4058 }
0x354d   :  { %4926 = vmatmul.msk.bf16.vlgmr.msra.gmra.mxu2 %vm91_vm8, %v4059_v12 }
0x355b   :  { %v3612_v23 = vpop.f32.mrf.mxu1 }
0x355c   :  { %v3613_v53 = vadd.f32 %v6449_v40, %v3612_v23 }
0x3563   :  { %v3614_v28 = vpop.f32.mrf.mxu1 }
0x3564   :  { %v3615_v41 = vadd.f32 %v6449_v40, %v3614_v28 }
0x35d0   :  { %v4072_v9 = vpop.f32.mrf.mxu2 }
0x35d1   :  { %v4077_v26 = vadd.f32 %v4072_v9, %v3613_v53 }
0x35d3   :  { %5492 = vtanh.f32 %v4077_v26  ;;  %v4927_v30 = vmul.f32 -1.442695, %v4077_v26 }
0x35d8   :  { %v4074_v13 = vpop.f32.mrf.mxu2 }
0x35d9   :  { %v5493_v21 = vpop.eup %5492  ;;  %v4078_v25 = vadd.f32 %v4074_v13, %v3615_v41 }
0x35da   :  { %4123 = vrot.lane.b32.xlu2 %v5493_v21, %s5637_s7 }
0x35db   :  { %5494 = vtanh.f32 %v4078_v25  ;;  %v4928_v39 = vmul.f32 -1.442695, %v4078_v25 }
0x35dc   :  { %5496 = vpow2.f32 %v4927_v30 }
0x35e1   :  { %v5495_v54 = vpop.eup %5494 }
0x35e2   :  { %4125 = vrot.lane.b32.xlu0 %v5495_v54, %s5637_s7  ;;  %v5497_v46 = vpop.eup %5496 }
0x35e3   :  { %v4085_v34 = vadd.f32 1.0, %v5497_v46 }
0x35e5   :  { %5498 = vrcp.f32 %v4085_v34  ;;  %v4098_v29 = vand.u32 2147483648, %v4085_v34  ;;  %vm4092_vm15 = vweird.f32 %v4085_v34  ;;  %v4096_v55 = vand.u32 2147483647, %v4085_v34 }
0x35e6   :  { %5500 = vpow2.f32 %v4928_v39 }
0x35e7   :  { %v4099_v20 = vor.u32 1.1754944e-38, %v4098_v29  ;;  %vm4097_vm1 = vcmp.eq.f32.partialorder %v4096_v55, 8.507059e+37 }
0x35eb   :  { %v5499_v19 = vpop.eup %5498 }
0x35ec   :  { %v4088_v27 = vmul.f32 %v5499_v19, %v4085_v34  ;;  %vm4093_vm14 = vweird.f32 %v5499_v19  ;;  %v5501_v38 = vpop.eup %5500 }
0x35ed   :  { %vm4094_vm0 = vmor %vm4092_vm15, %vm4093_vm14  ;;  %v4086_v52 = vadd.f32 1.0, %v5501_v38 }
0x35ee   :  { %v4089_v1 = vsub.f32 1.0, %v4088_v27 }
0x35ef   :  { %5502 = vrcp.f32 %v4086_v52  ;;  %v4113_v35 = vand.u32 2147483648, %v4086_v52  ;;  %vm4107_vm3 = vweird.f32 %v4086_v52  ;;  %v4111_v56 = vand.u32 2147483647, %v4086_v52 }
0x35f0   :  { %v4090_v59 = vmul.f32 %v5499_v19, %v4089_v1 }
0x35f1   :  { %v4114_v42 = vor.u32 1.1754944e-38, %v4113_v35  ;;  %vm4112_vm5 = vcmp.eq.f32.partialorder %v4111_v56, 8.507059e+37 }
0x35f2   :  { %v4091_v2 = vadd.f32 %v5499_v19, %v4090_v59 }
0x35f4   :  { %v4095_v7 = vsel %vm4094_vm0, %v5499_v19, %v4091_v2 }
0x35f5   :  { %v4100_v62 = vsel %vm4097_vm1, %v4099_v20, %v4095_v7  ;;  %v5503_v58 = vpop.eup %5502 }
0x35f6   :  { %v4103_v63 = vmul.f32 %v5503_v58, %v4086_v52  ;;  %vm4108_vm2 = vweird.f32 %v5503_v58  ;;  %v4119_v60 = vmul.f32 %v4100_v62, %v6537_v22 }
0x35f7   :  { %vm4109_vm4 = vmor %vm4107_vm3, %vm4108_vm2 }
0x35f8   :  { %v4104_v47 = vsub.f32 1.0, %v4103_v63 }
0x35fa   :  { %v4105_v18 = vmul.f32 %v5503_v58, %v4104_v47 }
0x35fc   :  { %v4106_v3 = vadd.f32 %v5503_v58, %v4105_v18 }
0x35fe   :  { %v4110_v11 = vsel %vm4109_vm4, %v5503_v58, %v4106_v3 }
0x35ff   :  { %v4115_v17 = vsel %vm4112_vm5, %v4114_v42, %v4110_v11 }
0x3600   :  { %v4120_v44 = vmul.f32 %v4115_v17, %v6541_v49 }
0x3634   :  { %v4124_v4 = vpop.permute.xlu2 %4123 }
0x3635   :  { %v4129_v50 = vmul.f32 %v4124_v4, %v4100_v62 }
0x3637   :  { %4133 = vrot.lane.b32.xlu1 %v4129_v50, %s5644_s0 }
0x3654   :  { %v4126_v45 = vpop.permute.xlu0 %4125 }
0x3655   :  { %v4130_v43 = vmul.f32 %v4126_v45, %v4115_v17 }
0x3657   :  { %4135 = vrot.lane.b32.xlu2 %v4130_v43, %s5644_s0 }
0x365f   :  { %3217 = vrot.lane.b32.xlu2 %v6328_v32, %s5644_s0 }
0x36a9   :  { %v4134_v31 = vpop.permute.xlu1 %4133 }
0x36aa   :  { %v6562_v36 = vadd.f32 %v4134_v31, %v4119_v60 }
0x36ac   :  { %5504 = vtanh.f32 %v6562_v36 }
0x36b1   :  { %v4136_v24 = vpop.permute.xlu2 %4135 }
0x36b2   :  { %v5505_v16 = vpop.eup %5504  ;;  %v6566_v48 = vadd.f32 %v4136_v24, %v4120_v44 }
0x36b3   :  { %4145 = vrot.lane.b32.xlu0 %v5505_v16, %s5637_s7 }
0x36b4   :  { %5506 = vtanh.f32 %v6566_v48 }
0x36b9   :  { %v3218_v33 = vpop.permute.xlu2 %3217 }
0x36ba   :  { %v5507_v14 = vpop.eup %5506  ;;  %3223 = vst.msk [vmem:[#allocation2 + $0x28] sm:$0xf] %vm195_vm11, %v3218_v33 }
0x36bb   :  { %4147 = vrot.lane.b32.xlu1 %v5507_v14, %s5637_s7  ;;  %3219 = vrot.lane.b32.xlu0 %v6330_v10, %s5644_s0 }
0x3725   :  { %v4146_v32 = vpop.permute.xlu0 %4145 }
0x3726   :  { %v4151_v5 = vmul.f32 %v4146_v32, %v4100_v62 }
0x372d   :  { %v4148_v22 = vpop.permute.xlu1 %4147  ;;  %v3220_v49 = vpop.permute.xlu0 %3219 }
0x372e   :  { %v4152_v0 = vmul.f32 %v4148_v22, %v4115_v17  ;;  %3224 = vst.msk [vmem:[#allocation2 + $0x2c] sm:$0xf] %vm195_vm11, %v3220_v49 }
0x3730   :  { %v4155_v37 = vpack.c.bf16 %v4152_v0, %v4151_v5 }
0x3732   :  { %4157 = vrot.lane.b32.xlu1 %v4155_v37, %s5644_s0 }
0x3735   :  { %v5020_v61 = vld [vmem:[#allocation2 + $0x28] sm:$0xff] }
0x3736   :  { %4904 = vmatmul.msk.bf16.gmra.mxu1 %vm91_vm8, %v5020_v61 }
0x37a4   :  { %v4158_v57 = vpop.permute.xlu1 %4157 }
0x37a5   :  { %4929 = vmatmul.msk.bf16.vlgmr.msrb.gmra.mxu0 %vm91_vm8, %v4158_v57 }
0x37b3   :  { %v3617_v12 = vpop.f32.mrf.mxu1 }
0x37b4   :  { %v3618_v23 = vadd.f32 %v6449_v40, %v3617_v12 }
0x37bb   :  { %v3619_v9 = vpop.f32.mrf.mxu1 }
0x37bc   :  { %v3620_v26 = vadd.f32 %v6449_v40, %v3619_v9 }
0x3822   :  { %v4171_v10 = vpop.f32.mrf.mxu0 }
0x3823   :  { %v4176_v53 = vadd.f32 %v4171_v10, %v3618_v23 }
0x3825   :  { %5508 = vtanh.f32 %v4176_v53  ;;  %v4930_v25 = vmul.f32 -1.442695, %v4176_v53 }
0x382a   :  { %v4173_v28 = vpop.f32.mrf.mxu0 }
0x382b   :  { %v5509_v41 = vpop.eup %5508  ;;  %v4177_v13 = vadd.f32 %v4173_v28, %v3620_v26 }
0x382c   :  { %4222 = vrot.lane.b32.xlu2 %v5509_v41, %s5637_s7 }
0x382d   :  { %5510 = vtanh.f32 %v4177_v13  ;;  %v4931_v27 = vmul.f32 -1.442695, %v4177_v13 }
0x382e   :  { %5512 = vpow2.f32 %v4930_v25 }
0x3833   :  { %v5511_v21 = vpop.eup %5510 }
0x3834   :  { %4224 = vrot.lane.b32.xlu0 %v5511_v21, %s5637_s7  ;;  %v5513_v54 = vpop.eup %5512 }
0x3835   :  { %v4184_v30 = vadd.f32 1.0, %v5513_v54 }
0x3837   :  { %5514 = vrcp.f32 %v4184_v30  ;;  %v4197_v39 = vand.u32 2147483648, %v4184_v30  ;;  %vm4191_vm6 = vweird.f32 %v4184_v30  ;;  %v4195_v59 = vand.u32 2147483647, %v4184_v30 }
0x3838   :  { %5516 = vpow2.f32 %v4931_v27 }
0x3839   :  { %v4198_v55 = vor.u32 1.1754944e-38, %v4197_v39  ;;  %vm4196_vm9 = vcmp.eq.f32.partialorder %v4195_v59, 8.507059e+37 }
0x383d   :  { %v5515_v46 = vpop.eup %5514 }
0x383e   :  { %v4187_v34 = vmul.f32 %v5515_v46, %v4184_v30  ;;  %vm4192_vm11 = vweird.f32 %v5515_v46  ;;  %v5517_v2 = vpop.eup %5516 }
0x383f   :  { %vm4193_vm7 = vmor %vm4191_vm6, %vm4192_vm11  ;;  %v4185_v38 = vadd.f32 1.0, %v5517_v2 }
0x3840   :  { %v4188_v19 = vsub.f32 1.0, %v4187_v34 }
0x3841   :  { %5518 = vrcp.f32 %v4185_v38  ;;  %v4212_v47 = vand.u32 2147483648, %v4185_v38  ;;  %vm4206_vm12 = vweird.f32 %v4185_v38  ;;  %v4210_v18 = vand.u32 2147483647, %v4185_v38 }
0x3842   :  { %v4189_v1 = vmul.f32 %v5515_v46, %v4188_v19 }
0x3843   :  { %v4213_v35 = vor.u32 1.1754944e-38, %v4212_v47  ;;  %vm4211_vm14 = vcmp.eq.f32.partialorder %v4210_v18, 8.507059e+37 }
0x3844   :  { %v4190_v40 = vadd.f32 %v5515_v46, %v4189_v1 }
0x3846   :  { %v4194_v29 = vsel %vm4193_vm7, %v5515_v46, %v4190_v40 }
0x3847   :  { %v4199_v20 = vsel %vm4196_vm9, %v4198_v55, %v4194_v29  ;;  %v5519_v4 = vpop.eup %5518 }
0x3848   :  { %v4202_v62 = vmul.f32 %v5519_v4, %v4185_v38  ;;  %vm4207_vm10 = vweird.f32 %v5519_v4  ;;  %v4218_v45 = vmul.f32 %v4199_v20, %v6562_v36 }
0x3849   :  { %vm4208_vm13 = vmor %vm4206_vm12, %vm4207_vm10 }
0x384a   :  { %v4203_v50 = vsub.f32 1.0, %v4202_v62 }
0x384c   :  { %v4204_v58 = vmul.f32 %v5519_v4, %v4203_v50 }
0x384e   :  { %v4205_v63 = vadd.f32 %v5519_v4, %v4204_v58 }
0x3850   :  { %v4209_v3 = vsel %vm4208_vm13, %v5519_v4, %v4205_v63 }
0x3851   :  { %v4214_v11 = vsel %vm4211_vm14, %v4213_v35, %v4209_v3 }
0x3852   :  { %v4219_v60 = vmul.f32 %v4214_v11, %v6566_v48  ;;  %v6599_v48 = vld [vmem:[%s6650_s3 + $0x2] ss:$0 sm:$0xff] }
0x3853   :  { %v3623_v5 = vadd.f32 %v6599_v48, %v6438_v6  ;;  %v3625_v61 = vadd.f32 %v6599_v48, %v6440_v51 }
0x3886   :  { %v4223_v7 = vpop.permute.xlu2 %4222 }
0x3887   :  { %v4228_v52 = vmul.f32 %v4223_v7, %v4199_v20 }
0x3889   :  { %4232 = vrot.lane.b32.xlu1 %v4228_v52, %s5644_s0 }
0x38a6   :  { %v4225_v56 = vpop.permute.xlu0 %4224 }
0x38a7   :  { %v4229_v42 = vmul.f32 %v4225_v56, %v4214_v11 }
0x38a9   :  { %4234 = vrot.lane.b32.xlu2 %v4229_v42, %s5644_s0 }
0x38fb   :  { %v4233_v17 = vpop.permute.xlu1 %4232 }
0x38fc   :  { %v6585_v43 = vadd.f32 %v4233_v17, %v4218_v45 }
0x38fe   :  { %5520 = vtanh.f32 %v6585_v43 }
0x3903   :  { %v4235_v31 = vpop.permute.xlu2 %4234 }
0x3904   :  { %v5521_v44 = vpop.eup %5520  ;;  %v6589_v24 = vadd.f32 %v4235_v31, %v4219_v60 }
0x3905   :  { %4244 = vrot.lane.b32.xlu0 %v5521_v44, %s5637_s7  ;;  %v3628_v44 = vadd.f32 %v6599_v48, %v6442_v15 }
0x3906   :  { %5522 = vtanh.f32 %v6589_v24 }
0x390c   :  { %v5523_v16 = vpop.eup %5522 }
0x390d   :  { %4246 = vrot.lane.b32.xlu1 %v5523_v16, %s5637_s7 }
0x3977   :  { %v4245_v33 = vpop.permute.xlu0 %4244 }
0x3978   :  { %v4250_v14 = vmul.f32 %v4245_v33, %v4199_v20  ;;  %v3630_v33 = vadd.f32 %v6599_v48, %v6444_v8 }
0x397f   :  { %v4247_v36 = vpop.permute.xlu1 %4246 }
0x3980   :  { %v4251_v32 = vmul.f32 %v4247_v36, %v4214_v11 }
0x3982   :  { %v4254_v22 = vpack.c.bf16 %v4251_v32, %v4250_v14 }
0x3984   :  { %4256 = vrot.lane.b32.xlu2 %v4254_v22, %s5644_s0 }
0x39de   :  { %v4257_v49 = vpop.permute.xlu2 %4256 }
0x39df   :  { %4932 = vmatmul.msk.bf16.vlgmr.msrb.gmra.mxu2 %vm91_vm8, %v4257_v49 }
0x3a62   :  { %v4270_v0 = vpop.f32.mrf.mxu2 }
0x3a63   :  { %v4275_v37 = vadd.f32 %v4270_v0, %v3623_v5 }
0x3a65   :  { %5524 = vtanh.f32 %v4275_v37  ;;  %v4933_v53 = vmul.f32 -1.442695, %v4275_v37 }
0x3a6a   :  { %v4272_v57 = vpop.f32.mrf.mxu2 }
0x3a6b   :  { %v5525_v12 = vpop.eup %5524  ;;  %v4276_v23 = vadd.f32 %v4272_v57, %v3625_v61 }
0x3a6c   :  { %4321 = vrot.lane.b32.xlu0 %v5525_v12, %s5637_s7 }
0x3a6d   :  { %5526 = vtanh.f32 %v4276_v23  ;;  %v4934_v9 = vmul.f32 -1.442695, %v4276_v23 }
0x3a6e   :  { %5528 = vpow2.f32 %v4933_v53 }
0x3a6f   :  { %5530 = vpow2.f32 %v4934_v9 }
0x3a73   :  { %v5527_v10 = vpop.eup %5526 }
0x3a74   :  { %4323 = vrot.lane.b32.xlu1 %v5527_v10, %s5637_s7  ;;  %v5529_v26 = vpop.eup %5528 }
0x3a75   :  { %v4283_v6 = vadd.f32 1.0, %v5529_v26  ;;  %v5531_v28 = vpop.eup %5530 }
0x3a76   :  { %v4284_v41 = vadd.f32 1.0, %v5531_v28 }
0x3a77   :  { %5532 = vrcp.f32 %v4283_v6  ;;  %v4296_v19 = vand.u32 2147483648, %v4283_v6  ;;  %vm4290_vm0 = vweird.f32 %v4283_v6  ;;  %v4294_v27 = vand.u32 2147483647, %v4283_v6 }
0x3a78   :  { %5534 = vrcp.f32 %v4284_v41  ;;  %v4311_v38 = vand.u32 2147483648, %v4284_v41  ;;  %vm4305_vm4 = vweird.f32 %v4284_v41  ;;  %v4309_v7 = vand.u32 2147483647, %v4284_v41 }
0x3a79   :  { %v4297_v39 = vor.u32 1.1754944e-38, %v4296_v19  ;;  %vm4295_vm2 = vcmp.eq.f32.partialorder %v4294_v27, 8.507059e+37 }
0x3a7a   :  { %v4312_v52 = vor.u32 1.1754944e-38, %v4311_v38  ;;  %vm4310_vm11 = vcmp.eq.f32.partialorder %v4309_v7, 8.507059e+37 }
0x3a7d   :  { %v5533_v13 = vpop.eup %5532 }
0x3a7e   :  { %v4286_v51 = vmul.f32 %v5533_v13, %v4283_v6  ;;  %v5535_v25 = vpop.eup %5534  ;;  %vm4291_vm15 = vweird.f32 %v5533_v13 }
0x3a7f   :  { %v4301_v30 = vmul.f32 %v5535_v25, %v4284_v41  ;;  %vm4292_vm1 = vmor %vm4290_vm0, %vm4291_vm15  ;;  %vm4306_vm3 = vweird.f32 %v5535_v25  ;;  %vm4491_vm0 = vcmask 7168  }
0x3a80   :  { %v4287_v21 = vsub.f32 1.0, %v4286_v51  ;;  %vm4307_vm5 = vmor %vm4305_vm4, %vm4306_vm3 }
0x3a81   :  { %v4302_v34 = vsub.f32 1.0, %v4301_v30 }
0x3a82   :  { %v4288_v54 = vmul.f32 %v5533_v13, %v4287_v21 }
0x3a83   :  { %v4303_v40 = vmul.f32 %v5535_v25, %v4302_v34 }
0x3a84   :  { %v4289_v46 = vadd.f32 %v5533_v13, %v4288_v54 }
0x3a85   :  { %v4304_v55 = vadd.f32 %v5535_v25, %v4303_v40 }
0x3a86   :  { %v4293_v1 = vsel %vm4292_vm1, %v5533_v13, %v4289_v46 }
0x3a87   :  { %v4298_v2 = vsel %vm4295_vm2, %v4297_v39, %v4293_v1  ;;  %v4308_v20 = vsel %vm4307_vm5, %v5535_v25, %v4304_v55 }
0x3a88   :  { %v4313_v62 = vsel %vm4310_vm11, %v4312_v52, %v4308_v20  ;;  %v4317_v58 = vmul.f32 %v4298_v2, %v6585_v43  ;;  %v5028_v52 = vld [vmem:[%s6651_s4 + $0x8] sm:$0xff] }
0x3a89   :  { %v4318_v3 = vmul.f32 %v4313_v62, %v6589_v24  ;;  %4483 = vmatpush.bf16.msra.mxu0 %v5028_v52 }
0x3ade   :  { %v4322_v59 = vpop.permute.xlu0 %4321 }
0x3adf   :  { %v4327_v29 = vmul.f32 %v4322_v59, %v4298_v2 }
0x3ae1   :  { %4331 = vrot.lane.b32.xlu2 %v4327_v29, %s5644_s0 }
0x3ae6   :  { %v4324_v4 = vpop.permute.xlu1 %4323 }
0x3ae7   :  { %v4328_v50 = vmul.f32 %v4324_v4, %v4313_v62  ;;  %v5027_v4 = vld [vmem:[%s6651_s4] sm:$0xff] }
0x3ae8   :  { %4484 = vmatpush.bf16.msra.mxu0 %v5027_v4 }
0x3ae9   :  { %4333 = vrot.lane.b32.xlu0 %v4328_v50, %s5644_s0 }
0x3b3b   :  { %v4332_v63 = vpop.permute.xlu2 %4331 }
0x3b3c   :  { %v6610_v47 = vadd.f32 %v4332_v63, %v4317_v58 }
0x3b3e   :  { %5536 = vtanh.f32 %v6610_v47 }
0x3b44   :  { %v5537_v18 = vpop.eup %5536 }
0x3b45   :  { %4343 = vrot.lane.b32.xlu1 %v5537_v18, %s5637_s7 }
0x3b5b   :  { %v4334_v35 = vpop.permute.xlu0 %4333 }
0x3b5c   :  { %v6615_v56 = vadd.f32 %v4334_v35, %v4318_v3  ;;  %v5043_v3 = vld [vmem:[#allocation4] ss:$0 sm:$0xff] }
0x3b5e   :  { %5538 = vtanh.f32 %v6615_v56 }
0x3b64   :  { %v5539_v11 = vpop.eup %5538 }
0x3b65   :  { %4345 = vrot.lane.b32.xlu2 %v5539_v11, %s5637_s7 }
0x3bb7   :  { %v4344_v42 = vpop.permute.xlu1 %4343 }
0x3bb8   :  { %v4349_v17 = vmul.f32 %v4344_v42, %v4298_v2 }
0x3bbf   :  { %v4346_v45 = vpop.permute.xlu2 %4345 }
0x3bc0   :  { %v4350_v43 = vmul.f32 %v4346_v45, %v4313_v62 }
0x3bc2   :  { %v4353_v60 = vpack.c.bf16 %v4350_v43, %v4349_v17 }
0x3bc4   :  { %4355 = vrot.lane.b32.xlu0 %v4353_v60, %s5644_s0 }
0x3c36   :  { %v4356_v31 = vpop.permute.xlu0 %4355 }
0x3c37   :  { %4935 = vmatmul.msk.bf16.vlgmr.msra.gmra.mxu3 %vm91_vm8, %v4356_v31 }
0x3cba   :  { %v4369_v24 = vpop.f32.mrf.mxu3 }
0x3cbb   :  { %v4374_v16 = vadd.f32 %v4369_v24, %v3628_v44 }
0x3cbd   :  { %5540 = vtanh.f32 %v4374_v16  ;;  %v4936_v15 = vmul.f32 -1.442695, %v4374_v16 }
0x3cc2   :  { %v4371_v36 = vpop.f32.mrf.mxu3 }
0x3cc3   :  { %v5541_v14 = vpop.eup %5540  ;;  %v4375_v32 = vadd.f32 %v4371_v36, %v3630_v33 }
0x3cc4   :  { %4420 = vrot.lane.b32.xlu1 %v5541_v14, %s5637_s7 }
0x3cc5   :  { %5542 = vtanh.f32 %v4375_v32  ;;  %v4937_v49 = vmul.f32 -1.442695, %v4375_v32 }
0x3cc7   :  { %5544 = vpow2.f32 %v4937_v49 }
0x3ccb   :  { %v5543_v22 = vpop.eup %5542 }
0x3ccc   :  { %4422 = vrot.lane.b32.xlu2 %v5543_v22, %s5637_s7 }
0x3ccd   :  { %v5545_v5 = vpop.eup %5544 }
0x3cce   :  { %v4383_v0 = vadd.f32 1.0, %v5545_v5 }
0x3cd0   :  { %5546 = vrcp.f32 %v4383_v0  ;;  %v4410_v53 = vand.u32 2147483648, %v4383_v0  ;;  %vm4404_vm7 = vweird.f32 %v4383_v0  ;;  %v4408_v9 = vand.u32 2147483647, %v4383_v0 }
0x3cd1   :  { %5548 = vpow2.f32 %v4936_v15 }
0x3cd2   :  { %v4411_v28 = vor.u32 1.1754944e-38, %v4410_v53  ;;  %vm4409_vm10 = vcmp.eq.f32.partialorder %v4408_v9, 8.507059e+37 }
0x3cd6   :  { %v5547_v37 = vpop.eup %5546 }
0x3cd7   :  { %v5549_v61 = vpop.eup %5548  ;;  %v4400_v57 = vmul.f32 %v5547_v37, %v4383_v0  ;;  %vm4405_vm6 = vweird.f32 %v5547_v37 }
0x3cd8   :  { %v4382_v8 = vadd.f32 1.0, %v5549_v61  ;;  %vm4406_vm9 = vmor %vm4404_vm7, %vm4405_vm6 }
0x3cd9   :  { %v4401_v48 = vsub.f32 1.0, %v4400_v57 }
0x3cda   :  { %5550 = vrcp.f32 %v4382_v8  ;;  %v4395_v30 = vand.u32 2147483648, %v4382_v8  ;;  %vm4389_vm13 = vweird.f32 %v4382_v8  ;;  %v4393_v46 = vand.u32 2147483647, %v4382_v8 }
0x3cdb   :  { %v4402_v12 = vmul.f32 %v5547_v37, %v4401_v48 }
0x3cdc   :  { %v4396_v19 = vor.u32 1.1754944e-38, %v4395_v30  ;;  %vm4394_vm15 = vcmp.eq.f32.partialorder %v4393_v46, 8.507059e+37 }
0x3cdd   :  { %v4403_v23 = vadd.f32 %v5547_v37, %v4402_v12 }
0x3cdf   :  { %v4407_v26 = vsel %vm4406_vm9, %v5547_v37, %v4403_v23 }
0x3ce0   :  { %v5551_v10 = vpop.eup %5550  ;;  %v4412_v13 = vsel %vm4409_vm10, %v4411_v28, %v4407_v26 }
0x3ce1   :  { %v4385_v6 = vmul.f32 %v5551_v10, %v4382_v8  ;;  %vm4390_vm12 = vweird.f32 %v5551_v10  ;;  %v4417_v39 = vmul.f32 %v4412_v13, %v6615_v56 }
0x3ce2   :  { %vm4391_vm14 = vmor %vm4389_vm13, %vm4390_vm12 }
0x3ce3   :  { %v4386_v21 = vsub.f32 1.0, %v4385_v6 }
0x3ce5   :  { %v4387_v25 = vmul.f32 %v5551_v10, %v4386_v21 }
0x3ce7   :  { %v4388_v54 = vadd.f32 %v5551_v10, %v4387_v25 }
0x3ce9   :  { %v4392_v34 = vsel %vm4391_vm14, %v5551_v10, %v4388_v54 }
0x3cea   :  { %v4397_v1 = vsel %vm4394_vm15, %v4396_v19, %v4392_v34 }
0x3ceb   :  { %v4416_v55 = vmul.f32 %v4397_v1, %v6610_v47 }
0x3d26   :  { %v4423_v41 = vpop.permute.xlu2 %4422 }
0x3d27   :  { %v4427_v51 = vmul.f32 %v4423_v41, %v4412_v13 }
0x3d29   :  { %4432 = vrot.lane.b32.xlu1 %v4427_v51, %s5644_s0 }
0x3d36   :  { %v4421_v27 = vpop.permute.xlu1 %4420 }
0x3d37   :  { %v4426_v40 = vmul.f32 %v4421_v27, %v4397_v1 }
0x3d39   :  { %4430 = vrot.lane.b32.xlu0 %v4426_v40, %s5644_s0 }
0x3d9b   :  { %v4433_v59 = vpop.permute.xlu1 %4432 }
0x3d9c   :  { %v4437_v2 = vadd.f32 %v4433_v59, %v4417_v39 }
0x3d9e   :  { %5552 = vtanh.f32 %v4437_v2 }
0x3da4   :  { %v5553_v29 = vpop.eup %5552 }
0x3da5   :  { %4444 = vrot.lane.b32.xlu0 %v5553_v29, %s5637_s7 }
0x3dab   :  { %v4431_v38 = vpop.permute.xlu0 %4430 }
0x3dac   :  { %v4436_v7 = vadd.f32 %v4431_v38, %v4416_v55 }
0x3dae   :  { %5554 = vtanh.f32 %v4436_v7 }
0x3db4   :  { %v5555_v20 = vpop.eup %5554 }
0x3db5   :  { %4442 = vrot.lane.b32.xlu2 %v5555_v20, %s5637_s7 }
0x3e0f   :  { %v4443_v62 = vpop.permute.xlu2 %4442 }
0x3e10   :  { %v4448_v58 = vmul.f32 %v4443_v62, %v4397_v1 }
0x3e17   :  { %v4445_v50 = vpop.permute.xlu0 %4444 }
0x3e18   :  { %v4449_v63 = vmul.f32 %v4445_v50, %v4412_v13 }
0x3e1a   :  { %v4450_v47 = vpack.c.bf16 %v4449_v63, %v4448_v58 }
0x3e1c   :  { %4460 = vrot.lane.b32.xlu1 %v4450_v47, %s5644_s0 }
0x3e8e   :  { %v4461_v18 = vpop.permute.xlu1 %4460 }
0x3e8f   :  { %4946 = vmatmul.msk.bf16.vlgmr.msra.gmra.mxu0 %vm91_vm8, %v4461_v18 }
0x3f0c   :  { %v4486_v35 = vpop.f32.mrf.mxu0 }
0x3f0d   :  { %v4487_v56 = vadd.f32 %v5043_v3, %v4486_v35 }
0x3f0f   :  { %4492 = vst.msk [vmem:[%s6653_s6] sm:$0xff] %vm4491_vm0, %v4487_v56 }
0x3f14   :  { %v4488_v11 = vpop.f32.mrf.mxu0 }
0x3f15   :  { %v4489_v42 = vadd.f32 %v5043_v3, %v4488_v11 }
0x3f17   :  { %4493 = vst.msk [vmem:[%s6653_s6 + $0x8] sm:$0xff] %vm4491_vm0, %v4489_v42 }
0x3f18   :  { %4498 = vsyncpa [#allocation6], 1 }
0x3f19   :  { %4499 = vsyncpa [#allocation8], 1 }

</bundles_post_ra>
